<compile_context>
chip_gen: v7x
topology: tpu7x:2x2x1
jax: 0.10.0
libtpu: 0.0.40
codegen_flags: <defaults>
</compile_context>

<pallas_src>
import jax
import jax.numpy as jnp
import numpy as np
from jax import lax
from jax.experimental import pallas as pl
from jax.experimental.pallas import tpu as pltpu

NEG_SLOPE = 0.01                  # nn.LeakyReLU() default negative_slope
IMG = 28                          # input H = W
HW = IMG * IMG                    # 784 flat pixels / image
PAD = 64                          # a1 scratch tail padding (covers max tap offset 58)
K1 = 16                           # conv1 im2col K (9 real taps + 7 zero columns)
TAP_OFF = tuple(dy * IMG + dx for dy in range(3) for dx in range(3))
POOL_HW = 12                      # pooled spatial size
N_POOL = POOL_HW * POOL_HW        # 144 pool positions / image
K_FC = N_POOL * 64                # 9216 FC input features / image
KC_FC = 1152                      # FC K chunk (9216 / 1152 = 8, multiple of 128)


def _leaky(x):
    return jnp.where(x > 0, x, NEG_SLOPE * x)


# --------------------------------------------------------------------------------------
# Kernel 1: conv1 + LeakyReLU + conv2 + LeakyReLU + 2x2 max-pool (compact) for bt images.
# Flat row index r = b*784 + 28*h + w; invalid border rows are over-computed garbage that
# never reaches the compact pooled output (only rows 56*i + 2*j, i,j < 12 are gathered).
# --------------------------------------------------------------------------------------
def make_conv_pool_kernel(bt):
    m_tot = bt * HW               # flat rows per grid step
    r1 = 448                      # conv1 row chunk (m_tot % 448 == 0 for bt in {4, 8})
    r2 = 224                      # conv2 row chunk
    assert m_tot % r1 == 0 and m_tot % r2 == 0

    def kernel(xcol_ref, w1_ref, b1_ref, w2_ref, b2_ref, o_ref, a1_ref, a2_ref):
        # xcol_ref: (1, m_tot, 16) bf16   host-built 9-tap im2col (7 zero cols)
        # w1_ref  : (16, 32) bf16         conv1 weights, tap-major (+ zero rows)
        # b1_ref  : (1, 32)  f32
        # w2_ref  : (3, 96, 64) bf16      conv2 weights grouped per dy, rows = dx*32 + cin
        # b2_ref  : (1, 64)  f32
        # o_ref   : (1, bt*144, 64) bf16  compact pooled output (row b*144 + 12*i + j)
        # a1_ref  : (m_tot+PAD, 32) f32   conv1 activations (VMEM scratch)
        # a2_ref  : (m_tot, 64) f32       conv2 activations (VMEM scratch)
        w1 = w1_ref[...]
        b1 = b1_ref[...]
        b2 = b2_ref[...]

        # ---- conv1 + LeakyReLU: one (r1, 16) @ (16, 32) matmul per chunk ----
        def c1(i, carry):
            r0 = pl.multiple_of(i * r1, 32)
            acc = jnp.dot(xcol_ref[0, pl.ds(r0, r1), :], w1,
                          preferred_element_type=jnp.float32)
            a1_ref[pl.ds(r0, r1), :] = _leaky(acc + b1)
            return carry

        lax.fori_loop(0, m_tot // r1, c1, 0)
        # Zero the tail so the last image's shifted reads never see uninitialized VMEM.
        a1_ref[m_tot:m_tot + PAD, :] = jnp.zeros((PAD, 32), jnp.float32)

        # ---- conv2 + LeakyReLU: per chunk, 3 per-dy K=96 matmuls built from one aligned
        #      slab load each (3 dx-shifted value slices lane-concatenated). ----
        def c2(i, carry):
            r0 = pl.multiple_of(i * r2, 32)
            acc = jnp.zeros((r2, 64), jnp.float32)
            for dy in range(3):
                slab = a1_ref[pl.ds(r0 + dy * IMG, r2 + 2), :]          # (r2+2, 32) f32
                lhs = jnp.concatenate(
                    [slab[dx:dx + r2, :].astype(jnp.bfloat16) for dx in range(3)],
                    axis=1)                                             # (r2, 96) bf16
                acc = acc + jnp.dot(lhs, w2_ref[dy],
                                    preferred_element_type=jnp.float32)
            a2_ref[pl.ds(r0, r2), :] = _leaky(acc + b2)
            return carry

        lax.fori_loop(0, m_tot // r2, c2, 0)

        # ---- 2x2 max-pool (stride 2), compact: per (image b, pooled row i) gather the
        #      12 stride-2 positions with strided ref loads and store 12 compact rows. ----
        for b in range(bt):
            for i in range(POOL_HW):
                base = b * HW + 56 * i
                m = a2_ref[pl.ds(base, POOL_HW, stride=2), :]
                m = jnp.maximum(m, a2_ref[pl.ds(base + 1, POOL_HW, stride=2), :])
                m = jnp.maximum(m, a2_ref[pl.ds(base + IMG, POOL_HW, stride=2), :])
                m = jnp.maximum(m, a2_ref[pl.ds(base + IMG + 1, POOL_HW, stride=2), :])
                o_ref[0, pl.ds(b * N_POOL + POOL_HW * i, POOL_HW), :] = (
                    m.astype(jnp.bfloat16))

    return kernel


# --------------------------------------------------------------------------------------
# Kernel 2: fully connected layer, x @ W^T + b with a K-chunked loop (W is lane-dense).
# --------------------------------------------------------------------------------------
def fc_kernel(x_ref, wt_ref, b_ref, o_ref):
    # x_ref: (bt_fc, 9216) bf16   wt_ref: (10, 9216) bf16   b_ref: (1, 10) f32
    acc = jnp.zeros((x_ref.shape[0], 10), jnp.float32)
    for k0 in range(0, K_FC, KC_FC):
        acc = acc + lax.dot_general(
            x_ref[:, k0:k0 + KC_FC], wt_ref[:, k0:k0 + KC_FC],
            (((1,), (1,)), ((), ())),
            preferred_element_type=jnp.float32)
    o_ref[...] = acc + b_ref[...]


# --------------------------------------------------------------------------------------
# Wrapper
# --------------------------------------------------------------------------------------
def my_awesome_model(x_nchw, params):
    if x_nchw.ndim != 4:
        raise ValueError("Expected input to be a 4D tensor")
    if tuple(x_nchw.shape[1:]) != (1, 28, 28):
        raise ValueError("Expected each sample to have shape (1, 28, 28)")

    w1, b1 = params["w1"], params["b1"]        # (3,3,1,32) HWIO, (1,32)
    w2, b2 = params["w2"], params["b2"]        # (3,3,32,64) HWIO, (1,64)
    wfc, bfc = params["wfc"], params["bfc"]    # (9216,10) PyTorch flatten order, (1,10)

    B = x_nchw.shape[0]
    bt = 4 if B <= 16 else 8                   # >=2 grid steps for small batches (v7x)
    g = pl.cdiv(B, bt)
    b_pad = g * bt
    m_tot = bt * HW

    # ----- host-side layout prep (cheap XLA ops) -----
    xf = x_nchw.reshape(B, HW).astype(jnp.float32)
    xf = jnp.pad(xf, ((0, b_pad - B), (0, 0)))
    xflat = jnp.pad(xf.reshape(b_pad * HW), (0, PAD))
    xcol = jnp.stack([xflat[off:off + b_pad * HW] for off in TAP_OFF], axis=1)
    xcol = jnp.pad(xcol, ((0, 0), (0, K1 - 9)))
    xcol = xcol.astype(jnp.bfloat16).reshape(g, m_tot, K1)

    w1k = jnp.pad(w1.reshape(9, 32), ((0, K1 - 9), (0, 0))).astype(jnp.bfloat16)
    w2k = w2.reshape(3, 96, 64).astype(jnp.bfloat16)       # (dy, dx*32+cin, cout)
    b1k = b1.reshape(1, 32).astype(jnp.float32)
    b2k = b2.reshape(1, 64).astype(jnp.float32)

    pooled = pl.pallas_call(
        make_conv_pool_kernel(bt),
        out_shape=jax.ShapeDtypeStruct((g, bt * N_POOL, 64), jnp.bfloat16),
        grid=(g,),
        in_specs=[
            pl.BlockSpec((1, m_tot, K1), lambda i: (i, 0, 0)),
            pl.BlockSpec((K1, 32), lambda i: (0, 0)),
            pl.BlockSpec((1, 32), lambda i: (0, 0)),
            pl.BlockSpec((3, 96, 64), lambda i: (0, 0, 0)),
            pl.BlockSpec((1, 64), lambda i: (0, 0)),
        ],
        out_specs=pl.BlockSpec((1, bt * N_POOL, 64), lambda i: (i, 0, 0)),
        scratch_shapes=[
            pltpu.VMEM((m_tot + PAD, 32), jnp.float32),
            pltpu.VMEM((m_tot, 64), jnp.float32),
        ],
        compiler_params=pltpu.CompilerParams(
            dimension_semantics=("parallel",),
            vmem_limit_bytes=32 * 1024 * 1024),
    )(xcol, w1k, b1k, w2k, b2k)

    # ----- FC: reorder the original (9216, 10) weight to the kernel's pooled order -----
    # PyTorch flatten index p = c*144 + pr  ->  kernel feature index q = pr*64 + c
    w_k = wfc.reshape(64, N_POOL, 10).transpose(1, 0, 2).reshape(K_FC, 10)
    wt = w_k.T.astype(jnp.bfloat16)                         # (10, 9216), lane-dense

    x_fc = pooled.reshape(b_pad, K_FC)                      # free row-major reshape

    if b_pad <= 8:
        bt_fc = b_pad
    elif b_pad < 32:
        bt_fc = 8
    else:
        bt_fc = 32
    b_pad2 = pl.cdiv(b_pad, bt_fc) * bt_fc
    if b_pad2 != b_pad:
        x_fc = jnp.pad(x_fc, ((0, b_pad2 - b_pad), (0, 0)))

    out = pl.pallas_call(
        fc_kernel,
        out_shape=jax.ShapeDtypeStruct((b_pad2, 10), jnp.float32),
        grid=(b_pad2 // bt_fc,),
        in_specs=[
            pl.BlockSpec((bt_fc, K_FC), lambda i: (i, 0)),
            pl.BlockSpec((10, K_FC), lambda i: (0, 0)),
            pl.BlockSpec((1, 10), lambda i: (0, 0)),
        ],
        out_specs=pl.BlockSpec((bt_fc, 10), lambda i: (i, 0)),
        compiler_params=pltpu.CompilerParams(dimension_semantics=("parallel",)),
    )(x_fc, wt, bfc.reshape(1, 10).astype(jnp.float32))

    return out[:B]


# --------------------------------------------------------------------------------------
# Pure-JAX reference (sanity check of the Pallas path)
# --------------------------------------------------------------------------------------
def reference_model(x_nchw, params):
    x = jnp.transpose(x_nchw, (0, 2, 3, 1)).astype(jnp.float32)
    dn1 = lax.conv_dimension_numbers(x.shape, params["w1"].shape, ("NHWC", "HWIO", "NHWC"))
    a1 = lax.conv_general_dilated(x, params["w1"], (1, 1), "VALID",
                                  dimension_numbers=dn1,
                                  precision=lax.Precision.HIGHEST)
    a1 = _leaky(a1 + params["b1"].reshape(1, 1, 1, 32))
    dn2 = lax.conv_dimension_numbers(a1.shape, params["w2"].shape, ("NHWC", "HWIO", "NHWC"))
    a2 = lax.conv_general_dilated(a1, params["w2"], (1, 1), "VALID",
                                  dimension_numbers=dn2,
                                  precision=lax.Precision.HIGHEST)
    a2 = _leaky(a2 + params["b2"].reshape(1, 1, 1, 64))
    pool = lax.reduce_window(a2, -jnp.inf, lax.max, (1, 2, 2, 1), (1, 2, 2, 1), "VALID")
    flat = jnp.transpose(pool, (0, 3, 1, 2)).reshape(x.shape[0], -1)
    return jnp.dot(flat, params["wfc"], precision=lax.Precision.HIGHEST) + params["bfc"]


if __name__ == "__main__":
    key = jax.random.PRNGKey(0)
    kx, k1, k2, k3, k4, k5, k6 = jax.random.split(key, 7)

    # Deterministic synthetic parameters (shapes dictated by the module's __init__).
    params = {
        "w1": jax.random.normal(k1, (3, 3, 1, 32), jnp.float32) * 0.1,     # HWIO
        "b1": jax.random.normal(k2, (1, 32), jnp.float32) * 0.1,
        "w2": jax.random.normal(k3, (3, 3, 32, 64), jnp.float32) * 0.05,   # HWIO
        "b2": jax.random.normal(k4, (1, 64), jnp.float32) * 0.05,
        "wfc": jax.random.normal(k5, (64 * 12 * 12, 10), jnp.float32) * 0.01,  # (in, out)
        "bfc": jax.random.normal(k6, (1, 10), jnp.float32) * 0.01,
    }

    # The module requires each sample to be exactly (1, 28, 28); small batch of 8
    # (gives a 2-step conv grid -> both v7x TensorCores + pipeline overlap).
    x = jax.random.normal(kx, (8, 1, 28, 28), jnp.float32)

    model = jax.jit(my_awesome_model)
    out = jax.block_until_ready(model(x, params))
    assert out.shape == (8, 10) and out.dtype == jnp.float32

    ref = jax.block_until_ready(reference_model(x, params))
    # NOTE: MXU operands are bf16 (f32 accumulation), hence the loose tolerance.
    assert np.allclose(np.asarray(out), np.asarray(ref), rtol=2e-2, atol=2e-2), (
        "Pallas output mismatch vs JAX reference")

    print("KERNEL_OK")
</pallas_src>

<mosaic_0001>
module attributes {stable_mosaic.version = 11 : i64} {
  func.func @kernel(%arg0: i32, %arg1: memref<1x3136x16xbf16, #tpu.memory_space<vmem>>, %arg2: memref<16x32xbf16, #tpu.memory_space<vmem>>, %arg3: memref<1x32xf32, #tpu.memory_space<vmem>>, %arg4: memref<3x96x64xbf16, #tpu.memory_space<vmem>>, %arg5: memref<1x64xf32, #tpu.memory_space<vmem>>, %arg6: memref<1x576x64xbf16, #tpu.memory_space<vmem>>, %arg7: memref<3200x32xf32, #tpu.memory_space<vmem>>, %arg8: memref<3136x64xf32, #tpu.memory_space<vmem>>) attributes {dimension_semantics = [#tpu.dimension_semantics<parallel>], iteration_bounds = array<i64: 2>, scalar_prefetch = 0 : i64, scratch_operands = 2 : i64, tpu.core_type = #tpu.core_type<tc>, window_params = [{transform_indices = @transform_0, window_bounds = array<i64: 1, 3136, 16>}, {pipeline_mode = #tpu.pipeline_mode<synchronous>, transform_indices = @transform_1, window_bounds = array<i64: 16, 32>}, {pipeline_mode = #tpu.pipeline_mode<synchronous>, transform_indices = @transform_2, window_bounds = array<i64: 1, 32>}, {pipeline_mode = #tpu.pipeline_mode<synchronous>, transform_indices = @transform_3, window_bounds = array<i64: 3, 96, 64>}, {pipeline_mode = #tpu.pipeline_mode<synchronous>, transform_indices = @transform_4, window_bounds = array<i64: 1, 64>}, {transform_indices = @transform_5, window_bounds = array<i64: 1, 576, 64>}]} {
    %c0 = arith.constant 0 : index
    %c0_0 = arith.constant 0 : index
    %0 = vector.load %arg2[%c0, %c0_0] : memref<16x32xbf16, #tpu.memory_space<vmem>>, vector<16x32xbf16>
    %c0_1 = arith.constant 0 : index
    %c0_2 = arith.constant 0 : index
    %1 = vector.load %arg3[%c0_1, %c0_2] : memref<1x32xf32, #tpu.memory_space<vmem>>, vector<1x32xf32>
    %c0_3 = arith.constant 0 : index
    %c0_4 = arith.constant 0 : index
    %2 = vector.load %arg5[%c0_3, %c0_4] : memref<1x64xf32, #tpu.memory_space<vmem>>, vector<1x64xf32>
    %c0_i32 = arith.constant 0 : i32
    %c7_i32 = arith.constant 7 : i32
    %3 = arith.addi %c0_i32, %c7_i32 : i32
    %c1_i32 = arith.constant 1 : i32
    scf.for %arg9 = %c0_i32 to %3 step %c1_i32  : i32 {
      %c448_i32 = arith.constant 448 : i32
      %535 = arith.muli %arg9, %c448_i32 : i32
      %536 = tpu.assume_multiple %535, 32 : i32
      %c0_306 = arith.constant 0 : index
      %537 = arith.index_cast %536 : i32 to index
      %c0_307 = arith.constant 0 : index
      %538 = vector.load %arg1[%c0_306, %537, %c0_307] : memref<1x3136x16xbf16, #tpu.memory_space<vmem>>, vector<1x448x16xbf16>
      %539 = vector.shape_cast %538 : vector<1x448x16xbf16> to vector<448x16xbf16>
      %cst_308 = arith.constant dense<0.000000e+00> : vector<448x32xf32>
      %540 = tpu.matmul %539, %0, %cst_308 {dimension_numbers = #tpu.dot_dimension_numbers<[1], [0], [0], [1], [0, 0, 1, 1], [], []>} : vector<448x16xbf16>, vector<16x32xbf16>, vector<448x32xf32> -> vector<448x32xf32>
      %541 = vector.broadcast %1 : vector<1x32xf32> to vector<448x32xf32>
      %542 = arith.addf %540, %541 : vector<448x32xf32>
      %cst_309 = arith.constant 0.000000e+00 : f32
      %543 = vector.broadcast %cst_309 : f32 to vector<448x32xf32>
      %544 = arith.cmpf ogt, %542, %543 : vector<448x32xf32>
      %cst_310 = arith.constant 0.00999999977 : f32
      %545 = vector.broadcast %cst_310 : f32 to vector<448x32xf32>
      %546 = arith.mulf %545, %542 : vector<448x32xf32>
      %547 = arith.select %544, %542, %546 : vector<448x32xi1>, vector<448x32xf32>
      %548 = arith.index_cast %536 : i32 to index
      %c0_311 = arith.constant 0 : index
      %549 = vector.load %arg7[%548, %c0_311] : memref<3200x32xf32, #tpu.memory_space<vmem>>, vector<448x32xf32>
      tpu.vector_store %arg7[%548, %c0_311], %547 {strides = array<i32>} : memref<3200x32xf32, #tpu.memory_space<vmem>>, vector<448x32xf32>,
    }
    %c7_i32_5 = arith.constant 7 : i32
    %cst = arith.constant 0.000000e+00 : f32
    %4 = vector.broadcast %cst : f32 to vector<64x32xf32>
    %c3136 = arith.constant 3136 : index
    %c0_6 = arith.constant 0 : index
    %5 = vector.load %arg7[%c3136, %c0_6] : memref<3200x32xf32, #tpu.memory_space<vmem>>, vector<64x32xf32>
    tpu.vector_store %arg7[%c3136, %c0_6], %4 {strides = array<i32>} : memref<3200x32xf32, #tpu.memory_space<vmem>>, vector<64x32xf32>,
    %c0_i32_7 = arith.constant 0 : i32
    %c14_i32 = arith.constant 14 : i32
    %6 = arith.addi %c0_i32_7, %c14_i32 : i32
    %c1_i32_8 = arith.constant 1 : i32
    scf.for %arg9 = %c0_i32_7 to %6 step %c1_i32_8  : i32 {
      %c224_i32 = arith.constant 224 : i32
      %535 = arith.muli %arg9, %c224_i32 : i32
      %536 = tpu.assume_multiple %535, 32 : i32
      %cst_306 = arith.constant 0.000000e+00 : f32
      %537 = vector.broadcast %cst_306 : f32 to vector<224x64xf32>
      %c0_i32_307 = arith.constant 0 : i32
      %538 = arith.addi %536, %c0_i32_307 : i32
      %539 = arith.index_cast %538 : i32 to index
      %c0_308 = arith.constant 0 : index
      %540 = vector.load %arg7[%539, %c0_308] : memref<3200x32xf32, #tpu.memory_space<vmem>>, vector<226x32xf32>
      %541 = vector.extract_strided_slice %540 {offsets = [0, 0], sizes = [224, 32], strides = [1, 1]} : vector<226x32xf32> to vector<224x32xf32>
      %542 = arith.truncf %541 : vector<224x32xf32> to vector<224x32xbf16>
      %543 = vector.extract_strided_slice %540 {offsets = [1, 0], sizes = [224, 32], strides = [1, 1]} : vector<226x32xf32> to vector<224x32xf32>
      %544 = arith.truncf %543 : vector<224x32xf32> to vector<224x32xbf16>
      %545 = vector.extract_strided_slice %540 {offsets = [2, 0], sizes = [224, 32], strides = [1, 1]} : vector<226x32xf32> to vector<224x32xf32>
      %546 = arith.truncf %545 : vector<224x32xf32> to vector<224x32xbf16>
      %547 = tpu.concatenate %542, %544, %546 in 1 : vector<224x32xbf16>, vector<224x32xbf16>, vector<224x32xbf16> -> vector<224x96xbf16>
      %c0_309 = arith.constant 0 : index
      %c0_310 = arith.constant 0 : index
      %c0_311 = arith.constant 0 : index
      %548 = vector.load %arg4[%c0_309, %c0_310, %c0_311] : memref<3x96x64xbf16, #tpu.memory_space<vmem>>, vector<1x96x64xbf16>
      %549 = vector.shape_cast %548 : vector<1x96x64xbf16> to vector<96x64xbf16>
      %cst_312 = arith.constant dense<0.000000e+00> : vector<224x64xf32>
      %550 = tpu.matmul %547, %549, %cst_312 {dimension_numbers = #tpu.dot_dimension_numbers<[1], [0], [0], [1], [0, 0, 1, 1], [], []>} : vector<224x96xbf16>, vector<96x64xbf16>, vector<224x64xf32> -> vector<224x64xf32>
      %551 = arith.addf %537, %550 : vector<224x64xf32>
      %c28_i32 = arith.constant 28 : i32
      %552 = arith.addi %536, %c28_i32 : i32
      %553 = arith.index_cast %552 : i32 to index
      %c0_313 = arith.constant 0 : index
      %554 = vector.load %arg7[%553, %c0_313] : memref<3200x32xf32, #tpu.memory_space<vmem>>, vector<226x32xf32>
      %555 = vector.extract_strided_slice %554 {offsets = [0, 0], sizes = [224, 32], strides = [1, 1]} : vector<226x32xf32> to vector<224x32xf32>
      %556 = arith.truncf %555 : vector<224x32xf32> to vector<224x32xbf16>
      %557 = vector.extract_strided_slice %554 {offsets = [1, 0], sizes = [224, 32], strides = [1, 1]} : vector<226x32xf32> to vector<224x32xf32>
      %558 = arith.truncf %557 : vector<224x32xf32> to vector<224x32xbf16>
      %559 = vector.extract_strided_slice %554 {offsets = [2, 0], sizes = [224, 32], strides = [1, 1]} : vector<226x32xf32> to vector<224x32xf32>
      %560 = arith.truncf %559 : vector<224x32xf32> to vector<224x32xbf16>
      %561 = tpu.concatenate %556, %558, %560 in 1 : vector<224x32xbf16>, vector<224x32xbf16>, vector<224x32xbf16> -> vector<224x96xbf16>
      %c1_314 = arith.constant 1 : index
      %c0_315 = arith.constant 0 : index
      %c0_316 = arith.constant 0 : index
      %562 = vector.load %arg4[%c1_314, %c0_315, %c0_316] : memref<3x96x64xbf16, #tpu.memory_space<vmem>>, vector<1x96x64xbf16>
      %563 = vector.shape_cast %562 : vector<1x96x64xbf16> to vector<96x64xbf16>
      %cst_317 = arith.constant dense<0.000000e+00> : vector<224x64xf32>
      %564 = tpu.matmul %561, %563, %cst_317 {dimension_numbers = #tpu.dot_dimension_numbers<[1], [0], [0], [1], [0, 0, 1, 1], [], []>} : vector<224x96xbf16>, vector<96x64xbf16>, vector<224x64xf32> -> vector<224x64xf32>
      %565 = arith.addf %551, %564 : vector<224x64xf32>
      %c56_i32 = arith.constant 56 : i32
      %566 = arith.addi %536, %c56_i32 : i32
      %567 = arith.index_cast %566 : i32 to index
      %c0_318 = arith.constant 0 : index
      %568 = vector.load %arg7[%567, %c0_318] : memref<3200x32xf32, #tpu.memory_space<vmem>>, vector<226x32xf32>
      %569 = vector.extract_strided_slice %568 {offsets = [0, 0], sizes = [224, 32], strides = [1, 1]} : vector<226x32xf32> to vector<224x32xf32>
      %570 = arith.truncf %569 : vector<224x32xf32> to vector<224x32xbf16>
      %571 = vector.extract_strided_slice %568 {offsets = [1, 0], sizes = [224, 32], strides = [1, 1]} : vector<226x32xf32> to vector<224x32xf32>
      %572 = arith.truncf %571 : vector<224x32xf32> to vector<224x32xbf16>
      %573 = vector.extract_strided_slice %568 {offsets = [2, 0], sizes = [224, 32], strides = [1, 1]} : vector<226x32xf32> to vector<224x32xf32>
      %574 = arith.truncf %573 : vector<224x32xf32> to vector<224x32xbf16>
      %575 = tpu.concatenate %570, %572, %574 in 1 : vector<224x32xbf16>, vector<224x32xbf16>, vector<224x32xbf16> -> vector<224x96xbf16>
      %c2 = arith.constant 2 : index
      %c0_319 = arith.constant 0 : index
      %c0_320 = arith.constant 0 : index
      %576 = vector.load %arg4[%c2, %c0_319, %c0_320] : memref<3x96x64xbf16, #tpu.memory_space<vmem>>, vector<1x96x64xbf16>
      %577 = vector.shape_cast %576 : vector<1x96x64xbf16> to vector<96x64xbf16>
      %cst_321 = arith.constant dense<0.000000e+00> : vector<224x64xf32>
      %578 = tpu.matmul %575, %577, %cst_321 {dimension_numbers = #tpu.dot_dimension_numbers<[1], [0], [0], [1], [0, 0, 1, 1], [], []>} : vector<224x96xbf16>, vector<96x64xbf16>, vector<224x64xf32> -> vector<224x64xf32>
      %579 = arith.addf %565, %578 : vector<224x64xf32>
      %580 = vector.broadcast %2 : vector<1x64xf32> to vector<224x64xf32>
      %581 = arith.addf %579, %580 : vector<224x64xf32>
      %cst_322 = arith.constant 0.000000e+00 : f32
      %582 = vector.broadcast %cst_322 : f32 to vector<224x64xf32>
      %583 = arith.cmpf ogt, %581, %582 : vector<224x64xf32>
      %cst_323 = arith.constant 0.00999999977 : f32
      %584 = vector.broadcast %cst_323 : f32 to vector<224x64xf32>
      %585 = arith.mulf %584, %581 : vector<224x64xf32>
      %586 = arith.select %583, %581, %585 : vector<224x64xi1>, vector<224x64xf32>
      %587 = arith.index_cast %536 : i32 to index
      %c0_324 = arith.constant 0 : index
      %588 = vector.load %arg8[%587, %c0_324] : memref<3136x64xf32, #tpu.memory_space<vmem>>, vector<224x64xf32>
      tpu.vector_store %arg8[%587, %c0_324], %586 {strides = array<i32>} : memref<3136x64xf32, #tpu.memory_space<vmem>>, vector<224x64xf32>,
    }
    %c14_i32_9 = arith.constant 14 : i32
    %c0_10 = arith.constant 0 : index
    %c0_11 = arith.constant 0 : index
    %7 = tpu.strided_load %arg8[%c0_10, %c0_11] {strides = array<i32: 2, 1>} : memref<3136x64xf32, #tpu.memory_space<vmem>>, vector<12x64xf32>
    %c1 = arith.constant 1 : index
    %c0_12 = arith.constant 0 : index
    %8 = tpu.strided_load %arg8[%c1, %c0_12] {strides = array<i32: 2, 1>} : memref<3136x64xf32, #tpu.memory_space<vmem>>, vector<12x64xf32>
    %9 = arith.maximumf %7, %8 : vector<12x64xf32>
    %c28 = arith.constant 28 : index
    %c0_13 = arith.constant 0 : index
    %10 = tpu.strided_load %arg8[%c28, %c0_13] {strides = array<i32: 2, 1>} : memref<3136x64xf32, #tpu.memory_space<vmem>>, vector<12x64xf32>
    %11 = arith.maximumf %9, %10 : vector<12x64xf32>
    %c29 = arith.constant 29 : index
    %c0_14 = arith.constant 0 : index
    %12 = tpu.strided_load %arg8[%c29, %c0_14] {strides = array<i32: 2, 1>} : memref<3136x64xf32, #tpu.memory_space<vmem>>, vector<12x64xf32>
    %13 = arith.maximumf %11, %12 : vector<12x64xf32>
    %14 = arith.truncf %13 : vector<12x64xf32> to vector<12x64xbf16>
    %c0_15 = arith.constant 0 : index
    %c0_16 = arith.constant 0 : index
    %c0_17 = arith.constant 0 : index
    %15 = vector.load %arg6[%c0_15, %c0_16, %c0_17] : memref<1x576x64xbf16, #tpu.memory_space<vmem>>, vector<1x12x64xbf16>
    %16 = vector.shape_cast %15 : vector<1x12x64xbf16> to vector<12x64xbf16>
    %17 = vector.shape_cast %14 : vector<12x64xbf16> to vector<1x12x64xbf16>
    tpu.vector_store %arg6[%c0_15, %c0_16, %c0_17], %17 {strides = array<i32>} : memref<1x576x64xbf16, #tpu.memory_space<vmem>>, vector<1x12x64xbf16>,
    %c56 = arith.constant 56 : index
    %c0_18 = arith.constant 0 : index
    %18 = tpu.strided_load %arg8[%c56, %c0_18] {strides = array<i32: 2, 1>} : memref<3136x64xf32, #tpu.memory_space<vmem>>, vector<12x64xf32>
    %c57 = arith.constant 57 : index
    %c0_19 = arith.constant 0 : index
    %19 = tpu.strided_load %arg8[%c57, %c0_19] {strides = array<i32: 2, 1>} : memref<3136x64xf32, #tpu.memory_space<vmem>>, vector<12x64xf32>
    %20 = arith.maximumf %18, %19 : vector<12x64xf32>
    %c84 = arith.constant 84 : index
    %c0_20 = arith.constant 0 : index
    %21 = tpu.strided_load %arg8[%c84, %c0_20] {strides = array<i32: 2, 1>} : memref<3136x64xf32, #tpu.memory_space<vmem>>, vector<12x64xf32>
    %22 = arith.maximumf %20, %21 : vector<12x64xf32>
    %c85 = arith.constant 85 : index
    %c0_21 = arith.constant 0 : index
    %23 = tpu.strided_load %arg8[%c85, %c0_21] {strides = array<i32: 2, 1>} : memref<3136x64xf32, #tpu.memory_space<vmem>>, vector<12x64xf32>
    %24 = arith.maximumf %22, %23 : vector<12x64xf32>
    %25 = arith.truncf %24 : vector<12x64xf32> to vector<12x64xbf16>
    %c0_22 = arith.constant 0 : index
    %c12 = arith.constant 12 : index
    %c0_23 = arith.constant 0 : index
    %26 = vector.load %arg6[%c0_22, %c12, %c0_23] : memref<1x576x64xbf16, #tpu.memory_space<vmem>>, vector<1x12x64xbf16>
    %27 = vector.shape_cast %26 : vector<1x12x64xbf16> to vector<12x64xbf16>
    %28 = vector.shape_cast %25 : vector<12x64xbf16> to vector<1x12x64xbf16>
    tpu.vector_store %arg6[%c0_22, %c12, %c0_23], %28 {strides = array<i32>} : memref<1x576x64xbf16, #tpu.memory_space<vmem>>, vector<1x12x64xbf16>,
    %c112 = arith.constant 112 : index
    %c0_24 = arith.constant 0 : index
    %29 = tpu.strided_load %arg8[%c112, %c0_24] {strides = array<i32: 2, 1>} : memref<3136x64xf32, #tpu.memory_space<vmem>>, vector<12x64xf32>
    %c113 = arith.constant 113 : index
    %c0_25 = arith.constant 0 : index
    %30 = tpu.strided_load %arg8[%c113, %c0_25] {strides = array<i32: 2, 1>} : memref<3136x64xf32, #tpu.memory_space<vmem>>, vector<12x64xf32>
    %31 = arith.maximumf %29, %30 : vector<12x64xf32>
    %c140 = arith.constant 140 : index
    %c0_26 = arith.constant 0 : index
    %32 = tpu.strided_load %arg8[%c140, %c0_26] {strides = array<i32: 2, 1>} : memref<3136x64xf32, #tpu.memory_space<vmem>>, vector<12x64xf32>
    %33 = arith.maximumf %31, %32 : vector<12x64xf32>
    %c141 = arith.constant 141 : index
    %c0_27 = arith.constant 0 : index
    %34 = tpu.strided_load %arg8[%c141, %c0_27] {strides = array<i32: 2, 1>} : memref<3136x64xf32, #tpu.memory_space<vmem>>, vector<12x64xf32>
    %35 = arith.maximumf %33, %34 : vector<12x64xf32>
    %36 = arith.truncf %35 : vector<12x64xf32> to vector<12x64xbf16>
    %c0_28 = arith.constant 0 : index
    %c24 = arith.constant 24 : index
    %c0_29 = arith.constant 0 : index
    %37 = vector.load %arg6[%c0_28, %c24, %c0_29] : memref<1x576x64xbf16, #tpu.memory_space<vmem>>, vector<1x12x64xbf16>
    %38 = vector.shape_cast %37 : vector<1x12x64xbf16> to vector<12x64xbf16>
    %39 = vector.shape_cast %36 : vector<12x64xbf16> to vector<1x12x64xbf16>
    tpu.vector_store %arg6[%c0_28, %c24, %c0_29], %39 {strides = array<i32>} : memref<1x576x64xbf16, #tpu.memory_space<vmem>>, vector<1x12x64xbf16>,
    %c168 = arith.constant 168 : index
    %c0_30 = arith.constant 0 : index
    %40 = tpu.strided_load %arg8[%c168, %c0_30] {strides = array<i32: 2, 1>} : memref<3136x64xf32, #tpu.memory_space<vmem>>, vector<12x64xf32>
    %c169 = arith.constant 169 : index
    %c0_31 = arith.constant 0 : index
    %41 = tpu.strided_load %arg8[%c169, %c0_31] {strides = array<i32: 2, 1>} : memref<3136x64xf32, #tpu.memory_space<vmem>>, vector<12x64xf32>
    %42 = arith.maximumf %40, %41 : vector<12x64xf32>
    %c196 = arith.constant 196 : index
    %c0_32 = arith.constant 0 : index
    %43 = tpu.strided_load %arg8[%c196, %c0_32] {strides = array<i32: 2, 1>} : memref<3136x64xf32, #tpu.memory_space<vmem>>, vector<12x64xf32>
    %44 = arith.maximumf %42, %43 : vector<12x64xf32>
    %c197 = arith.constant 197 : index
    %c0_33 = arith.constant 0 : index
    %45 = tpu.strided_load %arg8[%c197, %c0_33] {strides = array<i32: 2, 1>} : memref<3136x64xf32, #tpu.memory_space<vmem>>, vector<12x64xf32>
    %46 = arith.maximumf %44, %45 : vector<12x64xf32>
    %47 = arith.truncf %46 : vector<12x64xf32> to vector<12x64xbf16>
    %c0_34 = arith.constant 0 : index
    %c36 = arith.constant 36 : index
    %c0_35 = arith.constant 0 : index
    %48 = vector.load %arg6[%c0_34, %c36, %c0_35] : memref<1x576x64xbf16, #tpu.memory_space<vmem>>, vector<1x12x64xbf16>
    %49 = vector.shape_cast %48 : vector<1x12x64xbf16> to vector<12x64xbf16>
    %50 = vector.shape_cast %47 : vector<12x64xbf16> to vector<1x12x64xbf16>
    tpu.vector_store %arg6[%c0_34, %c36, %c0_35], %50 {strides = array<i32>} : memref<1x576x64xbf16, #tpu.memory_space<vmem>>, vector<1x12x64xbf16>,
    %c224 = arith.constant 224 : index
    %c0_36 = arith.constant 0 : index
    %51 = tpu.strided_load %arg8[%c224, %c0_36] {strides = array<i32: 2, 1>} : memref<3136x64xf32, #tpu.memory_space<vmem>>, vector<12x64xf32>
    %c225 = arith.constant 225 : index
    %c0_37 = arith.constant 0 : index
    %52 = tpu.strided_load %arg8[%c225, %c0_37] {strides = array<i32: 2, 1>} : memref<3136x64xf32, #tpu.memory_space<vmem>>, vector<12x64xf32>
    %53 = arith.maximumf %51, %52 : vector<12x64xf32>
    %c252 = arith.constant 252 : index
    %c0_38 = arith.constant 0 : index
    %54 = tpu.strided_load %arg8[%c252, %c0_38] {strides = array<i32: 2, 1>} : memref<3136x64xf32, #tpu.memory_space<vmem>>, vector<12x64xf32>
    %55 = arith.maximumf %53, %54 : vector<12x64xf32>
    %c253 = arith.constant 253 : index
    %c0_39 = arith.constant 0 : index
    %56 = tpu.strided_load %arg8[%c253, %c0_39] {strides = array<i32: 2, 1>} : memref<3136x64xf32, #tpu.memory_space<vmem>>, vector<12x64xf32>
    %57 = arith.maximumf %55, %56 : vector<12x64xf32>
    %58 = arith.truncf %57 : vector<12x64xf32> to vector<12x64xbf16>
    %c0_40 = arith.constant 0 : index
    %c48 = arith.constant 48 : index
    %c0_41 = arith.constant 0 : index
    %59 = vector.load %arg6[%c0_40, %c48, %c0_41] : memref<1x576x64xbf16, #tpu.memory_space<vmem>>, vector<1x12x64xbf16>
    %60 = vector.shape_cast %59 : vector<1x12x64xbf16> to vector<12x64xbf16>
    %61 = vector.shape_cast %58 : vector<12x64xbf16> to vector<1x12x64xbf16>
    tpu.vector_store %arg6[%c0_40, %c48, %c0_41], %61 {strides = array<i32>} : memref<1x576x64xbf16, #tpu.memory_space<vmem>>, vector<1x12x64xbf16>,
    %c280 = arith.constant 280 : index
    %c0_42 = arith.constant 0 : index
    %62 = tpu.strided_load %arg8[%c280, %c0_42] {strides = array<i32: 2, 1>} : memref<3136x64xf32, #tpu.memory_space<vmem>>, vector<12x64xf32>
    %c281 = arith.constant 281 : index
    %c0_43 = arith.constant 0 : index
    %63 = tpu.strided_load %arg8[%c281, %c0_43] {strides = array<i32: 2, 1>} : memref<3136x64xf32, #tpu.memory_space<vmem>>, vector<12x64xf32>
    %64 = arith.maximumf %62, %63 : vector<12x64xf32>
    %c308 = arith.constant 308 : index
    %c0_44 = arith.constant 0 : index
    %65 = tpu.strided_load %arg8[%c308, %c0_44] {strides = array<i32: 2, 1>} : memref<3136x64xf32, #tpu.memory_space<vmem>>, vector<12x64xf32>
    %66 = arith.maximumf %64, %65 : vector<12x64xf32>
    %c309 = arith.constant 309 : index
    %c0_45 = arith.constant 0 : index
    %67 = tpu.strided_load %arg8[%c309, %c0_45] {strides = array<i32: 2, 1>} : memref<3136x64xf32, #tpu.memory_space<vmem>>, vector<12x64xf32>
    %68 = arith.maximumf %66, %67 : vector<12x64xf32>
    %69 = arith.truncf %68 : vector<12x64xf32> to vector<12x64xbf16>
    %c0_46 = arith.constant 0 : index
    %c60 = arith.constant 60 : index
    %c0_47 = arith.constant 0 : index
    %70 = vector.load %arg6[%c0_46, %c60, %c0_47] : memref<1x576x64xbf16, #tpu.memory_space<vmem>>, vector<1x12x64xbf16>
    %71 = vector.shape_cast %70 : vector<1x12x64xbf16> to vector<12x64xbf16>
    %72 = vector.shape_cast %69 : vector<12x64xbf16> to vector<1x12x64xbf16>
    tpu.vector_store %arg6[%c0_46, %c60, %c0_47], %72 {strides = array<i32>} : memref<1x576x64xbf16, #tpu.memory_space<vmem>>, vector<1x12x64xbf16>,
    %c336 = arith.constant 336 : index
    %c0_48 = arith.constant 0 : index
    %73 = tpu.strided_load %arg8[%c336, %c0_48] {strides = array<i32: 2, 1>} : memref<3136x64xf32, #tpu.memory_space<vmem>>, vector<12x64xf32>
    %c337 = arith.constant 337 : index
    %c0_49 = arith.constant 0 : index
    %74 = tpu.strided_load %arg8[%c337, %c0_49] {strides = array<i32: 2, 1>} : memref<3136x64xf32, #tpu.memory_space<vmem>>, vector<12x64xf32>
    %75 = arith.maximumf %73, %74 : vector<12x64xf32>
    %c364 = arith.constant 364 : index
    %c0_50 = arith.constant 0 : index
    %76 = tpu.strided_load %arg8[%c364, %c0_50] {strides = array<i32: 2, 1>} : memref<3136x64xf32, #tpu.memory_space<vmem>>, vector<12x64xf32>
    %77 = arith.maximumf %75, %76 : vector<12x64xf32>
    %c365 = arith.constant 365 : index
    %c0_51 = arith.constant 0 : index
    %78 = tpu.strided_load %arg8[%c365, %c0_51] {strides = array<i32: 2, 1>} : memref<3136x64xf32, #tpu.memory_space<vmem>>, vector<12x64xf32>
    %79 = arith.maximumf %77, %78 : vector<12x64xf32>
    %80 = arith.truncf %79 : vector<12x64xf32> to vector<12x64xbf16>
    %c0_52 = arith.constant 0 : index
    %c72 = arith.constant 72 : index
    %c0_53 = arith.constant 0 : index
    %81 = vector.load %arg6[%c0_52, %c72, %c0_53] : memref<1x576x64xbf16, #tpu.memory_space<vmem>>, vector<1x12x64xbf16>
    %82 = vector.shape_cast %81 : vector<1x12x64xbf16> to vector<12x64xbf16>
    %83 = vector.shape_cast %80 : vector<12x64xbf16> to vector<1x12x64xbf16>
    tpu.vector_store %arg6[%c0_52, %c72, %c0_53], %83 {strides = array<i32>} : memref<1x576x64xbf16, #tpu.memory_space<vmem>>, vector<1x12x64xbf16>,
    %c392 = arith.constant 392 : index
    %c0_54 = arith.constant 0 : index
    %84 = tpu.strided_load %arg8[%c392, %c0_54] {strides = array<i32: 2, 1>} : memref<3136x64xf32, #tpu.memory_space<vmem>>, vector<12x64xf32>
    %c393 = arith.constant 393 : index
    %c0_55 = arith.constant 0 : index
    %85 = tpu.strided_load %arg8[%c393, %c0_55] {strides = array<i32: 2, 1>} : memref<3136x64xf32, #tpu.memory_space<vmem>>, vector<12x64xf32>
    %86 = arith.maximumf %84, %85 : vector<12x64xf32>
    %c420 = arith.constant 420 : index
    %c0_56 = arith.constant 0 : index
    %87 = tpu.strided_load %arg8[%c420, %c0_56] {strides = array<i32: 2, 1>} : memref<3136x64xf32, #tpu.memory_space<vmem>>, vector<12x64xf32>
    %88 = arith.maximumf %86, %87 : vector<12x64xf32>
    %c421 = arith.constant 421 : index
    %c0_57 = arith.constant 0 : index
    %89 = tpu.strided_load %arg8[%c421, %c0_57] {strides = array<i32: 2, 1>} : memref<3136x64xf32, #tpu.memory_space<vmem>>, vector<12x64xf32>
    %90 = arith.maximumf %88, %89 : vector<12x64xf32>
    %91 = arith.truncf %90 : vector<12x64xf32> to vector<12x64xbf16>
    %c0_58 = arith.constant 0 : index
    %c84_59 = arith.constant 84 : index
    %c0_60 = arith.constant 0 : index
    %92 = vector.load %arg6[%c0_58, %c84_59, %c0_60] : memref<1x576x64xbf16, #tpu.memory_space<vmem>>, vector<1x12x64xbf16>
    %93 = vector.shape_cast %92 : vector<1x12x64xbf16> to vector<12x64xbf16>
    %94 = vector.shape_cast %91 : vector<12x64xbf16> to vector<1x12x64xbf16>
    tpu.vector_store %arg6[%c0_58, %c84_59, %c0_60], %94 {strides = array<i32>} : memref<1x576x64xbf16, #tpu.memory_space<vmem>>, vector<1x12x64xbf16>,
    %c448 = arith.constant 448 : index
    %c0_61 = arith.constant 0 : index
    %95 = tpu.strided_load %arg8[%c448, %c0_61] {strides = array<i32: 2, 1>} : memref<3136x64xf32, #tpu.memory_space<vmem>>, vector<12x64xf32>
    %c449 = arith.constant 449 : index
    %c0_62 = arith.constant 0 : index
    %96 = tpu.strided_load %arg8[%c449, %c0_62] {strides = array<i32: 2, 1>} : memref<3136x64xf32, #tpu.memory_space<vmem>>, vector<12x64xf32>
    %97 = arith.maximumf %95, %96 : vector<12x64xf32>
    %c476 = arith.constant 476 : index
    %c0_63 = arith.constant 0 : index
    %98 = tpu.strided_load %arg8[%c476, %c0_63] {strides = array<i32: 2, 1>} : memref<3136x64xf32, #tpu.memory_space<vmem>>, vector<12x64xf32>
    %99 = arith.maximumf %97, %98 : vector<12x64xf32>
    %c477 = arith.constant 477 : index
    %c0_64 = arith.constant 0 : index
    %100 = tpu.strided_load %arg8[%c477, %c0_64] {strides = array<i32: 2, 1>} : memref<3136x64xf32, #tpu.memory_space<vmem>>, vector<12x64xf32>
    %101 = arith.maximumf %99, %100 : vector<12x64xf32>
    %102 = arith.truncf %101 : vector<12x64xf32> to vector<12x64xbf16>
    %c0_65 = arith.constant 0 : index
    %c96 = arith.constant 96 : index
    %c0_66 = arith.constant 0 : index
    %103 = vector.load %arg6[%c0_65, %c96, %c0_66] : memref<1x576x64xbf16, #tpu.memory_space<vmem>>, vector<1x12x64xbf16>
    %104 = vector.shape_cast %103 : vector<1x12x64xbf16> to vector<12x64xbf16>
    %105 = vector.shape_cast %102 : vector<12x64xbf16> to vector<1x12x64xbf16>
    tpu.vector_store %arg6[%c0_65, %c96, %c0_66], %105 {strides = array<i32>} : memref<1x576x64xbf16, #tpu.memory_space<vmem>>, vector<1x12x64xbf16>,
    %c504 = arith.constant 504 : index
    %c0_67 = arith.constant 0 : index
    %106 = tpu.strided_load %arg8[%c504, %c0_67] {strides = array<i32: 2, 1>} : memref<3136x64xf32, #tpu.memory_space<vmem>>, vector<12x64xf32>
    %c505 = arith.constant 505 : index
    %c0_68 = arith.constant 0 : index
    %107 = tpu.strided_load %arg8[%c505, %c0_68] {strides = array<i32: 2, 1>} : memref<3136x64xf32, #tpu.memory_space<vmem>>, vector<12x64xf32>
    %108 = arith.maximumf %106, %107 : vector<12x64xf32>
    %c532 = arith.constant 532 : index
    %c0_69 = arith.constant 0 : index
    %109 = tpu.strided_load %arg8[%c532, %c0_69] {strides = array<i32: 2, 1>} : memref<3136x64xf32, #tpu.memory_space<vmem>>, vector<12x64xf32>
    %110 = arith.maximumf %108, %109 : vector<12x64xf32>
    %c533 = arith.constant 533 : index
    %c0_70 = arith.constant 0 : index
    %111 = tpu.strided_load %arg8[%c533, %c0_70] {strides = array<i32: 2, 1>} : memref<3136x64xf32, #tpu.memory_space<vmem>>, vector<12x64xf32>
    %112 = arith.maximumf %110, %111 : vector<12x64xf32>
    %113 = arith.truncf %112 : vector<12x64xf32> to vector<12x64xbf16>
    %c0_71 = arith.constant 0 : index
    %c108 = arith.constant 108 : index
    %c0_72 = arith.constant 0 : index
    %114 = vector.load %arg6[%c0_71, %c108, %c0_72] : memref<1x576x64xbf16, #tpu.memory_space<vmem>>, vector<1x12x64xbf16>
    %115 = vector.shape_cast %114 : vector<1x12x64xbf16> to vector<12x64xbf16>
    %116 = vector.shape_cast %113 : vector<12x64xbf16> to vector<1x12x64xbf16>
    tpu.vector_store %arg6[%c0_71, %c108, %c0_72], %116 {strides = array<i32>} : memref<1x576x64xbf16, #tpu.memory_space<vmem>>, vector<1x12x64xbf16>,
    %c560 = arith.constant 560 : index
    %c0_73 = arith.constant 0 : index
    %117 = tpu.strided_load %arg8[%c560, %c0_73] {strides = array<i32: 2, 1>} : memref<3136x64xf32, #tpu.memory_space<vmem>>, vector<12x64xf32>
    %c561 = arith.constant 561 : index
    %c0_74 = arith.constant 0 : index
    %118 = tpu.strided_load %arg8[%c561, %c0_74] {strides = array<i32: 2, 1>} : memref<3136x64xf32, #tpu.memory_space<vmem>>, vector<12x64xf32>
    %119 = arith.maximumf %117, %118 : vector<12x64xf32>
    %c588 = arith.constant 588 : index
    %c0_75 = arith.constant 0 : index
    %120 = tpu.strided_load %arg8[%c588, %c0_75] {strides = array<i32: 2, 1>} : memref<3136x64xf32, #tpu.memory_space<vmem>>, vector<12x64xf32>
    %121 = arith.maximumf %119, %120 : vector<12x64xf32>
    %c589 = arith.constant 589 : index
    %c0_76 = arith.constant 0 : index
    %122 = tpu.strided_load %arg8[%c589, %c0_76] {strides = array<i32: 2, 1>} : memref<3136x64xf32, #tpu.memory_space<vmem>>, vector<12x64xf32>
    %123 = arith.maximumf %121, %122 : vector<12x64xf32>
    %124 = arith.truncf %123 : vector<12x64xf32> to vector<12x64xbf16>
    %c0_77 = arith.constant 0 : index
    %c120 = arith.constant 120 : index
    %c0_78 = arith.constant 0 : index
    %125 = vector.load %arg6[%c0_77, %c120, %c0_78] : memref<1x576x64xbf16, #tpu.memory_space<vmem>>, vector<1x12x64xbf16>
    %126 = vector.shape_cast %125 : vector<1x12x64xbf16> to vector<12x64xbf16>
    %127 = vector.shape_cast %124 : vector<12x64xbf16> to vector<1x12x64xbf16>
    tpu.vector_store %arg6[%c0_77, %c120, %c0_78], %127 {strides = array<i32>} : memref<1x576x64xbf16, #tpu.memory_space<vmem>>, vector<1x12x64xbf16>,
    %c616 = arith.constant 616 : index
    %c0_79 = arith.constant 0 : index
    %128 = tpu.strided_load %arg8[%c616, %c0_79] {strides = array<i32: 2, 1>} : memref<3136x64xf32, #tpu.memory_space<vmem>>, vector<12x64xf32>
    %c617 = arith.constant 617 : index
    %c0_80 = arith.constant 0 : index
    %129 = tpu.strided_load %arg8[%c617, %c0_80] {strides = array<i32: 2, 1>} : memref<3136x64xf32, #tpu.memory_space<vmem>>, vector<12x64xf32>
    %130 = arith.maximumf %128, %129 : vector<12x64xf32>
    %c644 = arith.constant 644 : index
    %c0_81 = arith.constant 0 : index
    %131 = tpu.strided_load %arg8[%c644, %c0_81] {strides = array<i32: 2, 1>} : memref<3136x64xf32, #tpu.memory_space<vmem>>, vector<12x64xf32>
    %132 = arith.maximumf %130, %131 : vector<12x64xf32>
    %c645 = arith.constant 645 : index
    %c0_82 = arith.constant 0 : index
    %133 = tpu.strided_load %arg8[%c645, %c0_82] {strides = array<i32: 2, 1>} : memref<3136x64xf32, #tpu.memory_space<vmem>>, vector<12x64xf32>
    %134 = arith.maximumf %132, %133 : vector<12x64xf32>
    %135 = arith.truncf %134 : vector<12x64xf32> to vector<12x64xbf16>
    %c0_83 = arith.constant 0 : index
    %c132 = arith.constant 132 : index
    %c0_84 = arith.constant 0 : index
    %136 = vector.load %arg6[%c0_83, %c132, %c0_84] : memref<1x576x64xbf16, #tpu.memory_space<vmem>>, vector<1x12x64xbf16>
    %137 = vector.shape_cast %136 : vector<1x12x64xbf16> to vector<12x64xbf16>
    %138 = vector.shape_cast %135 : vector<12x64xbf16> to vector<1x12x64xbf16>
    tpu.vector_store %arg6[%c0_83, %c132, %c0_84], %138 {strides = array<i32>} : memref<1x576x64xbf16, #tpu.memory_space<vmem>>, vector<1x12x64xbf16>,
    %c784 = arith.constant 784 : index
    %c0_85 = arith.constant 0 : index
    %139 = tpu.strided_load %arg8[%c784, %c0_85] {strides = array<i32: 2, 1>} : memref<3136x64xf32, #tpu.memory_space<vmem>>, vector<12x64xf32>
    %c785 = arith.constant 785 : index
    %c0_86 = arith.constant 0 : index
    %140 = tpu.strided_load %arg8[%c785, %c0_86] {strides = array<i32: 2, 1>} : memref<3136x64xf32, #tpu.memory_space<vmem>>, vector<12x64xf32>
    %141 = arith.maximumf %139, %140 : vector<12x64xf32>
    %c812 = arith.constant 812 : index
    %c0_87 = arith.constant 0 : index
    %142 = tpu.strided_load %arg8[%c812, %c0_87] {strides = array<i32: 2, 1>} : memref<3136x64xf32, #tpu.memory_space<vmem>>, vector<12x64xf32>
    %143 = arith.maximumf %141, %142 : vector<12x64xf32>
    %c813 = arith.constant 813 : index
    %c0_88 = arith.constant 0 : index
    %144 = tpu.strided_load %arg8[%c813, %c0_88] {strides = array<i32: 2, 1>} : memref<3136x64xf32, #tpu.memory_space<vmem>>, vector<12x64xf32>
    %145 = arith.maximumf %143, %144 : vector<12x64xf32>
    %146 = arith.truncf %145 : vector<12x64xf32> to vector<12x64xbf16>
    %c0_89 = arith.constant 0 : index
    %c144 = arith.constant 144 : index
    %c0_90 = arith.constant 0 : index
    %147 = vector.load %arg6[%c0_89, %c144, %c0_90] : memref<1x576x64xbf16, #tpu.memory_space<vmem>>, vector<1x12x64xbf16>
    %148 = vector.shape_cast %147 : vector<1x12x64xbf16> to vector<12x64xbf16>
    %149 = vector.shape_cast %146 : vector<12x64xbf16> to vector<1x12x64xbf16>
    tpu.vector_store %arg6[%c0_89, %c144, %c0_90], %149 {strides = array<i32>} : memref<1x576x64xbf16, #tpu.memory_space<vmem>>, vector<1x12x64xbf16>,
    %c840 = arith.constant 840 : index
    %c0_91 = arith.constant 0 : index
    %150 = tpu.strided_load %arg8[%c840, %c0_91] {strides = array<i32: 2, 1>} : memref<3136x64xf32, #tpu.memory_space<vmem>>, vector<12x64xf32>
    %c841 = arith.constant 841 : index
    %c0_92 = arith.constant 0 : index
    %151 = tpu.strided_load %arg8[%c841, %c0_92] {strides = array<i32: 2, 1>} : memref<3136x64xf32, #tpu.memory_space<vmem>>, vector<12x64xf32>
    %152 = arith.maximumf %150, %151 : vector<12x64xf32>
    %c868 = arith.constant 868 : index
    %c0_93 = arith.constant 0 : index
    %153 = tpu.strided_load %arg8[%c868, %c0_93] {strides = array<i32: 2, 1>} : memref<3136x64xf32, #tpu.memory_space<vmem>>, vector<12x64xf32>
    %154 = arith.maximumf %152, %153 : vector<12x64xf32>
    %c869 = arith.constant 869 : index
    %c0_94 = arith.constant 0 : index
    %155 = tpu.strided_load %arg8[%c869, %c0_94] {strides = array<i32: 2, 1>} : memref<3136x64xf32, #tpu.memory_space<vmem>>, vector<12x64xf32>
    %156 = arith.maximumf %154, %155 : vector<12x64xf32>
    %157 = arith.truncf %156 : vector<12x64xf32> to vector<12x64xbf16>
    %c0_95 = arith.constant 0 : index
    %c156 = arith.constant 156 : index
    %c0_96 = arith.constant 0 : index
    %158 = vector.load %arg6[%c0_95, %c156, %c0_96] : memref<1x576x64xbf16, #tpu.memory_space<vmem>>, vector<1x12x64xbf16>
    %159 = vector.shape_cast %158 : vector<1x12x64xbf16> to vector<12x64xbf16>
    %160 = vector.shape_cast %157 : vector<12x64xbf16> to vector<1x12x64xbf16>
    tpu.vector_store %arg6[%c0_95, %c156, %c0_96], %160 {strides = array<i32>} : memref<1x576x64xbf16, #tpu.memory_space<vmem>>, vector<1x12x64xbf16>,
    %c896 = arith.constant 896 : index
    %c0_97 = arith.constant 0 : index
    %161 = tpu.strided_load %arg8[%c896, %c0_97] {strides = array<i32: 2, 1>} : memref<3136x64xf32, #tpu.memory_space<vmem>>, vector<12x64xf32>
    %c897 = arith.constant 897 : index
    %c0_98 = arith.constant 0 : index
    %162 = tpu.strided_load %arg8[%c897, %c0_98] {strides = array<i32: 2, 1>} : memref<3136x64xf32, #tpu.memory_space<vmem>>, vector<12x64xf32>
    %163 = arith.maximumf %161, %162 : vector<12x64xf32>
    %c924 = arith.constant 924 : index
    %c0_99 = arith.constant 0 : index
    %164 = tpu.strided_load %arg8[%c924, %c0_99] {strides = array<i32: 2, 1>} : memref<3136x64xf32, #tpu.memory_space<vmem>>, vector<12x64xf32>
    %165 = arith.maximumf %163, %164 : vector<12x64xf32>
    %c925 = arith.constant 925 : index
    %c0_100 = arith.constant 0 : index
    %166 = tpu.strided_load %arg8[%c925, %c0_100] {strides = array<i32: 2, 1>} : memref<3136x64xf32, #tpu.memory_space<vmem>>, vector<12x64xf32>
    %167 = arith.maximumf %165, %166 : vector<12x64xf32>
    %168 = arith.truncf %167 : vector<12x64xf32> to vector<12x64xbf16>
    %c0_101 = arith.constant 0 : index
    %c168_102 = arith.constant 168 : index
    %c0_103 = arith.constant 0 : index
    %169 = vector.load %arg6[%c0_101, %c168_102, %c0_103] : memref<1x576x64xbf16, #tpu.memory_space<vmem>>, vector<1x12x64xbf16>
    %170 = vector.shape_cast %169 : vector<1x12x64xbf16> to vector<12x64xbf16>
    %171 = vector.shape_cast %168 : vector<12x64xbf16> to vector<1x12x64xbf16>
    tpu.vector_store %arg6[%c0_101, %c168_102, %c0_103], %171 {strides = array<i32>} : memref<1x576x64xbf16, #tpu.memory_space<vmem>>, vector<1x12x64xbf16>,
    %c952 = arith.constant 952 : index
    %c0_104 = arith.constant 0 : index
    %172 = tpu.strided_load %arg8[%c952, %c0_104] {strides = array<i32: 2, 1>} : memref<3136x64xf32, #tpu.memory_space<vmem>>, vector<12x64xf32>
    %c953 = arith.constant 953 : index
    %c0_105 = arith.constant 0 : index
    %173 = tpu.strided_load %arg8[%c953, %c0_105] {strides = array<i32: 2, 1>} : memref<3136x64xf32, #tpu.memory_space<vmem>>, vector<12x64xf32>
    %174 = arith.maximumf %172, %173 : vector<12x64xf32>
    %c980 = arith.constant 980 : index
    %c0_106 = arith.constant 0 : index
    %175 = tpu.strided_load %arg8[%c980, %c0_106] {strides = array<i32: 2, 1>} : memref<3136x64xf32, #tpu.memory_space<vmem>>, vector<12x64xf32>
    %176 = arith.maximumf %174, %175 : vector<12x64xf32>
    %c981 = arith.constant 981 : index
    %c0_107 = arith.constant 0 : index
    %177 = tpu.strided_load %arg8[%c981, %c0_107] {strides = array<i32: 2, 1>} : memref<3136x64xf32, #tpu.memory_space<vmem>>, vector<12x64xf32>
    %178 = arith.maximumf %176, %177 : vector<12x64xf32>
    %179 = arith.truncf %178 : vector<12x64xf32> to vector<12x64xbf16>
    %c0_108 = arith.constant 0 : index
    %c180 = arith.constant 180 : index
    %c0_109 = arith.constant 0 : index
    %180 = vector.load %arg6[%c0_108, %c180, %c0_109] : memref<1x576x64xbf16, #tpu.memory_space<vmem>>, vector<1x12x64xbf16>
    %181 = vector.shape_cast %180 : vector<1x12x64xbf16> to vector<12x64xbf16>
    %182 = vector.shape_cast %179 : vector<12x64xbf16> to vector<1x12x64xbf16>
    tpu.vector_store %arg6[%c0_108, %c180, %c0_109], %182 {strides = array<i32>} : memref<1x576x64xbf16, #tpu.memory_space<vmem>>, vector<1x12x64xbf16>,
    %c1008 = arith.constant 1008 : index
    %c0_110 = arith.constant 0 : index
    %183 = tpu.strided_load %arg8[%c1008, %c0_110] {strides = array<i32: 2, 1>} : memref<3136x64xf32, #tpu.memory_space<vmem>>, vector<12x64xf32>
    %c1009 = arith.constant 1009 : index
    %c0_111 = arith.constant 0 : index
    %184 = tpu.strided_load %arg8[%c1009, %c0_111] {strides = array<i32: 2, 1>} : memref<3136x64xf32, #tpu.memory_space<vmem>>, vector<12x64xf32>
    %185 = arith.maximumf %183, %184 : vector<12x64xf32>
    %c1036 = arith.constant 1036 : index
    %c0_112 = arith.constant 0 : index
    %186 = tpu.strided_load %arg8[%c1036, %c0_112] {strides = array<i32: 2, 1>} : memref<3136x64xf32, #tpu.memory_space<vmem>>, vector<12x64xf32>
    %187 = arith.maximumf %185, %186 : vector<12x64xf32>
    %c1037 = arith.constant 1037 : index
    %c0_113 = arith.constant 0 : index
    %188 = tpu.strided_load %arg8[%c1037, %c0_113] {strides = array<i32: 2, 1>} : memref<3136x64xf32, #tpu.memory_space<vmem>>, vector<12x64xf32>
    %189 = arith.maximumf %187, %188 : vector<12x64xf32>
    %190 = arith.truncf %189 : vector<12x64xf32> to vector<12x64xbf16>
    %c0_114 = arith.constant 0 : index
    %c192 = arith.constant 192 : index
    %c0_115 = arith.constant 0 : index
    %191 = vector.load %arg6[%c0_114, %c192, %c0_115] : memref<1x576x64xbf16, #tpu.memory_space<vmem>>, vector<1x12x64xbf16>
    %192 = vector.shape_cast %191 : vector<1x12x64xbf16> to vector<12x64xbf16>
    %193 = vector.shape_cast %190 : vector<12x64xbf16> to vector<1x12x64xbf16>
    tpu.vector_store %arg6[%c0_114, %c192, %c0_115], %193 {strides = array<i32>} : memref<1x576x64xbf16, #tpu.memory_space<vmem>>, vector<1x12x64xbf16>,
    %c1064 = arith.constant 1064 : index
    %c0_116 = arith.constant 0 : index
    %194 = tpu.strided_load %arg8[%c1064, %c0_116] {strides = array<i32: 2, 1>} : memref<3136x64xf32, #tpu.memory_space<vmem>>, vector<12x64xf32>
    %c1065 = arith.constant 1065 : index
    %c0_117 = arith.constant 0 : index
    %195 = tpu.strided_load %arg8[%c1065, %c0_117] {strides = array<i32: 2, 1>} : memref<3136x64xf32, #tpu.memory_space<vmem>>, vector<12x64xf32>
    %196 = arith.maximumf %194, %195 : vector<12x64xf32>
    %c1092 = arith.constant 1092 : index
    %c0_118 = arith.constant 0 : index
    %197 = tpu.strided_load %arg8[%c1092, %c0_118] {strides = array<i32: 2, 1>} : memref<3136x64xf32, #tpu.memory_space<vmem>>, vector<12x64xf32>
    %198 = arith.maximumf %196, %197 : vector<12x64xf32>
    %c1093 = arith.constant 1093 : index
    %c0_119 = arith.constant 0 : index
    %199 = tpu.strided_load %arg8[%c1093, %c0_119] {strides = array<i32: 2, 1>} : memref<3136x64xf32, #tpu.memory_space<vmem>>, vector<12x64xf32>
    %200 = arith.maximumf %198, %199 : vector<12x64xf32>
    %201 = arith.truncf %200 : vector<12x64xf32> to vector<12x64xbf16>
    %c0_120 = arith.constant 0 : index
    %c204 = arith.constant 204 : index
    %c0_121 = arith.constant 0 : index
    %202 = vector.load %arg6[%c0_120, %c204, %c0_121] : memref<1x576x64xbf16, #tpu.memory_space<vmem>>, vector<1x12x64xbf16>
    %203 = vector.shape_cast %202 : vector<1x12x64xbf16> to vector<12x64xbf16>
    %204 = vector.shape_cast %201 : vector<12x64xbf16> to vector<1x12x64xbf16>
    tpu.vector_store %arg6[%c0_120, %c204, %c0_121], %204 {strides = array<i32>} : memref<1x576x64xbf16, #tpu.memory_space<vmem>>, vector<1x12x64xbf16>,
    %c1120 = arith.constant 1120 : index
    %c0_122 = arith.constant 0 : index
    %205 = tpu.strided_load %arg8[%c1120, %c0_122] {strides = array<i32: 2, 1>} : memref<3136x64xf32, #tpu.memory_space<vmem>>, vector<12x64xf32>
    %c1121 = arith.constant 1121 : index
    %c0_123 = arith.constant 0 : index
    %206 = tpu.strided_load %arg8[%c1121, %c0_123] {strides = array<i32: 2, 1>} : memref<3136x64xf32, #tpu.memory_space<vmem>>, vector<12x64xf32>
    %207 = arith.maximumf %205, %206 : vector<12x64xf32>
    %c1148 = arith.constant 1148 : index
    %c0_124 = arith.constant 0 : index
    %208 = tpu.strided_load %arg8[%c1148, %c0_124] {strides = array<i32: 2, 1>} : memref<3136x64xf32, #tpu.memory_space<vmem>>, vector<12x64xf32>
    %209 = arith.maximumf %207, %208 : vector<12x64xf32>
    %c1149 = arith.constant 1149 : index
    %c0_125 = arith.constant 0 : index
    %210 = tpu.strided_load %arg8[%c1149, %c0_125] {strides = array<i32: 2, 1>} : memref<3136x64xf32, #tpu.memory_space<vmem>>, vector<12x64xf32>
    %211 = arith.maximumf %209, %210 : vector<12x64xf32>
    %212 = arith.truncf %211 : vector<12x64xf32> to vector<12x64xbf16>
    %c0_126 = arith.constant 0 : index
    %c216 = arith.constant 216 : index
    %c0_127 = arith.constant 0 : index
    %213 = vector.load %arg6[%c0_126, %c216, %c0_127] : memref<1x576x64xbf16, #tpu.memory_space<vmem>>, vector<1x12x64xbf16>
    %214 = vector.shape_cast %213 : vector<1x12x64xbf16> to vector<12x64xbf16>
    %215 = vector.shape_cast %212 : vector<12x64xbf16> to vector<1x12x64xbf16>
    tpu.vector_store %arg6[%c0_126, %c216, %c0_127], %215 {strides = array<i32>} : memref<1x576x64xbf16, #tpu.memory_space<vmem>>, vector<1x12x64xbf16>,
    %c1176 = arith.constant 1176 : index
    %c0_128 = arith.constant 0 : index
    %216 = tpu.strided_load %arg8[%c1176, %c0_128] {strides = array<i32: 2, 1>} : memref<3136x64xf32, #tpu.memory_space<vmem>>, vector<12x64xf32>
    %c1177 = arith.constant 1177 : index
    %c0_129 = arith.constant 0 : index
    %217 = tpu.strided_load %arg8[%c1177, %c0_129] {strides = array<i32: 2, 1>} : memref<3136x64xf32, #tpu.memory_space<vmem>>, vector<12x64xf32>
    %218 = arith.maximumf %216, %217 : vector<12x64xf32>
    %c1204 = arith.constant 1204 : index
    %c0_130 = arith.constant 0 : index
    %219 = tpu.strided_load %arg8[%c1204, %c0_130] {strides = array<i32: 2, 1>} : memref<3136x64xf32, #tpu.memory_space<vmem>>, vector<12x64xf32>
    %220 = arith.maximumf %218, %219 : vector<12x64xf32>
    %c1205 = arith.constant 1205 : index
    %c0_131 = arith.constant 0 : index
    %221 = tpu.strided_load %arg8[%c1205, %c0_131] {strides = array<i32: 2, 1>} : memref<3136x64xf32, #tpu.memory_space<vmem>>, vector<12x64xf32>
    %222 = arith.maximumf %220, %221 : vector<12x64xf32>
    %223 = arith.truncf %222 : vector<12x64xf32> to vector<12x64xbf16>
    %c0_132 = arith.constant 0 : index
    %c228 = arith.constant 228 : index
    %c0_133 = arith.constant 0 : index
    %224 = vector.load %arg6[%c0_132, %c228, %c0_133] : memref<1x576x64xbf16, #tpu.memory_space<vmem>>, vector<1x12x64xbf16>
    %225 = vector.shape_cast %224 : vector<1x12x64xbf16> to vector<12x64xbf16>
    %226 = vector.shape_cast %223 : vector<12x64xbf16> to vector<1x12x64xbf16>
    tpu.vector_store %arg6[%c0_132, %c228, %c0_133], %226 {strides = array<i32>} : memref<1x576x64xbf16, #tpu.memory_space<vmem>>, vector<1x12x64xbf16>,
    %c1232 = arith.constant 1232 : index
    %c0_134 = arith.constant 0 : index
    %227 = tpu.strided_load %arg8[%c1232, %c0_134] {strides = array<i32: 2, 1>} : memref<3136x64xf32, #tpu.memory_space<vmem>>, vector<12x64xf32>
    %c1233 = arith.constant 1233 : index
    %c0_135 = arith.constant 0 : index
    %228 = tpu.strided_load %arg8[%c1233, %c0_135] {strides = array<i32: 2, 1>} : memref<3136x64xf32, #tpu.memory_space<vmem>>, vector<12x64xf32>
    %229 = arith.maximumf %227, %228 : vector<12x64xf32>
    %c1260 = arith.constant 1260 : index
    %c0_136 = arith.constant 0 : index
    %230 = tpu.strided_load %arg8[%c1260, %c0_136] {strides = array<i32: 2, 1>} : memref<3136x64xf32, #tpu.memory_space<vmem>>, vector<12x64xf32>
    %231 = arith.maximumf %229, %230 : vector<12x64xf32>
    %c1261 = arith.constant 1261 : index
    %c0_137 = arith.constant 0 : index
    %232 = tpu.strided_load %arg8[%c1261, %c0_137] {strides = array<i32: 2, 1>} : memref<3136x64xf32, #tpu.memory_space<vmem>>, vector<12x64xf32>
    %233 = arith.maximumf %231, %232 : vector<12x64xf32>
    %234 = arith.truncf %233 : vector<12x64xf32> to vector<12x64xbf16>
    %c0_138 = arith.constant 0 : index
    %c240 = arith.constant 240 : index
    %c0_139 = arith.constant 0 : index
    %235 = vector.load %arg6[%c0_138, %c240, %c0_139] : memref<1x576x64xbf16, #tpu.memory_space<vmem>>, vector<1x12x64xbf16>
    %236 = vector.shape_cast %235 : vector<1x12x64xbf16> to vector<12x64xbf16>
    %237 = vector.shape_cast %234 : vector<12x64xbf16> to vector<1x12x64xbf16>
    tpu.vector_store %arg6[%c0_138, %c240, %c0_139], %237 {strides = array<i32>} : memref<1x576x64xbf16, #tpu.memory_space<vmem>>, vector<1x12x64xbf16>,
    %c1288 = arith.constant 1288 : index
    %c0_140 = arith.constant 0 : index
    %238 = tpu.strided_load %arg8[%c1288, %c0_140] {strides = array<i32: 2, 1>} : memref<3136x64xf32, #tpu.memory_space<vmem>>, vector<12x64xf32>
    %c1289 = arith.constant 1289 : index
    %c0_141 = arith.constant 0 : index
    %239 = tpu.strided_load %arg8[%c1289, %c0_141] {strides = array<i32: 2, 1>} : memref<3136x64xf32, #tpu.memory_space<vmem>>, vector<12x64xf32>
    %240 = arith.maximumf %238, %239 : vector<12x64xf32>
    %c1316 = arith.constant 1316 : index
    %c0_142 = arith.constant 0 : index
    %241 = tpu.strided_load %arg8[%c1316, %c0_142] {strides = array<i32: 2, 1>} : memref<3136x64xf32, #tpu.memory_space<vmem>>, vector<12x64xf32>
    %242 = arith.maximumf %240, %241 : vector<12x64xf32>
    %c1317 = arith.constant 1317 : index
    %c0_143 = arith.constant 0 : index
    %243 = tpu.strided_load %arg8[%c1317, %c0_143] {strides = array<i32: 2, 1>} : memref<3136x64xf32, #tpu.memory_space<vmem>>, vector<12x64xf32>
    %244 = arith.maximumf %242, %243 : vector<12x64xf32>
    %245 = arith.truncf %244 : vector<12x64xf32> to vector<12x64xbf16>
    %c0_144 = arith.constant 0 : index
    %c252_145 = arith.constant 252 : index
    %c0_146 = arith.constant 0 : index
    %246 = vector.load %arg6[%c0_144, %c252_145, %c0_146] : memref<1x576x64xbf16, #tpu.memory_space<vmem>>, vector<1x12x64xbf16>
    %247 = vector.shape_cast %246 : vector<1x12x64xbf16> to vector<12x64xbf16>
    %248 = vector.shape_cast %245 : vector<12x64xbf16> to vector<1x12x64xbf16>
    tpu.vector_store %arg6[%c0_144, %c252_145, %c0_146], %248 {strides = array<i32>} : memref<1x576x64xbf16, #tpu.memory_space<vmem>>, vector<1x12x64xbf16>,
    %c1344 = arith.constant 1344 : index
    %c0_147 = arith.constant 0 : index
    %249 = tpu.strided_load %arg8[%c1344, %c0_147] {strides = array<i32: 2, 1>} : memref<3136x64xf32, #tpu.memory_space<vmem>>, vector<12x64xf32>
    %c1345 = arith.constant 1345 : index
    %c0_148 = arith.constant 0 : index
    %250 = tpu.strided_load %arg8[%c1345, %c0_148] {strides = array<i32: 2, 1>} : memref<3136x64xf32, #tpu.memory_space<vmem>>, vector<12x64xf32>
    %251 = arith.maximumf %249, %250 : vector<12x64xf32>
    %c1372 = arith.constant 1372 : index
    %c0_149 = arith.constant 0 : index
    %252 = tpu.strided_load %arg8[%c1372, %c0_149] {strides = array<i32: 2, 1>} : memref<3136x64xf32, #tpu.memory_space<vmem>>, vector<12x64xf32>
    %253 = arith.maximumf %251, %252 : vector<12x64xf32>
    %c1373 = arith.constant 1373 : index
    %c0_150 = arith.constant 0 : index
    %254 = tpu.strided_load %arg8[%c1373, %c0_150] {strides = array<i32: 2, 1>} : memref<3136x64xf32, #tpu.memory_space<vmem>>, vector<12x64xf32>
    %255 = arith.maximumf %253, %254 : vector<12x64xf32>
    %256 = arith.truncf %255 : vector<12x64xf32> to vector<12x64xbf16>
    %c0_151 = arith.constant 0 : index
    %c264 = arith.constant 264 : index
    %c0_152 = arith.constant 0 : index
    %257 = vector.load %arg6[%c0_151, %c264, %c0_152] : memref<1x576x64xbf16, #tpu.memory_space<vmem>>, vector<1x12x64xbf16>
    %258 = vector.shape_cast %257 : vector<1x12x64xbf16> to vector<12x64xbf16>
    %259 = vector.shape_cast %256 : vector<12x64xbf16> to vector<1x12x64xbf16>
    tpu.vector_store %arg6[%c0_151, %c264, %c0_152], %259 {strides = array<i32>} : memref<1x576x64xbf16, #tpu.memory_space<vmem>>, vector<1x12x64xbf16>,
    %c1400 = arith.constant 1400 : index
    %c0_153 = arith.constant 0 : index
    %260 = tpu.strided_load %arg8[%c1400, %c0_153] {strides = array<i32: 2, 1>} : memref<3136x64xf32, #tpu.memory_space<vmem>>, vector<12x64xf32>
    %c1401 = arith.constant 1401 : index
    %c0_154 = arith.constant 0 : index
    %261 = tpu.strided_load %arg8[%c1401, %c0_154] {strides = array<i32: 2, 1>} : memref<3136x64xf32, #tpu.memory_space<vmem>>, vector<12x64xf32>
    %262 = arith.maximumf %260, %261 : vector<12x64xf32>
    %c1428 = arith.constant 1428 : index
    %c0_155 = arith.constant 0 : index
    %263 = tpu.strided_load %arg8[%c1428, %c0_155] {strides = array<i32: 2, 1>} : memref<3136x64xf32, #tpu.memory_space<vmem>>, vector<12x64xf32>
    %264 = arith.maximumf %262, %263 : vector<12x64xf32>
    %c1429 = arith.constant 1429 : index
    %c0_156 = arith.constant 0 : index
    %265 = tpu.strided_load %arg8[%c1429, %c0_156] {strides = array<i32: 2, 1>} : memref<3136x64xf32, #tpu.memory_space<vmem>>, vector<12x64xf32>
    %266 = arith.maximumf %264, %265 : vector<12x64xf32>
    %267 = arith.truncf %266 : vector<12x64xf32> to vector<12x64xbf16>
    %c0_157 = arith.constant 0 : index
    %c276 = arith.constant 276 : index
    %c0_158 = arith.constant 0 : index
    %268 = vector.load %arg6[%c0_157, %c276, %c0_158] : memref<1x576x64xbf16, #tpu.memory_space<vmem>>, vector<1x12x64xbf16>
    %269 = vector.shape_cast %268 : vector<1x12x64xbf16> to vector<12x64xbf16>
    %270 = vector.shape_cast %267 : vector<12x64xbf16> to vector<1x12x64xbf16>
    tpu.vector_store %arg6[%c0_157, %c276, %c0_158], %270 {strides = array<i32>} : memref<1x576x64xbf16, #tpu.memory_space<vmem>>, vector<1x12x64xbf16>,
    %c1568 = arith.constant 1568 : index
    %c0_159 = arith.constant 0 : index
    %271 = tpu.strided_load %arg8[%c1568, %c0_159] {strides = array<i32: 2, 1>} : memref<3136x64xf32, #tpu.memory_space<vmem>>, vector<12x64xf32>
    %c1569 = arith.constant 1569 : index
    %c0_160 = arith.constant 0 : index
    %272 = tpu.strided_load %arg8[%c1569, %c0_160] {strides = array<i32: 2, 1>} : memref<3136x64xf32, #tpu.memory_space<vmem>>, vector<12x64xf32>
    %273 = arith.maximumf %271, %272 : vector<12x64xf32>
    %c1596 = arith.constant 1596 : index
    %c0_161 = arith.constant 0 : index
    %274 = tpu.strided_load %arg8[%c1596, %c0_161] {strides = array<i32: 2, 1>} : memref<3136x64xf32, #tpu.memory_space<vmem>>, vector<12x64xf32>
    %275 = arith.maximumf %273, %274 : vector<12x64xf32>
    %c1597 = arith.constant 1597 : index
    %c0_162 = arith.constant 0 : index
    %276 = tpu.strided_load %arg8[%c1597, %c0_162] {strides = array<i32: 2, 1>} : memref<3136x64xf32, #tpu.memory_space<vmem>>, vector<12x64xf32>
    %277 = arith.maximumf %275, %276 : vector<12x64xf32>
    %278 = arith.truncf %277 : vector<12x64xf32> to vector<12x64xbf16>
    %c0_163 = arith.constant 0 : index
    %c288 = arith.constant 288 : index
    %c0_164 = arith.constant 0 : index
    %279 = vector.load %arg6[%c0_163, %c288, %c0_164] : memref<1x576x64xbf16, #tpu.memory_space<vmem>>, vector<1x12x64xbf16>
    %280 = vector.shape_cast %279 : vector<1x12x64xbf16> to vector<12x64xbf16>
    %281 = vector.shape_cast %278 : vector<12x64xbf16> to vector<1x12x64xbf16>
    tpu.vector_store %arg6[%c0_163, %c288, %c0_164], %281 {strides = array<i32>} : memref<1x576x64xbf16, #tpu.memory_space<vmem>>, vector<1x12x64xbf16>,
    %c1624 = arith.constant 1624 : index
    %c0_165 = arith.constant 0 : index
    %282 = tpu.strided_load %arg8[%c1624, %c0_165] {strides = array<i32: 2, 1>} : memref<3136x64xf32, #tpu.memory_space<vmem>>, vector<12x64xf32>
    %c1625 = arith.constant 1625 : index
    %c0_166 = arith.constant 0 : index
    %283 = tpu.strided_load %arg8[%c1625, %c0_166] {strides = array<i32: 2, 1>} : memref<3136x64xf32, #tpu.memory_space<vmem>>, vector<12x64xf32>
    %284 = arith.maximumf %282, %283 : vector<12x64xf32>
    %c1652 = arith.constant 1652 : index
    %c0_167 = arith.constant 0 : index
    %285 = tpu.strided_load %arg8[%c1652, %c0_167] {strides = array<i32: 2, 1>} : memref<3136x64xf32, #tpu.memory_space<vmem>>, vector<12x64xf32>
    %286 = arith.maximumf %284, %285 : vector<12x64xf32>
    %c1653 = arith.constant 1653 : index
    %c0_168 = arith.constant 0 : index
    %287 = tpu.strided_load %arg8[%c1653, %c0_168] {strides = array<i32: 2, 1>} : memref<3136x64xf32, #tpu.memory_space<vmem>>, vector<12x64xf32>
    %288 = arith.maximumf %286, %287 : vector<12x64xf32>
    %289 = arith.truncf %288 : vector<12x64xf32> to vector<12x64xbf16>
    %c0_169 = arith.constant 0 : index
    %c300 = arith.constant 300 : index
    %c0_170 = arith.constant 0 : index
    %290 = vector.load %arg6[%c0_169, %c300, %c0_170] : memref<1x576x64xbf16, #tpu.memory_space<vmem>>, vector<1x12x64xbf16>
    %291 = vector.shape_cast %290 : vector<1x12x64xbf16> to vector<12x64xbf16>
    %292 = vector.shape_cast %289 : vector<12x64xbf16> to vector<1x12x64xbf16>
    tpu.vector_store %arg6[%c0_169, %c300, %c0_170], %292 {strides = array<i32>} : memref<1x576x64xbf16, #tpu.memory_space<vmem>>, vector<1x12x64xbf16>,
    %c1680 = arith.constant 1680 : index
    %c0_171 = arith.constant 0 : index
    %293 = tpu.strided_load %arg8[%c1680, %c0_171] {strides = array<i32: 2, 1>} : memref<3136x64xf32, #tpu.memory_space<vmem>>, vector<12x64xf32>
    %c1681 = arith.constant 1681 : index
    %c0_172 = arith.constant 0 : index
    %294 = tpu.strided_load %arg8[%c1681, %c0_172] {strides = array<i32: 2, 1>} : memref<3136x64xf32, #tpu.memory_space<vmem>>, vector<12x64xf32>
    %295 = arith.maximumf %293, %294 : vector<12x64xf32>
    %c1708 = arith.constant 1708 : index
    %c0_173 = arith.constant 0 : index
    %296 = tpu.strided_load %arg8[%c1708, %c0_173] {strides = array<i32: 2, 1>} : memref<3136x64xf32, #tpu.memory_space<vmem>>, vector<12x64xf32>
    %297 = arith.maximumf %295, %296 : vector<12x64xf32>
    %c1709 = arith.constant 1709 : index
    %c0_174 = arith.constant 0 : index
    %298 = tpu.strided_load %arg8[%c1709, %c0_174] {strides = array<i32: 2, 1>} : memref<3136x64xf32, #tpu.memory_space<vmem>>, vector<12x64xf32>
    %299 = arith.maximumf %297, %298 : vector<12x64xf32>
    %300 = arith.truncf %299 : vector<12x64xf32> to vector<12x64xbf16>
    %c0_175 = arith.constant 0 : index
    %c312 = arith.constant 312 : index
    %c0_176 = arith.constant 0 : index
    %301 = vector.load %arg6[%c0_175, %c312, %c0_176] : memref<1x576x64xbf16, #tpu.memory_space<vmem>>, vector<1x12x64xbf16>
    %302 = vector.shape_cast %301 : vector<1x12x64xbf16> to vector<12x64xbf16>
    %303 = vector.shape_cast %300 : vector<12x64xbf16> to vector<1x12x64xbf16>
    tpu.vector_store %arg6[%c0_175, %c312, %c0_176], %303 {strides = array<i32>} : memref<1x576x64xbf16, #tpu.memory_space<vmem>>, vector<1x12x64xbf16>,
    %c1736 = arith.constant 1736 : index
    %c0_177 = arith.constant 0 : index
    %304 = tpu.strided_load %arg8[%c1736, %c0_177] {strides = array<i32: 2, 1>} : memref<3136x64xf32, #tpu.memory_space<vmem>>, vector<12x64xf32>
    %c1737 = arith.constant 1737 : index
    %c0_178 = arith.constant 0 : index
    %305 = tpu.strided_load %arg8[%c1737, %c0_178] {strides = array<i32: 2, 1>} : memref<3136x64xf32, #tpu.memory_space<vmem>>, vector<12x64xf32>
    %306 = arith.maximumf %304, %305 : vector<12x64xf32>
    %c1764 = arith.constant 1764 : index
    %c0_179 = arith.constant 0 : index
    %307 = tpu.strided_load %arg8[%c1764, %c0_179] {strides = array<i32: 2, 1>} : memref<3136x64xf32, #tpu.memory_space<vmem>>, vector<12x64xf32>
    %308 = arith.maximumf %306, %307 : vector<12x64xf32>
    %c1765 = arith.constant 1765 : index
    %c0_180 = arith.constant 0 : index
    %309 = tpu.strided_load %arg8[%c1765, %c0_180] {strides = array<i32: 2, 1>} : memref<3136x64xf32, #tpu.memory_space<vmem>>, vector<12x64xf32>
    %310 = arith.maximumf %308, %309 : vector<12x64xf32>
    %311 = arith.truncf %310 : vector<12x64xf32> to vector<12x64xbf16>
    %c0_181 = arith.constant 0 : index
    %c324 = arith.constant 324 : index
    %c0_182 = arith.constant 0 : index
    %312 = vector.load %arg6[%c0_181, %c324, %c0_182] : memref<1x576x64xbf16, #tpu.memory_space<vmem>>, vector<1x12x64xbf16>
    %313 = vector.shape_cast %312 : vector<1x12x64xbf16> to vector<12x64xbf16>
    %314 = vector.shape_cast %311 : vector<12x64xbf16> to vector<1x12x64xbf16>
    tpu.vector_store %arg6[%c0_181, %c324, %c0_182], %314 {strides = array<i32>} : memref<1x576x64xbf16, #tpu.memory_space<vmem>>, vector<1x12x64xbf16>,
    %c1792 = arith.constant 1792 : index
    %c0_183 = arith.constant 0 : index
    %315 = tpu.strided_load %arg8[%c1792, %c0_183] {strides = array<i32: 2, 1>} : memref<3136x64xf32, #tpu.memory_space<vmem>>, vector<12x64xf32>
    %c1793 = arith.constant 1793 : index
    %c0_184 = arith.constant 0 : index
    %316 = tpu.strided_load %arg8[%c1793, %c0_184] {strides = array<i32: 2, 1>} : memref<3136x64xf32, #tpu.memory_space<vmem>>, vector<12x64xf32>
    %317 = arith.maximumf %315, %316 : vector<12x64xf32>
    %c1820 = arith.constant 1820 : index
    %c0_185 = arith.constant 0 : index
    %318 = tpu.strided_load %arg8[%c1820, %c0_185] {strides = array<i32: 2, 1>} : memref<3136x64xf32, #tpu.memory_space<vmem>>, vector<12x64xf32>
    %319 = arith.maximumf %317, %318 : vector<12x64xf32>
    %c1821 = arith.constant 1821 : index
    %c0_186 = arith.constant 0 : index
    %320 = tpu.strided_load %arg8[%c1821, %c0_186] {strides = array<i32: 2, 1>} : memref<3136x64xf32, #tpu.memory_space<vmem>>, vector<12x64xf32>
    %321 = arith.maximumf %319, %320 : vector<12x64xf32>
    %322 = arith.truncf %321 : vector<12x64xf32> to vector<12x64xbf16>
    %c0_187 = arith.constant 0 : index
    %c336_188 = arith.constant 336 : index
    %c0_189 = arith.constant 0 : index
    %323 = vector.load %arg6[%c0_187, %c336_188, %c0_189] : memref<1x576x64xbf16, #tpu.memory_space<vmem>>, vector<1x12x64xbf16>
    %324 = vector.shape_cast %323 : vector<1x12x64xbf16> to vector<12x64xbf16>
    %325 = vector.shape_cast %322 : vector<12x64xbf16> to vector<1x12x64xbf16>
    tpu.vector_store %arg6[%c0_187, %c336_188, %c0_189], %325 {strides = array<i32>} : memref<1x576x64xbf16, #tpu.memory_space<vmem>>, vector<1x12x64xbf16>,
    %c1848 = arith.constant 1848 : index
    %c0_190 = arith.constant 0 : index
    %326 = tpu.strided_load %arg8[%c1848, %c0_190] {strides = array<i32: 2, 1>} : memref<3136x64xf32, #tpu.memory_space<vmem>>, vector<12x64xf32>
    %c1849 = arith.constant 1849 : index
    %c0_191 = arith.constant 0 : index
    %327 = tpu.strided_load %arg8[%c1849, %c0_191] {strides = array<i32: 2, 1>} : memref<3136x64xf32, #tpu.memory_space<vmem>>, vector<12x64xf32>
    %328 = arith.maximumf %326, %327 : vector<12x64xf32>
    %c1876 = arith.constant 1876 : index
    %c0_192 = arith.constant 0 : index
    %329 = tpu.strided_load %arg8[%c1876, %c0_192] {strides = array<i32: 2, 1>} : memref<3136x64xf32, #tpu.memory_space<vmem>>, vector<12x64xf32>
    %330 = arith.maximumf %328, %329 : vector<12x64xf32>
    %c1877 = arith.constant 1877 : index
    %c0_193 = arith.constant 0 : index
    %331 = tpu.strided_load %arg8[%c1877, %c0_193] {strides = array<i32: 2, 1>} : memref<3136x64xf32, #tpu.memory_space<vmem>>, vector<12x64xf32>
    %332 = arith.maximumf %330, %331 : vector<12x64xf32>
    %333 = arith.truncf %332 : vector<12x64xf32> to vector<12x64xbf16>
    %c0_194 = arith.constant 0 : index
    %c348 = arith.constant 348 : index
    %c0_195 = arith.constant 0 : index
    %334 = vector.load %arg6[%c0_194, %c348, %c0_195] : memref<1x576x64xbf16, #tpu.memory_space<vmem>>, vector<1x12x64xbf16>
    %335 = vector.shape_cast %334 : vector<1x12x64xbf16> to vector<12x64xbf16>
    %336 = vector.shape_cast %333 : vector<12x64xbf16> to vector<1x12x64xbf16>
    tpu.vector_store %arg6[%c0_194, %c348, %c0_195], %336 {strides = array<i32>} : memref<1x576x64xbf16, #tpu.memory_space<vmem>>, vector<1x12x64xbf16>,
    %c1904 = arith.constant 1904 : index
    %c0_196 = arith.constant 0 : index
    %337 = tpu.strided_load %arg8[%c1904, %c0_196] {strides = array<i32: 2, 1>} : memref<3136x64xf32, #tpu.memory_space<vmem>>, vector<12x64xf32>
    %c1905 = arith.constant 1905 : index
    %c0_197 = arith.constant 0 : index
    %338 = tpu.strided_load %arg8[%c1905, %c0_197] {strides = array<i32: 2, 1>} : memref<3136x64xf32, #tpu.memory_space<vmem>>, vector<12x64xf32>
    %339 = arith.maximumf %337, %338 : vector<12x64xf32>
    %c1932 = arith.constant 1932 : index
    %c0_198 = arith.constant 0 : index
    %340 = tpu.strided_load %arg8[%c1932, %c0_198] {strides = array<i32: 2, 1>} : memref<3136x64xf32, #tpu.memory_space<vmem>>, vector<12x64xf32>
    %341 = arith.maximumf %339, %340 : vector<12x64xf32>
    %c1933 = arith.constant 1933 : index
    %c0_199 = arith.constant 0 : index
    %342 = tpu.strided_load %arg8[%c1933, %c0_199] {strides = array<i32: 2, 1>} : memref<3136x64xf32, #tpu.memory_space<vmem>>, vector<12x64xf32>
    %343 = arith.maximumf %341, %342 : vector<12x64xf32>
    %344 = arith.truncf %343 : vector<12x64xf32> to vector<12x64xbf16>
    %c0_200 = arith.constant 0 : index
    %c360 = arith.constant 360 : index
    %c0_201 = arith.constant 0 : index
    %345 = vector.load %arg6[%c0_200, %c360, %c0_201] : memref<1x576x64xbf16, #tpu.memory_space<vmem>>, vector<1x12x64xbf16>
    %346 = vector.shape_cast %345 : vector<1x12x64xbf16> to vector<12x64xbf16>
    %347 = vector.shape_cast %344 : vector<12x64xbf16> to vector<1x12x64xbf16>
    tpu.vector_store %arg6[%c0_200, %c360, %c0_201], %347 {strides = array<i32>} : memref<1x576x64xbf16, #tpu.memory_space<vmem>>, vector<1x12x64xbf16>,
    %c1960 = arith.constant 1960 : index
    %c0_202 = arith.constant 0 : index
    %348 = tpu.strided_load %arg8[%c1960, %c0_202] {strides = array<i32: 2, 1>} : memref<3136x64xf32, #tpu.memory_space<vmem>>, vector<12x64xf32>
    %c1961 = arith.constant 1961 : index
    %c0_203 = arith.constant 0 : index
    %349 = tpu.strided_load %arg8[%c1961, %c0_203] {strides = array<i32: 2, 1>} : memref<3136x64xf32, #tpu.memory_space<vmem>>, vector<12x64xf32>
    %350 = arith.maximumf %348, %349 : vector<12x64xf32>
    %c1988 = arith.constant 1988 : index
    %c0_204 = arith.constant 0 : index
    %351 = tpu.strided_load %arg8[%c1988, %c0_204] {strides = array<i32: 2, 1>} : memref<3136x64xf32, #tpu.memory_space<vmem>>, vector<12x64xf32>
    %352 = arith.maximumf %350, %351 : vector<12x64xf32>
    %c1989 = arith.constant 1989 : index
    %c0_205 = arith.constant 0 : index
    %353 = tpu.strided_load %arg8[%c1989, %c0_205] {strides = array<i32: 2, 1>} : memref<3136x64xf32, #tpu.memory_space<vmem>>, vector<12x64xf32>
    %354 = arith.maximumf %352, %353 : vector<12x64xf32>
    %355 = arith.truncf %354 : vector<12x64xf32> to vector<12x64xbf16>
    %c0_206 = arith.constant 0 : index
    %c372 = arith.constant 372 : index
    %c0_207 = arith.constant 0 : index
    %356 = vector.load %arg6[%c0_206, %c372, %c0_207] : memref<1x576x64xbf16, #tpu.memory_space<vmem>>, vector<1x12x64xbf16>
    %357 = vector.shape_cast %356 : vector<1x12x64xbf16> to vector<12x64xbf16>
    %358 = vector.shape_cast %355 : vector<12x64xbf16> to vector<1x12x64xbf16>
    tpu.vector_store %arg6[%c0_206, %c372, %c0_207], %358 {strides = array<i32>} : memref<1x576x64xbf16, #tpu.memory_space<vmem>>, vector<1x12x64xbf16>,
    %c2016 = arith.constant 2016 : index
    %c0_208 = arith.constant 0 : index
    %359 = tpu.strided_load %arg8[%c2016, %c0_208] {strides = array<i32: 2, 1>} : memref<3136x64xf32, #tpu.memory_space<vmem>>, vector<12x64xf32>
    %c2017 = arith.constant 2017 : index
    %c0_209 = arith.constant 0 : index
    %360 = tpu.strided_load %arg8[%c2017, %c0_209] {strides = array<i32: 2, 1>} : memref<3136x64xf32, #tpu.memory_space<vmem>>, vector<12x64xf32>
    %361 = arith.maximumf %359, %360 : vector<12x64xf32>
    %c2044 = arith.constant 2044 : index
    %c0_210 = arith.constant 0 : index
    %362 = tpu.strided_load %arg8[%c2044, %c0_210] {strides = array<i32: 2, 1>} : memref<3136x64xf32, #tpu.memory_space<vmem>>, vector<12x64xf32>
    %363 = arith.maximumf %361, %362 : vector<12x64xf32>
    %c2045 = arith.constant 2045 : index
    %c0_211 = arith.constant 0 : index
    %364 = tpu.strided_load %arg8[%c2045, %c0_211] {strides = array<i32: 2, 1>} : memref<3136x64xf32, #tpu.memory_space<vmem>>, vector<12x64xf32>
    %365 = arith.maximumf %363, %364 : vector<12x64xf32>
    %366 = arith.truncf %365 : vector<12x64xf32> to vector<12x64xbf16>
    %c0_212 = arith.constant 0 : index
    %c384 = arith.constant 384 : index
    %c0_213 = arith.constant 0 : index
    %367 = vector.load %arg6[%c0_212, %c384, %c0_213] : memref<1x576x64xbf16, #tpu.memory_space<vmem>>, vector<1x12x64xbf16>
    %368 = vector.shape_cast %367 : vector<1x12x64xbf16> to vector<12x64xbf16>
    %369 = vector.shape_cast %366 : vector<12x64xbf16> to vector<1x12x64xbf16>
    tpu.vector_store %arg6[%c0_212, %c384, %c0_213], %369 {strides = array<i32>} : memref<1x576x64xbf16, #tpu.memory_space<vmem>>, vector<1x12x64xbf16>,
    %c2072 = arith.constant 2072 : index
    %c0_214 = arith.constant 0 : index
    %370 = tpu.strided_load %arg8[%c2072, %c0_214] {strides = array<i32: 2, 1>} : memref<3136x64xf32, #tpu.memory_space<vmem>>, vector<12x64xf32>
    %c2073 = arith.constant 2073 : index
    %c0_215 = arith.constant 0 : index
    %371 = tpu.strided_load %arg8[%c2073, %c0_215] {strides = array<i32: 2, 1>} : memref<3136x64xf32, #tpu.memory_space<vmem>>, vector<12x64xf32>
    %372 = arith.maximumf %370, %371 : vector<12x64xf32>
    %c2100 = arith.constant 2100 : index
    %c0_216 = arith.constant 0 : index
    %373 = tpu.strided_load %arg8[%c2100, %c0_216] {strides = array<i32: 2, 1>} : memref<3136x64xf32, #tpu.memory_space<vmem>>, vector<12x64xf32>
    %374 = arith.maximumf %372, %373 : vector<12x64xf32>
    %c2101 = arith.constant 2101 : index
    %c0_217 = arith.constant 0 : index
    %375 = tpu.strided_load %arg8[%c2101, %c0_217] {strides = array<i32: 2, 1>} : memref<3136x64xf32, #tpu.memory_space<vmem>>, vector<12x64xf32>
    %376 = arith.maximumf %374, %375 : vector<12x64xf32>
    %377 = arith.truncf %376 : vector<12x64xf32> to vector<12x64xbf16>
    %c0_218 = arith.constant 0 : index
    %c396 = arith.constant 396 : index
    %c0_219 = arith.constant 0 : index
    %378 = vector.load %arg6[%c0_218, %c396, %c0_219] : memref<1x576x64xbf16, #tpu.memory_space<vmem>>, vector<1x12x64xbf16>
    %379 = vector.shape_cast %378 : vector<1x12x64xbf16> to vector<12x64xbf16>
    %380 = vector.shape_cast %377 : vector<12x64xbf16> to vector<1x12x64xbf16>
    tpu.vector_store %arg6[%c0_218, %c396, %c0_219], %380 {strides = array<i32>} : memref<1x576x64xbf16, #tpu.memory_space<vmem>>, vector<1x12x64xbf16>,
    %c2128 = arith.constant 2128 : index
    %c0_220 = arith.constant 0 : index
    %381 = tpu.strided_load %arg8[%c2128, %c0_220] {strides = array<i32: 2, 1>} : memref<3136x64xf32, #tpu.memory_space<vmem>>, vector<12x64xf32>
    %c2129 = arith.constant 2129 : index
    %c0_221 = arith.constant 0 : index
    %382 = tpu.strided_load %arg8[%c2129, %c0_221] {strides = array<i32: 2, 1>} : memref<3136x64xf32, #tpu.memory_space<vmem>>, vector<12x64xf32>
    %383 = arith.maximumf %381, %382 : vector<12x64xf32>
    %c2156 = arith.constant 2156 : index
    %c0_222 = arith.constant 0 : index
    %384 = tpu.strided_load %arg8[%c2156, %c0_222] {strides = array<i32: 2, 1>} : memref<3136x64xf32, #tpu.memory_space<vmem>>, vector<12x64xf32>
    %385 = arith.maximumf %383, %384 : vector<12x64xf32>
    %c2157 = arith.constant 2157 : index
    %c0_223 = arith.constant 0 : index
    %386 = tpu.strided_load %arg8[%c2157, %c0_223] {strides = array<i32: 2, 1>} : memref<3136x64xf32, #tpu.memory_space<vmem>>, vector<12x64xf32>
    %387 = arith.maximumf %385, %386 : vector<12x64xf32>
    %388 = arith.truncf %387 : vector<12x64xf32> to vector<12x64xbf16>
    %c0_224 = arith.constant 0 : index
    %c408 = arith.constant 408 : index
    %c0_225 = arith.constant 0 : index
    %389 = vector.load %arg6[%c0_224, %c408, %c0_225] : memref<1x576x64xbf16, #tpu.memory_space<vmem>>, vector<1x12x64xbf16>
    %390 = vector.shape_cast %389 : vector<1x12x64xbf16> to vector<12x64xbf16>
    %391 = vector.shape_cast %388 : vector<12x64xbf16> to vector<1x12x64xbf16>
    tpu.vector_store %arg6[%c0_224, %c408, %c0_225], %391 {strides = array<i32>} : memref<1x576x64xbf16, #tpu.memory_space<vmem>>, vector<1x12x64xbf16>,
    %c2184 = arith.constant 2184 : index
    %c0_226 = arith.constant 0 : index
    %392 = tpu.strided_load %arg8[%c2184, %c0_226] {strides = array<i32: 2, 1>} : memref<3136x64xf32, #tpu.memory_space<vmem>>, vector<12x64xf32>
    %c2185 = arith.constant 2185 : index
    %c0_227 = arith.constant 0 : index
    %393 = tpu.strided_load %arg8[%c2185, %c0_227] {strides = array<i32: 2, 1>} : memref<3136x64xf32, #tpu.memory_space<vmem>>, vector<12x64xf32>
    %394 = arith.maximumf %392, %393 : vector<12x64xf32>
    %c2212 = arith.constant 2212 : index
    %c0_228 = arith.constant 0 : index
    %395 = tpu.strided_load %arg8[%c2212, %c0_228] {strides = array<i32: 2, 1>} : memref<3136x64xf32, #tpu.memory_space<vmem>>, vector<12x64xf32>
    %396 = arith.maximumf %394, %395 : vector<12x64xf32>
    %c2213 = arith.constant 2213 : index
    %c0_229 = arith.constant 0 : index
    %397 = tpu.strided_load %arg8[%c2213, %c0_229] {strides = array<i32: 2, 1>} : memref<3136x64xf32, #tpu.memory_space<vmem>>, vector<12x64xf32>
    %398 = arith.maximumf %396, %397 : vector<12x64xf32>
    %399 = arith.truncf %398 : vector<12x64xf32> to vector<12x64xbf16>
    %c0_230 = arith.constant 0 : index
    %c420_231 = arith.constant 420 : index
    %c0_232 = arith.constant 0 : index
    %400 = vector.load %arg6[%c0_230, %c420_231, %c0_232] : memref<1x576x64xbf16, #tpu.memory_space<vmem>>, vector<1x12x64xbf16>
    %401 = vector.shape_cast %400 : vector<1x12x64xbf16> to vector<12x64xbf16>
    %402 = vector.shape_cast %399 : vector<12x64xbf16> to vector<1x12x64xbf16>
    tpu.vector_store %arg6[%c0_230, %c420_231, %c0_232], %402 {strides = array<i32>} : memref<1x576x64xbf16, #tpu.memory_space<vmem>>, vector<1x12x64xbf16>,
    %c2352 = arith.constant 2352 : index
    %c0_233 = arith.constant 0 : index
    %403 = tpu.strided_load %arg8[%c2352, %c0_233] {strides = array<i32: 2, 1>} : memref<3136x64xf32, #tpu.memory_space<vmem>>, vector<12x64xf32>
    %c2353 = arith.constant 2353 : index
    %c0_234 = arith.constant 0 : index
    %404 = tpu.strided_load %arg8[%c2353, %c0_234] {strides = array<i32: 2, 1>} : memref<3136x64xf32, #tpu.memory_space<vmem>>, vector<12x64xf32>
    %405 = arith.maximumf %403, %404 : vector<12x64xf32>
    %c2380 = arith.constant 2380 : index
    %c0_235 = arith.constant 0 : index
    %406 = tpu.strided_load %arg8[%c2380, %c0_235] {strides = array<i32: 2, 1>} : memref<3136x64xf32, #tpu.memory_space<vmem>>, vector<12x64xf32>
    %407 = arith.maximumf %405, %406 : vector<12x64xf32>
    %c2381 = arith.constant 2381 : index
    %c0_236 = arith.constant 0 : index
    %408 = tpu.strided_load %arg8[%c2381, %c0_236] {strides = array<i32: 2, 1>} : memref<3136x64xf32, #tpu.memory_space<vmem>>, vector<12x64xf32>
    %409 = arith.maximumf %407, %408 : vector<12x64xf32>
    %410 = arith.truncf %409 : vector<12x64xf32> to vector<12x64xbf16>
    %c0_237 = arith.constant 0 : index
    %c432 = arith.constant 432 : index
    %c0_238 = arith.constant 0 : index
    %411 = vector.load %arg6[%c0_237, %c432, %c0_238] : memref<1x576x64xbf16, #tpu.memory_space<vmem>>, vector<1x12x64xbf16>
    %412 = vector.shape_cast %411 : vector<1x12x64xbf16> to vector<12x64xbf16>
    %413 = vector.shape_cast %410 : vector<12x64xbf16> to vector<1x12x64xbf16>
    tpu.vector_store %arg6[%c0_237, %c432, %c0_238], %413 {strides = array<i32>} : memref<1x576x64xbf16, #tpu.memory_space<vmem>>, vector<1x12x64xbf16>,
    %c2408 = arith.constant 2408 : index
    %c0_239 = arith.constant 0 : index
    %414 = tpu.strided_load %arg8[%c2408, %c0_239] {strides = array<i32: 2, 1>} : memref<3136x64xf32, #tpu.memory_space<vmem>>, vector<12x64xf32>
    %c2409 = arith.constant 2409 : index
    %c0_240 = arith.constant 0 : index
    %415 = tpu.strided_load %arg8[%c2409, %c0_240] {strides = array<i32: 2, 1>} : memref<3136x64xf32, #tpu.memory_space<vmem>>, vector<12x64xf32>
    %416 = arith.maximumf %414, %415 : vector<12x64xf32>
    %c2436 = arith.constant 2436 : index
    %c0_241 = arith.constant 0 : index
    %417 = tpu.strided_load %arg8[%c2436, %c0_241] {strides = array<i32: 2, 1>} : memref<3136x64xf32, #tpu.memory_space<vmem>>, vector<12x64xf32>
    %418 = arith.maximumf %416, %417 : vector<12x64xf32>
    %c2437 = arith.constant 2437 : index
    %c0_242 = arith.constant 0 : index
    %419 = tpu.strided_load %arg8[%c2437, %c0_242] {strides = array<i32: 2, 1>} : memref<3136x64xf32, #tpu.memory_space<vmem>>, vector<12x64xf32>
    %420 = arith.maximumf %418, %419 : vector<12x64xf32>
    %421 = arith.truncf %420 : vector<12x64xf32> to vector<12x64xbf16>
    %c0_243 = arith.constant 0 : index
    %c444 = arith.constant 444 : index
    %c0_244 = arith.constant 0 : index
    %422 = vector.load %arg6[%c0_243, %c444, %c0_244] : memref<1x576x64xbf16, #tpu.memory_space<vmem>>, vector<1x12x64xbf16>
    %423 = vector.shape_cast %422 : vector<1x12x64xbf16> to vector<12x64xbf16>
    %424 = vector.shape_cast %421 : vector<12x64xbf16> to vector<1x12x64xbf16>
    tpu.vector_store %arg6[%c0_243, %c444, %c0_244], %424 {strides = array<i32>} : memref<1x576x64xbf16, #tpu.memory_space<vmem>>, vector<1x12x64xbf16>,
    %c2464 = arith.constant 2464 : index
    %c0_245 = arith.constant 0 : index
    %425 = tpu.strided_load %arg8[%c2464, %c0_245] {strides = array<i32: 2, 1>} : memref<3136x64xf32, #tpu.memory_space<vmem>>, vector<12x64xf32>
    %c2465 = arith.constant 2465 : index
    %c0_246 = arith.constant 0 : index
    %426 = tpu.strided_load %arg8[%c2465, %c0_246] {strides = array<i32: 2, 1>} : memref<3136x64xf32, #tpu.memory_space<vmem>>, vector<12x64xf32>
    %427 = arith.maximumf %425, %426 : vector<12x64xf32>
    %c2492 = arith.constant 2492 : index
    %c0_247 = arith.constant 0 : index
    %428 = tpu.strided_load %arg8[%c2492, %c0_247] {strides = array<i32: 2, 1>} : memref<3136x64xf32, #tpu.memory_space<vmem>>, vector<12x64xf32>
    %429 = arith.maximumf %427, %428 : vector<12x64xf32>
    %c2493 = arith.constant 2493 : index
    %c0_248 = arith.constant 0 : index
    %430 = tpu.strided_load %arg8[%c2493, %c0_248] {strides = array<i32: 2, 1>} : memref<3136x64xf32, #tpu.memory_space<vmem>>, vector<12x64xf32>
    %431 = arith.maximumf %429, %430 : vector<12x64xf32>
    %432 = arith.truncf %431 : vector<12x64xf32> to vector<12x64xbf16>
    %c0_249 = arith.constant 0 : index
    %c456 = arith.constant 456 : index
    %c0_250 = arith.constant 0 : index
    %433 = vector.load %arg6[%c0_249, %c456, %c0_250] : memref<1x576x64xbf16, #tpu.memory_space<vmem>>, vector<1x12x64xbf16>
    %434 = vector.shape_cast %433 : vector<1x12x64xbf16> to vector<12x64xbf16>
    %435 = vector.shape_cast %432 : vector<12x64xbf16> to vector<1x12x64xbf16>
    tpu.vector_store %arg6[%c0_249, %c456, %c0_250], %435 {strides = array<i32>} : memref<1x576x64xbf16, #tpu.memory_space<vmem>>, vector<1x12x64xbf16>,
    %c2520 = arith.constant 2520 : index
    %c0_251 = arith.constant 0 : index
    %436 = tpu.strided_load %arg8[%c2520, %c0_251] {strides = array<i32: 2, 1>} : memref<3136x64xf32, #tpu.memory_space<vmem>>, vector<12x64xf32>
    %c2521 = arith.constant 2521 : index
    %c0_252 = arith.constant 0 : index
    %437 = tpu.strided_load %arg8[%c2521, %c0_252] {strides = array<i32: 2, 1>} : memref<3136x64xf32, #tpu.memory_space<vmem>>, vector<12x64xf32>
    %438 = arith.maximumf %436, %437 : vector<12x64xf32>
    %c2548 = arith.constant 2548 : index
    %c0_253 = arith.constant 0 : index
    %439 = tpu.strided_load %arg8[%c2548, %c0_253] {strides = array<i32: 2, 1>} : memref<3136x64xf32, #tpu.memory_space<vmem>>, vector<12x64xf32>
    %440 = arith.maximumf %438, %439 : vector<12x64xf32>
    %c2549 = arith.constant 2549 : index
    %c0_254 = arith.constant 0 : index
    %441 = tpu.strided_load %arg8[%c2549, %c0_254] {strides = array<i32: 2, 1>} : memref<3136x64xf32, #tpu.memory_space<vmem>>, vector<12x64xf32>
    %442 = arith.maximumf %440, %441 : vector<12x64xf32>
    %443 = arith.truncf %442 : vector<12x64xf32> to vector<12x64xbf16>
    %c0_255 = arith.constant 0 : index
    %c468 = arith.constant 468 : index
    %c0_256 = arith.constant 0 : index
    %444 = vector.load %arg6[%c0_255, %c468, %c0_256] : memref<1x576x64xbf16, #tpu.memory_space<vmem>>, vector<1x12x64xbf16>
    %445 = vector.shape_cast %444 : vector<1x12x64xbf16> to vector<12x64xbf16>
    %446 = vector.shape_cast %443 : vector<12x64xbf16> to vector<1x12x64xbf16>
    tpu.vector_store %arg6[%c0_255, %c468, %c0_256], %446 {strides = array<i32>} : memref<1x576x64xbf16, #tpu.memory_space<vmem>>, vector<1x12x64xbf16>,
    %c2576 = arith.constant 2576 : index
    %c0_257 = arith.constant 0 : index
    %447 = tpu.strided_load %arg8[%c2576, %c0_257] {strides = array<i32: 2, 1>} : memref<3136x64xf32, #tpu.memory_space<vmem>>, vector<12x64xf32>
    %c2577 = arith.constant 2577 : index
    %c0_258 = arith.constant 0 : index
    %448 = tpu.strided_load %arg8[%c2577, %c0_258] {strides = array<i32: 2, 1>} : memref<3136x64xf32, #tpu.memory_space<vmem>>, vector<12x64xf32>
    %449 = arith.maximumf %447, %448 : vector<12x64xf32>
    %c2604 = arith.constant 2604 : index
    %c0_259 = arith.constant 0 : index
    %450 = tpu.strided_load %arg8[%c2604, %c0_259] {strides = array<i32: 2, 1>} : memref<3136x64xf32, #tpu.memory_space<vmem>>, vector<12x64xf32>
    %451 = arith.maximumf %449, %450 : vector<12x64xf32>
    %c2605 = arith.constant 2605 : index
    %c0_260 = arith.constant 0 : index
    %452 = tpu.strided_load %arg8[%c2605, %c0_260] {strides = array<i32: 2, 1>} : memref<3136x64xf32, #tpu.memory_space<vmem>>, vector<12x64xf32>
    %453 = arith.maximumf %451, %452 : vector<12x64xf32>
    %454 = arith.truncf %453 : vector<12x64xf32> to vector<12x64xbf16>
    %c0_261 = arith.constant 0 : index
    %c480 = arith.constant 480 : index
    %c0_262 = arith.constant 0 : index
    %455 = vector.load %arg6[%c0_261, %c480, %c0_262] : memref<1x576x64xbf16, #tpu.memory_space<vmem>>, vector<1x12x64xbf16>
    %456 = vector.shape_cast %455 : vector<1x12x64xbf16> to vector<12x64xbf16>
    %457 = vector.shape_cast %454 : vector<12x64xbf16> to vector<1x12x64xbf16>
    tpu.vector_store %arg6[%c0_261, %c480, %c0_262], %457 {strides = array<i32>} : memref<1x576x64xbf16, #tpu.memory_space<vmem>>, vector<1x12x64xbf16>,
    %c2632 = arith.constant 2632 : index
    %c0_263 = arith.constant 0 : index
    %458 = tpu.strided_load %arg8[%c2632, %c0_263] {strides = array<i32: 2, 1>} : memref<3136x64xf32, #tpu.memory_space<vmem>>, vector<12x64xf32>
    %c2633 = arith.constant 2633 : index
    %c0_264 = arith.constant 0 : index
    %459 = tpu.strided_load %arg8[%c2633, %c0_264] {strides = array<i32: 2, 1>} : memref<3136x64xf32, #tpu.memory_space<vmem>>, vector<12x64xf32>
    %460 = arith.maximumf %458, %459 : vector<12x64xf32>
    %c2660 = arith.constant 2660 : index
    %c0_265 = arith.constant 0 : index
    %461 = tpu.strided_load %arg8[%c2660, %c0_265] {strides = array<i32: 2, 1>} : memref<3136x64xf32, #tpu.memory_space<vmem>>, vector<12x64xf32>
    %462 = arith.maximumf %460, %461 : vector<12x64xf32>
    %c2661 = arith.constant 2661 : index
    %c0_266 = arith.constant 0 : index
    %463 = tpu.strided_load %arg8[%c2661, %c0_266] {strides = array<i32: 2, 1>} : memref<3136x64xf32, #tpu.memory_space<vmem>>, vector<12x64xf32>
    %464 = arith.maximumf %462, %463 : vector<12x64xf32>
    %465 = arith.truncf %464 : vector<12x64xf32> to vector<12x64xbf16>
    %c0_267 = arith.constant 0 : index
    %c492 = arith.constant 492 : index
    %c0_268 = arith.constant 0 : index
    %466 = vector.load %arg6[%c0_267, %c492, %c0_268] : memref<1x576x64xbf16, #tpu.memory_space<vmem>>, vector<1x12x64xbf16>
    %467 = vector.shape_cast %466 : vector<1x12x64xbf16> to vector<12x64xbf16>
    %468 = vector.shape_cast %465 : vector<12x64xbf16> to vector<1x12x64xbf16>
    tpu.vector_store %arg6[%c0_267, %c492, %c0_268], %468 {strides = array<i32>} : memref<1x576x64xbf16, #tpu.memory_space<vmem>>, vector<1x12x64xbf16>,
    %c2688 = arith.constant 2688 : index
    %c0_269 = arith.constant 0 : index
    %469 = tpu.strided_load %arg8[%c2688, %c0_269] {strides = array<i32: 2, 1>} : memref<3136x64xf32, #tpu.memory_space<vmem>>, vector<12x64xf32>
    %c2689 = arith.constant 2689 : index
    %c0_270 = arith.constant 0 : index
    %470 = tpu.strided_load %arg8[%c2689, %c0_270] {strides = array<i32: 2, 1>} : memref<3136x64xf32, #tpu.memory_space<vmem>>, vector<12x64xf32>
    %471 = arith.maximumf %469, %470 : vector<12x64xf32>
    %c2716 = arith.constant 2716 : index
    %c0_271 = arith.constant 0 : index
    %472 = tpu.strided_load %arg8[%c2716, %c0_271] {strides = array<i32: 2, 1>} : memref<3136x64xf32, #tpu.memory_space<vmem>>, vector<12x64xf32>
    %473 = arith.maximumf %471, %472 : vector<12x64xf32>
    %c2717 = arith.constant 2717 : index
    %c0_272 = arith.constant 0 : index
    %474 = tpu.strided_load %arg8[%c2717, %c0_272] {strides = array<i32: 2, 1>} : memref<3136x64xf32, #tpu.memory_space<vmem>>, vector<12x64xf32>
    %475 = arith.maximumf %473, %474 : vector<12x64xf32>
    %476 = arith.truncf %475 : vector<12x64xf32> to vector<12x64xbf16>
    %c0_273 = arith.constant 0 : index
    %c504_274 = arith.constant 504 : index
    %c0_275 = arith.constant 0 : index
    %477 = vector.load %arg6[%c0_273, %c504_274, %c0_275] : memref<1x576x64xbf16, #tpu.memory_space<vmem>>, vector<1x12x64xbf16>
    %478 = vector.shape_cast %477 : vector<1x12x64xbf16> to vector<12x64xbf16>
    %479 = vector.shape_cast %476 : vector<12x64xbf16> to vector<1x12x64xbf16>
    tpu.vector_store %arg6[%c0_273, %c504_274, %c0_275], %479 {strides = array<i32>} : memref<1x576x64xbf16, #tpu.memory_space<vmem>>, vector<1x12x64xbf16>,
    %c2744 = arith.constant 2744 : index
    %c0_276 = arith.constant 0 : index
    %480 = tpu.strided_load %arg8[%c2744, %c0_276] {strides = array<i32: 2, 1>} : memref<3136x64xf32, #tpu.memory_space<vmem>>, vector<12x64xf32>
    %c2745 = arith.constant 2745 : index
    %c0_277 = arith.constant 0 : index
    %481 = tpu.strided_load %arg8[%c2745, %c0_277] {strides = array<i32: 2, 1>} : memref<3136x64xf32, #tpu.memory_space<vmem>>, vector<12x64xf32>
    %482 = arith.maximumf %480, %481 : vector<12x64xf32>
    %c2772 = arith.constant 2772 : index
    %c0_278 = arith.constant 0 : index
    %483 = tpu.strided_load %arg8[%c2772, %c0_278] {strides = array<i32: 2, 1>} : memref<3136x64xf32, #tpu.memory_space<vmem>>, vector<12x64xf32>
    %484 = arith.maximumf %482, %483 : vector<12x64xf32>
    %c2773 = arith.constant 2773 : index
    %c0_279 = arith.constant 0 : index
    %485 = tpu.strided_load %arg8[%c2773, %c0_279] {strides = array<i32: 2, 1>} : memref<3136x64xf32, #tpu.memory_space<vmem>>, vector<12x64xf32>
    %486 = arith.maximumf %484, %485 : vector<12x64xf32>
    %487 = arith.truncf %486 : vector<12x64xf32> to vector<12x64xbf16>
    %c0_280 = arith.constant 0 : index
    %c516 = arith.constant 516 : index
    %c0_281 = arith.constant 0 : index
    %488 = vector.load %arg6[%c0_280, %c516, %c0_281] : memref<1x576x64xbf16, #tpu.memory_space<vmem>>, vector<1x12x64xbf16>
    %489 = vector.shape_cast %488 : vector<1x12x64xbf16> to vector<12x64xbf16>
    %490 = vector.shape_cast %487 : vector<12x64xbf16> to vector<1x12x64xbf16>
    tpu.vector_store %arg6[%c0_280, %c516, %c0_281], %490 {strides = array<i32>} : memref<1x576x64xbf16, #tpu.memory_space<vmem>>, vector<1x12x64xbf16>,
    %c2800 = arith.constant 2800 : index
    %c0_282 = arith.constant 0 : index
    %491 = tpu.strided_load %arg8[%c2800, %c0_282] {strides = array<i32: 2, 1>} : memref<3136x64xf32, #tpu.memory_space<vmem>>, vector<12x64xf32>
    %c2801 = arith.constant 2801 : index
    %c0_283 = arith.constant 0 : index
    %492 = tpu.strided_load %arg8[%c2801, %c0_283] {strides = array<i32: 2, 1>} : memref<3136x64xf32, #tpu.memory_space<vmem>>, vector<12x64xf32>
    %493 = arith.maximumf %491, %492 : vector<12x64xf32>
    %c2828 = arith.constant 2828 : index
    %c0_284 = arith.constant 0 : index
    %494 = tpu.strided_load %arg8[%c2828, %c0_284] {strides = array<i32: 2, 1>} : memref<3136x64xf32, #tpu.memory_space<vmem>>, vector<12x64xf32>
    %495 = arith.maximumf %493, %494 : vector<12x64xf32>
    %c2829 = arith.constant 2829 : index
    %c0_285 = arith.constant 0 : index
    %496 = tpu.strided_load %arg8[%c2829, %c0_285] {strides = array<i32: 2, 1>} : memref<3136x64xf32, #tpu.memory_space<vmem>>, vector<12x64xf32>
    %497 = arith.maximumf %495, %496 : vector<12x64xf32>
    %498 = arith.truncf %497 : vector<12x64xf32> to vector<12x64xbf16>
    %c0_286 = arith.constant 0 : index
    %c528 = arith.constant 528 : index
    %c0_287 = arith.constant 0 : index
    %499 = vector.load %arg6[%c0_286, %c528, %c0_287] : memref<1x576x64xbf16, #tpu.memory_space<vmem>>, vector<1x12x64xbf16>
    %500 = vector.shape_cast %499 : vector<1x12x64xbf16> to vector<12x64xbf16>
    %501 = vector.shape_cast %498 : vector<12x64xbf16> to vector<1x12x64xbf16>
    tpu.vector_store %arg6[%c0_286, %c528, %c0_287], %501 {strides = array<i32>} : memref<1x576x64xbf16, #tpu.memory_space<vmem>>, vector<1x12x64xbf16>,
    %c2856 = arith.constant 2856 : index
    %c0_288 = arith.constant 0 : index
    %502 = tpu.strided_load %arg8[%c2856, %c0_288] {strides = array<i32: 2, 1>} : memref<3136x64xf32, #tpu.memory_space<vmem>>, vector<12x64xf32>
    %c2857 = arith.constant 2857 : index
    %c0_289 = arith.constant 0 : index
    %503 = tpu.strided_load %arg8[%c2857, %c0_289] {strides = array<i32: 2, 1>} : memref<3136x64xf32, #tpu.memory_space<vmem>>, vector<12x64xf32>
    %504 = arith.maximumf %502, %503 : vector<12x64xf32>
    %c2884 = arith.constant 2884 : index
    %c0_290 = arith.constant 0 : index
    %505 = tpu.strided_load %arg8[%c2884, %c0_290] {strides = array<i32: 2, 1>} : memref<3136x64xf32, #tpu.memory_space<vmem>>, vector<12x64xf32>
    %506 = arith.maximumf %504, %505 : vector<12x64xf32>
    %c2885 = arith.constant 2885 : index
    %c0_291 = arith.constant 0 : index
    %507 = tpu.strided_load %arg8[%c2885, %c0_291] {strides = array<i32: 2, 1>} : memref<3136x64xf32, #tpu.memory_space<vmem>>, vector<12x64xf32>
    %508 = arith.maximumf %506, %507 : vector<12x64xf32>
    %509 = arith.truncf %508 : vector<12x64xf32> to vector<12x64xbf16>
    %c0_292 = arith.constant 0 : index
    %c540 = arith.constant 540 : index
    %c0_293 = arith.constant 0 : index
    %510 = vector.load %arg6[%c0_292, %c540, %c0_293] : memref<1x576x64xbf16, #tpu.memory_space<vmem>>, vector<1x12x64xbf16>
    %511 = vector.shape_cast %510 : vector<1x12x64xbf16> to vector<12x64xbf16>
    %512 = vector.shape_cast %509 : vector<12x64xbf16> to vector<1x12x64xbf16>
    tpu.vector_store %arg6[%c0_292, %c540, %c0_293], %512 {strides = array<i32>} : memref<1x576x64xbf16, #tpu.memory_space<vmem>>, vector<1x12x64xbf16>,
    %c2912 = arith.constant 2912 : index
    %c0_294 = arith.constant 0 : index
    %513 = tpu.strided_load %arg8[%c2912, %c0_294] {strides = array<i32: 2, 1>} : memref<3136x64xf32, #tpu.memory_space<vmem>>, vector<12x64xf32>
    %c2913 = arith.constant 2913 : index
    %c0_295 = arith.constant 0 : index
    %514 = tpu.strided_load %arg8[%c2913, %c0_295] {strides = array<i32: 2, 1>} : memref<3136x64xf32, #tpu.memory_space<vmem>>, vector<12x64xf32>
    %515 = arith.maximumf %513, %514 : vector<12x64xf32>
    %c2940 = arith.constant 2940 : index
    %c0_296 = arith.constant 0 : index
    %516 = tpu.strided_load %arg8[%c2940, %c0_296] {strides = array<i32: 2, 1>} : memref<3136x64xf32, #tpu.memory_space<vmem>>, vector<12x64xf32>
    %517 = arith.maximumf %515, %516 : vector<12x64xf32>
    %c2941 = arith.constant 2941 : index
    %c0_297 = arith.constant 0 : index
    %518 = tpu.strided_load %arg8[%c2941, %c0_297] {strides = array<i32: 2, 1>} : memref<3136x64xf32, #tpu.memory_space<vmem>>, vector<12x64xf32>
    %519 = arith.maximumf %517, %518 : vector<12x64xf32>
    %520 = arith.truncf %519 : vector<12x64xf32> to vector<12x64xbf16>
    %c0_298 = arith.constant 0 : index
    %c552 = arith.constant 552 : index
    %c0_299 = arith.constant 0 : index
    %521 = vector.load %arg6[%c0_298, %c552, %c0_299] : memref<1x576x64xbf16, #tpu.memory_space<vmem>>, vector<1x12x64xbf16>
    %522 = vector.shape_cast %521 : vector<1x12x64xbf16> to vector<12x64xbf16>
    %523 = vector.shape_cast %520 : vector<12x64xbf16> to vector<1x12x64xbf16>
    tpu.vector_store %arg6[%c0_298, %c552, %c0_299], %523 {strides = array<i32>} : memref<1x576x64xbf16, #tpu.memory_space<vmem>>, vector<1x12x64xbf16>,
    %c2968 = arith.constant 2968 : index
    %c0_300 = arith.constant 0 : index
    %524 = tpu.strided_load %arg8[%c2968, %c0_300] {strides = array<i32: 2, 1>} : memref<3136x64xf32, #tpu.memory_space<vmem>>, vector<12x64xf32>
    %c2969 = arith.constant 2969 : index
    %c0_301 = arith.constant 0 : index
    %525 = tpu.strided_load %arg8[%c2969, %c0_301] {strides = array<i32: 2, 1>} : memref<3136x64xf32, #tpu.memory_space<vmem>>, vector<12x64xf32>
    %526 = arith.maximumf %524, %525 : vector<12x64xf32>
    %c2996 = arith.constant 2996 : index
    %c0_302 = arith.constant 0 : index
    %527 = tpu.strided_load %arg8[%c2996, %c0_302] {strides = array<i32: 2, 1>} : memref<3136x64xf32, #tpu.memory_space<vmem>>, vector<12x64xf32>
    %528 = arith.maximumf %526, %527 : vector<12x64xf32>
    %c2997 = arith.constant 2997 : index
    %c0_303 = arith.constant 0 : index
    %529 = tpu.strided_load %arg8[%c2997, %c0_303] {strides = array<i32: 2, 1>} : memref<3136x64xf32, #tpu.memory_space<vmem>>, vector<12x64xf32>
    %530 = arith.maximumf %528, %529 : vector<12x64xf32>
    %531 = arith.truncf %530 : vector<12x64xf32> to vector<12x64xbf16>
    %c0_304 = arith.constant 0 : index
    %c564 = arith.constant 564 : index
    %c0_305 = arith.constant 0 : index
    %532 = vector.load %arg6[%c0_304, %c564, %c0_305] : memref<1x576x64xbf16, #tpu.memory_space<vmem>>, vector<1x12x64xbf16>
    %533 = vector.shape_cast %532 : vector<1x12x64xbf16> to vector<12x64xbf16>
    %534 = vector.shape_cast %531 : vector<12x64xbf16> to vector<1x12x64xbf16>
    tpu.vector_store %arg6[%c0_304, %c564, %c0_305], %534 {strides = array<i32>} : memref<1x576x64xbf16, #tpu.memory_space<vmem>>, vector<1x12x64xbf16>,
    return
  }
  func.func @transform_0(%arg0: i32) -> (i32, i32, i32) {
    %c0_i32 = arith.constant 0 : i32
    %c0_i32_0 = arith.constant 0 : i32
    %c0_i32_1 = arith.constant 0 : i32
    return %arg0, %c0_i32, %c0_i32_0 : i32, i32, i32
  }
  func.func @transform_1(%arg0: i32) -> (i32, i32) {
    %c0_i32 = arith.constant 0 : i32
    %c0_i32_0 = arith.constant 0 : i32
    %c0_i32_1 = arith.constant 0 : i32
    return %c0_i32, %c0_i32_0 : i32, i32
  }
  func.func @transform_2(%arg0: i32) -> (i32, i32) {
    %c0_i32 = arith.constant 0 : i32
    %c0_i32_0 = arith.constant 0 : i32
    %c0_i32_1 = arith.constant 0 : i32
    return %c0_i32, %c0_i32_0 : i32, i32
  }
  func.func @transform_3(%arg0: i32) -> (i32, i32, i32) {
    %c0_i32 = arith.constant 0 : i32
    %c0_i32_0 = arith.constant 0 : i32
    %c0_i32_1 = arith.constant 0 : i32
    %c0_i32_2 = arith.constant 0 : i32
    return %c0_i32, %c0_i32_0, %c0_i32_1 : i32, i32, i32
  }
  func.func @transform_4(%arg0: i32) -> (i32, i32) {
    %c0_i32 = arith.constant 0 : i32
    %c0_i32_0 = arith.constant 0 : i32
    %c0_i32_1 = arith.constant 0 : i32
    return %c0_i32, %c0_i32_0 : i32, i32
  }
  func.func @transform_5(%arg0: i32) -> (i32, i32, i32) {
    %c0_i32 = arith.constant 0 : i32
    %c0_i32_0 = arith.constant 0 : i32
    %c0_i32_1 = arith.constant 0 : i32
    return %arg0, %c0_i32, %c0_i32_0 : i32, i32, i32
  }
}

module attributes {stable_mosaic.version = 11 : i64} {
  func.func @fc_kernel(%arg0: i32, %arg1: memref<8x9216xbf16, #tpu.memory_space<vmem>>, %arg2: memref<10x9216xbf16, #tpu.memory_space<vmem>>, %arg3: memref<1x10xf32, #tpu.memory_space<vmem>>, %arg4: memref<8x10xf32, #tpu.memory_space<vmem>>) attributes {dimension_semantics = [#tpu.dimension_semantics<parallel>], iteration_bounds = array<i64: 1>, scalar_prefetch = 0 : i64, scratch_operands = 0 : i64, tpu.core_type = #tpu.core_type<tc>, window_params = [{transform_indices = @transform_0, window_bounds = array<i64: 8, 9216>}, {pipeline_mode = #tpu.pipeline_mode<synchronous>, transform_indices = @transform_1, window_bounds = array<i64: 10, 9216>}, {pipeline_mode = #tpu.pipeline_mode<synchronous>, transform_indices = @transform_2, window_bounds = array<i64: 1, 10>}, {transform_indices = @transform_3, window_bounds = array<i64: 8, 10>}]} {
    %cst = arith.constant 0.000000e+00 : f32
    %0 = vector.broadcast %cst : f32 to vector<8x10xf32>
    %c0 = arith.constant 0 : index
    %c0_0 = arith.constant 0 : index
    %1 = vector.load %arg1[%c0, %c0_0] : memref<8x9216xbf16, #tpu.memory_space<vmem>>, vector<8x1152xbf16>
    %c0_1 = arith.constant 0 : index
    %c0_2 = arith.constant 0 : index
    %2 = vector.load %arg2[%c0_1, %c0_2] : memref<10x9216xbf16, #tpu.memory_space<vmem>>, vector<10x1152xbf16>
    %cst_3 = arith.constant dense<0.000000e+00> : vector<8x10xf32>
    %3 = tpu.matmul %1, %2, %cst_3 {dimension_numbers = #tpu.dot_dimension_numbers<[1], [1], [0], [0], [0, 0, 1, 0], [], []>} : vector<8x1152xbf16>, vector<10x1152xbf16>, vector<8x10xf32> -> vector<8x10xf32>
    %4 = arith.addf %0, %3 : vector<8x10xf32>
    %c0_4 = arith.constant 0 : index
    %c1152 = arith.constant 1152 : index
    %5 = vector.load %arg1[%c0_4, %c1152] : memref<8x9216xbf16, #tpu.memory_space<vmem>>, vector<8x1152xbf16>
    %c0_5 = arith.constant 0 : index
    %c1152_6 = arith.constant 1152 : index
    %6 = vector.load %arg2[%c0_5, %c1152_6] : memref<10x9216xbf16, #tpu.memory_space<vmem>>, vector<10x1152xbf16>
    %cst_7 = arith.constant dense<0.000000e+00> : vector<8x10xf32>
    %7 = tpu.matmul %5, %6, %cst_7 {dimension_numbers = #tpu.dot_dimension_numbers<[1], [1], [0], [0], [0, 0, 1, 0], [], []>} : vector<8x1152xbf16>, vector<10x1152xbf16>, vector<8x10xf32> -> vector<8x10xf32>
    %8 = arith.addf %4, %7 : vector<8x10xf32>
    %c0_8 = arith.constant 0 : index
    %c2304 = arith.constant 2304 : index
    %9 = vector.load %arg1[%c0_8, %c2304] : memref<8x9216xbf16, #tpu.memory_space<vmem>>, vector<8x1152xbf16>
    %c0_9 = arith.constant 0 : index
    %c2304_10 = arith.constant 2304 : index
    %10 = vector.load %arg2[%c0_9, %c2304_10] : memref<10x9216xbf16, #tpu.memory_space<vmem>>, vector<10x1152xbf16>
    %cst_11 = arith.constant dense<0.000000e+00> : vector<8x10xf32>
    %11 = tpu.matmul %9, %10, %cst_11 {dimension_numbers = #tpu.dot_dimension_numbers<[1], [1], [0], [0], [0, 0, 1, 0], [], []>} : vector<8x1152xbf16>, vector<10x1152xbf16>, vector<8x10xf32> -> vector<8x10xf32>
    %12 = arith.addf %8, %11 : vector<8x10xf32>
    %c0_12 = arith.constant 0 : index
    %c3456 = arith.constant 3456 : index
    %13 = vector.load %arg1[%c0_12, %c3456] : memref<8x9216xbf16, #tpu.memory_space<vmem>>, vector<8x1152xbf16>
    %c0_13 = arith.constant 0 : index
    %c3456_14 = arith.constant 3456 : index
    %14 = vector.load %arg2[%c0_13, %c3456_14] : memref<10x9216xbf16, #tpu.memory_space<vmem>>, vector<10x1152xbf16>
    %cst_15 = arith.constant dense<0.000000e+00> : vector<8x10xf32>
    %15 = tpu.matmul %13, %14, %cst_15 {dimension_numbers = #tpu.dot_dimension_numbers<[1], [1], [0], [0], [0, 0, 1, 0], [], []>} : vector<8x1152xbf16>, vector<10x1152xbf16>, vector<8x10xf32> -> vector<8x10xf32>
    %16 = arith.addf %12, %15 : vector<8x10xf32>
    %c0_16 = arith.constant 0 : index
    %c4608 = arith.constant 4608 : index
    %17 = vector.load %arg1[%c0_16, %c4608] : memref<8x9216xbf16, #tpu.memory_space<vmem>>, vector<8x1152xbf16>
    %c0_17 = arith.constant 0 : index
    %c4608_18 = arith.constant 4608 : index
    %18 = vector.load %arg2[%c0_17, %c4608_18] : memref<10x9216xbf16, #tpu.memory_space<vmem>>, vector<10x1152xbf16>
    %cst_19 = arith.constant dense<0.000000e+00> : vector<8x10xf32>
    %19 = tpu.matmul %17, %18, %cst_19 {dimension_numbers = #tpu.dot_dimension_numbers<[1], [1], [0], [0], [0, 0, 1, 0], [], []>} : vector<8x1152xbf16>, vector<10x1152xbf16>, vector<8x10xf32> -> vector<8x10xf32>
    %20 = arith.addf %16, %19 : vector<8x10xf32>
    %c0_20 = arith.constant 0 : index
    %c5760 = arith.constant 5760 : index
    %21 = vector.load %arg1[%c0_20, %c5760] : memref<8x9216xbf16, #tpu.memory_space<vmem>>, vector<8x1152xbf16>
    %c0_21 = arith.constant 0 : index
    %c5760_22 = arith.constant 5760 : index
    %22 = vector.load %arg2[%c0_21, %c5760_22] : memref<10x9216xbf16, #tpu.memory_space<vmem>>, vector<10x1152xbf16>
    %cst_23 = arith.constant dense<0.000000e+00> : vector<8x10xf32>
    %23 = tpu.matmul %21, %22, %cst_23 {dimension_numbers = #tpu.dot_dimension_numbers<[1], [1], [0], [0], [0, 0, 1, 0], [], []>} : vector<8x1152xbf16>, vector<10x1152xbf16>, vector<8x10xf32> -> vector<8x10xf32>
    %24 = arith.addf %20, %23 : vector<8x10xf32>
    %c0_24 = arith.constant 0 : index
    %c6912 = arith.constant 6912 : index
    %25 = vector.load %arg1[%c0_24, %c6912] : memref<8x9216xbf16, #tpu.memory_space<vmem>>, vector<8x1152xbf16>
    %c0_25 = arith.constant 0 : index
    %c6912_26 = arith.constant 6912 : index
    %26 = vector.load %arg2[%c0_25, %c6912_26] : memref<10x9216xbf16, #tpu.memory_space<vmem>>, vector<10x1152xbf16>
    %cst_27 = arith.constant dense<0.000000e+00> : vector<8x10xf32>
    %27 = tpu.matmul %25, %26, %cst_27 {dimension_numbers = #tpu.dot_dimension_numbers<[1], [1], [0], [0], [0, 0, 1, 0], [], []>} : vector<8x1152xbf16>, vector<10x1152xbf16>, vector<8x10xf32> -> vector<8x10xf32>
    %28 = arith.addf %24, %27 : vector<8x10xf32>
    %c0_28 = arith.constant 0 : index
    %c8064 = arith.constant 8064 : index
    %29 = vector.load %arg1[%c0_28, %c8064] : memref<8x9216xbf16, #tpu.memory_space<vmem>>, vector<8x1152xbf16>
    %c0_29 = arith.constant 0 : index
    %c8064_30 = arith.constant 8064 : index
    %30 = vector.load %arg2[%c0_29, %c8064_30] : memref<10x9216xbf16, #tpu.memory_space<vmem>>, vector<10x1152xbf16>
    %cst_31 = arith.constant dense<0.000000e+00> : vector<8x10xf32>
    %31 = tpu.matmul %29, %30, %cst_31 {dimension_numbers = #tpu.dot_dimension_numbers<[1], [1], [0], [0], [0, 0, 1, 0], [], []>} : vector<8x1152xbf16>, vector<10x1152xbf16>, vector<8x10xf32> -> vector<8x10xf32>
    %32 = arith.addf %28, %31 : vector<8x10xf32>
    %c0_32 = arith.constant 0 : index
    %c0_33 = arith.constant 0 : index
    %33 = vector.load %arg3[%c0_32, %c0_33] : memref<1x10xf32, #tpu.memory_space<vmem>>, vector<1x10xf32>
    %34 = vector.broadcast %33 : vector<1x10xf32> to vector<8x10xf32>
    %35 = arith.addf %32, %34 : vector<8x10xf32>
    %c0_34 = arith.constant 0 : index
    %c0_35 = arith.constant 0 : index
    %36 = vector.load %arg4[%c0_34, %c0_35] : memref<8x10xf32, #tpu.memory_space<vmem>>, vector<8x10xf32>
    tpu.vector_store %arg4[%c0_34, %c0_35], %35 {strides = array<i32>} : memref<8x10xf32, #tpu.memory_space<vmem>>, vector<8x10xf32>,
    return
  }
  func.func @transform_0(%arg0: i32) -> (i32, i32) {
    %c0_i32 = arith.constant 0 : i32
    %c0_i32_0 = arith.constant 0 : i32
    return %arg0, %c0_i32 : i32, i32
  }
  func.func @transform_1(%arg0: i32) -> (i32, i32) {
    %c0_i32 = arith.constant 0 : i32
    %c0_i32_0 = arith.constant 0 : i32
    %c0_i32_1 = arith.constant 0 : i32
    return %c0_i32, %c0_i32_0 : i32, i32
  }
  func.func @transform_2(%arg0: i32) -> (i32, i32) {
    %c0_i32 = arith.constant 0 : i32
    %c0_i32_0 = arith.constant 0 : i32
    %c0_i32_1 = arith.constant 0 : i32
    return %c0_i32, %c0_i32_0 : i32, i32
  }
  func.func @transform_3(%arg0: i32) -> (i32, i32) {
    %c0_i32 = arith.constant 0 : i32
    %c0_i32_0 = arith.constant 0 : i32
    return %arg0, %c0_i32 : i32, i32
  }
}

</mosaic_0001>

<bundles_post_ra>
// kernel: my_awesome_model.3
= control target key start
LH: loop header
LB: loop body
LE: loop exit
PB: predicated region body
PF: predicated region fallthrough
CT: control target
= control target key end

     0   :  { %v2698_v31 = vmov 0.0   ;;  %vm2699_vm0 = vmmov 0   ;;  %s3120_s0 = inlined_call_operand.vmem [shape: bf16[8,9216], index: 0, kind: input, shape index: {}]   ;;  %s3121_s1 = inlined_call_operand.vmem [shape: bf16[10,9216], index: 1, kind: input, shape index: {}]   ;;  %s3122_s2 = inlined_call_operand.vmem [shape: f32[1,10], index: 2, kind: input, shape index: {}]   ;;  %s3123_s3 = inlined_call_operand.hbm [shape: f32[8,10], index: 3, kind: output, shape index: {}]  }
   0x1   :  { %v36_v0 = vld [vmem:[%s3121_s1 + $0x24] sm:$0xff]  ;;  %v37_v2 = vld [vmem:[%s3121_s1 + $0x2c] sm:$0xff]  ;;  %v38_v11 = vld [vmem:[%s3121_s1 + $0x34] sm:$0xff] }
   0x2   :  { %v41_v1 = vld [vmem:[%s3121_s1 + $0x144] sm:$0x11]  ;;  %v42_v4 = vld [vmem:[%s3121_s1 + $0x14c] sm:$0x11]  ;;  %v43_v12 = vld [vmem:[%s3121_s1 + $0x154] sm:$0x11] }
   0x3   :  { %v2400_v3 = vcombine.high %v36_v0, %v41_v1  ;;  %v2399_v5 = vcombine.low %v36_v0, %v41_v1  ;;  %v31_v6 = vld [vmem:[%s3120_s0 + $0x24] sm:$0xff]  ;;  %v32_v7 = vld [vmem:[%s3120_s0 + $0x2c] sm:$0xff]  ;;  %v2402_v8 = vcombine.high %v37_v2, %v42_v4  ;;  %v2401_v9 = vcombine.low %v37_v2, %v42_v4  ;;  %v39_v13 = vld [vmem:[%s3121_s1 + $0x3c] sm:$0xff] }
   0x4   :  { %v2391_v10 = vcombine.high %v31_v6, %v31_v6  ;;  %v2393_v14 = vcombine.high %v32_v7, %v32_v7  ;;  %v2404_v15 = vcombine.high %v38_v11, %v43_v12  ;;  %v44_v16 = vld [vmem:[%s3121_s1 + $0x15c] sm:$0x11]  ;;  %v33_v18 = vld [vmem:[%s3120_s0 + $0x34] sm:$0xff]  ;;  %v2390_v19 = vcombine.low %v31_v6, %v31_v6  ;;  %v40_v29 = vld [vmem:[%s3121_s1 + $0x44] sm:$0xf] }
   0x5   :  { %124 = vmatprep.subr.bf16.mxu0 %v2400_v3  ;;  %164 = vmatprep.subr.bf16.mxu1 %v2402_v8  ;;  %v2406_v17 = vcombine.high %v39_v13, %v44_v16  ;;  %v34_v20 = vld [vmem:[%s3120_s0 + $0x3c] sm:$0xff]  ;;  %v2392_v21 = vcombine.low %v32_v7, %v32_v7  ;;  %v2403_v22 = vcombine.low %v38_v11, %v43_v12  ;;  %v45_v30 = vld [vmem:[%s3121_s1 + $0x164] sm:$0x1]  ;;  %v22_v34 = vld [vmem:[%s3121_s1 + $0x8] sm:$0xff] }
   0x6   :  { %125 = vmatpush1.bf16.xpose.msra.mxu0 %v2399_v5  ;;  %165 = vmatpush1.bf16.xpose.msra.mxu1 %v2401_v9  ;;  %v21_v23 = vld [vmem:[%s3121_s1] sm:$0xff]  ;;  %v2405_v25 = vcombine.low %v39_v13, %v44_v16  ;;  %v2395_v26 = vcombine.high %v33_v18, %v33_v18  ;;  %v2397_v27 = vcombine.high %v34_v20, %v34_v20  ;;  %v27_v35 = vld [vmem:[%s3121_s1 + $0x128] sm:$0x11]  ;;  %v23_v38 = vld [vmem:[%s3121_s1 + $0x10] sm:$0xff] }
   0x7   :  { %156 = vmatprep.mubr.bf16.mxu0 %v2391_v10  ;;  %196 = vmatprep.mubr.bf16.mxu1 %v2393_v14  ;;  %v26_v24 = vld [vmem:[%s3121_s1 + $0x120] sm:$0x11]  ;;  %v2394_v32 = vcombine.low %v33_v18, %v33_v18  ;;  %v2396_v36 = vcombine.low %v34_v20, %v34_v20  ;;  %v2407_v37 = vcombine.low %v40_v29, %v45_v30  ;;  %v28_v39 = vld [vmem:[%s3121_s1 + $0x130] sm:$0x11]  ;;  %v17_v45 = vld [vmem:[%s3120_s0 + $0x8] sm:$0xff] }
   0x8   :  { %204 = vmatprep.subr.bf16.mxu0 %v2404_v15  ;;  %244 = vmatprep.subr.bf16.mxu1 %v2406_v17  ;;  %v2418_v28 = vcombine.high %v21_v23, %v26_v24  ;;  %v16_v33 = vld [vmem:[%s3120_s0] sm:$0xff]  ;;  %v2417_v40 = vcombine.low %v21_v23, %v26_v24  ;;  %v2420_v42 = vcombine.high %v22_v34, %v27_v35  ;;  %v18_v46 = vld [vmem:[%s3120_s0 + $0x10] sm:$0xff]  ;;  %v24_v47 = vld [vmem:[%s3121_s1 + $0x18] sm:$0xff] }
   0x9   :  { %v2409_v41 = vcombine.high %v16_v33, %v16_v33  ;;  %v2422_v43 = vcombine.high %v23_v38, %v28_v39  ;;  %v2612_v44 = vld [vmem:[%s3120_s0 + $0x44] ss:$0 sps:$4 sm:$0xff]   ;;  %v29_v48 = vld [vmem:[%s3121_s1 + $0x138] sm:$0x11]  ;;  %v2408_v49 = vcombine.low %v16_v33, %v16_v33  ;;  %v2419_v50 = vcombine.low %v22_v34, %v27_v35  ;;  %v25_v55 = vld [vmem:[%s3121_s1 + $0x20] sm:$0xf] }
   0xa   :  { %v2421_v51 = vcombine.low %v23_v38, %v28_v39  ;;  %v2411_v52 = vcombine.high %v17_v45, %v17_v45  ;;  %v2413_v53 = vcombine.high %v18_v46, %v18_v46  ;;  %v2424_v54 = vcombine.high %v24_v47, %v29_v48  ;;  %v30_v56 = vld [vmem:[%s3121_s1 + $0x140] sm:$0x1]  ;;  %v19_v57 = vld [vmem:[%s3120_s0 + $0x18] sm:$0xff]  ;;  %v607_v59 = vld [vmem:[%s3121_s1 + $0x48] sm:$0xff] }
   0xb   :  { %v2410_v58 = vcombine.low %v17_v45, %v17_v45  ;;  %v612_v60 = vld [vmem:[%s3121_s1 + $0x168] sm:$0x11]  ;;  %v2412_v61 = vcombine.low %v18_v46, %v18_v46  ;;  %v2423_v62 = vcombine.low %v24_v47, %v29_v48  ;;  %v608_v63 = vld [vmem:[%s3121_s1 + $0x50] sm:$0xff]  ;;  %v2425_v1 = vcombine.low %v25_v55, %v30_v56  ;;  %v609_v8 = vld [vmem:[%s3121_s1 + $0x58] sm:$0xff] }
   0xc   :  { %v613_v0 = vld [vmem:[%s3121_s1 + $0x170] sm:$0x11]  ;;  %v2415_v2 = vcombine.high %v19_v57, %v19_v57  ;;  %v2436_v3 = vcombine.high %v607_v59, %v612_v60  ;;  %v602_v5 = vld [vmem:[%s3120_s0 + $0x48] sm:$0xff]  ;;  %v2414_v6 = vcombine.low %v19_v57, %v19_v57  ;;  %v614_v9 = vld [vmem:[%s3121_s1 + $0x178] sm:$0x11]  ;;  %v2435_v11 = vcombine.low %v607_v59, %v612_v60 }
   0xd   :  { %157 = vmatmul.mubr.bf16.vlgmr.msra.gmra.mrb[0].mxu0 %v2390_v19  ;;  %197 = vmatmul.mubr.bf16.vlgmr.msra.gmra.mrb[0].mxu1 %v2392_v21  ;;  %v2438_v4 = vcombine.high %v608_v63, %v613_v0  ;;  %v603_v7 = vld [vmem:[%s3120_s0 + $0x50] sm:$0xff]  ;;  %v2619_v10 = vld [vmem:[%s3120_s0 + $0x20] ss:$0 sps:$4 sm:$0xff]   ;;  %v2437_v14 = vcombine.low %v608_v63, %v613_v0  ;;  %v2427_v15 = vcombine.high %v602_v5, %v602_v5 }
   0xe   :  { %205 = vmatpush1.bf16.xpose.msra.mxu0 %v2403_v22  ;;  %245 = vmatpush1.bf16.xpose.msra.mxu1 %v2405_v25  ;;  %v610_v12 = vld [vmem:[%s3121_s1 + $0x60] sm:$0xff]  ;;  %v2429_v16 = vcombine.high %v603_v7, %v603_v7  ;;  %v2440_v17 = vcombine.high %v609_v8, %v614_v9 }
   0xf   :  { %236 = vmatprep.mubr.bf16.mxu0 %v2395_v26  ;;  %276 = vmatprep.mubr.bf16.mxu1 %v2397_v27  ;;  %v615_v13 = vld [vmem:[%s3121_s1 + $0x180] sm:$0x11] }
  0x10   :  { %2551 = vmatprep.subr.bf16.mxu0 %v2698_v31  ;;  %402 = vmatprep.subr.bf16.mxu1 %v2418_v28 }
  0x15   :  { %237 = vmatmul.mubr.bf16.vlgmr.msra.gmra.mrb[4].mxu0 %v2394_v32  ;;  %277 = vmatmul.mubr.bf16.vlgmr.msra.gmra.mrb[4].mxu1 %v2396_v36 }
  0x16   :  { %2552 = vmatpush3.bf16.xpose.msra.mxu0 %v2407_v37  ;;  %403 = vmatpush1.bf16.xpose.msra.mxu1 %v2417_v40 }
  0x17   :  { %2553 = vmatprep.mubr.msk.bf16.mxu0 %vm2699_vm0, %v2698_v31  ;;  %434 = vmatprep.mubr.bf16.mxu1 %v2409_v41 }
  0x18   :  { %442 = vmatprep.subr.bf16.mxu0 %v2420_v42  ;;  %482 = vmatprep.subr.bf16.mxu1 %v2422_v43 }
  0x1d   :  { %2554 = vmatmul.mubr.bf16.vlgmr.msra.gmra.mrb[8].mxu0 %v2612_v44  ;;  %435 = vmatmul.mubr.bf16.vlgmr.msra.gmra.mrb[8].mxu1 %v2408_v49 }
  0x1e   :  { %443 = vmatpush1.bf16.xpose.msra.mxu0 %v2419_v50  ;;  %483 = vmatpush1.bf16.xpose.msra.mxu1 %v2421_v51 }
  0x1f   :  { %474 = vmatprep.mubr.bf16.mxu0 %v2411_v52  ;;  %514 = vmatprep.mubr.bf16.mxu1 %v2413_v53 }
  0x20   :  { %522 = vmatprep.subr.bf16.mxu0 %v2424_v54  ;;  %2557 = vmatprep.subr.bf16.mxu1 %v2698_v31 }
  0x25   :  { %475 = vmatmul.mubr.bf16.vlgmr.msra.gmra.mrb[12].mxu0 %v2410_v58  ;;  %515 = vmatmul.mubr.bf16.vlgmr.msra.gmra.mrb[12].mxu1 %v2412_v61 }
  0x26   :  { %523 = vmatpush1.bf16.xpose.msra.mxu0 %v2423_v62  ;;  %2558 = vmatpush3.bf16.xpose.msra.mxu1 %v2425_v1 }
  0x27   :  { %554 = vmatprep.mubr.bf16.mxu0 %v2415_v2  ;;  %2559 = vmatprep.mubr.msk.bf16.mxu1 %vm2699_vm0, %v2698_v31 }
  0x28   :  { %695 = vmatprep.subr.bf16.mxu0 %v2436_v3  ;;  %735 = vmatprep.subr.bf16.mxu1 %v2438_v4 }
  0x29   :  { %8 = vsyncpa [#allocation3], 0  ;;  %v2442_v18 = vcombine.high %v610_v12, %v615_v13  ;;  %v604_v19 = vld [vmem:[%s3120_s0 + $0x58] sm:$0xff]  ;;  %v2426_v20 = vcombine.low %v602_v5, %v602_v5  ;;  %v605_v21 = vld [vmem:[%s3120_s0 + $0x60] sm:$0xff]  ;;  %v2428_v22 = vcombine.low %v603_v7, %v603_v7  ;;  %v2439_v23 = vcombine.low %v609_v8, %v614_v9  ;;  %s2700_s9 = smov [#allocation2]  }
  0x2a   :  { %v901_v24 = vld [vmem:[%s3121_s1 + $0x6c] sm:$0xff]  ;;  %v2441_v26 = vcombine.low %v610_v12, %v615_v13  ;;  %v2431_v27 = vcombine.high %v604_v19, %v604_v19  ;;  %v2433_v28 = vcombine.high %v605_v21, %v605_v21  ;;  %v611_v30 = vld [vmem:[%s3121_s1 + $0x68] sm:$0xf]  ;;  %v2430_v33 = vcombine.low %v604_v19, %v604_v19  ;;  %v902_v35 = vld [vmem:[%s3121_s1 + $0x74] sm:$0xff]  ;;  %s2382_s10 = sshll.u32 %s2700_s9, 4  ;;  %s2383_s10 = int_to_ptr.vmem [resolvable:$true] %s2382_s10 }
  0x2b   :  { %v906_v25 = vld [vmem:[%s3121_s1 + $0x18c] sm:$0x11]  ;;  %v616_v32 = vld [vmem:[%s3121_s1 + $0x188] sm:$0x1]  ;;  %v907_v36 = vld [vmem:[%s3121_s1 + $0x194] sm:$0x11]  ;;  %v2432_v37 = vcombine.low %v605_v21, %v605_v21  ;;  %p2679_p1 = scmp.lt.s32.totalorder %s2383_s10, %s2383_s10 }
  0x2c   :  { %v2454_v29 = vcombine.high %v901_v24, %v906_v25  ;;  %v896_v34 = vld [vmem:[%s3120_s0 + $0x6c] sm:$0xff]  ;;  %v2443_v38 = vcombine.low %v611_v30, %v616_v32  ;;  %v903_v39 = vld [vmem:[%s3121_s1 + $0x7c] sm:$0xff]  ;;  %v2453_v41 = vcombine.low %v901_v24, %v906_v25  ;;  %v2456_v43 = vcombine.high %v902_v35, %v907_v36  ;;  %v2630_v45 = vld [vmem:[%s3120_s0 + $0x68] ss:$0 sps:$4 sm:$0xff]   ;;  %s2674_s11 = scalar_lea.vmem %s2383_s10, 128 }
  0x2d   :  { %555 = vmatmul.mubr.bf16.vlgmr.msra.gmra.mrb[16].mxu0 %v2414_v6  ;;  %2560 = vmatmul.mubr.bf16.vlgmr.msra.gmra.mrb[16].mxu1 %v2619_v10  ;;  %v908_v40 = vld [vmem:[%s3121_s1 + $0x19c] sm:$0x11]  ;;  %v2445_v42 = vcombine.high %v896_v34, %v896_v34  ;;  %v897_v46 = vld [vmem:[%s3120_s0 + $0x74] sm:$0xff]  ;;  %v904_v48 = vld [vmem:[%s3121_s1 + $0x84] sm:$0xff]  ;;  %v2444_v50 = vcombine.low %v896_v34, %v896_v34  ;;  %v2455_v51 = vcombine.low %v902_v35, %v907_v36  ;;  %vm2374_vm1 = vcmask 80896   ;;  %p2675_p0 = scmp.ne.s32.totalorder %s2383_s10, %s2674_s11  ;;  %p2680_p2 = scmp.lt.s32.totalorder %s2674_s11, %s2674_s11 }
  0x2e   :  { %696 = vmatpush1.bf16.xpose.msra.mxu0 %v2435_v11  ;;  %736 = vmatpush1.bf16.xpose.msra.mxu1 %v2437_v14  ;;  %v2458_v44 = vcombine.high %v903_v39, %v908_v40  ;;  %v898_v47 = vld [vmem:[%s3120_s0 + $0x7c] sm:$0xff]  ;;  %v909_v49 = vld [vmem:[%s3121_s1 + $0x1a4] sm:$0x11]  ;;  %v2457_v52 = vcombine.low %v903_v39, %v908_v40  ;;  %v2447_v53 = vcombine.high %v897_v46, %v897_v46  ;;  %v905_v56 = vld [vmem:[%s3121_s1 + $0x8c] sm:$0xf] }
  0x2f   :  { %727 = vmatprep.mubr.bf16.mxu0 %v2427_v15  ;;  %767 = vmatprep.mubr.bf16.mxu1 %v2429_v16  ;;  %v2449_v54 = vcombine.high %v898_v47, %v898_v47  ;;  %v2460_v55 = vcombine.high %v904_v48, %v909_v49  ;;  %v910_v57 = vld [vmem:[%s3121_s1 + $0x1ac] sm:$0x1]  ;;  %v899_v58 = vld [vmem:[%s3120_s0 + $0x84] sm:$0xff]  ;;  %v2446_v59 = vcombine.low %v897_v46, %v897_v46  ;;  %v1195_v60 = vld [vmem:[%s3121_s1 + $0x90] sm:$0xff]  ;;  %p2681_p3 = por %p2680_p2, %p2679_p1 }
  0x30   :  { %775 = vmatprep.subr.bf16.mxu0 %v2440_v17  ;;  %815 = vmatprep.subr.bf16.mxu1 %v2442_v18  ;;  %v1200_v61 = vld [vmem:[%s3121_s1 + $0x1b0] sm:$0x11]  ;;  %v2448_v62 = vcombine.low %v898_v47, %v898_v47  ;;  %v2459_v63 = vcombine.low %v904_v48, %v909_v49  ;;  %v1196_v0 = vld [vmem:[%s3121_s1 + $0x98] sm:$0xff]  ;;  %v2461_v2 = vcombine.low %v905_v56, %v910_v57  ;;  %v1197_v9 = vld [vmem:[%s3121_s1 + $0xa0] sm:$0xff] }
  0x31   :  { %v1201_v1 = vld [vmem:[%s3121_s1 + $0x1b8] sm:$0x11]  ;;  %v2451_v3 = vcombine.high %v899_v58, %v899_v58  ;;  %v2472_v4 = vcombine.high %v1195_v60, %v1200_v61  ;;  %v1190_v6 = vld [vmem:[%s3120_s0 + $0x90] sm:$0xff]  ;;  %v2450_v7 = vcombine.low %v899_v58, %v899_v58  ;;  %v1202_v10 = vld [vmem:[%s3121_s1 + $0x1c0] sm:$0x11]  ;;  %v2471_v12 = vcombine.low %v1195_v60, %v1200_v61  ;;  %p2682_p4 = pnand %p2681_p3, %p2675_p0 }
  0x32   :  { %v2474_v5 = vcombine.high %v1196_v0, %v1201_v1  ;;  %v1191_v8 = vld [vmem:[%s3120_s0 + $0x98] sm:$0xff]  ;;  %v2637_v11 = vld [vmem:[%s3120_s0 + $0x8c] ss:$0 sps:$4 sm:$0xff]   ;;  %v2473_v15 = vcombine.low %v1196_v0, %v1201_v1  ;;  %v2463_v16 = vcombine.high %v1190_v6, %v1190_v6  ;;  %v2476_v18 = vcombine.high %v1197_v9, %v1202_v10  ;;  %v1199_v32 = vld [vmem:[%s3121_s1 + $0xb0] sm:$0xf] }
  0x33   :  { %v1198_v13 = vld [vmem:[%s3121_s1 + $0xa8] sm:$0xff]  ;;  %v2465_v17 = vcombine.high %v1191_v8, %v1191_v8  ;;  %v2462_v21 = vcombine.low %v1190_v6, %v1190_v6  ;;  %v2475_v24 = vcombine.low %v1197_v9, %v1202_v10  ;;  %v1489_v25 = vld [vmem:[%s3121_s1 + $0xb4] sm:$0xff]  ;;  %v1490_v36 = vld [vmem:[%s3121_s1 + $0xbc] sm:$0xff] }
  0x34   :  { %v1203_v14 = vld [vmem:[%s3121_s1 + $0x1c8] sm:$0x11]  ;;  %v1484_v35 = vld [vmem:[%s3120_s0 + $0xb4] sm:$0xff]  ;;  %v2648_v46 = vld [vmem:[%s3120_s0 + $0xb0] ss:$0 sps:$4 sm:$0xff]  }
  0x35   :  { %728 = vmatmul.mubr.bf16.vlgmr.msra.gmra.mrb[20].mxu0 %v2426_v20  ;;  %768 = vmatmul.mubr.bf16.vlgmr.msra.gmra.mrb[20].mxu1 %v2428_v22  ;;  %v2478_v19 = vcombine.high %v1198_v13, %v1203_v14  ;;  %v1192_v20 = vld [vmem:[%s3120_s0 + $0xa0] sm:$0xff]  ;;  %v1193_v22 = vld [vmem:[%s3120_s0 + $0xa8] sm:$0xff]  ;;  %v1493_v57 = vld [vmem:[%s3121_s1 + $0xd4] sm:$0xf] }
  0x36   :  { %776 = vmatpush1.bf16.xpose.msra.mxu0 %v2439_v23  ;;  %816 = vmatpush1.bf16.xpose.msra.mxu1 %v2441_v26  ;;  %v2464_v23 = vcombine.low %v1191_v8, %v1191_v8  ;;  %v1494_v26 = vld [vmem:[%s3121_s1 + $0x1d4] sm:$0x11]  ;;  %v2466_v34 = vcombine.low %v1192_v20, %v1192_v20  ;;  %v1491_v40 = vld [vmem:[%s3121_s1 + $0xc4] sm:$0xff]  ;;  %v1485_v47 = vld [vmem:[%s3120_s0 + $0xbc] sm:$0xff] }
  0x37   :  { %807 = vmatprep.mubr.bf16.mxu0 %v2431_v27  ;;  %847 = vmatprep.mubr.bf16.mxu1 %v2433_v28  ;;  %v2477_v27 = vcombine.low %v1198_v13, %v1203_v14  ;;  %v2467_v28 = vcombine.high %v1192_v20, %v1192_v20  ;;  %v2490_v30 = vcombine.high %v1489_v25, %v1494_v26  ;;  %v1486_v48 = vld [vmem:[%s3120_s0 + $0xc4] sm:$0xff]  ;;  %v1492_v49 = vld [vmem:[%s3121_s1 + $0xcc] sm:$0xff]  ;;  %v1498_v58 = vld [vmem:[%s3121_s1 + $0x1f4] sm:$0x1] }
  0x38   :  { %2563 = vmatprep.subr.bf16.mxu0 %v2698_v31  ;;  %989 = vmatprep.subr.bf16.mxu1 %v2454_v29  ;;  %v2469_v29 = vcombine.high %v1193_v22, %v1193_v22  ;;  %v2482_v60 = vcombine.low %v1485_v47, %v1485_v47  ;;  %v1783_v61 = vld [vmem:[%s3121_s1 + $0xd8] sm:$0xff]  ;;  %v1784_v1 = vld [vmem:[%s3121_s1 + $0xe0] sm:$0xff]  ;;  %v1785_v10 = vld [vmem:[%s3121_s1 + $0xe8] sm:$0xff] }
  0x39   :  { %v1779_v9 = vld [vmem:[%s3120_s0 + $0xe0] sm:$0xff]  ;;  %v1786_v14 = vld [vmem:[%s3121_s1 + $0xf0] sm:$0xff] }
  0x3d   :  { %808 = vmatmul.mubr.bf16.vlgmr.msra.gmra.mrb[24].mxu0 %v2430_v33  ;;  %848 = vmatmul.mubr.bf16.vlgmr.msra.gmra.mrb[24].mxu1 %v2432_v37  ;;  %v1204_v33 = vld [vmem:[%s3121_s1 + $0x1d0] sm:$0x1]  ;;  %v1495_v37 = vld [vmem:[%s3121_s1 + $0x1dc] sm:$0x11] }
  0x3e   :  { %2564 = vmatpush3.bf16.xpose.msra.mxu0 %v2443_v38  ;;  %990 = vmatpush1.bf16.xpose.msra.mxu1 %v2453_v41  ;;  %v2468_v38 = vcombine.low %v1193_v22, %v1193_v22  ;;  %v2479_v39 = vcombine.low %v1199_v32, %v1204_v33  ;;  %v1496_v41 = vld [vmem:[%s3121_s1 + $0x1e4] sm:$0x11]  ;;  %v1787_v33 = vld [vmem:[%s3121_s1 + $0xf8] sm:$0xf] }
  0x3f   :  { %2565 = vmatprep.mubr.msk.bf16.mxu0 %vm2699_vm0, %v2698_v31  ;;  %1021 = vmatprep.mubr.bf16.mxu1 %v2445_v42  ;;  %v2489_v42 = vcombine.low %v1489_v25, %v1494_v26  ;;  %v2077_v26 = vld [vmem:[%s3121_s1 + $0xfc] sm:$0xff] }
  0x40   :  { %1029 = vmatprep.subr.bf16.mxu0 %v2456_v43  ;;  %1069 = vmatprep.subr.bf16.mxu1 %v2458_v44  ;;  %v2481_v43 = vcombine.high %v1484_v35, %v1484_v35  ;;  %v2492_v44 = vcombine.high %v1490_v36, %v1495_v37 }
  0x45   :  { %2566 = vmatmul.mubr.bf16.vlgmr.msra.gmra.mrb[28].mxu0 %v2630_v45  ;;  %1022 = vmatmul.mubr.bf16.vlgmr.msra.gmra.mrb[28].mxu1 %v2444_v50  ;;  %v2494_v45 = vcombine.high %v1491_v40, %v1496_v41  ;;  %v1497_v50 = vld [vmem:[%s3121_s1 + $0x1ec] sm:$0x11] }
  0x46   :  { %1030 = vmatpush1.bf16.xpose.msra.mxu0 %v2455_v51  ;;  %1070 = vmatpush1.bf16.xpose.msra.mxu1 %v2457_v52  ;;  %v2480_v51 = vcombine.low %v1484_v35, %v1484_v35  ;;  %v2491_v52 = vcombine.low %v1490_v36, %v1495_v37  ;;  %v2496_v56 = vcombine.high %v1492_v49, %v1497_v50  ;;  %v2072_v36 = vld [vmem:[%s3120_s0 + $0xfc] sm:$0xff]  ;;  %v2078_v37 = vld [vmem:[%s3121_s1 + $0x104] sm:$0xff] }
  0x47   :  { %1061 = vmatprep.mubr.bf16.mxu0 %v2447_v53  ;;  %1101 = vmatprep.mubr.bf16.mxu1 %v2449_v54  ;;  %v2493_v53 = vcombine.low %v1491_v40, %v1496_v41  ;;  %v2483_v54 = vcombine.high %v1485_v47, %v1485_v47  ;;  %v2495_v0 = vcombine.low %v1492_v49, %v1497_v50  ;;  %v2079_v41 = vld [vmem:[%s3121_s1 + $0x10c] sm:$0xff]  ;;  %v2666_v47 = vld [vmem:[%s3120_s0 + $0xf8] ss:$0 sps:$4 sm:$0xff]  }
  0x48   :  { %1109 = vmatprep.subr.bf16.mxu0 %v2460_v55  ;;  %2569 = vmatprep.subr.bf16.mxu1 %v2698_v31  ;;  %v2485_v55 = vcombine.high %v1486_v48, %v1486_v48  ;;  %v2074_v49 = vld [vmem:[%s3120_s0 + $0x10c] sm:$0xff]  ;;  %v2080_v50 = vld [vmem:[%s3121_s1 + $0x114] sm:$0xff] }
  0x4d   :  { %1062 = vmatmul.mubr.bf16.vlgmr.msra.gmra.mrb[32].mxu0 %v2446_v59  ;;  %1102 = vmatmul.mubr.bf16.vlgmr.msra.gmra.mrb[32].mxu1 %v2448_v62  ;;  %v1487_v59 = vld [vmem:[%s3120_s0 + $0xcc] sm:$0xff]  ;;  %v1788_v62 = vld [vmem:[%s3121_s1 + $0x1f8] sm:$0x11] }
  0x4e   :  { %1110 = vmatpush1.bf16.xpose.msra.mxu0 %v2459_v63  ;;  %2570 = vmatpush3.bf16.xpose.msra.mxu1 %v2461_v2  ;;  %v2484_v63 = vcombine.low %v1486_v48, %v1486_v48  ;;  %v1789_v2 = vld [vmem:[%s3121_s1 + $0x200] sm:$0x11]  ;;  %v2486_v8 = vcombine.low %v1487_v59, %v1487_v59  ;;  %v2507_v13 = vcombine.low %v1783_v61, %v1788_v62 }
  0x4f   :  { %1141 = vmatprep.mubr.bf16.mxu0 %v2451_v3  ;;  %2571 = vmatprep.mubr.msk.bf16.mxu1 %vm2699_vm0, %v2698_v31  ;;  %v2497_v3 = vcombine.low %v1493_v57, %v1498_v58  ;;  %v2510_v6 = vcombine.high %v1784_v1, %v1789_v2  ;;  %v2073_v48 = vld [vmem:[%s3120_s0 + $0x104] sm:$0xff]  ;;  %v2081_v58 = vld [vmem:[%s3121_s1 + $0x11c] sm:$0xf] }
  0x50   :  { %1283 = vmatprep.subr.bf16.mxu0 %v2472_v4  ;;  %1323 = vmatprep.subr.bf16.mxu1 %v2474_v5  ;;  %v2487_v4 = vcombine.high %v1487_v59, %v1487_v59  ;;  %v2508_v5 = vcombine.high %v1783_v61, %v1788_v62  ;;  %v2086_v59 = vld [vmem:[%s3121_s1 + $0x23c] sm:$0x1]  ;;  %v2518_v61 = vcombine.low %v2073_v48, %v2073_v48 }
  0x51   :  { %v2520_v62 = vcombine.low %v2074_v49, %v2074_v49 }
  0x55   :  { %1142 = vmatmul.mubr.bf16.vlgmr.msra.gmra.mrb[36].mxu0 %v2450_v7  ;;  %2572 = vmatmul.mubr.bf16.vlgmr.msra.gmra.mrb[36].mxu1 %v2637_v11  ;;  %v1778_v7 = vld [vmem:[%s3120_s0 + $0xd8] sm:$0xff]  ;;  %v1790_v11 = vld [vmem:[%s3121_s1 + $0x208] sm:$0x11] }
  0x56   :  { %1284 = vmatpush1.bf16.xpose.msra.mxu0 %v2471_v12  ;;  %1324 = vmatpush1.bf16.xpose.msra.mxu1 %v2473_v15  ;;  %v2655_v12 = vld [vmem:[%s3120_s0 + $0xd4] ss:$0 sps:$4 sm:$0xff]   ;;  %v2498_v22 = vcombine.low %v1778_v7, %v1778_v7  ;;  %v2511_v25 = vcombine.low %v1785_v10, %v1790_v11 }
  0x57   :  { %1315 = vmatprep.mubr.bf16.mxu0 %v2463_v16  ;;  %1355 = vmatprep.mubr.bf16.mxu1 %v2465_v17  ;;  %v1791_v15 = vld [vmem:[%s3121_s1 + $0x210] sm:$0x11]  ;;  %v2509_v16 = vcombine.low %v1784_v1, %v1789_v2  ;;  %v2499_v17 = vcombine.high %v1778_v7, %v1778_v7 }
  0x58   :  { %1363 = vmatprep.subr.bf16.mxu0 %v2476_v18  ;;  %1403 = vmatprep.subr.bf16.mxu1 %v2478_v19  ;;  %v2501_v18 = vcombine.high %v1779_v9, %v1779_v9  ;;  %v2512_v19 = vcombine.high %v1785_v10, %v1790_v11  ;;  %v2514_v20 = vcombine.high %v1786_v14, %v1791_v15 }
  0x5d   :  { %1316 = vmatmul.mubr.bf16.vlgmr.msra.gmra.mrb[40].mxu0 %v2462_v21  ;;  %1356 = vmatmul.mubr.bf16.vlgmr.msra.gmra.mrb[40].mxu1 %v2464_v23  ;;  %v1780_v21 = vld [vmem:[%s3120_s0 + $0xe8] sm:$0xff]  ;;  %v1781_v23 = vld [vmem:[%s3120_s0 + $0xf0] sm:$0xff] }
  0x5e   :  { %1364 = vmatpush1.bf16.xpose.msra.mxu0 %v2475_v24  ;;  %1404 = vmatpush1.bf16.xpose.msra.mxu1 %v2477_v27  ;;  %v2500_v24 = vcombine.low %v1779_v9, %v1779_v9  ;;  %v2082_v27 = vld [vmem:[%s3121_s1 + $0x21c] sm:$0x11]  ;;  %v2502_v35 = vcombine.low %v1780_v21, %v1780_v21 }
  0x5f   :  { %1395 = vmatprep.mubr.bf16.mxu0 %v2467_v28  ;;  %1435 = vmatprep.mubr.bf16.mxu1 %v2469_v29  ;;  %v2513_v28 = vcombine.low %v1786_v14, %v1791_v15  ;;  %v2503_v29 = vcombine.high %v1780_v21, %v1780_v21  ;;  %v2526_v32 = vcombine.high %v2077_v26, %v2082_v27 }
  0x60   :  { %2575 = vmatprep.subr.bf16.mxu0 %v2698_v31  ;;  %1577 = vmatprep.subr.bf16.mxu1 %v2490_v30  ;;  %v2505_v30 = vcombine.high %v1781_v23, %v1781_v23 }
  0x65   :  { %1396 = vmatmul.mubr.bf16.vlgmr.msra.gmra.mrb[44].mxu0 %v2466_v34  ;;  %1436 = vmatmul.mubr.bf16.vlgmr.msra.gmra.mrb[44].mxu1 %v2468_v38  ;;  %v1792_v34 = vld [vmem:[%s3121_s1 + $0x218] sm:$0x1]  ;;  %v2083_v38 = vld [vmem:[%s3121_s1 + $0x224] sm:$0x11] }
  0x66   :  { %2576 = vmatpush3.bf16.xpose.msra.mxu0 %v2479_v39  ;;  %1578 = vmatpush1.bf16.xpose.msra.mxu1 %v2489_v42  ;;  %v2504_v39 = vcombine.low %v1781_v23, %v1781_v23  ;;  %v2515_v40 = vcombine.low %v1787_v33, %v1792_v34  ;;  %v2084_v42 = vld [vmem:[%s3121_s1 + $0x22c] sm:$0x11] }
  0x67   :  { %2577 = vmatprep.mubr.msk.bf16.mxu0 %vm2699_vm0, %v2698_v31  ;;  %1609 = vmatprep.mubr.bf16.mxu1 %v2481_v43  ;;  %v2525_v43 = vcombine.low %v2077_v26, %v2082_v27 }
  0x68   :  { %1617 = vmatprep.subr.bf16.mxu0 %v2492_v44  ;;  %1657 = vmatprep.subr.bf16.mxu1 %v2494_v45  ;;  %v2517_v44 = vcombine.high %v2072_v36, %v2072_v36  ;;  %v2528_v45 = vcombine.high %v2078_v37, %v2083_v38 }
  0x6d   :  { %2578 = vmatmul.mubr.bf16.vlgmr.msra.gmra.mrb[48].mxu0 %v2648_v46  ;;  %1610 = vmatmul.mubr.bf16.vlgmr.msra.gmra.mrb[48].mxu1 %v2480_v51  ;;  %v2530_v46 = vcombine.high %v2079_v41, %v2084_v42  ;;  %v2085_v51 = vld [vmem:[%s3121_s1 + $0x234] sm:$0x11] }
  0x6e   :  { %1618 = vmatpush1.bf16.xpose.msra.mxu0 %v2491_v52  ;;  %1658 = vmatpush1.bf16.xpose.msra.mxu1 %v2493_v53  ;;  %v2516_v52 = vcombine.low %v2072_v36, %v2072_v36  ;;  %v2527_v53 = vcombine.low %v2078_v37, %v2083_v38  ;;  %v2532_v57 = vcombine.high %v2080_v50, %v2085_v51 }
  0x6f   :  { %1649 = vmatprep.mubr.bf16.mxu0 %v2483_v54  ;;  %1689 = vmatprep.mubr.bf16.mxu1 %v2485_v55  ;;  %v2529_v54 = vcombine.low %v2079_v41, %v2084_v42  ;;  %v2519_v55 = vcombine.high %v2073_v48, %v2073_v48 }
  0x70   :  { %1697 = vmatprep.subr.bf16.mxu0 %v2496_v56  ;;  %2581 = vmatprep.subr.bf16.mxu1 %v2698_v31  ;;  %v2521_v56 = vcombine.high %v2074_v49, %v2074_v49 }
  0x75   :  { %1650 = vmatmul.mubr.bf16.vlgmr.msra.gmra.mrb[52].mxu0 %v2482_v60  ;;  %1690 = vmatmul.mubr.bf16.vlgmr.msra.gmra.mrb[52].mxu1 %v2484_v63  ;;  %v2075_v60 = vld [vmem:[%s3120_s0 + $0x114] sm:$0xff]  ;;  %v2531_v63 = vcombine.low %v2080_v50, %v2085_v51 }
  0x76   :  { %1698 = vmatpush1.bf16.xpose.msra.mxu0 %v2495_v0  ;;  %2582 = vmatpush3.bf16.xpose.msra.mxu1 %v2497_v3  ;;  %v2533_v0 = vcombine.low %v2081_v58, %v2086_v59  ;;  %v2523_v1 = vcombine.high %v2075_v60, %v2075_v60  ;;  %v2522_v2 = vcombine.low %v2075_v60, %v2075_v60  ;;  %v2673_v3 = vld [vmem:[%s3120_s0 + $0x11c] ss:$0 sps:$4 sm:$0xff]  }
  0x77   :  { %1729 = vmatprep.mubr.bf16.mxu0 %v2487_v4  ;;  %2583 = vmatprep.mubr.msk.bf16.mxu1 %vm2699_vm0, %v2698_v31 }
  0x78   :  { %1871 = vmatprep.subr.bf16.mxu0 %v2508_v5  ;;  %1911 = vmatprep.subr.bf16.mxu1 %v2510_v6 }
  0x7d   :  { %1730 = vmatmul.mubr.bf16.vlgmr.msra.gmra.mrb[56].mxu0 %v2486_v8  ;;  %2584 = vmatmul.mubr.bf16.vlgmr.msra.gmra.mrb[56].mxu1 %v2655_v12 }
  0x7e   :  { %1872 = vmatpush1.bf16.xpose.msra.mxu0 %v2507_v13  ;;  %1912 = vmatpush1.bf16.xpose.msra.mxu1 %v2509_v16 }
  0x7f   :  { %1903 = vmatprep.mubr.bf16.mxu0 %v2499_v17  ;;  %1943 = vmatprep.mubr.bf16.mxu1 %v2501_v18 }
  0x80   :  { %1951 = vmatprep.subr.bf16.mxu0 %v2512_v19  ;;  %1991 = vmatprep.subr.bf16.mxu1 %v2514_v20 }
  0x85   :  { %1904 = vmatmul.mubr.bf16.vlgmr.msra.gmra.mrb[60].mxu0 %v2498_v22  ;;  %1944 = vmatmul.mubr.bf16.vlgmr.msra.gmra.mrb[60].mxu1 %v2500_v24 }
  0x86   :  { %1952 = vmatpush1.bf16.xpose.msra.mxu0 %v2511_v25  ;;  %1992 = vmatpush1.bf16.xpose.msra.mxu1 %v2513_v28 }
  0x87   :  { %1983 = vmatprep.mubr.bf16.mxu0 %v2503_v29  ;;  %2023 = vmatprep.mubr.bf16.mxu1 %v2505_v30 }
  0x88   :  { %2587 = vmatprep.subr.bf16.mxu0 %v2698_v31  ;;  %2165 = vmatprep.subr.bf16.mxu1 %v2526_v32 }
  0x8d   :  { %1984 = vmatmul.mubr.bf16.vlgmr.msra.gmra.mrb[64].mxu0 %v2502_v35  ;;  %2024 = vmatmul.mubr.bf16.vlgmr.msra.gmra.mrb[64].mxu1 %v2504_v39 }
  0x8e   :  { %2588 = vmatpush3.bf16.xpose.msra.mxu0 %v2515_v40  ;;  %2166 = vmatpush1.bf16.xpose.msra.mxu1 %v2525_v43 }
  0x8f   :  { %2589 = vmatprep.mubr.msk.bf16.mxu0 %vm2699_vm0, %v2698_v31  ;;  %2197 = vmatprep.mubr.bf16.mxu1 %v2517_v44 }
  0x90   :  { %2205 = vmatprep.subr.bf16.mxu0 %v2528_v45  ;;  %2245 = vmatprep.subr.bf16.mxu1 %v2530_v46 }
  0x95   :  { %2590 = vmatmul.mubr.bf16.vlgmr.msra.gmra.mrb[68].mxu0 %v2666_v47  ;;  %2198 = vmatmul.mubr.bf16.vlgmr.msra.gmra.mrb[68].mxu1 %v2516_v52 }
  0x96   :  { %2206 = vmatpush1.bf16.xpose.msra.mxu0 %v2527_v53  ;;  %2246 = vmatpush1.bf16.xpose.msra.mxu1 %v2529_v54 }
  0x97   :  { %2237 = vmatprep.mubr.bf16.mxu0 %v2519_v55  ;;  %2277 = vmatprep.mubr.bf16.mxu1 %v2521_v56 }
  0x98   :  { %2285 = vmatprep.subr.bf16.mxu0 %v2532_v57  ;;  %2593 = vmatprep.subr.bf16.mxu1 %v2698_v31 }
  0x9d   :  { %2238 = vmatmul.mubr.bf16.vlgmr.msra.gmra.mrb[72].mxu0 %v2518_v61  ;;  %2278 = vmatmul.mubr.bf16.vlgmr.msra.gmra.mrb[72].mxu1 %v2520_v62 }
  0x9e   :  { %2286 = vmatpush1.bf16.xpose.msra.mxu0 %v2531_v63  ;;  %2594 = vmatpush3.bf16.xpose.msra.mxu1 %v2533_v0 }
  0x9f   :  { %2317 = vmatprep.mubr.bf16.mxu0 %v2523_v1  ;;  %2595 = vmatprep.mubr.msk.bf16.mxu1 %vm2699_vm0, %v2698_v31 }
  0xa5   :  { %2318 = vmatmul.mubr.bf16.vlgmr.msra.gmra.mrb[76].mxu0 %v2522_v2  ;;  %2596 = vmatmul.mubr.bf16.vlgmr.msra.gmra.mrb[76].mxu1 %v2673_v3 }
  0xe0   :  { %v158_v4 = vpop.f32.mrb[0].mxu0  ;;  %v198_v5 = vpop.f32.mrb[0].mxu1 }
  0xe1   :  { %v160_v6 = vpop.f32.mrb[1].mxu0  ;;  %v199_v7 = vadd.f32 %v198_v5, %v158_v4  ;;  %v200_v8 = vpop.f32.mrb[1].mxu1 }
  0xe2   :  { %v161_v9 = vpop.f32.mrb[2].mxu0  ;;  %v201_v10 = vpop.f32.mrb[2].mxu1 }
  0xe3   :  { %v162_v11 = vpop.f32.mrb[3].mxu0  ;;  %v202_v12 = vpop.f32.mrb[3].mxu1 }
  0xe8   :  { %v238_v13 = vpop.f32.mrb[4].mxu0  ;;  %v278_v15 = vpop.f32.mrb[4].mxu1 }
  0xe9   :  { %v239_v14 = vadd.f32 %v238_v13, %v199_v7  ;;  %v240_v31 = vpop.f32.mrb[5].mxu0  ;;  %v280_v16 = vpop.f32.mrb[5].mxu1 }
  0xea   :  { %v241_v17 = vpop.f32.mrb[6].mxu0  ;;  %v281_v19 = vpop.f32.mrb[6].mxu1 }
  0xeb   :  { %v279_v18 = vadd.f32 %v278_v15, %v239_v14  ;;  %v242_v20 = vpop.f32.mrb[7].mxu0  ;;  %v282_v21 = vpop.f32.mrb[7].mxu1 }
  0xf0   :  { %v318_v22 = vpop.f32.mrb[8].mxu0  ;;  %v436_v24 = vpop.f32.mrb[8].mxu1 }
  0xf1   :  { %v319_v23 = vadd.f32 %v318_v22, %v279_v18  ;;  %v2555_v25 = vpop.f32.mrb[9].mxu0  ;;  %v438_v26 = vpop.f32.mrb[9].mxu1 }
  0xf2   :  { %v321_v27 = vpop.f32.mrb[10].mxu0  ;;  %v439_v29 = vpop.f32.mrb[10].mxu1 }
  0xf3   :  { %v437_v28 = vadd.f32 %v436_v24, %v319_v23  ;;  %v2556_v30 = vpop.f32.mrb[11].mxu0  ;;  %v440_v32 = vpop.f32.mrb[11].mxu1 }
  0xf8   :  { %v476_v33 = vpop.f32.mrb[12].mxu0  ;;  %v516_v35 = vpop.f32.mrb[12].mxu1 }
  0xf9   :  { %v477_v34 = vadd.f32 %v476_v33, %v437_v28  ;;  %v478_v36 = vpop.f32.mrb[13].mxu0  ;;  %v518_v37 = vpop.f32.mrb[13].mxu1 }
  0xfa   :  { %v479_v38 = vpop.f32.mrb[14].mxu0  ;;  %v519_v40 = vpop.f32.mrb[14].mxu1 }
  0xfb   :  { %v517_v39 = vadd.f32 %v516_v35, %v477_v34  ;;  %v480_v41 = vpop.f32.mrb[15].mxu0  ;;  %v520_v42 = vpop.f32.mrb[15].mxu1 }
 0x100   :  { %v556_v43 = vpop.f32.mrb[16].mxu0  ;;  %v596_v45 = vpop.f32.mrb[16].mxu1 }
 0x101   :  { %v557_v44 = vadd.f32 %v556_v43, %v517_v39  ;;  %v558_v46 = vpop.f32.mrb[17].mxu0  ;;  %v2561_v47 = vpop.f32.mrb[17].mxu1 }
 0x102   :  { %v559_v48 = vpop.f32.mrb[18].mxu0  ;;  %v599_v50 = vpop.f32.mrb[18].mxu1 }
 0x103   :  { %v597_v49 = vadd.f32 %v596_v45, %v557_v44  ;;  %v560_v51 = vpop.f32.mrb[19].mxu0  ;;  %v2562_v52 = vpop.f32.mrb[19].mxu1 }
 0x108   :  { %v729_v53 = vpop.f32.mrb[20].mxu0  ;;  %v769_v54 = vpop.f32.mrb[20].mxu1 }
 0x109   :  { %v731_v55 = vpop.f32.mrb[21].mxu0  ;;  %v770_v56 = vadd.f32 %v769_v54, %v729_v53  ;;  %v771_v57 = vpop.f32.mrb[21].mxu1 }
 0x10a   :  { %v732_v58 = vpop.f32.mrb[22].mxu0  ;;  %v772_v59 = vpop.f32.mrb[22].mxu1 }
 0x10b   :  { %v733_v60 = vpop.f32.mrb[23].mxu0  ;;  %v773_v61 = vpop.f32.mrb[23].mxu1 }
 0x110   :  { %v809_v62 = vpop.f32.mrb[24].mxu0  ;;  %v849_v0 = vpop.f32.mrb[24].mxu1 }
 0x111   :  { %v810_v63 = vadd.f32 %v809_v62, %v770_v56  ;;  %v811_v1 = vpop.f32.mrb[25].mxu0  ;;  %v851_v2 = vpop.f32.mrb[25].mxu1 }
 0x112   :  { %v812_v3 = vpop.f32.mrb[26].mxu0  ;;  %v852_v5 = vpop.f32.mrb[26].mxu1 }
 0x113   :  { %v850_v4 = vadd.f32 %v849_v0, %v810_v63  ;;  %v813_v6 = vpop.f32.mrb[27].mxu0  ;;  %v853_v7 = vpop.f32.mrb[27].mxu1 }
 0x118   :  { %v889_v8 = vpop.f32.mrb[28].mxu0  ;;  %v1023_v10 = vpop.f32.mrb[28].mxu1 }
 0x119   :  { %v890_v9 = vadd.f32 %v889_v8, %v850_v4  ;;  %v2567_v11 = vpop.f32.mrb[29].mxu0  ;;  %v1025_v12 = vpop.f32.mrb[29].mxu1 }
 0x11a   :  { %v892_v13 = vpop.f32.mrb[30].mxu0  ;;  %v1026_v15 = vpop.f32.mrb[30].mxu1 }
 0x11b   :  { %v895_v14 = vadd.f32 %v890_v9, %v597_v49  ;;  %v2568_v31 = vpop.f32.mrb[31].mxu0  ;;  %v1027_v16 = vpop.f32.mrb[31].mxu1 }
 0x120   :  { %v1063_v17 = vpop.f32.mrb[32].mxu0  ;;  %v1103_v19 = vpop.f32.mrb[32].mxu1 }
 0x121   :  { %v1064_v18 = vadd.f32 %v1063_v17, %v1023_v10  ;;  %v1065_v20 = vpop.f32.mrb[33].mxu0  ;;  %v1105_v21 = vpop.f32.mrb[33].mxu1 }
 0x122   :  { %v1066_v22 = vpop.f32.mrb[34].mxu0  ;;  %v1106_v24 = vpop.f32.mrb[34].mxu1 }
 0x123   :  { %v1104_v23 = vadd.f32 %v1103_v19, %v1064_v18  ;;  %v1067_v25 = vpop.f32.mrb[35].mxu0  ;;  %v1107_v26 = vpop.f32.mrb[35].mxu1 }
 0x128   :  { %v1143_v27 = vpop.f32.mrb[36].mxu0  ;;  %v1183_v29 = vpop.f32.mrb[36].mxu1 }
 0x129   :  { %v1144_v28 = vadd.f32 %v1143_v27, %v1104_v23  ;;  %v1145_v30 = vpop.f32.mrb[37].mxu0  ;;  %v2573_v32 = vpop.f32.mrb[37].mxu1 }
 0x12a   :  { %v1146_v33 = vpop.f32.mrb[38].mxu0  ;;  %v1186_v35 = vpop.f32.mrb[38].mxu1 }
 0x12b   :  { %v1184_v34 = vadd.f32 %v1183_v29, %v1144_v28  ;;  %v1147_v36 = vpop.f32.mrb[39].mxu0  ;;  %v2574_v37 = vpop.f32.mrb[39].mxu1 }
 0x12d   :  { %v1189_v38 = vadd.f32 %v1184_v34, %v895_v14 }
 0x130   :  { %v1317_v39 = vpop.f32.mrb[40].mxu0  ;;  %v1357_v40 = vpop.f32.mrb[40].mxu1 }
 0x131   :  { %v1319_v41 = vpop.f32.mrb[41].mxu0  ;;  %v1358_v42 = vadd.f32 %v1357_v40, %v1317_v39  ;;  %v1359_v43 = vpop.f32.mrb[41].mxu1 }
 0x132   :  { %v1320_v44 = vpop.f32.mrb[42].mxu0  ;;  %v1360_v45 = vpop.f32.mrb[42].mxu1 }
 0x133   :  { %v1321_v46 = vpop.f32.mrb[43].mxu0  ;;  %v1361_v47 = vpop.f32.mrb[43].mxu1 }
 0x138   :  { %v1397_v48 = vpop.f32.mrb[44].mxu0  ;;  %v1437_v50 = vpop.f32.mrb[44].mxu1 }
 0x139   :  { %v1398_v49 = vadd.f32 %v1397_v48, %v1358_v42  ;;  %v1399_v51 = vpop.f32.mrb[45].mxu0  ;;  %v1439_v52 = vpop.f32.mrb[45].mxu1 }
 0x13a   :  { %v1400_v53 = vpop.f32.mrb[46].mxu0  ;;  %v1440_v55 = vpop.f32.mrb[46].mxu1 }
 0x13b   :  { %v1438_v54 = vadd.f32 %v1437_v50, %v1398_v49  ;;  %v1401_v56 = vpop.f32.mrb[47].mxu0  ;;  %v1441_v57 = vpop.f32.mrb[47].mxu1 }
 0x140   :  { %v1477_v58 = vpop.f32.mrb[48].mxu0  ;;  %v1611_v60 = vpop.f32.mrb[48].mxu1 }
 0x141   :  { %v1478_v59 = vadd.f32 %v1477_v58, %v1438_v54  ;;  %v2579_v61 = vpop.f32.mrb[49].mxu0  ;;  %v1613_v62 = vpop.f32.mrb[49].mxu1 }
 0x142   :  { %v1480_v63 = vpop.f32.mrb[50].mxu0  ;;  %v1614_v1 = vpop.f32.mrb[50].mxu1 }
 0x143   :  { %v1483_v0 = vadd.f32 %v1478_v59, %v1189_v38  ;;  %v2580_v2 = vpop.f32.mrb[51].mxu0  ;;  %v1615_v3 = vpop.f32.mrb[51].mxu1 }
 0x148   :  { %v1651_v4 = vpop.f32.mrb[52].mxu0  ;;  %v1691_v6 = vpop.f32.mrb[52].mxu1 }
 0x149   :  { %v1652_v5 = vadd.f32 %v1651_v4, %v1611_v60  ;;  %v1653_v7 = vpop.f32.mrb[53].mxu0  ;;  %v1693_v8 = vpop.f32.mrb[53].mxu1 }
 0x14a   :  { %v1654_v9 = vpop.f32.mrb[54].mxu0  ;;  %v1694_v11 = vpop.f32.mrb[54].mxu1 }
 0x14b   :  { %v1692_v10 = vadd.f32 %v1691_v6, %v1652_v5  ;;  %v1655_v12 = vpop.f32.mrb[55].mxu0  ;;  %v1695_v13 = vpop.f32.mrb[55].mxu1 }
 0x150   :  { %v1731_v14 = vpop.f32.mrb[56].mxu0  ;;  %v1771_v31 = vpop.f32.mrb[56].mxu1 }
 0x151   :  { %v1732_v15 = vadd.f32 %v1731_v14, %v1692_v10  ;;  %v1733_v16 = vpop.f32.mrb[57].mxu0  ;;  %v2585_v17 = vpop.f32.mrb[57].mxu1  ;;  %v2534_v10 = vld [vmem:[%s3122_s2] ss:$0 sm:$0xff] }
 0x152   :  { %v1734_v18 = vpop.f32.mrb[58].mxu0  ;;  %v1774_v20 = vpop.f32.mrb[58].mxu1 }
 0x153   :  { %v1772_v19 = vadd.f32 %v1771_v31, %v1732_v15  ;;  %v1735_v21 = vpop.f32.mrb[59].mxu0  ;;  %v2586_v22 = vpop.f32.mrb[59].mxu1 }
 0x155   :  { %v1777_v23 = vadd.f32 %v1772_v19, %v1483_v0 }
 0x158   :  { %v1905_v24 = vpop.f32.mrb[60].mxu0  ;;  %v1945_v25 = vpop.f32.mrb[60].mxu1 }
 0x159   :  { %v1907_v26 = vpop.f32.mrb[61].mxu0  ;;  %v1946_v27 = vadd.f32 %v1945_v25, %v1905_v24  ;;  %v1947_v28 = vpop.f32.mrb[61].mxu1 }
 0x15a   :  { %v1908_v29 = vpop.f32.mrb[62].mxu0  ;;  %v1948_v30 = vpop.f32.mrb[62].mxu1 }
 0x15b   :  { %v1909_v32 = vpop.f32.mrb[63].mxu0  ;;  %v1949_v33 = vpop.f32.mrb[63].mxu1 }
 0x160   :  { %v1985_v34 = vpop.f32.mrb[64].mxu0  ;;  %v2025_v36 = vpop.f32.mrb[64].mxu1 }
 0x161   :  { %v1986_v35 = vadd.f32 %v1985_v34, %v1946_v27  ;;  %v1987_v37 = vpop.f32.mrb[65].mxu0  ;;  %v2027_v38 = vpop.f32.mrb[65].mxu1 }
 0x162   :  { %v1988_v39 = vpop.f32.mrb[66].mxu0  ;;  %v2028_v41 = vpop.f32.mrb[66].mxu1 }
 0x163   :  { %v2026_v40 = vadd.f32 %v2025_v36, %v1986_v35  ;;  %v1989_v42 = vpop.f32.mrb[67].mxu0  ;;  %v2029_v43 = vpop.f32.mrb[67].mxu1 }
 0x168   :  { %v2065_v44 = vpop.f32.mrb[68].mxu0  ;;  %v2199_v46 = vpop.f32.mrb[68].mxu1 }
 0x169   :  { %v2066_v45 = vadd.f32 %v2065_v44, %v2026_v40  ;;  %v2591_v47 = vpop.f32.mrb[69].mxu0  ;;  %v2201_v48 = vpop.f32.mrb[69].mxu1 }
 0x16a   :  { %v2068_v49 = vpop.f32.mrb[70].mxu0  ;;  %v2202_v51 = vpop.f32.mrb[70].mxu1 }
 0x16b   :  { %v2071_v50 = vadd.f32 %v2066_v45, %v1777_v23  ;;  %v2592_v52 = vpop.f32.mrb[71].mxu0  ;;  %v2203_v53 = vpop.f32.mrb[71].mxu1 }
 0x170   :  { %v2239_v54 = vpop.f32.mrb[72].mxu0  ;;  %v2279_v56 = vpop.f32.mrb[72].mxu1 }
 0x171   :  { %v2240_v55 = vadd.f32 %v2239_v54, %v2199_v46  ;;  %v2241_v57 = vpop.f32.mrb[73].mxu0  ;;  %v2281_v58 = vpop.f32.mrb[73].mxu1 }
 0x172   :  { %v2242_v59 = vpop.f32.mrb[74].mxu0  ;;  %v2282_v61 = vpop.f32.mrb[74].mxu1 }
 0x173   :  { %v2280_v60 = vadd.f32 %v2279_v56, %v2240_v55  ;;  %v2243_v62 = vpop.f32.mrb[75].mxu0  ;;  %v2283_v63 = vpop.f32.mrb[75].mxu1 }
 0x178   :  { %v2319_v0 = vpop.f32.mrb[76].mxu0  ;;  %v2359_v2 = vpop.f32.mrb[76].mxu1 }
 0x179   :  { %v2320_v1 = vadd.f32 %v2319_v0, %v2280_v60  ;;  %v2321_v3 = vpop.f32.mrb[77].mxu0  ;;  %v2597_v4 = vpop.f32.mrb[77].mxu1 }
 0x17a   :  { %v2322_v5 = vpop.f32.mrb[78].mxu0  ;;  %v2362_v7 = vpop.f32.mrb[78].mxu1 }
 0x17b   :  { %v2360_v6 = vadd.f32 %v2359_v2, %v2320_v1  ;;  %v2323_v8 = vpop.f32.mrb[79].mxu0  ;;  %v2598_v9 = vpop.f32.mrb[79].mxu1 }
 0x17d   :  { %v2365_v11 = vadd.f32 %v2360_v6, %v2071_v50 }
 0x17f   :  { %v2373_v12 = vadd.f32 %v2534_v10, %v2365_v11 }
 0x181   :  { %2375 = vst.msk [vmem:[#allocation2] sm:$0xff] %vm2374_vm1, %v2373_v12 }
 0x182   :  { %2685 = shalt.err (!%p2682_p4)
}
 0x183   :  { %s2686_s14 = scalar_lea.hbm %s3123_s3, 128 }
 0x184   :  { %p2687_p5 = scmp.ne.s32.totalorder %s3123_s3, %s2686_s14  ;;  %p2690_p6 = scmp.lt.u32.totalorder %s2686_s14, %s3123_s3 }
 0x186   :  { %p2692_p7 = pnand %p2690_p6, %p2687_p5 }
 0x188   :  { %2695 = shalt.err (!%p2692_p7)
}
 0x189   :  { %2385 = dma.vmem_to_hbm [thread:$0]  %s2383_s10, 128, %s3123_s3, [#allocation3]  }
 0x18a   :  { %2696 = dma.done.wait [#allocation3], 128  }
 0x18b   :  { %2697 = vsyncadd [#allocation3], 4294967168 }
 0x18c   :  { %2389 = vsyncpa [#allocation3], 1 }

// kernel: my_awesome_model.2
= control target key start
LH: loop header
LB: loop body
LE: loop exit
PB: predicated region body
PF: predicated region fallthrough
CT: control target
= control target key end

     0   :  { %s5418_s18 = smov 0   ;;  %s6889_s0 = inlined_call_operand.vmem [shape: bf16[2,3136,16], index: 0, kind: input, shape index: {}]   ;;  %s6890_s1 = inlined_call_operand.vmem [shape: bf16[16,32], index: 1, kind: input, shape index: {}]   ;;  %s6891_s2 = inlined_call_operand.vmem [shape: f32[1,32], index: 2, kind: input, shape index: {}]   ;;  %s6892_s3 = inlined_call_operand.vmem [shape: bf16[3,96,64], index: 3, kind: input, shape index: {}]   ;;  %s6893_s4 = inlined_call_operand.vmem [shape: f32[1,64], index: 4, kind: input, shape index: {}]   ;;  %s6894_s5 = inlined_call_operand.vmem [shape: bf16[2,576,64], index: 5, kind: output, shape index: {}]  }
   0x1 LB: > { %s4546_s19 = sadd.s32 4294967295, %s5375_s18   ;;  %p4550_p0 = scmp.ge.s32.totalorder %s5375_s18, 1  ;;  %s5375_s18 = sphi %s5418_s18, %s15_s18  }
   0x2   : > { %p187_p1 = scmp.lt.s32.totalorder %s5375_s18, 3 }
   0x4   : > { %p188_p2 = pnand %p4550_p0, %p187_p1 }
   0x6   : > { %191 = sbr.rel (%p188_p2) target bundleno = 1054 (0x41e), region = 40 }
   0xd   : > { %p215_p3 = scmp.lt.s32.totalorder %s4546_s19, 1  ;;  %v5429_v0 = vld [vmem:[%s6890_s1] sm:$0xf]  ;;  %v5434_v1 = vld [vmem:[%s6890_s1 + $0x4] sm:$0xf]  ;;  %s5456_s11 = smov 0  }
   0xe   : > { %v5439_v2 = vld [vmem:[%s6891_s2] ss:$0 sm:$0xff] }
   0xf   : > { %v5444_v3 = vld [vmem:[%s6893_s4] ss:$0 sm:$0xff]  ;;  %s6927_s19 = smov (!%p215_p3, %s4546_s19), 1 }
  0x10   : > { %6905 = vst [vmem:[#allocation4_spill] sm:$0xff] %v5444_v3  ;;  %s5286_s28 = smul.u32 1568, %s6927_s19 }
  0x11   : > { %s5287_s29 = smul.u32 288, %s6927_s19 }
  0x12   : > { %s5449_s7 = scalar_lea.vmem %s6889_s0, %s5286_s28 }
  0x13   : > { %s5454_s10 = scalar_lea.vmem %s6894_s5, %s5287_s29 }
  0x14 LB: >> { %v4583_v4 = vcombine.low %v5429_v0, %v5434_v1  ;;  %s236_s12 = smul.u32 448, %s5379_s11  ;;  %vm449_vm0 = vcmask 130048   ;;  %vm960_vm1 = vcmask 261120   ;;  %s235_s11 = sadd.s32 1, %s5379_s11   ;;  %s5379_s11 = sphi %s5456_s11, %s235_s11  }
  0x15   : >> { %p232_p4 = scmp.ge.s32.totalorder %s235_s11, 7  }
  0x16   : >> { %5038 = vmatprep.subr.bf16.mxu0 %v4583_v4  ;;  %5216 = vmatprep.subr.bf16.mxu1 %v4583_v4  ;;  %s237_s13 = sshra.s32 %s236_s12, 3  ;;  %s5532_s16 = scalar_lea.vmem [#allocation2], %s236_s12 }
  0x17   : >> { %5039 = vmatpush3.bf16.msra.mxu0 %v4583_v4  ;;  %5217 = vmatpush3.bf16.msra.mxu1 %v4583_v4  ;;  %s4553_s14 = sshll.u32 %s237_s13, 2  ;;  %s5708_s17 = smov (%p232_p4), 0  }
  0x18   : >> { %s5467_s15 = scalar_lea.vmem %s5449_s7, %s4553_s14 }
  0x19   : >> { %v5315_v5 = vld [vmem:[%s5467_s15] sm:$0xff]   ;;  %v5316_v6 = vld [vmem:[%s5467_s15 + $0x70] sm:$0xff]   ;;  %v5317_v7 = vld [vmem:[%s5467_s15 + $0x8] sm:$0xff]  }
  0x1a   : >> { %5040 = vmatprep.mubr.msk.bf16.mxu0 %vm449_vm0, %v5315_v5  ;;  %5068 = vmatprep.mubr.msk.bf16.mxu1 %vm449_vm0, %v5316_v6  ;;  %v5318_v8 = vld [vmem:[%s5467_s15 + $0x78] sm:$0xff]   ;;  %v5319_v9 = vld [vmem:[%s5467_s15 + $0x10] sm:$0xff]   ;;  %v5320_v10 = vld [vmem:[%s5467_s15 + $0x80] sm:$0xff]  }
  0x1b   : >> { %5041 = vmatmul.mubr.msk.bf16.vlgmr.msra.gmra.mrb[0].mxu0 %vm449_vm0, %v5317_v7  ;;  %5069 = vmatmul.mubr.msk.bf16.vlgmr.msra.gmra.mrb[0].mxu1 %vm449_vm0, %v5318_v8  ;;  %v5321_v11 = vld [vmem:[%s5467_s15 + $0x18] sm:$0xff]   ;;  %v5322_v12 = vld [vmem:[%s5467_s15 + $0x88] sm:$0xff]   ;;  %v5323_v13 = vld [vmem:[%s5467_s15 + $0x20] sm:$0xff]  }
  0x1c   : >> { %5044 = vmatprep.mubr.msk.bf16.mxu0 %vm449_vm0, %v5319_v9  ;;  %5072 = vmatprep.mubr.msk.bf16.mxu1 %vm449_vm0, %v5320_v10  ;;  %v5324_v14 = vld [vmem:[%s5467_s15 + $0x90] sm:$0xff]   ;;  %v5325_v15 = vld [vmem:[%s5467_s15 + $0x28] sm:$0xff]   ;;  %v5326_v16 = vld [vmem:[%s5467_s15 + $0x98] sm:$0xff]  }
  0x1d   : >> { %v5327_v17 = vld [vmem:[%s5467_s15 + $0x30] sm:$0xff]   ;;  %v5328_v18 = vld [vmem:[%s5467_s15 + $0xa0] sm:$0xff]   ;;  %v5329_v19 = vld [vmem:[%s5467_s15 + $0x38] sm:$0xff]  }
  0x1e   : >> { %v5330_v20 = vld [vmem:[%s5467_s15 + $0xa8] sm:$0xff]   ;;  %v5331_v21 = vld [vmem:[%s5467_s15 + $0x40] sm:$0xff]   ;;  %v5332_v22 = vld [vmem:[%s5467_s15 + $0xb0] sm:$0xff]  }
  0x1f   : >> { %v5333_v23 = vld [vmem:[%s5467_s15 + $0x48] sm:$0xff]   ;;  %v5334_v24 = vld [vmem:[%s5467_s15 + $0xb8] sm:$0xff]   ;;  %v5335_v25 = vld [vmem:[%s5467_s15 + $0x50] sm:$0xff]  }
  0x20   : >> { %v5336_v26 = vld [vmem:[%s5467_s15 + $0xc0] sm:$0xff]   ;;  %v5337_v27 = vld [vmem:[%s5467_s15 + $0x58] sm:$0xff]   ;;  %v5338_v28 = vld [vmem:[%s5467_s15 + $0xc8] sm:$0xff]  }
  0x21   : >> { %v5339_v29 = vld [vmem:[%s5467_s15 + $0x60] sm:$0xff]   ;;  %v5340_v30 = vld [vmem:[%s5467_s15 + $0xd0] sm:$0xff]   ;;  %v5341_v31 = vld [vmem:[%s5467_s15 + $0x68] sm:$0xff]  }
  0x22   : >> { %v5342_v32 = vld [vmem:[%s5467_s15 + $0xd8] sm:$0xff]  }
  0x23   : >> { %5045 = vmatmul.mubr.msk.bf16.gmra.mrb[4].mxu0 %vm449_vm0, %v5321_v11  ;;  %5073 = vmatmul.mubr.msk.bf16.gmra.mrb[4].mxu1 %vm449_vm0, %v5322_v12 }
  0x24   : >> { %5048 = vmatprep.mubr.msk.bf16.mxu0 %vm449_vm0, %v5323_v13  ;;  %5076 = vmatprep.mubr.msk.bf16.mxu1 %vm449_vm0, %v5324_v14 }
  0x2b   : >> { %5049 = vmatmul.mubr.msk.bf16.gmra.mrb[8].mxu0 %vm449_vm0, %v5325_v15  ;;  %5077 = vmatmul.mubr.msk.bf16.gmra.mrb[8].mxu1 %vm449_vm0, %v5326_v16 }
  0x2c   : >> { %5052 = vmatprep.mubr.msk.bf16.mxu0 %vm449_vm0, %v5327_v17  ;;  %5080 = vmatprep.mubr.msk.bf16.mxu1 %vm449_vm0, %v5328_v18 }
  0x33   : >> { %5053 = vmatmul.mubr.msk.bf16.gmra.mrb[12].mxu0 %vm449_vm0, %v5329_v19  ;;  %5081 = vmatmul.mubr.msk.bf16.gmra.mrb[12].mxu1 %vm449_vm0, %v5330_v20 }
  0x34   : >> { %5056 = vmatprep.mubr.msk.bf16.mxu0 %vm449_vm0, %v5331_v21  ;;  %5084 = vmatprep.mubr.msk.bf16.mxu1 %vm449_vm0, %v5332_v22 }
  0x3b   : >> { %5057 = vmatmul.mubr.msk.bf16.gmra.mrb[16].mxu0 %vm449_vm0, %v5333_v23  ;;  %5085 = vmatmul.mubr.msk.bf16.gmra.mrb[16].mxu1 %vm449_vm0, %v5334_v24 }
  0x3c   : >> { %5060 = vmatprep.mubr.msk.bf16.mxu0 %vm449_vm0, %v5335_v25  ;;  %5088 = vmatprep.mubr.msk.bf16.mxu1 %vm449_vm0, %v5336_v26 }
  0x43   : >> { %5061 = vmatmul.mubr.msk.bf16.gmra.mrb[20].mxu0 %vm449_vm0, %v5337_v27  ;;  %5089 = vmatmul.mubr.msk.bf16.gmra.mrb[20].mxu1 %vm449_vm0, %v5338_v28 }
  0x44   : >> { %5064 = vmatprep.mubr.msk.bf16.mxu0 %vm449_vm0, %v5339_v29  ;;  %5092 = vmatprep.mubr.msk.bf16.mxu1 %vm449_vm0, %v5340_v30 }
  0x4b   : >> { %5065 = vmatmul.mubr.msk.bf16.gmra.mrb[24].mxu0 %vm449_vm0, %v5341_v31  ;;  %5093 = vmatmul.mubr.msk.bf16.gmra.mrb[24].mxu1 %vm449_vm0, %v5342_v32 }
  0xee   : >> { %v5042_v33 = vpop.f32.mrb[0].mxu0  ;;  %v5070_v35 = vpop.f32.mrb[0].mxu1 }
  0xef   : >> { %v577_v34 = vadd.f32 %v5042_v33, %v5439_v2  ;;  %v568_v36 = vpop.f32.mrb[1].mxu0  ;;  %v689_v37 = vadd.f32 %v5070_v35, %v5439_v2  ;;  %v680_v39 = vpop.f32.mrb[1].mxu1 }
  0xf0   : >> { %v569_v38 = vadd.f32 %v5439_v2, %v568_v36  ;;  %v5043_v40 = vpop.f32.mrb[2].mxu0  ;;  %v681_v42 = vadd.f32 %v5439_v2, %v680_v39  ;;  %v5071_v44 = vpop.f32.mrb[2].mxu1 }
  0xf1   : >> { %vm793_vm2 = vcmp.gt.f32.partialorder %v577_v34, 0.0  ;;  %v849_v41 = vmul.f32 0.01, %v577_v34  ;;  %v580_v43 = vadd.f32 %v5043_v40, %v5439_v2  ;;  %v571_v45 = vpop.f32.mrb[3].mxu0  ;;  %vm821_vm3 = vcmp.gt.f32.partialorder %v689_v37, 0.0  ;;  %v683_v50 = vpop.f32.mrb[3].mxu1 }
  0xf2   : >> { %v877_v46 = vmul.f32 0.01, %v689_v37  ;;  %vm791_vm4 = vcmp.gt.f32.partialorder %v569_v38, 0.0  ;;  %v847_v47 = vmul.f32 0.01, %v569_v38  ;;  %vm819_vm5 = vcmp.gt.f32.partialorder %v681_v42, 0.0 }
  0xf3   : >> { %v905_v48 = vsel %vm793_vm2, %v577_v34, %v849_v41  ;;  %v875_v49 = vmul.f32 0.01, %v681_v42  ;;  %vm794_vm6 = vcmp.gt.f32.partialorder %v580_v43, 0.0  ;;  %v850_v53 = vmul.f32 0.01, %v580_v43 }
  0xf4   : >> { %963 = vst.msk [vmem:[%s5532_s16 + $0x10] sm:$0xff] %vm960_vm1, %v905_v48  ;;  %v933_v51 = vsel %vm821_vm3, %v689_v37, %v877_v46  ;;  %v903_v52 = vsel %vm791_vm4, %v569_v38, %v847_v47  ;;  %v692_v54 = vadd.f32 %v5071_v44, %v5439_v2  ;;  %v572_v56 = vadd.f32 %v5439_v2, %v571_v45 }
  0xf5   : >> { %991 = vst.msk [vmem:[%s5532_s16 + $0xf0] sm:$0xff] %vm960_vm1, %v933_v51  ;;  %961 = vst.msk [vmem:[%s5532_s16] sm:$0xff] %vm960_vm1, %v903_v52  ;;  %v931_v55 = vsel %vm819_vm5, %v681_v42, %v875_v49  ;;  %v684_v57 = vadd.f32 %v5439_v2, %v683_v50  ;;  %v906_v58 = vsel %vm794_vm6, %v580_v43, %v850_v53 }
  0xf6   : >> { %989 = vst.msk [vmem:[%s5532_s16 + $0xe0] sm:$0xff] %vm960_vm1, %v931_v55  ;;  %vm822_vm7 = vcmp.gt.f32.partialorder %v692_v54, 0.0  ;;  %v878_v59 = vmul.f32 0.01, %v692_v54  ;;  %v5046_v60 = vpop.f32.mrb[4].mxu0  ;;  %964 = vst.msk [vmem:[%s5532_s16 + $0x18] sm:$0xff] %vm960_vm1, %v906_v58 }
  0xf7   : >> { %vm792_vm8 = vcmp.gt.f32.partialorder %v572_v56, 0.0  ;;  %v848_v61 = vmul.f32 0.01, %v572_v56  ;;  %vm820_vm9 = vcmp.gt.f32.partialorder %v684_v57, 0.0  ;;  %v876_v62 = vmul.f32 0.01, %v684_v57 }
  0xf8   : >> { %v934_v63 = vsel %vm822_vm7, %v692_v54, %v878_v59  ;;  %v593_v4 = vadd.f32 %v5046_v60, %v5439_v2  ;;  %v5074_v5 = vpop.f32.mrb[4].mxu1  ;;  %v584_v6 = vpop.f32.mrb[5].mxu0 }
  0xf9   : >> { %992 = vst.msk [vmem:[%s5532_s16 + $0xf8] sm:$0xff] %vm960_vm1, %v934_v63  ;;  %v904_v7 = vsel %vm792_vm8, %v572_v56, %v848_v61  ;;  %v932_v8 = vsel %vm820_vm9, %v684_v57, %v876_v62  ;;  %v705_v9 = vadd.f32 %v5074_v5, %v5439_v2  ;;  %v585_v10 = vadd.f32 %v5439_v2, %v584_v6  ;;  %v696_v11 = vpop.f32.mrb[5].mxu1  ;;  %v5047_v12 = vpop.f32.mrb[6].mxu0 }
  0xfa   : >> { %962 = vst.msk [vmem:[%s5532_s16 + $0x8] sm:$0xff] %vm960_vm1, %v904_v7  ;;  %990 = vst.msk [vmem:[%s5532_s16 + $0xe8] sm:$0xff] %vm960_vm1, %v932_v8  ;;  %vm797_vm10 = vcmp.gt.f32.partialorder %v593_v4, 0.0  ;;  %v853_v13 = vmul.f32 0.01, %v593_v4  ;;  %v697_v14 = vadd.f32 %v5439_v2, %v696_v11  ;;  %v596_v15 = vadd.f32 %v5047_v12, %v5439_v2  ;;  %v5075_v16 = vpop.f32.mrb[6].mxu1 }
  0xfb   : >> { %v587_v17 = vpop.f32.mrb[7].mxu0  ;;  %vm825_vm11 = vcmp.gt.f32.partialorder %v705_v9, 0.0  ;;  %v881_v18 = vmul.f32 0.01, %v705_v9  ;;  %vm795_vm12 = vcmp.gt.f32.partialorder %v585_v10, 0.0  ;;  %v699_v22 = vpop.f32.mrb[7].mxu1  ;;  %v708_v26 = vadd.f32 %v5075_v16, %v5439_v2 }
  0xfc   : >> { %v851_v19 = vmul.f32 0.01, %v585_v10  ;;  %v909_v20 = vsel %vm797_vm10, %v593_v4, %v853_v13  ;;  %vm823_vm13 = vcmp.gt.f32.partialorder %v697_v14, 0.0  ;;  %v879_v21 = vmul.f32 0.01, %v697_v14 }
  0xfd   : >> { %vm798_vm14 = vcmp.gt.f32.partialorder %v596_v15, 0.0  ;;  %967 = vst.msk [vmem:[%s5532_s16 + $0x30] sm:$0xff] %vm960_vm1, %v909_v20  ;;  %v937_v23 = vsel %vm825_vm11, %v705_v9, %v881_v18  ;;  %v854_v25 = vmul.f32 0.01, %v596_v15  ;;  %v588_v28 = vadd.f32 %v5439_v2, %v587_v17 }
  0xfe   : >> { %v907_v24 = vsel %vm795_vm12, %v585_v10, %v851_v19  ;;  %995 = vst.msk [vmem:[%s5532_s16 + $0x110] sm:$0xff] %vm960_vm1, %v937_v23  ;;  %v935_v27 = vsel %vm823_vm13, %v697_v14, %v879_v21  ;;  %v700_v29 = vadd.f32 %v5439_v2, %v699_v22  ;;  %v5050_v30 = vpop.f32.mrb[8].mxu0  ;;  %vm826_vm15 = vcmp.gt.f32.partialorder %v708_v26, 0.0  ;;  %v5078_v34 = vpop.f32.mrb[8].mxu1 }
  0xff   : >> { %965 = vst.msk [vmem:[%s5532_s16 + $0x20] sm:$0xff] %vm960_vm1, %v907_v24  ;;  %993 = vst.msk [vmem:[%s5532_s16 + $0x100] sm:$0xff] %vm960_vm1, %v935_v27  ;;  %v910_v31 = vsel %vm798_vm14, %v596_v15, %v854_v25  ;;  %v882_v32 = vmul.f32 0.01, %v708_v26  ;;  %v609_v33 = vadd.f32 %v5050_v30, %v5439_v2  ;;  %v600_v35 = vpop.f32.mrb[9].mxu0  ;;  %vm796_vm0 = vcmp.gt.f32.partialorder %v588_v28, 0.0 }
 0x100   : >> { %968 = vst.msk [vmem:[%s5532_s16 + $0x38] sm:$0xff] %vm960_vm1, %v910_v31  ;;  %v852_v36 = vmul.f32 0.01, %v588_v28  ;;  %vm824_vm2 = vcmp.gt.f32.partialorder %v700_v29, 0.0  ;;  %v880_v37 = vmul.f32 0.01, %v700_v29  ;;  %v721_v40 = vadd.f32 %v5078_v34, %v5439_v2 }
 0x101   : >> { %v938_v38 = vsel %vm826_vm15, %v708_v26, %v882_v32  ;;  %vm801_vm3 = vcmp.gt.f32.partialorder %v609_v33, 0.0  ;;  %v857_v39 = vmul.f32 0.01, %v609_v33  ;;  %v712_v41 = vpop.f32.mrb[9].mxu1  ;;  %v5051_v42 = vpop.f32.mrb[10].mxu0  ;;  %v601_v45 = vadd.f32 %v5439_v2, %v600_v35 }
 0x102   : >> { %996 = vst.msk [vmem:[%s5532_s16 + $0x118] sm:$0xff] %vm960_vm1, %v938_v38  ;;  %v908_v43 = vsel %vm796_vm0, %v588_v28, %v852_v36  ;;  %v936_v44 = vsel %vm824_vm2, %v700_v29, %v880_v37  ;;  %v713_v46 = vadd.f32 %v5439_v2, %v712_v41  ;;  %v5079_v47 = vpop.f32.mrb[10].mxu1  ;;  %v603_v48 = vpop.f32.mrb[11].mxu0  ;;  %vm829_vm4 = vcmp.gt.f32.partialorder %v721_v40, 0.0 }
 0x103   : >> { %966 = vst.msk [vmem:[%s5532_s16 + $0x28] sm:$0xff] %vm960_vm1, %v908_v43  ;;  %994 = vst.msk [vmem:[%s5532_s16 + $0x108] sm:$0xff] %vm960_vm1, %v936_v44  ;;  %v913_v49 = vsel %vm801_vm3, %v609_v33, %v857_v39  ;;  %v885_v50 = vmul.f32 0.01, %v721_v40  ;;  %v612_v51 = vadd.f32 %v5051_v42, %v5439_v2  ;;  %v715_v52 = vpop.f32.mrb[11].mxu1  ;;  %vm799_vm5 = vcmp.gt.f32.partialorder %v601_v45, 0.0 }
 0x104   : >> { %971 = vst.msk [vmem:[%s5532_s16 + $0x50] sm:$0xff] %vm960_vm1, %v913_v49  ;;  %v855_v53 = vmul.f32 0.01, %v601_v45  ;;  %vm827_vm6 = vcmp.gt.f32.partialorder %v713_v46, 0.0  ;;  %v883_v54 = vmul.f32 0.01, %v713_v46  ;;  %v724_v57 = vadd.f32 %v5079_v47, %v5439_v2 }
 0x105   : >> { %v941_v55 = vsel %vm829_vm4, %v721_v40, %v885_v50  ;;  %vm802_vm7 = vcmp.gt.f32.partialorder %v612_v51, 0.0  ;;  %v858_v56 = vmul.f32 0.01, %v612_v51  ;;  %v604_v60 = vadd.f32 %v5439_v2, %v603_v48 }
 0x106   : >> { %999 = vst.msk [vmem:[%s5532_s16 + $0x130] sm:$0xff] %vm960_vm1, %v941_v55  ;;  %v911_v58 = vsel %vm799_vm5, %v601_v45, %v855_v53  ;;  %v939_v59 = vsel %vm827_vm6, %v713_v46, %v883_v54  ;;  %v716_v61 = vadd.f32 %v5439_v2, %v715_v52  ;;  %v5054_v62 = vpop.f32.mrb[12].mxu0  ;;  %vm830_vm8 = vcmp.gt.f32.partialorder %v724_v57, 0.0  ;;  %v5082_v6 = vpop.f32.mrb[12].mxu1 }
 0x107   : >> { %969 = vst.msk [vmem:[%s5532_s16 + $0x40] sm:$0xff] %vm960_vm1, %v911_v58  ;;  %997 = vst.msk [vmem:[%s5532_s16 + $0x120] sm:$0xff] %vm960_vm1, %v939_v59  ;;  %v914_v63 = vsel %vm802_vm7, %v612_v51, %v858_v56  ;;  %v886_v4 = vmul.f32 0.01, %v724_v57  ;;  %v625_v5 = vadd.f32 %v5054_v62, %v5439_v2  ;;  %v616_v7 = vpop.f32.mrb[13].mxu0  ;;  %vm800_vm9 = vcmp.gt.f32.partialorder %v604_v60, 0.0 }
 0x108   : >> { %972 = vst.msk [vmem:[%s5532_s16 + $0x58] sm:$0xff] %vm960_vm1, %v914_v63  ;;  %v856_v8 = vmul.f32 0.01, %v604_v60  ;;  %vm828_vm10 = vcmp.gt.f32.partialorder %v716_v61, 0.0  ;;  %v884_v9 = vmul.f32 0.01, %v716_v61  ;;  %v737_v12 = vadd.f32 %v5082_v6, %v5439_v2 }
 0x109   : >> { %v942_v10 = vsel %vm830_vm8, %v724_v57, %v886_v4  ;;  %vm805_vm11 = vcmp.gt.f32.partialorder %v625_v5, 0.0  ;;  %v861_v11 = vmul.f32 0.01, %v625_v5  ;;  %v728_v13 = vpop.f32.mrb[13].mxu1  ;;  %v5055_v14 = vpop.f32.mrb[14].mxu0  ;;  %v617_v17 = vadd.f32 %v5439_v2, %v616_v7 }
 0x10a   : >> { %1000 = vst.msk [vmem:[%s5532_s16 + $0x138] sm:$0xff] %vm960_vm1, %v942_v10  ;;  %v912_v15 = vsel %vm800_vm9, %v604_v60, %v856_v8  ;;  %v940_v16 = vsel %vm828_vm10, %v716_v61, %v884_v9  ;;  %v729_v18 = vadd.f32 %v5439_v2, %v728_v13  ;;  %v5083_v19 = vpop.f32.mrb[14].mxu1  ;;  %v619_v20 = vpop.f32.mrb[15].mxu0  ;;  %vm833_vm12 = vcmp.gt.f32.partialorder %v737_v12, 0.0 }
 0x10b   : >> { %970 = vst.msk [vmem:[%s5532_s16 + $0x48] sm:$0xff] %vm960_vm1, %v912_v15  ;;  %998 = vst.msk [vmem:[%s5532_s16 + $0x128] sm:$0xff] %vm960_vm1, %v940_v16  ;;  %v917_v21 = vsel %vm805_vm11, %v625_v5, %v861_v11  ;;  %v889_v22 = vmul.f32 0.01, %v737_v12  ;;  %v628_v23 = vadd.f32 %v5055_v14, %v5439_v2  ;;  %v731_v24 = vpop.f32.mrb[15].mxu1  ;;  %vm803_vm13 = vcmp.gt.f32.partialorder %v617_v17, 0.0 }
 0x10c   : >> { %975 = vst.msk [vmem:[%s5532_s16 + $0x70] sm:$0xff] %vm960_vm1, %v917_v21  ;;  %v859_v25 = vmul.f32 0.01, %v617_v17  ;;  %vm831_vm14 = vcmp.gt.f32.partialorder %v729_v18, 0.0  ;;  %v887_v26 = vmul.f32 0.01, %v729_v18  ;;  %v740_v29 = vadd.f32 %v5083_v19, %v5439_v2 }
 0x10d   : >> { %v945_v27 = vsel %vm833_vm12, %v737_v12, %v889_v22  ;;  %vm806_vm15 = vcmp.gt.f32.partialorder %v628_v23, 0.0  ;;  %v862_v28 = vmul.f32 0.01, %v628_v23  ;;  %v620_v32 = vadd.f32 %v5439_v2, %v619_v20 }
 0x10e   : >> { %1003 = vst.msk [vmem:[%s5532_s16 + $0x150] sm:$0xff] %vm960_vm1, %v945_v27  ;;  %v915_v30 = vsel %vm803_vm13, %v617_v17, %v859_v25  ;;  %v943_v31 = vsel %vm831_vm14, %v729_v18, %v887_v26  ;;  %v732_v33 = vadd.f32 %v5439_v2, %v731_v24  ;;  %v5058_v34 = vpop.f32.mrb[16].mxu0  ;;  %vm834_vm0 = vcmp.gt.f32.partialorder %v740_v29, 0.0  ;;  %v5086_v38 = vpop.f32.mrb[16].mxu1 }
 0x10f   : >> { %973 = vst.msk [vmem:[%s5532_s16 + $0x60] sm:$0xff] %vm960_vm1, %v915_v30  ;;  %1001 = vst.msk [vmem:[%s5532_s16 + $0x140] sm:$0xff] %vm960_vm1, %v943_v31  ;;  %v918_v35 = vsel %vm806_vm15, %v628_v23, %v862_v28  ;;  %v890_v36 = vmul.f32 0.01, %v740_v29  ;;  %v641_v37 = vadd.f32 %v5058_v34, %v5439_v2  ;;  %v632_v39 = vpop.f32.mrb[17].mxu0  ;;  %vm804_vm2 = vcmp.gt.f32.partialorder %v620_v32, 0.0 }
 0x110   : >> { %976 = vst.msk [vmem:[%s5532_s16 + $0x78] sm:$0xff] %vm960_vm1, %v918_v35  ;;  %v860_v40 = vmul.f32 0.01, %v620_v32  ;;  %vm832_vm3 = vcmp.gt.f32.partialorder %v732_v33, 0.0  ;;  %v888_v41 = vmul.f32 0.01, %v732_v33  ;;  %v753_v44 = vadd.f32 %v5086_v38, %v5439_v2 }
 0x111   : >> { %v946_v42 = vsel %vm834_vm0, %v740_v29, %v890_v36  ;;  %vm809_vm4 = vcmp.gt.f32.partialorder %v641_v37, 0.0  ;;  %v865_v43 = vmul.f32 0.01, %v641_v37  ;;  %v744_v45 = vpop.f32.mrb[17].mxu1  ;;  %v5059_v46 = vpop.f32.mrb[18].mxu0  ;;  %v633_v49 = vadd.f32 %v5439_v2, %v632_v39 }
 0x112   : >> { %1004 = vst.msk [vmem:[%s5532_s16 + $0x158] sm:$0xff] %vm960_vm1, %v946_v42  ;;  %v916_v47 = vsel %vm804_vm2, %v620_v32, %v860_v40  ;;  %v944_v48 = vsel %vm832_vm3, %v732_v33, %v888_v41  ;;  %v745_v50 = vadd.f32 %v5439_v2, %v744_v45  ;;  %v5087_v51 = vpop.f32.mrb[18].mxu1  ;;  %v635_v52 = vpop.f32.mrb[19].mxu0  ;;  %vm837_vm5 = vcmp.gt.f32.partialorder %v753_v44, 0.0 }
 0x113   : >> { %974 = vst.msk [vmem:[%s5532_s16 + $0x68] sm:$0xff] %vm960_vm1, %v916_v47  ;;  %1002 = vst.msk [vmem:[%s5532_s16 + $0x148] sm:$0xff] %vm960_vm1, %v944_v48  ;;  %v921_v53 = vsel %vm809_vm4, %v641_v37, %v865_v43  ;;  %v893_v54 = vmul.f32 0.01, %v753_v44  ;;  %v644_v55 = vadd.f32 %v5059_v46, %v5439_v2  ;;  %v747_v56 = vpop.f32.mrb[19].mxu1  ;;  %vm807_vm6 = vcmp.gt.f32.partialorder %v633_v49, 0.0 }
 0x114   : >> { %979 = vst.msk [vmem:[%s5532_s16 + $0x90] sm:$0xff] %vm960_vm1, %v921_v53  ;;  %v863_v57 = vmul.f32 0.01, %v633_v49  ;;  %vm835_vm7 = vcmp.gt.f32.partialorder %v745_v50, 0.0  ;;  %v891_v58 = vmul.f32 0.01, %v745_v50  ;;  %v756_v61 = vadd.f32 %v5087_v51, %v5439_v2 }
 0x115   : >> { %v949_v59 = vsel %vm837_vm5, %v753_v44, %v893_v54  ;;  %vm810_vm8 = vcmp.gt.f32.partialorder %v644_v55, 0.0  ;;  %v866_v60 = vmul.f32 0.01, %v644_v55  ;;  %v636_v4 = vadd.f32 %v5439_v2, %v635_v52 }
 0x116   : >> { %1007 = vst.msk [vmem:[%s5532_s16 + $0x170] sm:$0xff] %vm960_vm1, %v949_v59  ;;  %v919_v62 = vsel %vm807_vm6, %v633_v49, %v863_v57  ;;  %v947_v63 = vsel %vm835_vm7, %v745_v50, %v891_v58  ;;  %v748_v5 = vadd.f32 %v5439_v2, %v747_v56  ;;  %v5062_v6 = vpop.f32.mrb[20].mxu0  ;;  %vm838_vm9 = vcmp.gt.f32.partialorder %v756_v61, 0.0  ;;  %v5090_v10 = vpop.f32.mrb[20].mxu1 }
 0x117   : >> { %977 = vst.msk [vmem:[%s5532_s16 + $0x80] sm:$0xff] %vm960_vm1, %v919_v62  ;;  %1005 = vst.msk [vmem:[%s5532_s16 + $0x160] sm:$0xff] %vm960_vm1, %v947_v63  ;;  %v922_v7 = vsel %vm810_vm8, %v644_v55, %v866_v60  ;;  %v894_v8 = vmul.f32 0.01, %v756_v61  ;;  %v657_v9 = vadd.f32 %v5062_v6, %v5439_v2  ;;  %v648_v11 = vpop.f32.mrb[21].mxu0  ;;  %vm808_vm10 = vcmp.gt.f32.partialorder %v636_v4, 0.0 }
 0x118   : >> { %980 = vst.msk [vmem:[%s5532_s16 + $0x98] sm:$0xff] %vm960_vm1, %v922_v7  ;;  %v864_v12 = vmul.f32 0.01, %v636_v4  ;;  %vm836_vm11 = vcmp.gt.f32.partialorder %v748_v5, 0.0  ;;  %v892_v13 = vmul.f32 0.01, %v748_v5  ;;  %v769_v16 = vadd.f32 %v5090_v10, %v5439_v2 }
 0x119   : >> { %v950_v14 = vsel %vm838_vm9, %v756_v61, %v894_v8  ;;  %vm813_vm12 = vcmp.gt.f32.partialorder %v657_v9, 0.0  ;;  %v869_v15 = vmul.f32 0.01, %v657_v9  ;;  %v760_v17 = vpop.f32.mrb[21].mxu1  ;;  %v5063_v18 = vpop.f32.mrb[22].mxu0  ;;  %v649_v21 = vadd.f32 %v5439_v2, %v648_v11 }
 0x11a   : >> { %1008 = vst.msk [vmem:[%s5532_s16 + $0x178] sm:$0xff] %vm960_vm1, %v950_v14  ;;  %v920_v19 = vsel %vm808_vm10, %v636_v4, %v864_v12  ;;  %v948_v20 = vsel %vm836_vm11, %v748_v5, %v892_v13  ;;  %v761_v22 = vadd.f32 %v5439_v2, %v760_v17  ;;  %v5091_v23 = vpop.f32.mrb[22].mxu1  ;;  %v651_v24 = vpop.f32.mrb[23].mxu0  ;;  %vm841_vm13 = vcmp.gt.f32.partialorder %v769_v16, 0.0 }
 0x11b   : >> { %978 = vst.msk [vmem:[%s5532_s16 + $0x88] sm:$0xff] %vm960_vm1, %v920_v19  ;;  %1006 = vst.msk [vmem:[%s5532_s16 + $0x168] sm:$0xff] %vm960_vm1, %v948_v20  ;;  %v925_v25 = vsel %vm813_vm12, %v657_v9, %v869_v15  ;;  %v897_v26 = vmul.f32 0.01, %v769_v16  ;;  %v660_v27 = vadd.f32 %v5063_v18, %v5439_v2  ;;  %v763_v28 = vpop.f32.mrb[23].mxu1  ;;  %vm811_vm14 = vcmp.gt.f32.partialorder %v649_v21, 0.0 }
 0x11c   : >> { %983 = vst.msk [vmem:[%s5532_s16 + $0xb0] sm:$0xff] %vm960_vm1, %v925_v25  ;;  %v867_v29 = vmul.f32 0.01, %v649_v21  ;;  %vm839_vm15 = vcmp.gt.f32.partialorder %v761_v22, 0.0  ;;  %v895_v30 = vmul.f32 0.01, %v761_v22  ;;  %v772_v33 = vadd.f32 %v5091_v23, %v5439_v2 }
 0x11d   : >> { %v953_v31 = vsel %vm841_vm13, %v769_v16, %v897_v26  ;;  %vm814_vm0 = vcmp.gt.f32.partialorder %v660_v27, 0.0  ;;  %v870_v32 = vmul.f32 0.01, %v660_v27  ;;  %v652_v36 = vadd.f32 %v5439_v2, %v651_v24 }
 0x11e   : >> { %1011 = vst.msk [vmem:[%s5532_s16 + $0x190] sm:$0xff] %vm960_vm1, %v953_v31  ;;  %v923_v34 = vsel %vm811_vm14, %v649_v21, %v867_v29  ;;  %v951_v35 = vsel %vm839_vm15, %v761_v22, %v895_v30  ;;  %v764_v37 = vadd.f32 %v5439_v2, %v763_v28  ;;  %v5066_v38 = vpop.f32.mrb[24].mxu0  ;;  %vm842_vm2 = vcmp.gt.f32.partialorder %v772_v33, 0.0  ;;  %v5094_v42 = vpop.f32.mrb[24].mxu1 }
 0x11f   : >> { %981 = vst.msk [vmem:[%s5532_s16 + $0xa0] sm:$0xff] %vm960_vm1, %v923_v34  ;;  %1009 = vst.msk [vmem:[%s5532_s16 + $0x180] sm:$0xff] %vm960_vm1, %v951_v35  ;;  %v926_v39 = vsel %vm814_vm0, %v660_v27, %v870_v32  ;;  %v898_v40 = vmul.f32 0.01, %v772_v33  ;;  %v673_v41 = vadd.f32 %v5066_v38, %v5439_v2  ;;  %v664_v43 = vpop.f32.mrb[25].mxu0  ;;  %vm812_vm3 = vcmp.gt.f32.partialorder %v652_v36, 0.0 }
 0x120   : >> { %984 = vst.msk [vmem:[%s5532_s16 + $0xb8] sm:$0xff] %vm960_vm1, %v926_v39  ;;  %v868_v44 = vmul.f32 0.01, %v652_v36  ;;  %vm840_vm4 = vcmp.gt.f32.partialorder %v764_v37, 0.0  ;;  %v896_v45 = vmul.f32 0.01, %v764_v37  ;;  %v785_v48 = vadd.f32 %v5094_v42, %v5439_v2 }
 0x121   : >> { %v954_v46 = vsel %vm842_vm2, %v772_v33, %v898_v40  ;;  %vm817_vm5 = vcmp.gt.f32.partialorder %v673_v41, 0.0  ;;  %v873_v47 = vmul.f32 0.01, %v673_v41  ;;  %v776_v49 = vpop.f32.mrb[25].mxu1  ;;  %v5067_v50 = vpop.f32.mrb[26].mxu0  ;;  %v665_v53 = vadd.f32 %v5439_v2, %v664_v43 }
 0x122   : >> { %1012 = vst.msk [vmem:[%s5532_s16 + $0x198] sm:$0xff] %vm960_vm1, %v954_v46  ;;  %v924_v51 = vsel %vm812_vm3, %v652_v36, %v868_v44  ;;  %v952_v52 = vsel %vm840_vm4, %v764_v37, %v896_v45  ;;  %v777_v54 = vadd.f32 %v5439_v2, %v776_v49  ;;  %v5095_v55 = vpop.f32.mrb[26].mxu1  ;;  %v667_v56 = vpop.f32.mrb[27].mxu0  ;;  %vm845_vm6 = vcmp.gt.f32.partialorder %v785_v48, 0.0 }
 0x123   : >> { %982 = vst.msk [vmem:[%s5532_s16 + $0xa8] sm:$0xff] %vm960_vm1, %v924_v51  ;;  %1010 = vst.msk [vmem:[%s5532_s16 + $0x188] sm:$0xff] %vm960_vm1, %v952_v52  ;;  %v929_v57 = vsel %vm817_vm5, %v673_v41, %v873_v47  ;;  %v901_v58 = vmul.f32 0.01, %v785_v48  ;;  %v676_v59 = vadd.f32 %v5067_v50, %v5439_v2  ;;  %v779_v60 = vpop.f32.mrb[27].mxu1  ;;  %vm815_vm7 = vcmp.gt.f32.partialorder %v665_v53, 0.0 }
 0x124   : >> { %987 = vst.msk [vmem:[%s5532_s16 + $0xd0] sm:$0xff] %vm960_vm1, %v929_v57  ;;  %v871_v61 = vmul.f32 0.01, %v665_v53  ;;  %vm843_vm8 = vcmp.gt.f32.partialorder %v777_v54, 0.0  ;;  %v899_v62 = vmul.f32 0.01, %v777_v54  ;;  %v788_v5 = vadd.f32 %v5095_v55, %v5439_v2 }
 0x125   : >> { %v957_v63 = vsel %vm845_vm6, %v785_v48, %v901_v58  ;;  %vm818_vm9 = vcmp.gt.f32.partialorder %v676_v59, 0.0  ;;  %v874_v4 = vmul.f32 0.01, %v676_v59  ;;  %v668_v8 = vadd.f32 %v5439_v2, %v667_v56  ;;  %234 = sbr.rel (!%p232_p4) target bundleno = 20 (0x14), region = 475 }
 0x126   : >> { %1015 = vst.msk [vmem:[%s5532_s16 + $0x1b0] sm:$0xff] %vm960_vm1, %v957_v63  ;;  %v927_v6 = vsel %vm815_vm7, %v665_v53, %v871_v61  ;;  %v955_v7 = vsel %vm843_vm8, %v777_v54, %v899_v62  ;;  %v780_v9 = vadd.f32 %v5439_v2, %v779_v60  ;;  %vm846_vm10 = vcmp.gt.f32.partialorder %v788_v5, 0.0 }
 0x127   : >> { %985 = vst.msk [vmem:[%s5532_s16 + $0xc0] sm:$0xff] %vm960_vm1, %v927_v6  ;;  %1013 = vst.msk [vmem:[%s5532_s16 + $0x1a0] sm:$0xff] %vm960_vm1, %v955_v7  ;;  %v930_v10 = vsel %vm818_vm9, %v676_v59, %v874_v4  ;;  %v902_v11 = vmul.f32 0.01, %v788_v5  ;;  %vm816_vm11 = vcmp.gt.f32.partialorder %v668_v8, 0.0  ;;  %v5385_v17 = vmov (%p232_p4), 0.0  }
 0x128   : >> { %988 = vst.msk [vmem:[%s5532_s16 + $0xd8] sm:$0xff] %vm960_vm1, %v930_v10  ;;  %v872_v12 = vmul.f32 0.01, %v668_v8  ;;  %vm844_vm12 = vcmp.gt.f32.partialorder %v780_v9, 0.0  ;;  %v900_v13 = vmul.f32 0.01, %v780_v9 }
 0x129   : >> { %v958_v14 = vsel %vm846_vm10, %v788_v5, %v902_v11 }
 0x12a   : >> { %1016 = vst.msk [vmem:[%s5532_s16 + $0x1b8] sm:$0xff] %vm960_vm1, %v958_v14  ;;  %v928_v15 = vsel %vm816_vm11, %v668_v8, %v872_v12  ;;  %v956_v16 = vsel %vm844_vm12, %v780_v9, %v900_v13 }
 0x12b   : >> { %986 = vst.msk [vmem:[%s5532_s16 + $0xc8] sm:$0xff] %vm960_vm1, %v928_v15  ;;  %1014 = vst.msk [vmem:[%s5532_s16 + $0x1a8] sm:$0xff] %vm960_vm1, %v956_v16 }
 0x12c   : > { %1018 = vst.msk [vmem:[#allocation2 + $0xc40] sm:$0xff] %vm960_vm1, %v5385_v17  ;;  %1019 = vst.msk [vmem:[#allocation2 + $0xc48] sm:$0xff] %vm960_vm1, %v5385_v17 }
 0x12d   : > { %1020 = vst.msk [vmem:[#allocation2 + $0xc50] sm:$0xff] %vm960_vm1, %v5385_v17  ;;  %1021 = vst.msk [vmem:[#allocation2 + $0xc58] sm:$0xff] %vm960_vm1, %v5385_v17 }
 0x12e   : > { %1022 = vst.msk [vmem:[#allocation2 + $0xc60] sm:$0xff] %vm960_vm1, %v5385_v17  ;;  %1023 = vst.msk [vmem:[#allocation2 + $0xc68] sm:$0xff] %vm960_vm1, %v5385_v17 }
 0x12f   : > { %1024 = vst.msk [vmem:[#allocation2 + $0xc70] sm:$0xff] %vm960_vm1, %v5385_v17  ;;  %1025 = vst.msk [vmem:[#allocation2 + $0xc78] sm:$0xff] %vm960_vm1, %v5385_v17 }
 0x130 LB: >> { %v5343_v0 = vld [vmem:[%s6892_s3 + $0x30] sm:$0xff]   ;;  %s1032_s21 = smul.u32 224, %s5383_s17  ;;  %v5344_v1 = vld [vmem:[%s6892_s3 + $0x38] sm:$0xff]   ;;  %v5345_v2 = vld [vmem:[%s6892_s3 + $0x40] sm:$0xff]   ;;  %vm1238_vm13 = vcmask 1046528   ;;  %s5386_s29 = smov 64   ;;  %s5383_s17 = sphi %s5708_s17, %s1031_s17  }
 0x131   : >> { %5096 = vmatprep.subr.bf16.mxu1 %v5343_v0  ;;  %vm1078_vm14 = vsmask.f32 7424  ;;  %v5346_v41 = vld [vmem:[%s6892_s3 + $0x48] sm:$0xff]   ;;  %s5387_s30 = smov 32   ;;  %vm1324_vm15 = vcmask 523264   ;;  %vm1732_vm0 = vcmask 785408  }
 0x132   : >> { %5097 = vmatpush3.bf16.msra.mxu1 %v5343_v0  ;;  %s5725_s26 = scalar_lea.vmem [#allocation2], %s1032_s21  ;;  %s1031_s17 = sadd.s32 1, %s5383_s17  }
 0x133   : >> { %5098 = vmatprep.subr.bf16.mxu1 %v5344_v1  ;;  %p1028_p5 = scmp.ge.s32.totalorder %s1031_s17, 14  }
 0x136   : >> { %v4612_v18 = vld [vmem:[%s5725_s26 + $0x1c] sm:$0xff]  ;;  %v4613_v19 = vld [vmem:[%s5725_s26 + $0x24] sm:$0xff]  ;;  %v4614_v20 = vld [vmem:[%s5725_s26 + $0x2c] sm:$0xff]  ;;  %5099 = vmatpush3.bf16.msra.mxu1 %v5344_v1 }
 0x137   : >> { %v4615_v21 = vld [vmem:[%s5725_s26 + $0x34] sm:$0xff]  ;;  %v5731_v22 = vpack.c.bf16 %v4613_v19, %v4612_v18  ;;  %v4616_v23 = vld [vmem:[%s5725_s26 + $0x3c] sm:$0xff]  ;;  %v4617_v24 = vld [vmem:[%s5725_s26 + $0x44] sm:$0xff]  ;;  %5100 = vmatprep.subr.bf16.mxu1 %v5345_v2 }
 0x138   : >> { %v5735_v25 = vpack.c.bf16 %v4615_v21, %v4614_v20  ;;  %v5737_v26 = vpack.c.bf16 %v4617_v24, %v4616_v23  ;;  %v1034_v27 = vld [vmem:[%s5725_s26] sm:$0xff]  ;;  %v1035_v28 = vld [vmem:[%s5725_s26 + $0x8] sm:$0xff]  ;;  %v1036_v29 = vld [vmem:[%s5725_s26 + $0x10] sm:$0xff] }
 0x139   : >> { %v1570_v30 = vrot.slane %v5731_v22, 1  ;;  %v1412_v31 = vshrl.u32 %v5731_v22, 16  ;;  %v1414_v32 = vshll.u32 %v5731_v22, 16  ;;  %v1037_v33 = vld [vmem:[%s5725_s26 + $0x18] sm:$0xff]  ;;  %v5746_v34 = vpack.c.bf16 %v1035_v28, %v1034_v27  ;;  %v4618_v35 = vld [vmem:[%s5725_s26 + $0x4c] sm:$0xff]  ;;  %v1038_v54 = vld [vmem:[%s5725_s26 + $0x20] sm:$0xff] }
 0x13a   : >> { %v4619_v36 = vld [vmem:[%s5725_s26 + $0x54] sm:$0xff]  ;;  %v1571_v37 = vrot.slane %v5735_v25, 1  ;;  %v1573_v38 = vrot.slane %v5737_v26, 1  ;;  %v1419_v39 = vshll.u32 %v5735_v25, 16  ;;  %v1423_v40 = vshrl.u32 %v5735_v25, 16  ;;  %5101 = vmatpush3.bf16.msra.mxu1 %v5345_v2  ;;  %v1039_v59 = vld [vmem:[%s5725_s26 + $0x28] sm:$0xff] }
 0x13b   : >> { %v1416_v42 = vrot.slane %v1414_v32, 1  ;;  %v1427_v43 = vshll.u32 %v5737_v26, 16  ;;  %v5758_v44 = vpack.c.bf16 %v1037_v33, %v1036_v29  ;;  %v1239_v45 = vrot.slane %v5746_v34, 1  ;;  %v4620_v60 = vld [vmem:[%s5725_s26 + $0x5c] sm:$0xff]  ;;  %v4621_v61 = vld [vmem:[%s5725_s26 + $0x64] sm:$0xff]  ;;  %5102 = vmatprep.subr.bf16.mxu1 %v5346_v41  ;;  %v4622_v15 = vld [vmem:[%s5725_s26 + $0x6c] sm:$0xff] }
 0x13c   : >> { %v1572_v46 = vsel %vm1238_vm13, %v1570_v30, %v1571_v37  ;;  %v1574_v47 = vsel %vm1238_vm13, %v1571_v37, %v1573_v38  ;;  %v1421_v48 = vrot.slane %v1419_v39, 1  ;;  %v5765_v49 = vpack.c.bf16 %v4619_v36, %v4618_v35  ;;  %v4623_v16 = vld [vmem:[%s5725_s26 + $0x74] sm:$0xff]  ;;  %v5811_v28 = vld [vmem:[%s6892_s3] sm:$0xff]   ;;  %v5822_v35 = vld [vmem:[%s5725_s26 + $0x48] sm:$0xff] }
 0x13d   : >> { %1599 = vrot.lane.b32.xlu1 %v1572_v46, %s5386_s29  ;;  %v1417_v50 = vor.u32 %v1416_v42, %v1412_v31  ;;  %v1429_v51 = vrot.slane %v1427_v43, 1  ;;  %v1240_v52 = vrot.slane %v5758_v44, 1  ;;  %v1431_v53 = vshrl.u32 %v5737_v26, 16  ;;  %v1040_v23 = vld [vmem:[%s5725_s26 + $0x30] sm:$0xff]  ;;  %v5804_v24 = vld [vmem:[%s5725_s26 + $0x38] sm:$0xff]  ;;  %v5819_v33 = vld [vmem:[%s5725_s26 + $0x40] sm:$0xff]  ;;  %5136 = vmatprep.subr.bf16.mxu0 %v5811_v28 }
 0x13e   : >> { %v1425_v55 = vor.u32 %v1423_v40, %v1421_v48  ;;  %v1435_v56 = vshll.u32 %v5765_v49, 16  ;;  %v1080_v57 = vshrl.u32 %v5746_v34, 16  ;;  %v1082_v58 = vshll.u32 %v5746_v34, 16  ;;  %5103 = vmatpush3.bf16.msra.mxu1 %v5346_v41  ;;  %v5348_v40 = vld [vmem:[%s6892_s3 + $0x50] sm:$0xff]   ;;  %v5836_v41 = vld [vmem:[%s6892_s3 + $0x8] sm:$0xff]   ;;  %5137 = vmatpush3.bf16.msra.mxu0 %v5811_v28 }
 0x13f   : >> { %v1422_v62 = vsel %vm1078_vm14, %v1417_v50, %v1421_v48  ;;  %v1087_v63 = vshll.u32 %v5758_v44, 16  ;;  %v5782_v7 = vpack.c.bf16 %v1039_v59, %v1038_v54  ;;  %v1091_v8 = vshrl.u32 %v5758_v44, 16  ;;  %5104 = vmatprep.subr.bf16.mxu1 %v5348_v40  ;;  %v5350_v48 = vld [vmem:[%s6892_s3 + $0x58] sm:$0xff]   ;;  %v4625_v54 = vld [vmem:[%s5725_s26 + $0x84] sm:$0xff]  ;;  %5138 = vmatprep.subr.bf16.mxu0 %v5836_v41 }
 0x140   : >> { %1527 = vrot.lane.b32.xlu0 %v1422_v62, %s5387_s30  ;;  %v1430_v4 = vsel %vm1078_vm14, %v1425_v55, %v1429_v51  ;;  %v1084_v5 = vrot.slane %v1082_v58, 1  ;;  %v5785_v9 = vpack.c.bf16 %v4621_v61, %v4620_v60  ;;  %v1241_v10 = vsel %vm1238_vm13, %v1239_v45, %v1240_v52  ;;  %v5861_v55 = vld [vmem:[%s6892_s3 + $0x10] sm:$0xff]   ;;  %v5872_v58 = vld [vmem:[%s6892_s3 + $0x18] sm:$0xff]  }
 0x141   : >> { %1601 = vrot.lane.b32.xlu1 %v1574_v47, %s5386_s29  ;;  %v1089_v6 = vrot.slane %v1087_v63, 1  ;;  %v1433_v11 = vor.u32 %v1431_v53, %v1429_v51  ;;  %v1437_v12 = vrot.slane %v1435_v56, 1  ;;  %v1095_v14 = vshll.u32 %v5782_v7, 16  ;;  %v4624_v47 = vld [vmem:[%s5725_s26 + $0x7c] sm:$0xff] }
 0x142   : >> { %v1085_v13 = vor.u32 %v1084_v5, %v1080_v57  ;;  %v1439_v17 = vshrl.u32 %v5765_v49, 16  ;;  %v1443_v18 = vshll.u32 %v5785_v9, 16  ;;  %v1575_v20 = vrot.slane %v5765_v49, 1  ;;  %5105 = vmatpush3.bf16.msra.mxu1 %v5348_v40  ;;  %5139 = vmatpush3.bf16.msra.mxu0 %v5836_v41  ;;  %v4627_v5 = vld [vmem:[%s5725_s26 + $0x94] sm:$0xff] }
 0x143   : >> { %v1093_v1 = vor.u32 %v1091_v8, %v1089_v6  ;;  %v1097_v2 = vrot.slane %v1095_v14, 1  ;;  %v1438_v19 = vsel %vm1078_vm14, %v1433_v11, %v1437_v12  ;;  %v5800_v21 = vpack.c.bf16 %v4623_v16, %v4622_v15  ;;  %5106 = vmatprep.subr.bf16.mxu1 %v5350_v48  ;;  %5140 = vmatprep.subr.bf16.mxu0 %v5861_v55  ;;  %v5891_v8 = vld [vmem:[%s6892_s3 + $0x20] sm:$0xff]  }
 0x144   : >> { %1529 = vrot.lane.b32.xlu0 %v1430_v4, %s5387_s30  ;;  %v1090_v0 = vsel %vm1078_vm14, %v1085_v13, %v1089_v6  ;;  %v1577_v27 = vrot.slane %v5785_v9, 1  ;;  %v1441_v30 = vor.u32 %v1439_v17, %v1437_v12  ;;  %v1445_v31 = vrot.slane %v1443_v18, 1  ;;  %v4626_v4 = vld [vmem:[%s5725_s26 + $0x8c] sm:$0xff] }
 0x145   : >> { %1268 = vrot.lane.b32.xlu1 %v1241_v10, %s5386_s29  ;;  %v1098_v29 = vsel %vm1078_vm14, %v1093_v1, %v1097_v2  ;;  %v5816_v32 = vpack.c.bf16 %v5804_v24, %v1040_v23  ;;  %v1576_v36 = vsel %vm1238_vm13, %v1573_v38, %v1575_v20  ;;  %v1447_v37 = vshrl.u32 %v5785_v9, 16  ;;  %v1044_v17 = vld [vmem:[%s5725_s26 + $0x50] sm:$0xff] }
 0x146   : >> { %v1451_v39 = vshll.u32 %v5800_v21, 16  ;;  %v1242_v38 = vrot.slane %v5782_v7, 1  ;;  %v1099_v42 = vshrl.u32 %v5782_v7, 16  ;;  %v1446_v43 = vsel %vm1078_vm14, %v1441_v30, %v1445_v31  ;;  %5107 = vmatpush3.bf16.msra.mxu1 %v5350_v48  ;;  %5141 = vmatpush3.bf16.msra.mxu0 %v5861_v55  ;;  %v5922_v30 = vld [vmem:[%s5725_s26 + $0x68] sm:$0xff] }
 0x147   : >> { %v1103_v45 = vshll.u32 %v5816_v32, 16  ;;  %v5847_v46 = vpack.c.bf16 %v5822_v35, %v5819_v33  ;;  %v1578_v50 = vsel %vm1238_vm13, %v1575_v20, %v1577_v27  ;;  %v1449_v51 = vor.u32 %v1447_v37, %v1445_v31  ;;  %5218 = vmatprep.subr.bf16.mxu1 %v5811_v28  ;;  %5142 = vmatprep.subr.bf16.mxu0 %v5872_v58 }
 0x148   : >> { %1195 = vrot.lane.b32.xlu0 %v1090_v0, %s5387_s30  ;;  %v1453_v53 = vrot.slane %v1451_v39, 1  ;;  %v1243_v56 = vsel %vm1238_vm13, %v1240_v52, %v1242_v38  ;;  %v1101_v57 = vor.u32 %v1099_v42, %v1097_v2  ;;  %v1107_v60 = vshrl.u32 %v5816_v32, 16  ;;  %v5902_v0 = vld [vmem:[%s5725_s26 + $0x58] sm:$0xff]  ;;  %v5911_v2 = vld [vmem:[%s6892_s3 + $0x28] sm:$0xff]  }
 0x149   : >> { %1531 = vrot.lane.b32.xlu1 %v1438_v19, %s5387_s30  ;;  %v1105_v59 = vrot.slane %v1103_v45, 1  ;;  %v1111_v61 = vshll.u32 %v5847_v46, 16  ;;  %v5877_v62 = vpack.c.bf16 %v4625_v54, %v4624_v47  ;;  %v1244_v63 = vrot.slane %v5816_v32, 1 }
 0x14a   : >> { %v1454_v52 = vsel %vm1078_vm14, %v1449_v51, %v1453_v53  ;;  %v1455_v6 = vshrl.u32 %v5800_v21, 16  ;;  %v1579_v15 = vrot.slane %v5800_v21, 1  ;;  %v5898_v16 = vpack.c.bf16 %v4627_v5, %v4626_v4  ;;  %5143 = vmatpush3.bf16.msra.mxu0 %v5872_v58  ;;  %v4629_v51 = vld [vmem:[%s5725_s26 + $0xa4] sm:$0xff] }
 0x14b   : >> { %v1106_v10 = vsel %vm1078_vm14, %v1101_v57, %v1105_v59  ;;  %v1109_v11 = vor.u32 %v1107_v60, %v1105_v59  ;;  %v1113_v12 = vrot.slane %v1111_v61, 1  ;;  %v1459_v13 = vshll.u32 %v5877_v62, 16  ;;  %5144 = vmatprep.subr.bf16.mxu0 %v5891_v8 }
 0x14c   : >> { %1197 = vrot.lane.b32.xlu0 %v1098_v29, %s5387_s30  ;;  %v1245_v14 = vsel %vm1238_vm13, %v1242_v38, %v1244_v63  ;;  %v1581_v1 = vrot.slane %v5877_v62, 1  ;;  %v1457_v19 = vor.u32 %v1455_v6, %v1453_v53  ;;  %v5916_v23 = vpack.c.bf16 %v5902_v0, %v1044_v17  ;;  %v5919_v29 = vld [vmem:[%s5725_s26 + $0x60] sm:$0xff] }
 0x14d   : >> { %1603 = vrot.lane.b32.xlu1 %v1576_v36, %s5386_s29  ;;  %v1114_v18 = vsel %vm1078_vm14, %v1109_v11, %v1113_v12  ;;  %v1461_v20 = vrot.slane %v1459_v13, 1  ;;  %v1580_v31 = vsel %vm1238_vm13, %v1577_v27, %v1579_v15  ;;  %v1463_v36 = vshrl.u32 %v5877_v62, 16  ;;  %v5937_v27 = vld [vmem:[%s6892_s3 + $0x60] sm:$0xff]  }
 0x14e   : >> { %v1467_v37 = vshll.u32 %v5898_v16, 16  ;;  %v1246_v39 = vrot.slane %v5847_v46, 1  ;;  %5145 = vmatpush3.bf16.msra.mxu0 %v5891_v8  ;;  %v1115_v40 = vshrl.u32 %v5847_v46, 16  ;;  %v1119_v42 = vshll.u32 %v5916_v23, 16 }
 0x14f   : >> { %5146 = vmatprep.subr.bf16.mxu0 %v5911_v2  ;;  %v1462_v38 = vsel %vm1078_vm14, %v1457_v19, %v1461_v20  ;;  %v1582_v45 = vsel %vm1238_vm13, %v1579_v15, %v1581_v1  ;;  %v1465_v47 = vor.u32 %v1463_v36, %v1461_v20  ;;  %v1123_v57 = vshrl.u32 %v5916_v23, 16  ;;  %v4631_v15 = vld [vmem:[%s5725_s26 + $0xb4] sm:$0xff] }
 0x150   : >> { %1533 = vrot.lane.b32.xlu0 %v1446_v43, %s5387_s30  ;;  %v5944_v43 = vpack.c.bf16 %v5922_v30, %v5919_v29  ;;  %v1469_v48 = vrot.slane %v1467_v37, 1  ;;  %v1247_v53 = vsel %vm1238_vm13, %v1244_v63, %v1246_v39  ;;  %v1117_v54 = vor.u32 %v1115_v40, %v1113_v12  ;;  %v4632_v40 = vld [vmem:[%s5725_s26 + $0xbc] sm:$0xff] }
 0x151   : >> { %1605 = vrot.lane.b32.xlu1 %v1578_v50, %s5386_s29  ;;  %v4628_v50 = vld [vmem:[%s5725_s26 + $0x9c] sm:$0xff]  ;;  %v5962_v63 = vpack.c.bf16 %v5819_v33, %v5804_v24  ;;  %v1583_v4 = vrot.slane %v5898_v16, 1  ;;  %v1471_v5 = vshrl.u32 %v5898_v16, 16  ;;  %v5974_v24 = vpack.c.bf16 %v1044_v17, %v5822_v35 }
 0x152   : >> { %6906 = vst [vmem:[#allocation5_spill] sm:$0xff] %v5944_v43  ;;  %5147 = vmatpush3.bf16.msra.mxu0 %v5911_v2  ;;  %v1127_v59 = vshll.u32 %v5944_v43, 16  ;;  %v5956_v60 = vpack.c.bf16 %v4629_v51, %v4628_v50  ;;  %v1470_v61 = vsel %vm1078_vm14, %v1465_v47, %v1469_v48 }
 0x153   : >> { %5176 = vmatprep.subr.bf16.mxu0 %v5937_v27  ;;  %v2164_v33 = vshll.u32 %v5962_v63, 16  ;;  %v1473_v20 = vor.u32 %v1471_v5, %v1469_v48  ;;  %v2162_v17 = vshrl.u32 %v5962_v63, 16 }
 0x154   : >> { %1270 = vrot.lane.b32.xlu0 %v1243_v56, %s5386_s29  ;;  %v1121_v56 = vrot.slane %v1119_v42, 1  ;;  %v5969_v11 = vrot.slane %v1127_v59, 1  ;;  %v1475_v12 = vshll.u32 %v5956_v60, 16  ;;  %v1585_v35 = vrot.slane %v5956_v60, 1 }
 0x155   : >> { %1535 = vrot.lane.b32.xlu1 %v1454_v52, %s5387_s30  ;;  %v1248_v52 = vrot.slane %v5916_v23, 1  ;;  %v2166_v37 = vrot.slane %v2164_v33, 1  ;;  %v1479_v42 = vshrl.u32 %v5956_v60, 16 }
 0x156   : >> { %v1122_v6 = vsel %vm1078_vm14, %v1117_v54, %v1121_v56  ;;  %v1586_v50 = vsel %vm1238_vm13, %v1583_v4, %v1585_v35 }
 0x157   : >> { %v1249_v13 = vsel %vm1238_vm13, %v1246_v39, %v1248_v52  ;;  %v2169_v39 = vshll.u32 %v5974_v24, 16  ;;  %v2167_v51 = vor.u32 %v2166_v37, %v2162_v17 }
 0x158   : >> { %1199 = vrot.lane.b32.xlu0 %v1106_v10, %s5387_s30  ;;  %v1125_v10 = vor.u32 %v1123_v57, %v1121_v56 }
 0x159   : >> { %1272 = vrot.lane.b32.xlu1 %v1245_v14, %s5386_s29  ;;  %v4630_v14 = vld [vmem:[%s5725_s26 + $0xac] sm:$0xff] }
 0x15a   : >> { %v1130_v19 = vsel %vm1078_vm14, %v1125_v10, %v5969_v11  ;;  %v5984_v36 = vpack.c.bf16 %v4631_v15, %v4630_v14  ;;  %v6014_v10 = vld [vmem:[%s5725_s26 + $0x70] sm:$0xff]  ;;  %v2320_v14 = vrot.slane %v5962_v63, 1  ;;  %v2321_v15 = vrot.slane %v5974_v24, 1 }
 0x15c   : >> { %1201 = vrot.lane.b32.xlu0 %v1114_v18, %s5387_s30  ;;  %v1584_v18 = vsel %vm1238_vm13, %v1581_v1, %v1583_v4  ;;  %v6895_v1 = vrot.slane %v5944_v43, 1  ;;  %v1483_v47 = vshll.u32 %v5984_v36, 16  ;;  %v1487_v59 = vshrl.u32 %v5984_v36, 16 }
 0x15d   : >> { %1607 = vrot.lane.b32.xlu1 %v1580_v31, %s5386_s29  ;;  %v1477_v31 = vrot.slane %v1475_v12, 1  ;;  %v6009_v4 = vpack.c.bf16 %v5919_v29, %v5902_v0 }
 0x15e   : >> { %v1251_v54 = vsel %vm1238_vm13, %v1248_v52, %v6895_v1  ;;  %v1485_v57 = vrot.slane %v1483_v47, 1  ;;  %v2173_v52 = vshrl.u32 %v5974_v24, 16 }
 0x15f   : >> { %v1481_v56 = vor.u32 %v1479_v42, %v1477_v31  ;;  %v2177_v0 = vshll.u32 %v6009_v4, 16  ;;  %v4636_v42 = vld [vmem:[%s5725_s26 + $0xdc] sm:$0xff] }
 0x160   : >> { %1537 = vrot.lane.b32.xlu0 %v1462_v38, %s5387_s30  ;;  %v4633_v38 = vld [vmem:[%s5725_s26 + $0xc4] sm:$0xff] }
 0x161   : >> { %1609 = vrot.lane.b32.xlu1 %v1582_v45, %s5386_s29  ;;  %v1478_v45 = vsel %vm1078_vm14, %v1473_v20, %v1477_v31  ;;  %v5997_v48 = vpack.c.bf16 %v4633_v38, %v4632_v40  ;;  %v1486_v12 = vsel %vm1078_vm14, %v1481_v56, %v1485_v57  ;;  %v4635_v20 = vld [vmem:[%s5725_s26 + $0xd4] sm:$0xff]  ;;  %v2323_v40 = vrot.slane %v6009_v4, 1 }
 0x163   : >> { %v1589_v47 = vrot.slane %v5997_v48, 1  ;;  %v2324_v56 = vsel %vm1238_vm13, %v2321_v15, %v2323_v40 }
 0x164   : >> { %1274 = vrot.lane.b32.xlu0 %v1247_v53, %s5386_s29  ;;  %v2171_v53 = vrot.slane %v2169_v39, 1  ;;  %v2322_v39 = vsel %vm1238_vm13, %v2320_v14, %v2321_v15 }
 0x165   : >> { %1539 = vrot.lane.b32.xlu1 %v1470_v61, %s5387_s30  ;;  %v1491_v61 = vshll.u32 %v5997_v48, 16 }
 0x166   : >> { %v2172_v5 = vsel %vm1078_vm14, %v2167_v51, %v2171_v53  ;;  %v2175_v17 = vor.u32 %v2173_v52, %v2171_v53 }
 0x167   : >> { %v1493_v33 = vrot.slane %v1491_v61, 1  ;;  %v6051_v61 = vld [vmem:[%s5725_s26 + $0x78] sm:$0xff] }
 0x168   : >> { %1203 = vrot.lane.b32.xlu0 %v1122_v6, %s5387_s30  ;;  %v1587_v6 = vrot.slane %v5984_v36, 1 }
 0x169   : >> { %1276 = vrot.lane.b32.xlu1 %v1249_v13, %s5386_s29  ;;  %v1489_v13 = vor.u32 %v1487_v59, %v1485_v57 }
 0x16a   : >> { %v1588_v29 = vsel %vm1238_vm13, %v1585_v35, %v1587_v6  ;;  %v2179_v35 = vrot.slane %v2177_v0, 1  ;;  %v1590_v52 = vsel %vm1238_vm13, %v1587_v6, %v1589_v47  ;;  %v6071_v6 = vld [vmem:[%s5725_s26 + $0x90] sm:$0xff] }
 0x16b   : >> { %v1494_v31 = vsel %vm1078_vm14, %v1489_v13, %v1493_v33 }
 0x16c   : >> { %1205 = vrot.lane.b32.xlu0 %v1130_v19, %s5387_s30  ;;  %v4634_v19 = vld [vmem:[%s5725_s26 + $0xcc] sm:$0xff]  ;;  %v2180_v51 = vsel %vm1078_vm14, %v2175_v17, %v2179_v35 }
 0x16d   : >> { %1611 = vrot.lane.b32.xlu1 %v1584_v18, %s5386_s29  ;;  %v6026_v18 = vpack.c.bf16 %v6014_v10, %v5922_v30  ;;  %v6033_v37 = vpack.c.bf16 %v4635_v20, %v4634_v19  ;;  %v2181_v30 = vshrl.u32 %v6009_v4, 16  ;;  %v6068_v20 = vld [vmem:[%s5725_s26 + $0x88] sm:$0xff] }
 0x16f   : >> { %v2185_v38 = vshll.u32 %v6026_v18, 16  ;;  %v1499_v53 = vshll.u32 %v6033_v37, 16  ;;  %v2183_v57 = vor.u32 %v2181_v30, %v2179_v35  ;;  %v1503_v0 = vshrl.u32 %v6033_v37, 16 }
 0x170   : >> { %1541 = vrot.lane.b32.xlu0 %v1478_v45, %s5387_s30  ;;  %v4637_v45 = vld [vmem:[%s5725_s26 + $0xe4] sm:$0xff]  ;;  %v1591_v19 = vrot.slane %v6033_v37, 1 }
 0x171   : >> { %1613 = vrot.lane.b32.xlu1 %v1586_v50, %s5386_s29  ;;  %v1495_v50 = vshrl.u32 %v5997_v48, 16  ;;  %v2187_v59 = vrot.slane %v2185_v38, 1  ;;  %v1501_v13 = vrot.slane %v1499_v53, 1  ;;  %v2325_v38 = vrot.slane %v6026_v18, 1 }
 0x172   : >> { %v1592_v30 = vsel %vm1238_vm13, %v1589_v47, %v1591_v19 }
 0x173   : >> { %v2188_v15 = vsel %vm1078_vm14, %v2183_v57, %v2187_v59  ;;  %v1505_v17 = vor.u32 %v1503_v0, %v1501_v13  ;;  %v2326_v47 = vsel %vm1238_vm13, %v2323_v40, %v2325_v38  ;;  %v4640_v0 = vld [vmem:[%s5725_s26 + $0xfc] sm:$0x3] }
 0x174   : >> { %1278 = vrot.lane.b32.xlu0 %v1251_v54, %s5386_s29  ;;  %v6047_v54 = vpack.c.bf16 %v4637_v45, %v4636_v42  ;;  %v6082_v42 = vpack.c.bf16 %v6071_v6, %v6068_v20  ;;  %v4638_v45 = vld [vmem:[%s5725_s26 + $0xec] sm:$0xff] }
 0x175   : >> { %2277 = vrot.lane.b32.xlu1 %v2172_v5, %s5387_s30  ;;  %v6054_v5 = vld [vmem:[%s5725_s26 + $0x80] sm:$0xff] }
 0x176   : >> { %v6063_v14 = vpack.c.bf16 %v6054_v5, %v6051_v61  ;;  %v2329_v1 = vrot.slane %v6082_v42, 1 }
 0x178   : >> { %1543 = vrot.lane.b32.xlu0 %v1486_v12, %s5387_s30  ;;  %v1497_v12 = vor.u32 %v1495_v50, %v1493_v33  ;;  %v2189_v33 = vshrl.u32 %v6026_v18, 16  ;;  %v4639_v50 = vld [vmem:[%s5725_s26 + $0xf4] sm:$0xff] }
 0x179   : >> { %1615 = vrot.lane.b32.xlu1 %v1588_v29, %s5386_s29  ;;  %v1507_v29 = vshll.u32 %v6047_v54, 16  ;;  %v6089_v57 = vpack.c.bf16 %v4639_v50, %v4638_v45  ;;  %v6107_v45 = vld [vmem:[%s5725_s26 + $0xa0] sm:$0xff] }
 0x17a   : >> { %v2191_v53 = vor.u32 %v2189_v33, %v2187_v59  ;;  %v1511_v59 = vshrl.u32 %v6047_v54, 16  ;;  %v1410_v33 = vpack.c.bf16 %v4640_v0, %v4640_v0 }
 0x17b   : >> { %v1509_v35 = vrot.slane %v1507_v29, 1  ;;  %6907 = vst [vmem:[#allocation6_spill] sm:$0xff] %v6089_v57  ;;  %v1593_v29 = vrot.slane %v6047_v54, 1  ;;  %v1515_v40 = vshll.u32 %v6089_v57, 16 }
 0x17c   : >> { %1545 = vrot.lane.b32.xlu0 %v1494_v31, %s5387_s30  ;;  %v1502_v31 = vsel %vm1078_vm14, %v1497_v12, %v1501_v13  ;;  %v2197_v12 = vshrl.u32 %v6063_v14, 16  ;;  %v2201_v13 = vshll.u32 %v6082_v42, 16  ;;  %v1523_v0 = vshll.u32 %v1410_v33, 16 }
 0x17d   : >> { %2349 = vrot.lane.b32.xlu1 %v2322_v39, %s5386_s29  ;;  %v2193_v39 = vshll.u32 %v6063_v14, 16  ;;  %v1594_v50 = vsel %vm1238_vm13, %v1591_v19, %v1593_v29  ;;  %v2205_v19 = vshrl.u32 %v6082_v42, 16 }
 0x180   : >> { %2279 = vrot.lane.b32.xlu0 %v2180_v51, %s5387_s30  ;;  %v1510_v51 = vsel %vm1078_vm14, %v1505_v17, %v1509_v35 }
 0x181   : >> { %2351 = vrot.lane.b32.xlu1 %v2324_v56, %s5386_s29  ;;  %v2195_v56 = vrot.slane %v2193_v39, 1  ;;  %v2203_v39 = vrot.slane %v2201_v13, 1  ;;  %v6120_v13 = vld [vmem:[%s5725_s26 + $0xa8] sm:$0xff] }
 0x183   : >> { %v2199_v17 = vor.u32 %v2197_v12, %v2195_v56  ;;  %v1595_v12 = vrot.slane %v6089_v57, 1 }
 0x184   : >> { %1617 = vrot.lane.b32.xlu0 %v1590_v52, %s5386_s29  ;;  %v2327_v52 = vrot.slane %v6063_v14, 1 }
 0x185   : >> { %2281 = vrot.lane.b32.xlu1 %v2188_v15, %s5387_s30  ;;  %v2196_v15 = vsel %vm1078_vm14, %v2191_v53, %v2195_v56  ;;  %v1517_v53 = vrot.slane %v1515_v40, 1  ;;  %v2204_v56 = vsel %vm1078_vm14, %v2199_v17, %v2203_v39  ;;  %v1525_v40 = vrot.slane %v1523_v0, 1 }
 0x186   : >> { %v1596_v17 = vsel %vm1238_vm13, %v1593_v29, %v1595_v12  ;;  %v2330_v29 = vsel %vm1238_vm13, %v2327_v52, %v2329_v1 }
 0x188   : >> { %1547 = vrot.lane.b32.xlu0 %v1502_v31, %s5387_s30  ;;  %v2328_v31 = vsel %vm1238_vm13, %v2325_v38, %v2327_v52 }
 0x189   : >> { %1619 = vrot.lane.b32.xlu1 %v1592_v30, %s5386_s29  ;;  %v6104_v30 = vld [vmem:[%s5725_s26 + $0x98] sm:$0xff] }
 0x18a   : >> { %v6115_v38 = vpack.c.bf16 %v6107_v45, %v6104_v30 }
 0x18c   : >> { %1549 = vrot.lane.b32.xlu0 %v1510_v51, %s5387_s30  ;;  %v1513_v51 = vor.u32 %v1511_v59, %v1509_v35  ;;  %6908 = vst [vmem:[#allocation7_spill] sm:$0xff] %v6115_v38  ;;  %v2213_v0 = vshrl.u32 %v6115_v38, 16 }
 0x18d   : >> { %2353 = vrot.lane.b32.xlu1 %v2326_v47, %s5386_s29  ;;  %v1519_v47 = vshrl.u32 %v6089_v57, 16 }
 0x18e   : >> { %v1518_v35 = vsel %vm1078_vm14, %v1513_v51, %v1517_v53 }
 0x18f   : >> { %v1521_v59 = vor.u32 %v1519_v47, %v1517_v53  ;;  %v6141_v53 = vpack.c.bf16 %v6051_v61, %v6014_v10  ;;  %v2331_v47 = vrot.slane %v6115_v38, 1  ;;  %v6154_v61 = vpack.c.bf16 %v6068_v20, %v6054_v5 }
 0x190   : >> { %2283 = vrot.lane.b32.xlu0 %v2196_v15, %s5387_s30  ;;  %v6123_v15 = vld [vmem:[%s5725_s26 + $0xb0] sm:$0xff] }
 0x191   : >> { %2355 = vrot.lane.b32.xlu1 %v2328_v31, %s5386_s29  ;;  %v2209_v31 = vshll.u32 %v6115_v38, 16  ;;  %v6134_v3 = vpack.c.bf16 %v6123_v15, %v6120_v13  ;;  %6910 = vst [vmem:[#allocation9_spill] sm:$0xff] %v6141_v53  ;;  %v1135_v10 = vshll.u32 %v6141_v53, 16  ;;  %6911 = vst [vmem:[#allocation10_spill] sm:$0xff] %v6154_v61  ;;  %v2332_v52 = vsel %vm1238_vm13, %v2329_v1, %v2331_v47 }
 0x192   : >> { %v1139_v20 = vshrl.u32 %v6141_v53, 16  ;;  %v1143_v1 = vshll.u32 %v6154_v61, 16 }
 0x193   : >> { %6909 = vst [vmem:[#allocation8_spill] sm:$0xff] %v6134_v3  ;;  %v2211_v51 = vrot.slane %v2209_v31, 1  ;;  %v6158_v31 = vld [vmem:[%s5725_s26 + $0xb8] sm:$0xff]  ;;  %v1137_v5 = vrot.slane %v1135_v10, 1 }
 0x194   : >> { %1621 = vrot.lane.b32.xlu0 %v1594_v50, %s5386_s29  ;;  %v1526_v50 = vsel %vm1078_vm14, %v1521_v59, %v1525_v40 }
 0x195   : >> { %2285 = vrot.lane.b32.xlu1 %v2204_v56, %s5387_s30  ;;  %v2207_v56 = vor.u32 %v2205_v19, %v2203_v39  ;;  %v1131_v39 = vshrl.u32 %v5944_v43, 16  ;;  %v2215_v59 = vor.u32 %v2213_v0, %v2211_v51  ;;  %v1252_v0 = vrot.slane %v6141_v53, 1 }
 0x196   : >> { %v2333_v53 = vrot.slane %v6134_v3, 1 }
 0x197   : >> { %v2212_v19 = vsel %vm1078_vm14, %v2207_v56, %v2211_v51  ;;  %v1133_v56 = vor.u32 %v1131_v39, %v5969_v11  ;;  %v2221_v11 = vshrl.u32 %v6134_v3, 16  ;;  %v1141_v39 = vor.u32 %v1139_v20, %v1137_v5 }
 0x198   : >> { %1551 = vrot.lane.b32.xlu0 %v1518_v35, %s5387_s30  ;;  %v2217_v35 = vshll.u32 %v6134_v3, 16  ;;  %v6199_v20 = vpack.c.bf16 %v6104_v30, %v6071_v6 }
 0x199   : >> { %1623 = vrot.lane.b32.xlu1 %v1596_v17, %s5386_s29  ;;  %v1597_v17 = vrot.slane %v1410_v33, 1  ;;  %v6161_v33 = vld [vmem:[%s5725_s26 + $0xc0] sm:$0xff] }
 0x19a   : >> { %v2219_v40 = vrot.slane %v2217_v35, 1  ;;  %v6171_v51 = vpack.c.bf16 %v6161_v33, %v6158_v31  ;;  %v6176_v35 = vld [vmem:[%s5725_s26 + $0xc8] sm:$0xff]  ;;  %6914 = vst [vmem:[#allocation12_spill] sm:$0xff] %v6199_v20  ;;  %v1151_v30 = vshll.u32 %v6199_v20, 16 }
 0x19c   : >> { %1553 = vrot.lane.b32.xlu0 %v1526_v50, %s5387_s30  ;;  %v1598_v50 = vsel %vm1238_vm13, %v1595_v12, %v1597_v17  ;;  %6912 = vst [vmem:[#allocation11_spill] sm:$0xff] %v6171_v51  ;;  %v6179_v12 = vld [vmem:[%s5725_s26 + $0xd0] sm:$0xff]  ;;  %v1138_v17 = vsel %vm1078_vm14, %v1133_v56, %v1137_v5  ;;  %v2225_v10 = vshll.u32 %v6171_v51, 16  ;;  %v2223_v56 = vor.u32 %v2221_v11, %v2219_v40 }
 0x19d   : >> { %2357 = vrot.lane.b32.xlu1 %v2330_v29, %s5386_s29  ;;  %v2220_v29 = vsel %vm1078_vm14, %v2215_v59, %v2219_v40  ;;  %v6192_v38 = vpack.c.bf16 %v6179_v12, %v6176_v35  ;;  %v1147_v40 = vshrl.u32 %v6154_v61, 16 }
 0x19e   : >> { %v2227_v5 = vrot.slane %v2225_v10, 1 }
 0x1a0   : >> { %2287 = vrot.lane.b32.xlu0 %v2212_v19, %s5387_s30  ;;  %v1145_v19 = vrot.slane %v1143_v1, 1  ;;  %v2334_v1 = vsel %vm1238_vm13, %v2331_v47, %v2333_v53  ;;  %v2228_v6 = vsel %vm1078_vm14, %v2223_v56, %v2227_v5  ;;  %v6213_v47 = vpack.c.bf16 %v6120_v13, %v6107_v45 }
 0x1a1   : >> { %2359 = vrot.lane.b32.xlu1 %v2332_v52, %s5386_s29  ;;  %v6913_v52 = vrot.slane %v5944_v43, 1  ;;  %v1153_v45 = vrot.slane %v1151_v30, 1  ;;  %v1155_v13 = vshrl.u32 %v6199_v20, 16 }
 0x1a3   : >> { %v1253_v59 = vsel %vm1238_vm13, %v6913_v52, %v1252_v0  ;;  %v2229_v52 = vshrl.u32 %v6171_v51, 16 }
 0x1a4   : >> { %1625 = vrot.lane.b32.xlu0 %v1598_v50, %s5386_s29  ;;  %v1146_v50 = vsel %vm1078_vm14, %v1141_v39, %v1145_v19  ;;  %v1254_v39 = vrot.slane %v6154_v61, 1 }
 0x1a5   : >> { %2289 = vrot.lane.b32.xlu1 %v2220_v29, %s5387_s30  ;;  %v2335_v29 = vrot.slane %v6171_v51, 1  ;;  %v2231_v10 = vor.u32 %v2229_v52, %v2227_v5  ;;  %v6217_v51 = vld [vmem:[%s5725_s26 + $0xd8] sm:$0xff] }
 0x1a6   : >> { %v1255_v56 = vsel %vm1238_vm13, %v1252_v0, %v1254_v39 }
 0x1a7   : >> { %v2336_v11 = vsel %vm1238_vm13, %v2333_v53, %v2335_v29  ;;  %v1159_v53 = vshll.u32 %v6213_v47, 16 }
 0x1a8   : >> { %1207 = vrot.lane.b32.xlu0 %v1138_v17, %s5387_s30  ;;  %v2233_v17 = vshll.u32 %v6192_v38, 16 }
 0x1a9   : >> { %1280 = vrot.lane.b32.xlu1 %v1253_v59, %s5386_s29 }
 0x1aa   : >> { %v2235_v59 = vrot.slane %v2233_v17, 1 }
 0x1ac   : >> { %1209 = vrot.lane.b32.xlu0 %v1146_v50, %s5387_s30  ;;  %v4714_v50 = vld [vmem:[%s5725_s26 + $0xe0] sm:$0xff]  ;;  %v2236_v17 = vsel %vm1078_vm14, %v2231_v10, %v2235_v59 }
 0x1ad   : >> { %2361 = vrot.lane.b32.xlu1 %v2334_v1, %s5386_s29  ;;  %v1149_v1 = vor.u32 %v1147_v40, %v1145_v19  ;;  %v6226_v5 = vpack.c.bf16 %v4714_v50, %v6217_v51  ;;  %v4715_v19 = vld [vmem:[%s5725_s26 + $0xe8] sm:$0xff]  ;;  %v4716_v40 = vld [vmem:[%s5725_s26 + $0xf0] sm:$0xff]  ;;  %v1157_v50 = vor.u32 %v1155_v13, %v1153_v45  ;;  %v6254_v13 = vpack.c.bf16 %v6158_v31, %v6123_v15 }
 0x1ae   : >> { %v1258_v15 = vrot.slane %v6213_v47, 1  ;;  %v1163_v31 = vshrl.u32 %v6213_v47, 16 }
 0x1af   : >> { %v1600_v3 = vpop.permute.xlu1 %1599  ;;  %v1154_v10 = vsel %vm1078_vm14, %v1149_v1, %v1153_v45  ;;  %v2241_v43 = vshll.u32 %v6226_v5, 16 }
 0x1b0   : >> { %2291 = vrot.lane.b32.xlu0 %v2228_v6, %s5387_s30  ;;  %v1256_v6 = vrot.slane %v6199_v20, 1  ;;  %v1161_v20 = vrot.slane %v1159_v53, 1 }
 0x1b1   : >> { %2363 = vrot.lane.b32.xlu1 %v2336_v11, %s5386_s29  ;;  %v2237_v11 = vshrl.u32 %v6192_v38, 16 }
 0x1b2   : >> { %v1528_v52 = vpop.permute.xlu0 %1527  ;;  %v1162_v1 = vsel %vm1078_vm14, %v1157_v50, %v1161_v20 }
 0x1b3   : >> { %v1602_v61 = vpop.permute.xlu1 %1601  ;;  %v1628_v0 = vsel %vm960_vm1, %v5731_v22, %v1528_v52  ;;  %v1257_v22 = vsel %vm1238_vm13, %v1254_v39, %v1256_v6  ;;  %v2337_v52 = vrot.slane %v6192_v38, 1  ;;  %v2239_v45 = vor.u32 %v2237_v11, %v2235_v59 }
 0x1b4   : >> { %1282 = vrot.lane.b32.xlu0 %v1255_v56, %s5386_s29  ;;  %v1656_v30 = vsel %vm1324_vm15, %v1628_v0, %v1600_v3  ;;  %v6243_v56 = vpack.c.bf16 %v4716_v40, %v4715_v19  ;;  %v2243_v39 = vrot.slane %v2241_v43, 1 }
 0x1b5   : >> { %2293 = vrot.lane.b32.xlu1 %v2236_v17, %s5387_s30  ;;  %5108 = vmatprep.mubr.msk.bf16.mxu1 %vm1732_vm0, %v1656_v30  ;;  %v6276_v30 = vpack.c.bf16 %v6176_v35, %v6161_v33  ;;  %v1259_v33 = vsel %vm1238_vm13, %v1256_v6, %v1258_v15  ;;  %v1165_v35 = vor.u32 %v1163_v31, %v1161_v20 }
 0x1b6   : >> { %v1530_v57 = vpop.permute.xlu0 %1529  ;;  %v2249_v19 = vshll.u32 %v6243_v56, 16 }
 0x1b7   : >> { %v1630_v3 = vsel %vm960_vm1, %v5735_v25, %v1530_v57  ;;  %v1269_v0 = vpop.permute.xlu1 %1268  ;;  %v2338_v25 = vsel %vm1238_vm13, %v2335_v29, %v2337_v52  ;;  %v2339_v57 = vrot.slane %v6226_v5, 1 }
 0x1b8   : >> { %v1658_v17 = vsel %vm1324_vm15, %v1630_v3, %v1602_v61  ;;  %1211 = vrot.lane.b32.xlu0 %v1154_v10, %s5387_s30  ;;  %v2245_v61 = vshrl.u32 %v6226_v5, 16  ;;  %v4718_v3 = vld [vmem:[%s5725_s26 + $0x100] sm:$0xff] }
 0x1b9   : >> { %1284 = vrot.lane.b32.xlu1 %v1257_v22, %s5386_s29  ;;  %5109 = vmatmul.mubr.msk.bf16.vlgmr.msra.gmra.mrb[0].mxu1 %vm1732_vm0, %v1658_v17  ;;  %v2340_v10 = vsel %vm1238_vm13, %v2337_v52, %v2339_v57  ;;  %v2251_v22 = vrot.slane %v2249_v19, 1  ;;  %v4720_v19 = vld [vmem:[%s5725_s26 + $0x110] sm:$0xff] }
 0x1ba   : >> { %v1196_v53 = vpop.permute.xlu0 %1195  ;;  %5224 = vmatpush3.bf16.msra.mxu1 %v5811_v28  ;;  %v1167_v28 = vshll.u32 %v6254_v13, 16  ;;  %v2247_v50 = vor.u32 %v2245_v61, %v2243_v39  ;;  %v4719_v61 = vld [vmem:[%s5725_s26 + $0x108] sm:$0xff] }
 0x1bb   : >> { %v1532_v40 = vpop.permute.xlu1 %1531  ;;  %v1297_v59 = vsel %vm960_vm1, %v5746_v34, %v1196_v53  ;;  %5219 = vmatprep.subr.bf16.mxu1 %v5836_v41  ;;  %v2244_v34 = vsel %vm1078_vm14, %v2239_v45, %v2243_v39 }
 0x1bc   : >> { %1213 = vrot.lane.b32.xlu0 %v1162_v1, %s5387_s30  ;;  %v1326_v43 = vsel %vm1324_vm15, %v1297_v59, %v1269_v0  ;;  %v1632_v29 = vsel %vm960_vm1, %v5737_v26, %v1532_v40  ;;  %v4717_v26 = vld [vmem:[%s5725_s26 + $0xf8] sm:$0xff]  ;;  %v1169_v52 = vrot.slane %v1167_v28, 1  ;;  %v1171_v1 = vshrl.u32 %v6254_v13, 16 }
 0x1bd   : >> { %2365 = vrot.lane.b32.xlu1 %v2338_v25, %s5386_s29  ;;  %5148 = vmatprep.mubr.msk.bf16.mxu0 %vm1732_vm0, %v1326_v43  ;;  %v6292_v45 = vpack.c.bf16 %v4718_v3, %v4717_v26  ;;  %v2252_v53 = vsel %vm1078_vm14, %v2247_v50, %v2251_v22  ;;  %v1260_v25 = vrot.slane %v6254_v13, 1  ;;  %v2253_v59 = vshrl.u32 %v6243_v56, 16  ;;  %v5356_v26 = vld [vmem:[%s6892_s3 + $0x68] sm:$0xff]  }
 0x1be   : >> { %v1198_v11 = vpop.permute.xlu0 %1197  ;;  %5225 = vmatpush3.bf16.msra.mxu1 %v5836_v41  ;;  %v1175_v41 = vshll.u32 %v6276_v30, 16  ;;  %v1173_v43 = vor.u32 %v1171_v1, %v1169_v52  ;;  %v6315_v50 = vpack.c.bf16 %v4720_v19, %v4719_v61 }
 0x1bf   : >> { %v1604_v0 = vpop.permute.xlu1 %1603  ;;  %5220 = vmatprep.subr.bf16.mxu1 %v5861_v55  ;;  %v1261_v28 = vsel %vm1238_vm13, %v1258_v15, %v1260_v25  ;;  %v2255_v15 = vor.u32 %v2253_v59, %v2251_v22 }
 0x1c0   : >> { %v1660_v17 = vsel %vm1324_vm15, %v1632_v29, %v1604_v0  ;;  %2295 = vrot.lane.b32.xlu0 %v2244_v34, %s5387_s30  ;;  %v1177_v31 = vrot.slane %v1175_v41, 1  ;;  %v1299_v29 = vsel %vm960_vm1, %v5758_v44, %v1198_v11  ;;  %v2265_v1 = vshll.u32 %v6315_v50, 16  ;;  %v1062_v41 = vld [vmem:[%s5725_s26 + $0xe0] sm:$0x3] }
 0x1c1   : >> { %2367 = vrot.lane.b32.xlu1 %v2340_v10, %s5386_s29  ;;  %5112 = vmatprep.mubr.msk.bf16.mxu1 %vm1732_vm0, %v1660_v17  ;;  %v2341_v10 = vrot.slane %v6243_v56, 1  ;;  %v6329_v17 = vpack.c.bf16 %v6217_v51, %v6179_v12 }
 0x1c2   : >> { %v1534_v39 = vpop.permute.xlu0 %1533  ;;  %5226 = vmatpush3.bf16.msra.mxu1 %v5861_v55  ;;  %v1170_v55 = vsel %vm1078_vm14, %v1165_v35, %v1169_v52  ;;  %v1178_v44 = vsel %vm1078_vm14, %v1173_v43, %v1177_v31  ;;  %v2343_v35 = vrot.slane %v6292_v45, 1  ;;  %v2261_v52 = vshrl.u32 %v6292_v45, 16  ;;  %v5358_v43 = vld [vmem:[%s6892_s3 + $0x78] sm:$0xff]  }
 0x1c3   : >> { %v1606_v6 = vpop.permute.xlu1 %1605  ;;  %v1634_v20 = vsel %vm960_vm1, %v5765_v49, %v1534_v39  ;;  %5221 = vmatprep.subr.bf16.mxu1 %v5872_v58  ;;  %v2257_v49 = vshll.u32 %v6292_v45, 16  ;;  %v1179_v39 = vshrl.u32 %v6276_v30, 16  ;;  %v2267_v19 = vrot.slane %v2265_v1, 1 }
 0x1c4   : >> { %v1662_v40 = vsel %vm1324_vm15, %v1634_v20, %v1606_v6  ;;  %1286 = vrot.lane.b32.xlu0 %v1259_v33, %s5386_s29  ;;  %v2342_v33 = vsel %vm1238_vm13, %v2339_v57, %v2341_v10  ;;  %v1262_v57 = vrot.slane %v6276_v30, 1  ;;  %v2344_v20 = vsel %vm1238_vm13, %v2341_v10, %v2343_v35 }
 0x1c5   : >> { %2297 = vrot.lane.b32.xlu1 %v2252_v53, %s5387_s30  ;;  %5113 = vmatmul.mubr.msk.bf16.gmra.mrb[4].mxu1 %vm1732_vm0, %v1662_v40  ;;  %v2259_v11 = vrot.slane %v2257_v49, 1  ;;  %v6354_v53 = vpack.c.bf16 %v1062_v41, %v1062_v41  ;;  %v4721_v40 = vld [vmem:[%s5725_s26 + $0x118] sm:$0x3] }
 0x1c6   : >> { %v1271_v34 = vpop.permute.xlu0 %1270  ;;  %5227 = vmatpush3.bf16.msra.mxu1 %v5872_v58  ;;  %v2160_v10 = vpack.c.bf16 %v4721_v40, %v4721_v40 }
 0x1c7   : >> { %v1536_v3 = vpop.permute.xlu1 %1535  ;;  %v1328_v0 = vsel %vm1324_vm15, %v1299_v29, %v1271_v34  ;;  %5222 = vmatprep.subr.bf16.mxu1 %v5891_v8  ;;  %v2263_v61 = vor.u32 %v2261_v52, %v2259_v11  ;;  %v1263_v29 = vsel %vm1238_vm13, %v1260_v25, %v1262_v57  ;;  %v1181_v34 = vor.u32 %v1179_v39, %v1177_v31  ;;  %v5359_v31 = vld [vmem:[%s6892_s3 + $0x80] sm:$0xff]   ;;  %v5360_v39 = vld [vmem:[%s6892_s3 + $0x88] sm:$0xff]  }
 0x1c8   : >> { %1215 = vrot.lane.b32.xlu0 %v1170_v55, %s5387_s30  ;;  %5149 = vmatmul.mubr.msk.bf16.vlgmr.msra.gmra.mrb[0].mxu0 %vm1732_vm0, %v1328_v0  ;;  %v1636_v59 = vsel %vm960_vm1, %v5785_v9, %v1536_v3  ;;  %v1264_v0 = vrot.slane %v6329_v17, 1 }
 0x1c9   : >> { %1288 = vrot.lane.b32.xlu1 %v1261_v28, %s5386_s29  ;;  %5177 = vmatpush3.bf16.msra.mxu0 %v5937_v27  ;;  %v5357_v27 = vld [vmem:[%s6892_s3 + $0x70] sm:$0xff]   ;;  %v1191_v28 = vshll.u32 %v6354_v53, 16  ;;  %v2268_v3 = vsel %vm1078_vm14, %v2263_v61, %v2267_v19 }
 0x1ca   : >> { %v1200_v58 = vpop.permute.xlu0 %1199  ;;  %5178 = vmatprep.subr.bf16.mxu0 %v5356_v26  ;;  %5228 = vmatpush3.bf16.msra.mxu1 %v5891_v8  ;;  %v1183_v8 = vshll.u32 %v6329_v17, 16 }
 0x1cb   : >> { %v1273_v22 = vpop.permute.xlu1 %1272  ;;  %v1301_v51 = vsel %vm960_vm1, %v5782_v7, %v1200_v58  ;;  %5223 = vmatprep.subr.bf16.mxu1 %v5911_v2  ;;  %v2260_v7 = vsel %vm1078_vm14, %v2255_v15, %v2259_v11  ;;  %v2269_v11 = vshrl.u32 %v6315_v50, 16  ;;  %v1193_v52 = vrot.slane %v1191_v28, 1 }
 0x1cc   : >> { %v1330_v12 = vsel %vm1324_vm15, %v1301_v51, %v1273_v22  ;;  %1217 = vrot.lane.b32.xlu0 %v1178_v44, %s5387_s30  ;;  %v1185_v9 = vrot.slane %v1183_v8, 1  ;;  %v1265_v22 = vsel %vm1238_vm13, %v1262_v57, %v1264_v0  ;;  %v2345_v51 = vrot.slane %v6315_v50, 1 }
 0x1cd   : >> { %2369 = vrot.lane.b32.xlu1 %v2342_v33, %s5386_s29  ;;  %5152 = vmatprep.mubr.msk.bf16.mxu0 %vm1732_vm0, %v1330_v12  ;;  %v2271_v57 = vor.u32 %v2269_v11, %v2267_v19 }
 0x1ce   : >> { %v1202_v6 = vpop.permute.xlu0 %1201  ;;  %5179 = vmatpush3.bf16.msra.mxu0 %v5356_v26  ;;  %5229 = vmatpush3.bf16.msra.mxu1 %v5911_v2  ;;  %v1187_v2 = vshrl.u32 %v6329_v17, 16  ;;  %v1186_v58 = vsel %vm1078_vm14, %v1181_v34, %v1185_v9 }
 0x1cf   : >> { %v1608_v55 = vpop.permute.xlu1 %1607  ;;  %5180 = vmatprep.subr.bf16.mxu0 %v5357_v27  ;;  %v1303_v1 = vsel %vm960_vm1, %v5816_v32, %v1202_v6  ;;  %v2346_v6 = vsel %vm1238_vm13, %v2343_v35, %v2345_v51 }
 0x1d0   : >> { %v1664_v49 = vsel %vm1324_vm15, %v1636_v59, %v1608_v55  ;;  %2299 = vrot.lane.b32.xlu0 %v2260_v7, %s5387_s30  ;;  %v1189_v33 = vor.u32 %v1187_v2, %v1185_v9  ;;  %v1266_v55 = vrot.slane %v6354_v53, 1 }
 0x1d1   : >> { %2371 = vrot.lane.b32.xlu1 %v2344_v20, %s5386_s29  ;;  %5116 = vmatprep.mubr.msk.bf16.mxu1 %vm1732_vm0, %v1664_v49  ;;  %v2347_v20 = vrot.slane %v2160_v10, 1 }
 0x1d2   : >> { %v1538_v26 = vpop.permute.xlu0 %1537  ;;  %5181 = vmatpush3.bf16.msra.mxu0 %v5357_v27  ;;  %v1194_v32 = vsel %vm1078_vm14, %v1189_v33, %v1193_v52  ;;  %v1267_v34 = vsel %vm1238_vm13, %v1264_v0, %v1266_v55 }
 0x1d3   : >> { %v1610_v44 = vpop.permute.xlu1 %1609  ;;  %v1638_v25 = vsel %vm960_vm1, %v5800_v21, %v1538_v26  ;;  %5182 = vmatprep.subr.bf16.mxu0 %v5358_v43  ;;  %v2273_v21 = vshll.u32 %v2160_v10, 16 }
 0x1d4   : >> { %v1666_v15 = vsel %vm1324_vm15, %v1638_v25, %v1610_v44  ;;  %1290 = vrot.lane.b32.xlu0 %v1263_v29, %s5386_s29 }
 0x1d5   : >> { %2301 = vrot.lane.b32.xlu1 %v2268_v3, %s5387_s30  ;;  %5117 = vmatmul.mubr.msk.bf16.gmra.mrb[8].mxu1 %vm1732_vm0, %v1666_v15  ;;  %v2275_v7 = vrot.slane %v2273_v21, 1 }
 0x1d6   : >> { %v1275_v41 = vpop.permute.xlu0 %1274  ;;  %5183 = vmatpush3.bf16.msra.mxu0 %v5358_v43  ;;  %v2348_v43 = vsel %vm1238_vm13, %v2345_v51, %v2347_v20 }
 0x1d7   : >> { %v1540_v27 = vpop.permute.xlu1 %1539  ;;  %v1332_v12 = vsel %vm1324_vm15, %v1303_v1, %v1275_v41  ;;  %5184 = vmatprep.subr.bf16.mxu0 %v5359_v31  ;;  %v2276_v19 = vsel %vm1078_vm14, %v2271_v57, %v2275_v7 }
 0x1d8   : >> { %1219 = vrot.lane.b32.xlu0 %v1186_v58, %s5387_s30  ;;  %5153 = vmatmul.mubr.msk.bf16.gmra.mrb[4].mxu0 %vm1732_vm0, %v1332_v12 }
 0x1d9   : >> { %1292 = vrot.lane.b32.xlu1 %v1265_v22, %s5386_s29 }
 0x1da   : >> { %v1204_v8 = vpop.permute.xlu0 %1203  ;;  %5185 = vmatpush3.bf16.msra.mxu0 %v5359_v31 }
 0x1db   : >> { %v1277_v61 = vpop.permute.xlu1 %1276  ;;  %v1305_v40 = vsel %vm960_vm1, %v5847_v46, %v1204_v8  ;;  %5186 = vmatprep.subr.bf16.mxu0 %v5360_v39  ;;  %v1640_v46 = vsel %vm960_vm1, %v5877_v62, %v1540_v27 }
 0x1dc   : >> { %v1334_v59 = vsel %vm1324_vm15, %v1305_v40, %v1277_v61  ;;  %1221 = vrot.lane.b32.xlu0 %v1194_v32, %s5387_s30 }
 0x1dd   : >> { %2373 = vrot.lane.b32.xlu1 %v2346_v6, %s5386_s29  ;;  %5156 = vmatprep.mubr.msk.bf16.mxu0 %vm1732_vm0, %v1334_v59 }
 0x1de   : >> { %v1206_v35 = vpop.permute.xlu0 %1205  ;;  %5187 = vmatpush3.bf16.msra.mxu0 %v5360_v39 }
 0x1df   : >> { %v1612_v49 = vpop.permute.xlu1 %1611  ;;  %v1307_v62 = vsel %vm960_vm1, %v5916_v23, %v1206_v35 }
 0x1e0   : >> { %v1668_v29 = vsel %vm1324_vm15, %v1640_v46, %v1612_v49  ;;  %2303 = vrot.lane.b32.xlu0 %v2276_v19, %s5387_s30 }
 0x1e1   : >> { %5120 = vmatprep.mubr.msk.bf16.mxu1 %vm1732_vm0, %v1668_v29  ;;  %2375 = vrot.lane.b32.xlu1 %v2348_v43, %s5386_s29 }
 0x1e2   : >> { %v1542_v9 = vpop.permute.xlu0 %1541 }
 0x1e3   : >> { %v1614_v53 = vpop.permute.xlu1 %1613  ;;  %v1642_v2 = vsel %vm960_vm1, %v5898_v16, %v1542_v9 }
 0x1e4   : >> { %v1670_v28 = vsel %vm1324_vm15, %v1642_v2, %v1614_v53  ;;  %1294 = vrot.lane.b32.xlu0 %v1267_v34, %s5386_s29  ;;  %v6915_v34 = vld [vmem:[#allocation6_spill] sm:$0xff]  ;;  %s6552_s29 = scalar_lea.vmem [#allocation3], %s1032_s21 }
 0x1e5   : >> { %5121 = vmatmul.mubr.msk.bf16.gmra.mrb[12].mxu1 %vm1732_vm0, %v1670_v28 }
 0x1e6   : >> { %v1279_v10 = vpop.permute.xlu0 %1278 }
 0x1e7   : >> { %v2278_v26 = vpop.permute.xlu1 %2277  ;;  %v1336_v3 = vsel %vm1324_vm15, %v1307_v62, %v1279_v10  ;;  %v6916_v10 = vld [vmem:[#allocation5_spill] sm:$0xff] }
 0x1e8   : >> { %5157 = vmatmul.mubr.msk.bf16.gmra.mrb[8].mxu0 %vm1732_vm0, %v1336_v3  ;;  %v2378_v15 = vsel %vm960_vm1, %v5962_v63, %v2278_v26 }
 0x1ea   : >> { %v1544_v0 = vpop.permute.xlu0 %1543 }
 0x1eb   : >> { %v1616_v44 = vpop.permute.xlu1 %1615  ;;  %v1644_v16 = vsel %vm960_vm1, %v5956_v60, %v1544_v0  ;;  %v6917_v0 = vld [vmem:[#allocation7_spill] sm:$0xff] }
 0x1ec   : >> { %v1672_v25 = vsel %vm1324_vm15, %v1644_v16, %v1616_v44 }
 0x1ed   : >> { %5124 = vmatprep.mubr.msk.bf16.mxu1 %vm1732_vm0, %v1672_v25 }
 0x1ee   : >> { %v1546_v31 = vpop.permute.xlu0 %1545 }
 0x1ef   : >> { %v2350_v23 = vpop.permute.xlu1 %2349  ;;  %v1646_v21 = vsel %vm960_vm1, %v5984_v36, %v1546_v31 }
 0x1f0   : >> { %v2406_v11 = vsel %vm1324_vm15, %v2378_v15, %v2350_v23  ;;  %v6918_v23 = vld [vmem:[#allocation8_spill] sm:$0xff] }
 0x1f1   : >> { %5188 = vmatprep.mubr.msk.bf16.mxu0 %vm1732_vm0, %v2406_v11 }
 0x1f2   : >> { %v2280_v58 = vpop.permute.xlu0 %2279 }
 0x1f3   : >> { %v2352_v33 = vpop.permute.xlu1 %2351  ;;  %v2380_v52 = vsel %vm960_vm1, %v5974_v24, %v2280_v58 }
 0x1f4   : >> { %v2408_v60 = vsel %vm1324_vm15, %v2380_v52, %v2352_v33  ;;  %v6919_v33 = vld [vmem:[#allocation9_spill] sm:$0xff] }
 0x1f5   : >> { %5189 = vmatmul.mubr.msk.bf16.vlgmr.msra.gmra.mrb[0].mxu0 %vm1732_vm0, %v2408_v60 }
 0x1f6   : >> { %v1618_v1 = vpop.permute.xlu0 %1617 }
 0x1f7   : >> { %v2282_v41 = vpop.permute.xlu1 %2281  ;;  %v1674_v63 = vsel %vm1324_vm15, %v1646_v21, %v1618_v1 }
 0x1f8   : >> { %5125 = vmatmul.mubr.msk.bf16.gmra.mrb[16].mxu1 %vm1732_vm0, %v1674_v63  ;;  %v2382_v39 = vsel %vm960_vm1, %v6009_v4, %v2282_v41 }
 0x1fa   : >> { %v1548_v22 = vpop.permute.xlu0 %1547 }
 0x1fb   : >> { %v1620_v51 = vpop.permute.xlu1 %1619  ;;  %v1648_v27 = vsel %vm960_vm1, %v5997_v48, %v1548_v22  ;;  %v6920_v22 = vld [vmem:[#allocation10_spill] sm:$0xff] }
 0x1fc   : >> { %v1676_v24 = vsel %vm1324_vm15, %v1648_v27, %v1620_v51 }
 0x1fd   : >> { %5128 = vmatprep.mubr.msk.bf16.mxu1 %vm1732_vm0, %v1676_v24 }
 0x1fe   : >> { %v1550_v12 = vpop.permute.xlu0 %1549 }
 0x1ff   : >> { %v2354_v36 = vpop.permute.xlu1 %2353  ;;  %v1650_v6 = vsel %vm960_vm1, %v6033_v37, %v1550_v12  ;;  %v6921_v12 = vld [vmem:[#allocation11_spill] sm:$0xff] }
 0x200   : >> { %v2410_v32 = vsel %vm1324_vm15, %v2382_v39, %v2354_v36 }
 0x201   : >> { %5192 = vmatprep.mubr.msk.bf16.mxu0 %vm1732_vm0, %v2410_v32 }
 0x202   : >> { %v2284_v57 = vpop.permute.xlu0 %2283 }
 0x203   : >> { %v2356_v7 = vpop.permute.xlu1 %2355  ;;  %v2384_v8 = vsel %vm960_vm1, %v6026_v18, %v2284_v57 }
 0x204   : >> { %v2412_v48 = vsel %vm1324_vm15, %v2384_v8, %v2356_v7 }
 0x205   : >> { %5193 = vmatmul.mubr.msk.bf16.gmra.mrb[4].mxu0 %vm1732_vm0, %v2412_v48 }
 0x206   : >> { %v1622_v20 = vpop.permute.xlu0 %1621 }
 0x207   : >> { %v2286_v61 = vpop.permute.xlu1 %2285  ;;  %v1678_v4 = vsel %vm1324_vm15, %v1650_v6, %v1622_v20  ;;  %v6922_v6 = vld [vmem:[#allocation12_spill] sm:$0xff] }
 0x208   : >> { %5129 = vmatmul.mubr.msk.bf16.gmra.mrb[20].mxu1 %vm1732_vm0, %v1678_v4  ;;  %v2386_v35 = vsel %vm960_vm1, %v6063_v14, %v2286_v61 }
 0x20a   : >> { %v1552_v40 = vpop.permute.xlu0 %1551 }
 0x20b   : >> { %v1624_v59 = vpop.permute.xlu1 %1623  ;;  %v1652_v19 = vsel %vm960_vm1, %v6047_v54, %v1552_v40 }
 0x20c   : >> { %v1680_v18 = vsel %vm1324_vm15, %v1652_v19, %v1624_v59 }
 0x20d   : >> { %5132 = vmatprep.mubr.msk.bf16.mxu1 %vm1732_vm0, %v1680_v18 }
 0x20e   : >> { %v1554_v55 = vpop.permute.xlu0 %1553 }
 0x20f   : >> { %v2358_v37 = vpop.permute.xlu1 %2357  ;;  %v1654_v9 = vsel %vm960_vm1, %v6915_v34, %v1554_v55 }
 0x210   : >> { %v2414_v43 = vsel %vm1324_vm15, %v2386_v35, %v2358_v37 }
 0x211   : >> { %5196 = vmatprep.mubr.msk.bf16.mxu0 %vm1732_vm0, %v2414_v43 }
 0x212   : >> { %v2288_v46 = vpop.permute.xlu0 %2287 }
 0x213   : >> { %v2360_v49 = vpop.permute.xlu1 %2359  ;;  %v2388_v29 = vsel %vm960_vm1, %v6082_v42, %v2288_v46 }
 0x214   : >> { %v2416_v54 = vsel %vm1324_vm15, %v2388_v29, %v2360_v49 }
 0x215   : >> { %5197 = vmatmul.mubr.msk.bf16.gmra.mrb[8].mxu0 %vm1732_vm0, %v2416_v54 }
 0x216   : >> { %v1626_v53 = vpop.permute.xlu0 %1625 }
 0x217   : >> { %v2290_v2 = vpop.permute.xlu1 %2289  ;;  %v1682_v14 = vsel %vm1324_vm15, %v1654_v9, %v1626_v53 }
 0x218   : >> { %5133 = vmatmul.mubr.msk.bf16.gmra.mrb[24].mxu1 %vm1732_vm0, %v1682_v14  ;;  %v2390_v44 = vsel %vm960_vm1, %v6917_v0, %v2290_v2 }
 0x21a   : >> { %v1208_v28 = vpop.permute.xlu0 %1207 }
 0x21b   : >> { %v1281_v62 = vpop.permute.xlu1 %1280  ;;  %v1309_v26 = vsel %vm960_vm1, %v6916_v10, %v1208_v28 }
 0x21c   : >> { %v1338_v42 = vsel %vm1324_vm15, %v1309_v26, %v1281_v62 }
 0x21d   : >> { %5160 = vmatprep.mubr.msk.bf16.mxu1 %vm1732_vm0, %v1338_v42 }
 0x21e   : >> { %v1210_v3 = vpop.permute.xlu0 %1209 }
 0x21f   : >> { %v2362_v16 = vpop.permute.xlu1 %2361  ;;  %v1311_v52 = vsel %vm960_vm1, %v6919_v33, %v1210_v3 }
 0x220   : >> { %v2418_v25 = vsel %vm1324_vm15, %v2390_v44, %v2362_v16 }
 0x221   : >> { %5200 = vmatprep.mubr.msk.bf16.mxu0 %vm1732_vm0, %v2418_v25 }
 0x222   : >> { %v2292_v31 = vpop.permute.xlu0 %2291 }
 0x223   : >> { %v2364_v15 = vpop.permute.xlu1 %2363  ;;  %v2392_v11 = vsel %vm960_vm1, %v6918_v23, %v2292_v31 }
 0x224   : >> { %v2420_v58 = vsel %vm1324_vm15, %v2392_v11, %v2364_v15 }
 0x225   : >> { %5201 = vmatmul.mubr.msk.bf16.gmra.mrb[12].mxu0 %vm1732_vm0, %v2420_v58 }
 0x226   : >> { %v1283_v60 = vpop.permute.xlu0 %1282 }
 0x227   : >> { %v2294_v21 = vpop.permute.xlu1 %2293  ;;  %v1340_v1 = vsel %vm1324_vm15, %v1311_v52, %v1283_v60 }
 0x228   : >> { %5161 = vmatmul.mubr.msk.bf16.vlgmr.msra.gmra.mrb[12].mxu1 %vm1732_vm0, %v1340_v1  ;;  %v2394_v39 = vsel %vm960_vm1, %v6921_v12, %v2294_v21 }
 0x22a   : >> { %v1212_v41 = vpop.permute.xlu0 %1211 }
 0x22b   : >> { %v1285_v63 = vpop.permute.xlu1 %1284  ;;  %v1313_v51 = vsel %vm960_vm1, %v6920_v22, %v1212_v41 }
 0x22c   : >> { %v1342_v27 = vsel %vm1324_vm15, %v1313_v51, %v1285_v63  ;;  %v6923_v51 = vld [vmem:[#allocation4_spill] sm:$0xff] }
 0x22d   : >> { %5164 = vmatprep.mubr.msk.bf16.mxu1 %vm1732_vm0, %v1342_v27 }
 0x22e   : >> { %v1214_v24 = vpop.permute.xlu0 %1213 }
 0x22f   : >> { %v2366_v36 = vpop.permute.xlu1 %2365  ;;  %v1315_v20 = vsel %vm960_vm1, %v6922_v6, %v1214_v24 }
 0x230   : >> { %v2422_v32 = vsel %vm1324_vm15, %v2394_v39, %v2366_v36 }
 0x231   : >> { %5204 = vmatprep.mubr.msk.bf16.mxu0 %vm1732_vm0, %v2422_v32 }
 0x232   : >> { %v2296_v57 = vpop.permute.xlu0 %2295 }
 0x233   : >> { %v2368_v7 = vpop.permute.xlu1 %2367  ;;  %v2396_v8 = vsel %vm960_vm1, %v6192_v38, %v2296_v57 }
 0x234   : >> { %v2424_v48 = vsel %vm1324_vm15, %v2396_v8, %v2368_v7 }
 0x235   : >> { %5205 = vmatmul.mubr.msk.bf16.gmra.mrb[16].mxu0 %vm1732_vm0, %v2424_v48 }
 0x236   : >> { %v1287_v61 = vpop.permute.xlu0 %1286 }
 0x237   : >> { %v2298_v4 = vpop.permute.xlu1 %2297  ;;  %v1344_v40 = vsel %vm1324_vm15, %v1315_v20, %v1287_v61 }
 0x238   : >> { %5165 = vmatmul.mubr.msk.bf16.gmra.mrb[16].mxu1 %vm1732_vm0, %v1344_v40  ;;  %v2398_v35 = vsel %vm960_vm1, %v6226_v5, %v2298_v4 }
 0x23a   : >> { %v1216_v59 = vpop.permute.xlu0 %1215 }
 0x23b   : >> { %v1289_v19 = vpop.permute.xlu1 %1288  ;;  %v1317_v18 = vsel %vm960_vm1, %v6213_v47, %v1216_v59 }
 0x23c   : >> { %v1346_v38 = vsel %vm1324_vm15, %v1317_v18, %v1289_v19 }
 0x23d   : >> { %5168 = vmatprep.mubr.msk.bf16.mxu1 %vm1732_vm0, %v1346_v38 }
 0x23e   : >> { %v1218_v55 = vpop.permute.xlu0 %1217 }
 0x23f   : >> { %v2370_v37 = vpop.permute.xlu1 %2369  ;;  %v1319_v54 = vsel %vm960_vm1, %v6254_v13, %v1218_v55 }
 0x240   : >> { %v2426_v43 = vsel %vm1324_vm15, %v2398_v35, %v2370_v37 }
 0x241   : >> { %5208 = vmatprep.mubr.msk.bf16.mxu0 %vm1732_vm0, %v2426_v43 }
 0x242   : >> { %v2300_v46 = vpop.permute.xlu0 %2299 }
 0x243   : >> { %v2372_v49 = vpop.permute.xlu1 %2371  ;;  %v2400_v29 = vsel %vm960_vm1, %v6243_v56, %v2300_v46 }
 0x244   : >> { %v2428_v47 = vsel %vm1324_vm15, %v2400_v29, %v2372_v49 }
 0x245   : >> { %5209 = vmatmul.mubr.msk.bf16.gmra.mrb[20].mxu0 %vm1732_vm0, %v2428_v47 }
 0x246   : >> { %v1291_v34 = vpop.permute.xlu0 %1290 }
 0x247   : >> { %v2302_v9 = vpop.permute.xlu1 %2301  ;;  %v1348_v5 = vsel %vm1324_vm15, %v1319_v54, %v1291_v34 }
 0x248   : >> { %5169 = vmatmul.mubr.msk.bf16.gmra.mrb[20].mxu1 %vm1732_vm0, %v1348_v5  ;;  %v2402_v62 = vsel %vm960_vm1, %v6292_v45, %v2302_v9 }
 0x24a   : >> { %v1220_v53 = vpop.permute.xlu0 %1219 }
 0x24b   : >> { %v1293_v2 = vpop.permute.xlu1 %1292  ;;  %v1321_v14 = vsel %vm960_vm1, %v6276_v30, %v1220_v53 }
 0x24c   : >> { %v1350_v56 = vsel %vm1324_vm15, %v1321_v14, %v1293_v2 }
 0x24d   : >> { %5172 = vmatprep.mubr.msk.bf16.mxu1 %vm1732_vm0, %v1350_v56 }
 0x24e   : >> { %v1222_v28 = vpop.permute.xlu0 %1221 }
 0x24f   : >> { %v2374_v13 = vpop.permute.xlu1 %2373  ;;  %v1323_v0 = vsel %vm960_vm1, %v6329_v17, %v1222_v28 }
 0x250   : >> { %v2430_v10 = vsel %vm1324_vm15, %v2402_v62, %v2374_v13 }
 0x251   : >> { %5212 = vmatprep.mubr.msk.bf16.mxu0 %vm1732_vm0, %v2430_v10 }
 0x252   : >> { %v2304_v26 = vpop.permute.xlu0 %2303 }
 0x253   : >> { %v2404_v42 = vsel %vm960_vm1, %v6315_v50, %v2304_v26  ;;  %v2376_v3 = vpop.permute.xlu1 %2375  ;;  %vm2891_vm1 = vcmask (%p1028_p5), 1041408  }
 0x254   : >> { %v2432_v30 = vsel %vm1324_vm15, %v2404_v42, %v2376_v3 }
 0x255   : >> { %5213 = vmatmul.mubr.msk.bf16.gmra.mrb[24].mxu0 %vm1732_vm0, %v2432_v30 }
 0x256   : >> { %v1295_v44 = vpop.permute.xlu0 %1294 }
 0x257   : >> { %v1352_v45 = vsel %vm1324_vm15, %v1323_v0, %v1295_v44 }
 0x258   : >> { %5173 = vmatmul.mubr.msk.bf16.gmra.mrb[24].mxu1 %vm1732_vm0, %v1352_v45 }
 0x28c   : >> { %v5110_v16 = vpop.f32.mrb[0].mxu1 }
 0x28d   : >> { %v1795_v25 = vpop.f32.mrb[1].mxu1 }
 0x28e   : >> { %v5111_v31 = vpop.f32.mrb[2].mxu1 }
 0x28f   : >> { %v1798_v15 = vpop.f32.mrb[3].mxu1 }
 0x298   : >> { %v5114_v23 = vpop.f32.mrb[4].mxu1 }
 0x299   : >> { %v1811_v11 = vpop.f32.mrb[5].mxu1 }
 0x29a   : >> { %v5115_v50 = vpop.f32.mrb[6].mxu1 }
 0x29b   : >> { %v1814_v58 = vpop.f32.mrb[7].mxu1 }
 0x2a8   : >> { %v5118_v33 = vpop.f32.mrb[8].mxu1 }
 0x2a9   : >> { %v6540_v52 = vpop.f32.mrb[9].mxu1 }
 0x2aa   : >> { %v6542_v60 = vpop.f32.mrb[10].mxu1 }
 0x2ab   : >> { %v6544_v21 = vpop.f32.mrb[11].mxu1 }
 0x2c8   : >> { %v5190_v17 = vpop.f32.mrb[0].mxu0 }
 0x2c9   : >> { %v5230_v1 = vadd.f32 %v5190_v17, %v5110_v16  ;;  %v2544_v41 = vpop.f32.mrb[1].mxu0 }
 0x2ca   : >> { %v5231_v63 = vadd.f32 %v2544_v41, %v1795_v25  ;;  %v5191_v22 = vpop.f32.mrb[2].mxu0 }
 0x2cb   : >> { %v2691_v27 = vadd.f32 %v5230_v1, %v6923_v51  ;;  %v5232_v24 = vadd.f32 %v5191_v22, %v5111_v31  ;;  %v2547_v12 = vpop.f32.mrb[3].mxu0 }
 0x2cc   : >> { %v2689_v39 = vadd.f32 %v5231_v63, %v6923_v51  ;;  %v5233_v36 = vadd.f32 %v2547_v12, %v1798_v15 }
 0x2cd   : >> { %vm2719_vm2 = vcmp.gt.f32.partialorder %v2691_v27, 0.0  ;;  %v2747_v32 = vmul.f32 0.01, %v2691_v27  ;;  %v2692_v57 = vadd.f32 %v5232_v24, %v6923_v51 }
 0x2ce   : >> { %vm2717_vm3 = vcmp.gt.f32.partialorder %v2689_v39, 0.0  ;;  %v2745_v7 = vmul.f32 0.01, %v2689_v39  ;;  %v2690_v8 = vadd.f32 %v5233_v36, %v6923_v51 }
 0x2cf   : >> { %v2775_v48 = vsel %vm2719_vm2, %v2691_v27, %v2747_v32  ;;  %vm2720_vm4 = vcmp.gt.f32.partialorder %v2692_v57, 0.0  ;;  %v2748_v6 = vmul.f32 0.01, %v2692_v57 }
 0x2d0   : >> { %2804 = vst.msk [vmem:[%s6552_s29 + $0x10] sm:$0xff] %vm1324_vm15, %v2775_v48  ;;  %v2773_v20 = vsel %vm2717_vm3, %v2689_v39, %v2745_v7  ;;  %vm2718_vm5 = vcmp.gt.f32.partialorder %v2690_v8, 0.0  ;;  %v2746_v61 = vmul.f32 0.01, %v2690_v8 }
 0x2d1   : >> { %2802 = vst.msk [vmem:[%s6552_s29] sm:$0xff] %vm1324_vm15, %v2773_v20  ;;  %v2776_v4 = vsel %vm2720_vm4, %v2692_v57, %v2748_v6 }
 0x2d2   : >> { %2805 = vst.msk [vmem:[%s6552_s29 + $0x18] sm:$0xff] %vm1324_vm15, %v2776_v4  ;;  %v2774_v40 = vsel %vm2718_vm5, %v2690_v8, %v2746_v61 }
 0x2d3   : >> { %2803 = vst.msk [vmem:[%s6552_s29 + $0x8] sm:$0xff] %vm1324_vm15, %v2774_v40 }
 0x2d8   : >> { %v5194_v59 = vpop.f32.mrb[4].mxu0 }
 0x2d9   : >> { %v5234_v19 = vadd.f32 %v5194_v59, %v5114_v23  ;;  %v2560_v18 = vpop.f32.mrb[5].mxu0 }
 0x2da   : >> { %v5235_v38 = vadd.f32 %v2560_v18, %v1811_v11  ;;  %v5195_v55 = vpop.f32.mrb[6].mxu0 }
 0x2db   : >> { %v2695_v35 = vadd.f32 %v5234_v19, %v6923_v51  ;;  %v5236_v37 = vadd.f32 %v5195_v55, %v5115_v50  ;;  %v2563_v43 = vpop.f32.mrb[7].mxu0 }
 0x2dc   : >> { %v2693_v46 = vadd.f32 %v5235_v38, %v6923_v51  ;;  %v5237_v49 = vadd.f32 %v2563_v43, %v1814_v58 }
 0x2dd   : >> { %vm2723_vm6 = vcmp.gt.f32.partialorder %v2695_v35, 0.0  ;;  %v2751_v29 = vmul.f32 0.01, %v2695_v35  ;;  %v2696_v47 = vadd.f32 %v5236_v37, %v6923_v51 }
 0x2de   : >> { %vm2721_vm7 = vcmp.gt.f32.partialorder %v2693_v46, 0.0  ;;  %v2749_v54 = vmul.f32 0.01, %v2693_v46  ;;  %v2694_v34 = vadd.f32 %v5237_v49, %v6923_v51 }
 0x2df   : >> { %v2779_v9 = vsel %vm2723_vm6, %v2695_v35, %v2751_v29  ;;  %vm2724_vm8 = vcmp.gt.f32.partialorder %v2696_v47, 0.0  ;;  %v2752_v5 = vmul.f32 0.01, %v2696_v47 }
 0x2e0   : >> { %2808 = vst.msk [vmem:[%s6552_s29 + $0x30] sm:$0xff] %vm1324_vm15, %v2779_v9  ;;  %v2777_v53 = vsel %vm2721_vm7, %v2693_v46, %v2749_v54  ;;  %vm2722_vm9 = vcmp.gt.f32.partialorder %v2694_v34, 0.0  ;;  %v2750_v2 = vmul.f32 0.01, %v2694_v34 }
 0x2e1   : >> { %2806 = vst.msk [vmem:[%s6552_s29 + $0x20] sm:$0xff] %vm1324_vm15, %v2777_v53  ;;  %v2780_v14 = vsel %vm2724_vm8, %v2696_v47, %v2752_v5 }
 0x2e2   : >> { %2809 = vst.msk [vmem:[%s6552_s29 + $0x38] sm:$0xff] %vm1324_vm15, %v2780_v14  ;;  %v2778_v56 = vsel %vm2722_vm9, %v2694_v34, %v2750_v2 }
 0x2e3   : >> { %2807 = vst.msk [vmem:[%s6552_s29 + $0x28] sm:$0xff] %vm1324_vm15, %v2778_v56 }
 0x2e8   : >> { %v5198_v28 = vpop.f32.mrb[8].mxu0 }
 0x2e9   : >> { %v5238_v62 = vadd.f32 %v5198_v28, %v5118_v33  ;;  %v2576_v13 = vpop.f32.mrb[9].mxu0 }
 0x2ea   : >> { %v5239_v10 = vadd.f32 %v2576_v13, %v6540_v52  ;;  %v5199_v26 = vpop.f32.mrb[10].mxu0 }
 0x2eb   : >> { %v2699_v42 = vadd.f32 %v5238_v62, %v6923_v51  ;;  %v5240_v3 = vadd.f32 %v5199_v26, %v6542_v60  ;;  %v2579_v30 = vpop.f32.mrb[11].mxu0 }
 0x2ec   : >> { %v2697_v0 = vadd.f32 %v5239_v10, %v6923_v51  ;;  %v5241_v44 = vadd.f32 %v2579_v30, %v6544_v21 }
 0x2ed   : >> { %vm2727_vm10 = vcmp.gt.f32.partialorder %v2699_v42, 0.0  ;;  %v2755_v45 = vmul.f32 0.01, %v2699_v42  ;;  %v2700_v16 = vadd.f32 %v5240_v3, %v6923_v51 }
 0x2ee   : >> { %vm2725_vm11 = vcmp.gt.f32.partialorder %v2697_v0, 0.0  ;;  %v2753_v25 = vmul.f32 0.01, %v2697_v0  ;;  %v2698_v31 = vadd.f32 %v5241_v44, %v6923_v51 }
 0x2ef   : >> { %v2783_v15 = vsel %vm2727_vm10, %v2699_v42, %v2755_v45  ;;  %vm2728_vm12 = vcmp.gt.f32.partialorder %v2700_v16, 0.0  ;;  %v2756_v23 = vmul.f32 0.01, %v2700_v16 }
 0x2f0   : >> { %2812 = vst.msk [vmem:[%s6552_s29 + $0x50] sm:$0xff] %vm1324_vm15, %v2783_v15  ;;  %v2781_v11 = vsel %vm2725_vm11, %v2697_v0, %v2753_v25  ;;  %vm2726_vm13 = vcmp.gt.f32.partialorder %v2698_v31, 0.0  ;;  %v2754_v50 = vmul.f32 0.01, %v2698_v31 }
 0x2f1   : >> { %2810 = vst.msk [vmem:[%s6552_s29 + $0x40] sm:$0xff] %vm1324_vm15, %v2781_v11  ;;  %v2784_v58 = vsel %vm2728_vm12, %v2700_v16, %v2756_v23 }
 0x2f2   : >> { %2813 = vst.msk [vmem:[%s6552_s29 + $0x58] sm:$0xff] %vm1324_vm15, %v2784_v58  ;;  %v2782_v33 = vsel %vm2726_vm13, %v2698_v31, %v2754_v50 }
 0x2f3   : >> { %2811 = vst.msk [vmem:[%s6552_s29 + $0x48] sm:$0xff] %vm1324_vm15, %v2782_v33 }
 0x2f8   : >> { %v5202_v52 = vpop.f32.mrb[12].mxu0 }
 0x2f9   : >> { %v2592_v60 = vpop.f32.mrb[13].mxu0 }
 0x2fa   : >> { %v5203_v21 = vpop.f32.mrb[14].mxu0 }
 0x2fb   : >> { %v5162_v17 = vpop.f32.mrb[12].mxu1  ;;  %v2595_v1 = vpop.f32.mrb[15].mxu0 }
 0x2fc   : >> { %v5242_v41 = vadd.f32 %v5202_v52, %v5162_v17  ;;  %v2052_v63 = vpop.f32.mrb[13].mxu1 }
 0x2fd   : >> { %v5243_v22 = vadd.f32 %v2592_v60, %v2052_v63  ;;  %v5163_v27 = vpop.f32.mrb[14].mxu1 }
 0x2fe   : >> { %v2703_v24 = vadd.f32 %v5242_v41, %v6923_v51  ;;  %v5244_v12 = vadd.f32 %v5203_v21, %v5163_v27  ;;  %v2055_v39 = vpop.f32.mrb[15].mxu1 }
 0x2ff   : >> { %v2701_v36 = vadd.f32 %v5243_v22, %v6923_v51  ;;  %v5245_v32 = vadd.f32 %v2595_v1, %v2055_v39 }
 0x300   : >> { %vm2731_vm14 = vcmp.gt.f32.partialorder %v2703_v24, 0.0  ;;  %v2759_v57 = vmul.f32 0.01, %v2703_v24  ;;  %v2704_v7 = vadd.f32 %v5244_v12, %v6923_v51 }
 0x301   : >> { %vm2729_vm0 = vcmp.gt.f32.partialorder %v2701_v36, 0.0  ;;  %v2757_v8 = vmul.f32 0.01, %v2701_v36  ;;  %v2702_v48 = vadd.f32 %v5245_v32, %v6923_v51 }
 0x302   : >> { %v2787_v6 = vsel %vm2731_vm14, %v2703_v24, %v2759_v57  ;;  %vm2732_vm2 = vcmp.gt.f32.partialorder %v2704_v7, 0.0  ;;  %v2760_v20 = vmul.f32 0.01, %v2704_v7 }
 0x303   : >> { %2816 = vst.msk [vmem:[%s6552_s29 + $0x70] sm:$0xff] %vm1324_vm15, %v2787_v6  ;;  %v2785_v61 = vsel %vm2729_vm0, %v2701_v36, %v2757_v8  ;;  %vm2730_vm3 = vcmp.gt.f32.partialorder %v2702_v48, 0.0  ;;  %v2758_v4 = vmul.f32 0.01, %v2702_v48 }
 0x304   : >> { %2814 = vst.msk [vmem:[%s6552_s29 + $0x60] sm:$0xff] %vm1324_vm15, %v2785_v61  ;;  %v2788_v40 = vsel %vm2732_vm2, %v2704_v7, %v2760_v20  ;;  %vm2859_vm2 = vcmask (%p1028_p5), 519168  }
 0x305   : >> { %2817 = vst.msk [vmem:[%s6552_s29 + $0x78] sm:$0xff] %vm1324_vm15, %v2788_v40  ;;  %v2786_v59 = vsel %vm2730_vm3, %v2702_v48, %v2758_v4  ;;  %vm2892_vm3 = vcmask (%p1028_p5), 1045508  }
 0x306   : >> { %2815 = vst.msk [vmem:[%s6552_s29 + $0x68] sm:$0xff] %vm1324_vm15, %v2786_v59 }
 0x308   : >> { %v5206_v19 = vpop.f32.mrb[16].mxu0 }
 0x309   : >> { %v2608_v18 = vpop.f32.mrb[17].mxu0 }
 0x30a   : >> { %v5207_v38 = vpop.f32.mrb[18].mxu0 }
 0x30b   : >> { %v5166_v55 = vpop.f32.mrb[16].mxu1  ;;  %v2611_v35 = vpop.f32.mrb[19].mxu0 }
 0x30c   : >> { %v5246_v37 = vadd.f32 %v5206_v19, %v5166_v55  ;;  %v2068_v43 = vpop.f32.mrb[17].mxu1 }
 0x30d   : >> { %v5247_v46 = vadd.f32 %v2608_v18, %v2068_v43  ;;  %v5167_v49 = vpop.f32.mrb[18].mxu1 }
 0x30e   : >> { %v2707_v29 = vadd.f32 %v5246_v37, %v6923_v51  ;;  %v5248_v47 = vadd.f32 %v5207_v38, %v5167_v49  ;;  %v2071_v54 = vpop.f32.mrb[19].mxu1 }
 0x30f   : >> { %v2705_v34 = vadd.f32 %v5247_v46, %v6923_v51  ;;  %v5249_v9 = vadd.f32 %v2611_v35, %v2071_v54 }
 0x310   : >> { %vm2735_vm4 = vcmp.gt.f32.partialorder %v2707_v29, 0.0  ;;  %v2763_v5 = vmul.f32 0.01, %v2707_v29  ;;  %v2708_v53 = vadd.f32 %v5248_v47, %v6923_v51 }
 0x311   : >> { %vm2733_vm5 = vcmp.gt.f32.partialorder %v2705_v34, 0.0  ;;  %v2761_v2 = vmul.f32 0.01, %v2705_v34  ;;  %v2706_v14 = vadd.f32 %v5249_v9, %v6923_v51 }
 0x312   : >> { %v2791_v56 = vsel %vm2735_vm4, %v2707_v29, %v2763_v5  ;;  %vm2736_vm6 = vcmp.gt.f32.partialorder %v2708_v53, 0.0  ;;  %v2764_v28 = vmul.f32 0.01, %v2708_v53  ;;  %vm2900_vm4 = vcmask (%p1028_p5), 519170  }
 0x313   : >> { %2820 = vst.msk [vmem:[%s6552_s29 + $0x90] sm:$0xff] %vm1324_vm15, %v2791_v56  ;;  %v2789_v62 = vsel %vm2733_vm5, %v2705_v34, %v2761_v2  ;;  %vm2734_vm7 = vcmp.gt.f32.partialorder %v2706_v14, 0.0  ;;  %v2762_v13 = vmul.f32 0.01, %v2706_v14  ;;  %vm6646_vm5 = vmor (%p1028_p5), %vm2891_vm1, %vm2892_vm3 }
 0x314   : >> { %2818 = vst.msk [vmem:[%s6552_s29 + $0x80] sm:$0xff] %vm1324_vm15, %v2789_v62  ;;  %v2792_v10 = vsel %vm2736_vm6, %v2708_v53, %v2764_v28 }
 0x315   : >> { %2821 = vst.msk [vmem:[%s6552_s29 + $0x98] sm:$0xff] %vm1324_vm15, %v2792_v10  ;;  %v2790_v26 = vsel %vm2734_vm7, %v2706_v14, %v2762_v13 }
 0x316   : >> { %2819 = vst.msk [vmem:[%s6552_s29 + $0x88] sm:$0xff] %vm1324_vm15, %v2790_v26 }
 0x318   : >> { %v5210_v42 = vpop.f32.mrb[20].mxu0 }
 0x319   : >> { %v2624_v3 = vpop.f32.mrb[21].mxu0 }
 0x31a   : >> { %v5211_v30 = vpop.f32.mrb[22].mxu0 }
 0x31b   : >> { %v5170_v0 = vpop.f32.mrb[20].mxu1  ;;  %v2627_v44 = vpop.f32.mrb[23].mxu0 }
 0x31c   : >> { %v5250_v45 = vadd.f32 %v5210_v42, %v5170_v0  ;;  %v2084_v16 = vpop.f32.mrb[21].mxu1 }
 0x31d   : >> { %v5251_v25 = vadd.f32 %v2624_v3, %v2084_v16  ;;  %v5171_v31 = vpop.f32.mrb[22].mxu1 }
 0x31e   : >> { %v2711_v15 = vadd.f32 %v5250_v45, %v6923_v51  ;;  %v5252_v23 = vadd.f32 %v5211_v30, %v5171_v31  ;;  %v2087_v11 = vpop.f32.mrb[23].mxu1 }
 0x31f   : >> { %v2709_v50 = vadd.f32 %v5251_v25, %v6923_v51  ;;  %v5253_v58 = vadd.f32 %v2627_v44, %v2087_v11 }
 0x320   : >> { %vm2739_vm8 = vcmp.gt.f32.partialorder %v2711_v15, 0.0  ;;  %v2767_v33 = vmul.f32 0.01, %v2711_v15  ;;  %v2712_v52 = vadd.f32 %v5252_v23, %v6923_v51 }
 0x321   : >> { %vm2737_vm9 = vcmp.gt.f32.partialorder %v2709_v50, 0.0  ;;  %v2765_v60 = vmul.f32 0.01, %v2709_v50  ;;  %v2710_v21 = vadd.f32 %v5253_v58, %v6923_v51 }
 0x322   : >> { %v2795_v17 = vsel %vm2739_vm8, %v2711_v15, %v2767_v33  ;;  %vm2740_vm10 = vcmp.gt.f32.partialorder %v2712_v52, 0.0  ;;  %v2768_v1 = vmul.f32 0.01, %v2712_v52 }
 0x323   : >> { %2824 = vst.msk [vmem:[%s6552_s29 + $0xb0] sm:$0xff] %vm1324_vm15, %v2795_v17  ;;  %v2793_v41 = vsel %vm2737_vm9, %v2709_v50, %v2765_v60  ;;  %vm2738_vm11 = vcmp.gt.f32.partialorder %v2710_v21, 0.0  ;;  %v2766_v63 = vmul.f32 0.01, %v2710_v21 }
 0x324   : >> { %2822 = vst.msk [vmem:[%s6552_s29 + $0xa0] sm:$0xff] %vm1324_vm15, %v2793_v41  ;;  %v2796_v22 = vsel %vm2740_vm10, %v2712_v52, %v2768_v1 }
 0x325   : >> { %2825 = vst.msk [vmem:[%s6552_s29 + $0xb8] sm:$0xff] %vm1324_vm15, %v2796_v22  ;;  %v2794_v27 = vsel %vm2738_vm11, %v2710_v21, %v2766_v63 }
 0x326   : >> { %2823 = vst.msk [vmem:[%s6552_s29 + $0xa8] sm:$0xff] %vm1324_vm15, %v2794_v27 }
 0x328   : >> { %v5214_v24 = vpop.f32.mrb[24].mxu0 }
 0x329   : >> { %v2640_v12 = vpop.f32.mrb[25].mxu0 }
 0x32a   : >> { %v5215_v39 = vpop.f32.mrb[26].mxu0 }
 0x32b   : >> { %v5174_v36 = vpop.f32.mrb[24].mxu1  ;;  %v2643_v32 = vpop.f32.mrb[27].mxu0 }
 0x32c   : >> { %v5254_v57 = vadd.f32 %v5214_v24, %v5174_v36  ;;  %v2100_v7 = vpop.f32.mrb[25].mxu1 }
 0x32d   : >> { %v5255_v8 = vadd.f32 %v2640_v12, %v2100_v7  ;;  %v5175_v48 = vpop.f32.mrb[26].mxu1 }
 0x32e   : >> { %v2715_v6 = vadd.f32 %v5254_v57, %v6923_v51  ;;  %v5256_v20 = vadd.f32 %v5215_v39, %v5175_v48  ;;  %v2103_v61 = vpop.f32.mrb[27].mxu1 }
 0x32f   : >> { %v2713_v4 = vadd.f32 %v5255_v8, %v6923_v51  ;;  %v5257_v40 = vadd.f32 %v2643_v32, %v2103_v61 }
 0x330   : >> { %vm2743_vm12 = vcmp.gt.f32.partialorder %v2715_v6, 0.0  ;;  %v2771_v59 = vmul.f32 0.01, %v2715_v6  ;;  %v2716_v19 = vadd.f32 %v5256_v20, %v6923_v51  ;;  %1030 = sbr.rel (!%p1028_p5) target bundleno = 304 (0x130), region = 486 }
 0x331   : >> { %vm2741_vm13 = vcmp.gt.f32.partialorder %v2713_v4, 0.0  ;;  %v2769_v18 = vmul.f32 0.01, %v2713_v4  ;;  %v2714_v38 = vadd.f32 %v5257_v40, %v6923_v51 }
 0x332   : >> { %v2799_v55 = vsel %vm2743_vm12, %v2715_v6, %v2771_v59  ;;  %vm2744_vm14 = vcmp.gt.f32.partialorder %v2716_v19, 0.0  ;;  %v2772_v35 = vmul.f32 0.01, %v2716_v19 }
 0x333   : >> { %2828 = vst.msk [vmem:[%s6552_s29 + $0xd0] sm:$0xff] %vm1324_vm15, %v2799_v55  ;;  %v2797_v37 = vsel %vm2741_vm13, %v2713_v4, %v2769_v18  ;;  %vm2742_vm0 = vcmp.gt.f32.partialorder %v2714_v38, 0.0  ;;  %v2770_v43 = vmul.f32 0.01, %v2714_v38 }
 0x334   : >> { %2826 = vst.msk [vmem:[%s6552_s29 + $0xc0] sm:$0xff] %vm1324_vm15, %v2797_v37  ;;  %v2800_v46 = vsel %vm2744_vm14, %v2716_v19, %v2772_v35 }
 0x335   : >> { %2829 = vst.msk [vmem:[%s6552_s29 + $0xd8] sm:$0xff] %vm1324_vm15, %v2800_v46  ;;  %v2798_v49 = vsel %vm2742_vm0, %v2714_v38, %v2770_v43 }
 0x336   : >> { %2827 = vst.msk [vmem:[%s6552_s29 + $0xc8] sm:$0xff] %vm1324_vm15, %v2798_v49  ;;  %vm2861_vm15 = vcmask (%p1028_p5), 517120  }
 0x33d   : > { %v2830_v29 = vld [vmem:[#allocation3] ss:$2 sm:$0xff]  ;;  %v2834_v47 = vld [vmem:[#allocation3 + $0x1] ss:$2 sm:$0xff]  ;;  %v2904_v0 = vld [vmem:[#allocation3 + $0x70] ss:$2 sm:$0xff] }
 0x33e   : > { %v2840_v54 = vld [vmem:[#allocation3 + $0x1c] ss:$2 sm:$0xff]  ;;  %v2837_v34 = vmax.f32 %v2830_v29, %v2834_v47  ;;  %v2846_v9 = vld [vmem:[#allocation3 + $0x1d] ss:$2 sm:$0xff]  ;;  %v2914_v58 = vld [vmem:[#allocation3 + $0x8c] ss:$2 sm:$0xff] }
 0x33f   : > { %v2832_v5 = vld [vmem:[#allocation3 + $0x10] ss:$2 sm:$0xf]  ;;  %v2836_v53 = vld [vmem:[#allocation3 + $0x11] ss:$2 sm:$0xf] }
 0x340   : > { %v2842_v2 = vld [vmem:[#allocation3 + $0x2c] ss:$2 sm:$0xf]  ;;  %v2843_v14 = vmax.f32 %v2837_v34, %v2840_v54  ;;  %v2838_v56 = vmax.f32 %v2832_v5, %v2836_v53  ;;  %v2848_v28 = vld [vmem:[#allocation3 + $0x2d] ss:$2 sm:$0xf] }
 0x341   : > { %v2864_v62 = vld [vmem:[#allocation3 + $0x38] ss:$2 sm:$0xff]  ;;  %v2868_v13 = vld [vmem:[#allocation3 + $0x39] ss:$2 sm:$0xff]  ;;  %v2936_v39 = vld [vmem:[#allocation3 + $0xa8] ss:$2 sm:$0xff] }
 0x342   : > { %v2874_v10 = vld [vmem:[#allocation3 + $0x54] ss:$2 sm:$0xff]  ;;  %v2880_v26 = vld [vmem:[#allocation3 + $0x55] ss:$2 sm:$0xff]  ;;  %v2849_v42 = vmax.f32 %v2843_v14, %v2846_v9  ;;  %v2844_v3 = vmax.f32 %v2838_v56, %v2842_v2  ;;  %v2871_v30 = vmax.f32 %v2864_v62, %v2868_v13  ;;  %v2946_v32 = vld [vmem:[#allocation3 + $0xc4] ss:$2 sm:$0xff] }
 0x343   : > { %v2866_v51 = vld [vmem:[#allocation3 + $0x48] ss:$2 sm:$0xf]  ;;  %v2870_v44 = vld [vmem:[#allocation3 + $0x49] ss:$2 sm:$0xf] }
 0x344   : > { %v2876_v45 = vld [vmem:[#allocation3 + $0x64] ss:$2 sm:$0xf]  ;;  %v4853_v16 = vpack.c.bf16 %v2849_v42, %v2849_v42  ;;  %v2850_v25 = vmax.f32 %v2844_v3, %v2848_v28  ;;  %v2877_v31 = vmax.f32 %v2871_v30, %v2874_v10  ;;  %v2872_v15 = vmax.f32 %v2866_v51, %v2870_v44  ;;  %v2882_v23 = vld [vmem:[#allocation3 + $0x65] ss:$2 sm:$0xf] }
 0x345   : > { %v2908_v11 = vld [vmem:[#allocation3 + $0x71] ss:$2 sm:$0xff]  ;;  %v2906_v17 = vld [vmem:[#allocation3 + $0x80] ss:$2 sm:$0xf] }
 0x346   : > { %v2911_v50 = vmax.f32 %v2904_v0, %v2908_v11  ;;  %v2920_v33 = vld [vmem:[#allocation3 + $0x8d] ss:$2 sm:$0xff]  ;;  %2860 = vst.msk [vmem:[%s5454_s10] sm:$0xf] %vm2859_vm2, %v4853_v16  ;;  %v4854_v52 = vpack.c.bf16 %v2850_v25, %v2850_v25  ;;  %v2883_v60 = vmax.f32 %v2877_v31, %v2880_v26  ;;  %v2878_v21 = vmax.f32 %v2872_v15, %v2876_v45  ;;  %v2972_v40 = vld [vmem:[#allocation3 + $0xe0] ss:$2 sm:$0xff] }
 0x347   : > { %v2910_v1 = vld [vmem:[#allocation3 + $0x81] ss:$2 sm:$0xf]  ;;  %v2916_v22 = vld [vmem:[#allocation3 + $0x9c] ss:$2 sm:$0xf] }
 0x348   : > { %v2917_v41 = vmax.f32 %v2911_v50, %v2914_v58  ;;  %v2912_v63 = vmax.f32 %v2906_v17, %v2910_v1  ;;  %v2922_v27 = vld [vmem:[#allocation3 + $0x9d] ss:$2 sm:$0xf]  ;;  %2862 = vst.msk [vmem:[%s5454_s10 + $0x4] sm:$0x3] %vm2861_vm15, %v4854_v52  ;;  %v4855_v24 = vpack.c.bf16 %v2883_v60, %v2883_v60  ;;  %v2884_v12 = vmax.f32 %v2878_v21, %v2882_v23 }
 0x349   : > { %v2940_v36 = vld [vmem:[#allocation3 + $0xa9] ss:$2 sm:$0xff]  ;;  %v2938_v6 = vld [vmem:[#allocation3 + $0xb8] ss:$2 sm:$0xf] }
 0x34a   : > { %v2923_v57 = vmax.f32 %v2917_v41, %v2920_v33  ;;  %v2918_v7 = vmax.f32 %v2912_v63, %v2916_v22  ;;  %v2943_v8 = vmax.f32 %v2936_v39, %v2940_v36  ;;  %v2952_v48 = vld [vmem:[#allocation3 + $0xc5] ss:$2 sm:$0xff]  ;;  %v2894_v20 = vrot.slane %v4855_v24, 6  ;;  %v2942_v4 = vld [vmem:[#allocation3 + $0xb9] ss:$2 sm:$0xf] }
 0x34b   : > { %v4856_v61 = vpack.c.bf16 %v2884_v12, %v2884_v12  ;;  %v2944_v55 = vmax.f32 %v2938_v6, %v2942_v4  ;;  %v2948_v35 = vld [vmem:[#allocation3 + $0xd4] ss:$2 sm:$0xf]  ;;  %v2954_v37 = vld [vmem:[#allocation3 + $0xd5] ss:$2 sm:$0xf] }
 0x34c   : > { %v4857_v19 = vpack.c.bf16 %v2923_v57, %v2923_v57  ;;  %v2924_v18 = vmax.f32 %v2918_v7, %v2922_v27  ;;  %v2949_v38 = vmax.f32 %v2943_v8, %v2946_v32  ;;  %v2895_v43 = vrot.slane %v2894_v20, 4  ;;  %2901 = vst.msk [vmem:[%s5454_s10 + $0x4] sm:$0xc] %vm2900_vm4, %v2894_v20  ;;  %v2976_v49 = vld [vmem:[#allocation3 + $0xe1] ss:$2 sm:$0xff] }
 0x34d   : > { %v2896_v46 = vrot.slane %v4856_v61, 6  ;;  %v2982_v29 = vld [vmem:[#allocation3 + $0xfc] ss:$2 sm:$0xff]  ;;  %v2950_v34 = vmax.f32 %v2944_v55, %v2948_v35  ;;  %v2979_v9 = vmax.f32 %v2972_v40, %v2976_v49  ;;  %v2988_v5 = vld [vmem:[#allocation3 + $0xfd] ss:$2 sm:$0xff] }
 0x34e   : > { %2933 = vst.msk [vmem:[%s5454_s10 + $0xc] sm:$0xf] %vm2859_vm2, %v4857_v19  ;;  %v4858_v47 = vpack.c.bf16 %v2924_v18, %v2924_v18  ;;  %v2955_v54 = vmax.f32 %v2949_v38, %v2952_v48  ;;  %v2974_v53 = vld [vmem:[#allocation3 + $0xf0] ss:$2 sm:$0xf] }
 0x34f   : > { %v2897_v2 = vsel %vm6646_vm5, %v2895_v43, %v2896_v46  ;;  %v2978_v14 = vld [vmem:[#allocation3 + $0xf1] ss:$2 sm:$0xf]  ;;  %v2984_v56 = vld [vmem:[#allocation3 + $0x10c] ss:$2 sm:$0xf]  ;;  %v2956_v62 = vmax.f32 %v2950_v34, %v2954_v37  ;;  %v2985_v13 = vmax.f32 %v2979_v9, %v2982_v29 }
 0x350   : > { %2902 = vst.msk [vmem:[%s5454_s10 + $0x8] sm:$0xf] %vm2859_vm2, %v2897_v2  ;;  %v4859_v28 = vpack.c.bf16 %v2955_v54, %v2955_v54  ;;  %v2980_v10 = vmax.f32 %v2974_v53, %v2978_v14  ;;  %v2990_v26 = vld [vmem:[#allocation3 + $0x10d] ss:$2 sm:$0xf] }
 0x351   : > { %2934 = vst.msk [vmem:[%s5454_s10 + $0x10] sm:$0x3] %vm2861_vm15, %v4858_v47  ;;  %v3004_v42 = vld [vmem:[#allocation3 + $0x118] ss:$2 sm:$0xff]  ;;  %v3008_v3 = vld [vmem:[#allocation3 + $0x119] ss:$2 sm:$0xff]  ;;  %v4860_v0 = vpack.c.bf16 %v2956_v62, %v2956_v62  ;;  %v2991_v44 = vmax.f32 %v2985_v13, %v2988_v5 }
 0x352   : > { %v3014_v30 = vld [vmem:[#allocation3 + $0x134] ss:$2 sm:$0xff]  ;;  %v2963_v51 = vrot.slane %v4859_v28, 6  ;;  %v2986_v45 = vmax.f32 %v2980_v10, %v2984_v56  ;;  %v3020_v16 = vld [vmem:[#allocation3 + $0x135] ss:$2 sm:$0xff]  ;;  %v3011_v15 = vmax.f32 %v3004_v42, %v3008_v3 }
 0x353   : > { %v3006_v25 = vld [vmem:[#allocation3 + $0x128] ss:$2 sm:$0xf]  ;;  %v3040_v31 = vld [vmem:[#allocation3 + $0x150] ss:$2 sm:$0xff]  ;;  %v2965_v58 = vrot.slane %v4860_v0, 6  ;;  %v4861_v33 = vpack.c.bf16 %v2991_v44, %v2991_v44 }
 0x354   : > { %v3010_v23 = vld [vmem:[#allocation3 + $0x129] ss:$2 sm:$0xf]  ;;  %v3016_v11 = vld [vmem:[#allocation3 + $0x144] ss:$2 sm:$0xf]  ;;  %v2992_v52 = vmax.f32 %v2986_v45, %v2990_v26  ;;  %v3017_v21 = vmax.f32 %v3011_v15, %v3014_v30 }
 0x355   : > { %v2964_v50 = vrot.slane %v2963_v51, 4  ;;  %2969 = vst.msk [vmem:[%s5454_s10 + $0x10] sm:$0xc] %vm2900_vm4, %v2963_v51  ;;  %v3022_v60 = vld [vmem:[#allocation3 + $0x145] ss:$2 sm:$0xf]  ;;  %v3012_v17 = vmax.f32 %v3006_v25, %v3010_v23 }
 0x356   : > { %v3044_v1 = vld [vmem:[#allocation3 + $0x151] ss:$2 sm:$0xff]  ;;  %v3050_v41 = vld [vmem:[#allocation3 + $0x16c] ss:$2 sm:$0xff]  ;;  %3001 = vst.msk [vmem:[%s5454_s10 + $0x18] sm:$0xf] %vm2859_vm2, %v4861_v33  ;;  %v4862_v27 = vpack.c.bf16 %v2992_v52, %v2992_v52  ;;  %v3023_v36 = vmax.f32 %v3017_v21, %v3020_v16 }
 0x357   : > { %v3056_v63 = vld [vmem:[#allocation3 + $0x16d] ss:$2 sm:$0xff]  ;;  %v2966_v22 = vsel %vm6646_vm5, %v2964_v50, %v2965_v58  ;;  %v3047_v24 = vmax.f32 %v3040_v31, %v3044_v1  ;;  %v3042_v12 = vld [vmem:[#allocation3 + $0x160] ss:$2 sm:$0xf]  ;;  %v3018_v32 = vmax.f32 %v3012_v17, %v3016_v11 }
 0x358   : > { %v3046_v39 = vld [vmem:[#allocation3 + $0x161] ss:$2 sm:$0xf]  ;;  %2970 = vst.msk [vmem:[%s5454_s10 + $0x14] sm:$0xf] %vm2859_vm2, %v2966_v22  ;;  %v4863_v4 = vpack.c.bf16 %v3023_v36, %v3023_v36 }
 0x359   : > { %v3048_v57 = vmax.f32 %v3042_v12, %v3046_v39  ;;  %v3052_v7 = vld [vmem:[#allocation3 + $0x17c] ss:$2 sm:$0xf]  ;;  %v3058_v8 = vld [vmem:[#allocation3 + $0x17d] ss:$2 sm:$0xf]  ;;  %v3053_v48 = vmax.f32 %v3047_v24, %v3050_v41  ;;  %v3024_v40 = vmax.f32 %v3018_v32, %v3022_v60 }
 0x35a   : > { %3002 = vst.msk [vmem:[%s5454_s10 + $0x1c] sm:$0x3] %vm2861_vm15, %v4862_v27  ;;  %v3072_v6 = vld [vmem:[#allocation3 + $0x188] ss:$2 sm:$0xff]  ;;  %v3076_v20 = vld [vmem:[#allocation3 + $0x189] ss:$2 sm:$0xff] }
 0x35b   : > { %v3082_v61 = vld [vmem:[#allocation3 + $0x1a4] ss:$2 sm:$0xff]  ;;  %v3054_v19 = vmax.f32 %v3048_v57, %v3052_v7  ;;  %v3079_v18 = vmax.f32 %v3072_v6, %v3076_v20  ;;  %v3088_v38 = vld [vmem:[#allocation3 + $0x1a5] ss:$2 sm:$0xff]  ;;  %v3059_v35 = vmax.f32 %v3053_v48, %v3056_v63  ;;  %v3031_v46 = vrot.slane %v4863_v4, 6 }
 0x35c   : > { %v3074_v55 = vld [vmem:[#allocation3 + $0x198] ss:$2 sm:$0xf]  ;;  %v3078_v37 = vld [vmem:[#allocation3 + $0x199] ss:$2 sm:$0xf]  ;;  %v4864_v49 = vpack.c.bf16 %v3024_v40, %v3024_v40 }
 0x35d   : > { %v3084_v43 = vld [vmem:[#allocation3 + $0x1b4] ss:$2 sm:$0xf]  ;;  %v3060_v29 = vmax.f32 %v3054_v19, %v3058_v8  ;;  %v3085_v47 = vmax.f32 %v3079_v18, %v3082_v61  ;;  %v3090_v54 = vld [vmem:[#allocation3 + $0x1b5] ss:$2 sm:$0xf]  ;;  %v4865_v9 = vpack.c.bf16 %v3059_v35, %v3059_v35  ;;  %v3080_v5 = vmax.f32 %v3074_v55, %v3078_v37 }
 0x35e   : > { %v3108_v34 = vld [vmem:[#allocation3 + $0x1c0] ss:$2 sm:$0xff]  ;;  %v3112_v53 = vld [vmem:[#allocation3 + $0x1c1] ss:$2 sm:$0xff]  ;;  %v3032_v14 = vrot.slane %v3031_v46, 4  ;;  %v3033_v56 = vrot.slane %v4864_v49, 6 }
 0x35f   : > { %v3118_v2 = vld [vmem:[#allocation3 + $0x1dc] ss:$2 sm:$0xff]  ;;  %3037 = vst.msk [vmem:[%s5454_s10 + $0x1c] sm:$0xc] %vm2900_vm4, %v3031_v46  ;;  %v4866_v28 = vpack.c.bf16 %v3060_v29, %v3060_v29  ;;  %v3091_v62 = vmax.f32 %v3085_v47, %v3088_v38  ;;  %v3124_v13 = vld [vmem:[#allocation3 + $0x1dd] ss:$2 sm:$0xff]  ;;  %v3086_v26 = vmax.f32 %v3080_v5, %v3084_v43  ;;  %v3115_v42 = vmax.f32 %v3108_v34, %v3112_v53 }
 0x360   : > { %v3110_v10 = vld [vmem:[#allocation3 + $0x1d0] ss:$2 sm:$0xf]  ;;  %3069 = vst.msk [vmem:[%s5454_s10 + $0x24] sm:$0xf] %vm2859_vm2, %v4865_v9  ;;  %v3034_v51 = vsel %vm6646_vm5, %v3032_v14, %v3033_v56 }
 0x361   : > { %v3114_v3 = vld [vmem:[#allocation3 + $0x1d1] ss:$2 sm:$0xf]  ;;  %v3120_v30 = vld [vmem:[#allocation3 + $0x1ec] ss:$2 sm:$0xf]  ;;  %v4867_v0 = vpack.c.bf16 %v3091_v62, %v3091_v62  ;;  %v3092_v25 = vmax.f32 %v3086_v26, %v3090_v54  ;;  %v3121_v31 = vmax.f32 %v3115_v42, %v3118_v2 }
 0x362   : > { %3070 = vst.msk [vmem:[%s5454_s10 + $0x28] sm:$0x3] %vm2861_vm15, %v4866_v28  ;;  %v3116_v44 = vmax.f32 %v3110_v10, %v3114_v3  ;;  %v3126_v45 = vld [vmem:[#allocation3 + $0x1ed] ss:$2 sm:$0xf] }
 0x363   : > { %v3140_v16 = vld [vmem:[#allocation3 + $0x1f8] ss:$2 sm:$0xff]  ;;  %3038 = vst.msk [vmem:[%s5454_s10 + $0x20] sm:$0xf] %vm2859_vm2, %v3034_v51  ;;  %v3144_v15 = vld [vmem:[#allocation3 + $0x1f9] ss:$2 sm:$0xff]  ;;  %v4868_v21 = vpack.c.bf16 %v3092_v25, %v3092_v25  ;;  %v3127_v17 = vmax.f32 %v3121_v31, %v3124_v13 }
 0x364   : > { %v3150_v23 = vld [vmem:[#allocation3 + $0x214] ss:$2 sm:$0xff]  ;;  %v3156_v11 = vld [vmem:[#allocation3 + $0x215] ss:$2 sm:$0xff]  ;;  %v3099_v50 = vrot.slane %v4867_v0, 6  ;;  %v3122_v58 = vmax.f32 %v3116_v44, %v3120_v30  ;;  %v3147_v33 = vmax.f32 %v3140_v16, %v3144_v15 }
 0x365   : > { %v3142_v52 = vld [vmem:[#allocation3 + $0x208] ss:$2 sm:$0xf]  ;;  %v3176_v60 = vld [vmem:[#allocation3 + $0x230] ss:$2 sm:$0xff]  ;;  %v3101_v36 = vrot.slane %v4868_v21, 6  ;;  %v4869_v32 = vpack.c.bf16 %v3127_v17, %v3127_v17 }
 0x366   : > { %v3146_v1 = vld [vmem:[#allocation3 + $0x209] ss:$2 sm:$0xf]  ;;  %v3152_v41 = vld [vmem:[#allocation3 + $0x224] ss:$2 sm:$0xf]  ;;  %v3128_v22 = vmax.f32 %v3122_v58, %v3126_v45  ;;  %v3153_v27 = vmax.f32 %v3147_v33, %v3150_v23 }
 0x367   : > { %v3100_v63 = vrot.slane %v3099_v50, 4  ;;  %3105 = vst.msk [vmem:[%s5454_s10 + $0x28] sm:$0xc] %vm2900_vm4, %v3099_v50  ;;  %v3148_v24 = vmax.f32 %v3142_v52, %v3146_v1  ;;  %v3158_v12 = vld [vmem:[#allocation3 + $0x225] ss:$2 sm:$0xf] }
 0x368   : > { %v3180_v39 = vld [vmem:[#allocation3 + $0x231] ss:$2 sm:$0xff]  ;;  %v3186_v7 = vld [vmem:[#allocation3 + $0x24c] ss:$2 sm:$0xff]  ;;  %v4870_v48 = vpack.c.bf16 %v3128_v22, %v3128_v22  ;;  %v3159_v6 = vmax.f32 %v3153_v27, %v3156_v11  ;;  %3137 = vst.msk [vmem:[%s5454_s10 + $0x30] sm:$0xf] %vm2859_vm2, %v4869_v32 }
 0x369   : > { %v3183_v57 = vmax.f32 %v3176_v60, %v3180_v39  ;;  %v3192_v8 = vld [vmem:[#allocation3 + $0x24d] ss:$2 sm:$0xff]  ;;  %v3154_v20 = vmax.f32 %v3148_v24, %v3152_v41  ;;  %v3178_v61 = vld [vmem:[#allocation3 + $0x240] ss:$2 sm:$0xf]  ;;  %v3102_v40 = vsel %vm6646_vm5, %v3100_v63, %v3101_v36 }
 0x36a   : > { %v3182_v4 = vld [vmem:[#allocation3 + $0x241] ss:$2 sm:$0xf]  ;;  %v3188_v38 = vld [vmem:[#allocation3 + $0x25c] ss:$2 sm:$0xf]  ;;  %v4871_v35 = vpack.c.bf16 %v3159_v6, %v3159_v6 }
 0x36b   : > { %v3189_v19 = vmax.f32 %v3183_v57, %v3186_v7  ;;  %v3184_v18 = vmax.f32 %v3178_v61, %v3182_v4  ;;  %v3194_v55 = vld [vmem:[#allocation3 + $0x25d] ss:$2 sm:$0xf]  ;;  %3106 = vst.msk [vmem:[%s5454_s10 + $0x2c] sm:$0xf] %vm2859_vm2, %v3102_v40  ;;  %v3160_v37 = vmax.f32 %v3154_v20, %v3158_v12 }
 0x36c   : > { %3138 = vst.msk [vmem:[%s5454_s10 + $0x34] sm:$0x3] %vm2861_vm15, %v4870_v48  ;;  %v3208_v43 = vld [vmem:[#allocation3 + $0x268] ss:$2 sm:$0xff]  ;;  %v3212_v46 = vld [vmem:[#allocation3 + $0x269] ss:$2 sm:$0xff] }
 0x36d   : > { %v3218_v49 = vld [vmem:[#allocation3 + $0x284] ss:$2 sm:$0xff]  ;;  %v3195_v29 = vmax.f32 %v3189_v19, %v3192_v8  ;;  %v3190_v47 = vmax.f32 %v3184_v18, %v3188_v38  ;;  %v3215_v54 = vmax.f32 %v3208_v43, %v3212_v46  ;;  %v3224_v34 = vld [vmem:[#allocation3 + $0x285] ss:$2 sm:$0xff]  ;;  %v3167_v5 = vrot.slane %v4871_v35, 6 }
 0x36e   : > { %v3210_v9 = vld [vmem:[#allocation3 + $0x278] ss:$2 sm:$0xf]  ;;  %v4872_v53 = vpack.c.bf16 %v3160_v37, %v3160_v37  ;;  %v3214_v2 = vld [vmem:[#allocation3 + $0x279] ss:$2 sm:$0xf] }
 0x36f   : > { %v3244_v14 = vld [vmem:[#allocation3 + $0x310] ss:$2 sm:$0xff]  ;;  %v4873_v56 = vpack.c.bf16 %v3195_v29, %v3195_v29  ;;  %v3196_v28 = vmax.f32 %v3190_v47, %v3194_v55  ;;  %v3221_v62 = vmax.f32 %v3215_v54, %v3218_v49  ;;  %v3216_v13 = vmax.f32 %v3210_v9, %v3214_v2  ;;  %v3226_v26 = vld [vmem:[#allocation3 + $0x295] ss:$2 sm:$0xf] }
 0x370   : > { %v3220_v10 = vld [vmem:[#allocation3 + $0x294] ss:$2 sm:$0xf]  ;;  %v3168_v42 = vrot.slane %v3167_v5, 4  ;;  %3173 = vst.msk [vmem:[%s5454_s10 + $0x34] sm:$0xc] %vm2900_vm4, %v3167_v5 }
 0x371   : > { %v3169_v3 = vrot.slane %v4872_v53, 6  ;;  %v3248_v30 = vld [vmem:[#allocation3 + $0x311] ss:$2 sm:$0xff]  ;;  %v3254_v51 = vld [vmem:[#allocation3 + $0x32c] ss:$2 sm:$0xff]  ;;  %v4874_v0 = vpack.c.bf16 %v3196_v28, %v3196_v28  ;;  %v3227_v44 = vmax.f32 %v3221_v62, %v3224_v34  ;;  %v3222_v45 = vmax.f32 %v3216_v13, %v3220_v10 }
 0x372   : > { %3205 = vst.msk [vmem:[%s5454_s10 + $0x3c] sm:$0xf] %vm2859_vm2, %v4873_v56  ;;  %v3251_v16 = vmax.f32 %v3244_v14, %v3248_v30  ;;  %v3260_v25 = vld [vmem:[#allocation3 + $0x32d] ss:$2 sm:$0xff]  ;;  %v3276_v21 = vld [vmem:[#allocation3 + $0x348] ss:$2 sm:$0xff] }
 0x373   : > { %v3246_v31 = vld [vmem:[#allocation3 + $0x320] ss:$2 sm:$0xf]  ;;  %v3170_v15 = vsel %vm6646_vm5, %v3168_v42, %v3169_v3  ;;  %v3250_v23 = vld [vmem:[#allocation3 + $0x321] ss:$2 sm:$0xf]  ;;  %v4875_v50 = vpack.c.bf16 %v3227_v44, %v3227_v44  ;;  %v3228_v58 = vmax.f32 %v3222_v45, %v3226_v26 }
 0x374   : > { %v3256_v11 = vld [vmem:[#allocation3 + $0x33c] ss:$2 sm:$0xf]  ;;  %3174 = vst.msk [vmem:[%s5454_s10 + $0x38] sm:$0xf] %vm2859_vm2, %v3170_v15  ;;  %v3257_v33 = vmax.f32 %v3251_v16, %v3254_v51  ;;  %v3252_v52 = vmax.f32 %v3246_v31, %v3250_v23 }
 0x375   : > { %3206 = vst.msk [vmem:[%s5454_s10 + $0x40] sm:$0x3] %vm2861_vm15, %v4874_v0  ;;  %v3262_v60 = vld [vmem:[#allocation3 + $0x33d] ss:$2 sm:$0xf]  ;;  %v3235_v41 = vrot.slane %v4875_v50, 6  ;;  %v4876_v63 = vpack.c.bf16 %v3228_v58, %v3228_v58 }
 0x376   : > { %v3280_v17 = vld [vmem:[#allocation3 + $0x349] ss:$2 sm:$0xff]  ;;  %v3286_v1 = vld [vmem:[#allocation3 + $0x364] ss:$2 sm:$0xff]  ;;  %v3263_v22 = vmax.f32 %v3257_v33, %v3260_v25  ;;  %v3258_v27 = vmax.f32 %v3252_v52, %v3256_v11  ;;  %v3348_v5 = vld [vmem:[#allocation3 + $0x3b9] ss:$2 sm:$0xff] }
 0x377   : > { %v3292_v24 = vld [vmem:[#allocation3 + $0x365] ss:$2 sm:$0xff]  ;;  %v3278_v12 = vld [vmem:[#allocation3 + $0x358] ss:$2 sm:$0xf]  ;;  %v3283_v36 = vmax.f32 %v3276_v21, %v3280_v17  ;;  %v3236_v7 = vrot.slane %v3235_v41, 4 }
 0x378   : > { %v3312_v39 = vld [vmem:[#allocation3 + $0x380] ss:$2 sm:$0xff]  ;;  %v3282_v32 = vld [vmem:[#allocation3 + $0x359] ss:$2 sm:$0xf]  ;;  %v3237_v8 = vrot.slane %v4876_v63, 6  ;;  %v4877_v48 = vpack.c.bf16 %v3263_v22, %v3263_v22  ;;  %v3264_v6 = vmax.f32 %v3258_v27, %v3262_v60 }
 0x379   : > { %v3288_v57 = vld [vmem:[#allocation3 + $0x374] ss:$2 sm:$0xf]  ;;  %3241 = vst.msk [vmem:[%s5454_s10 + $0x40] sm:$0xc] %vm2900_vm4, %v3235_v41  ;;  %v3289_v61 = vmax.f32 %v3283_v36, %v3286_v1  ;;  %v3284_v4 = vmax.f32 %v3278_v12, %v3282_v32 }
 0x37a   : > { %v3294_v20 = vld [vmem:[#allocation3 + $0x375] ss:$2 sm:$0xf]  ;;  %v3316_v40 = vld [vmem:[#allocation3 + $0x381] ss:$2 sm:$0xff]  ;;  %v3238_v38 = vsel %vm6646_vm5, %v3236_v7, %v3237_v8  ;;  %v4878_v55 = vpack.c.bf16 %v3264_v6, %v3264_v6 }
 0x37b   : > { %v3322_v19 = vld [vmem:[#allocation3 + $0x39c] ss:$2 sm:$0xff]  ;;  %v3328_v18 = vld [vmem:[#allocation3 + $0x39d] ss:$2 sm:$0xff]  ;;  %3273 = vst.msk [vmem:[%s5454_s10 + $0x48] sm:$0xf] %vm2859_vm2, %v4877_v48  ;;  %v3319_v35 = vmax.f32 %v3312_v39, %v3316_v40  ;;  %v3295_v46 = vmax.f32 %v3289_v61, %v3292_v24  ;;  %v3290_v49 = vmax.f32 %v3284_v4, %v3288_v57 }
 0x37c   : > { %v3314_v37 = vld [vmem:[#allocation3 + $0x390] ss:$2 sm:$0xf]  ;;  %v3318_v43 = vld [vmem:[#allocation3 + $0x391] ss:$2 sm:$0xf] }
 0x37d   : > { %3242 = vst.msk [vmem:[%s5454_s10 + $0x44] sm:$0xf] %vm2859_vm2, %v3238_v38  ;;  %v3320_v29 = vmax.f32 %v3314_v37, %v3318_v43  ;;  %v3324_v47 = vld [vmem:[#allocation3 + $0x3ac] ss:$2 sm:$0xf]  ;;  %v3325_v34 = vmax.f32 %v3319_v35, %v3322_v19  ;;  %v4879_v2 = vpack.c.bf16 %v3295_v46, %v3295_v46  ;;  %v3296_v14 = vmax.f32 %v3290_v49, %v3294_v20 }
 0x37e   : > { %v3330_v54 = vld [vmem:[#allocation3 + $0x3ad] ss:$2 sm:$0xf]  ;;  %3274 = vst.msk [vmem:[%s5454_s10 + $0x4c] sm:$0x3] %vm2861_vm15, %v4878_v55 }
 0x37f   : > { %v3344_v9 = vld [vmem:[#allocation3 + $0x3b8] ss:$2 sm:$0xff]  ;;  %v3326_v56 = vmax.f32 %v3320_v29, %v3324_v47  ;;  %v3360_v62 = vld [vmem:[#allocation3 + $0x3d5] ss:$2 sm:$0xff]  ;;  %v3331_v10 = vmax.f32 %v3325_v34, %v3328_v18  ;;  %v3303_v3 = vrot.slane %v4879_v2, 6  ;;  %v4880_v30 = vpack.c.bf16 %v3296_v14, %v3296_v14 }
 0x380   : > { %v3354_v53 = vld [vmem:[#allocation3 + $0x3d4] ss:$2 sm:$0xff]  ;;  %v3351_v28 = vmax.f32 %v3344_v9, %v3348_v5  ;;  %v3346_v13 = vld [vmem:[#allocation3 + $0x3c8] ss:$2 sm:$0xf] }
 0x381   : > { %v3350_v26 = vld [vmem:[#allocation3 + $0x3c9] ss:$2 sm:$0xf]  ;;  %v3356_v42 = vld [vmem:[#allocation3 + $0x3e4] ss:$2 sm:$0xf]  ;;  %v3332_v51 = vmax.f32 %v3326_v56, %v3330_v54  ;;  %v4881_v16 = vpack.c.bf16 %v3331_v10, %v3331_v10 }
 0x382   : > { %v3357_v0 = vmax.f32 %v3351_v28, %v3354_v53  ;;  %v3362_v44 = vld [vmem:[#allocation3 + $0x3e5] ss:$2 sm:$0xf]  ;;  %v3380_v45 = vld [vmem:[#allocation3 + $0x3f0] ss:$2 sm:$0xff]  ;;  %v3352_v25 = vmax.f32 %v3346_v13, %v3350_v26  ;;  %v3304_v23 = vrot.slane %v3303_v3, 4 }
 0x383   : > { %v3384_v31 = vld [vmem:[#allocation3 + $0x3f1] ss:$2 sm:$0xff]  ;;  %v3390_v15 = vld [vmem:[#allocation3 + $0x40c] ss:$2 sm:$0xff]  ;;  %3309 = vst.msk [vmem:[%s5454_s10 + $0x4c] sm:$0xc] %vm2900_vm4, %v3303_v3  ;;  %v4882_v50 = vpack.c.bf16 %v3332_v51, %v3332_v51 }
 0x384   : > { %v3305_v11 = vrot.slane %v4880_v30, 6  ;;  %v3363_v58 = vmax.f32 %v3357_v0, %v3360_v62  ;;  %v3396_v33 = vld [vmem:[#allocation3 + $0x40d] ss:$2 sm:$0xff]  ;;  %v3382_v52 = vld [vmem:[#allocation3 + $0x400] ss:$2 sm:$0xf]  ;;  %v3358_v60 = vmax.f32 %v3352_v25, %v3356_v42  ;;  %v3387_v21 = vmax.f32 %v3380_v45, %v3384_v31 }
 0x385   : > { %3341 = vst.msk [vmem:[%s5454_s10 + $0x54] sm:$0xf] %vm2859_vm2, %v4881_v16  ;;  %v3386_v17 = vld [vmem:[#allocation3 + $0x401] ss:$2 sm:$0xf] }
 0x386   : > { %v3392_v1 = vld [vmem:[#allocation3 + $0x41c] ss:$2 sm:$0xf]  ;;  %v3306_v41 = vsel %vm6646_vm5, %v3304_v23, %v3305_v11  ;;  %3342 = vst.msk [vmem:[%s5454_s10 + $0x58] sm:$0x3] %vm2861_vm15, %v4882_v50  ;;  %v4883_v63 = vpack.c.bf16 %v3363_v58, %v3363_v58  ;;  %v3388_v22 = vmax.f32 %v3382_v52, %v3386_v17  ;;  %v3364_v12 = vmax.f32 %v3358_v60, %v3362_v44 }
 0x387   : > { %v3398_v27 = vld [vmem:[#allocation3 + $0x41d] ss:$2 sm:$0xf]  ;;  %v3412_v24 = vld [vmem:[#allocation3 + $0x428] ss:$2 sm:$0xff]  ;;  %v3393_v39 = vmax.f32 %v3387_v21, %v3390_v15 }
 0x388   : > { %3310 = vst.msk [vmem:[%s5454_s10 + $0x50] sm:$0xf] %vm2859_vm2, %v3306_v41  ;;  %v3416_v36 = vld [vmem:[#allocation3 + $0x429] ss:$2 sm:$0xff]  ;;  %v3422_v32 = vld [vmem:[#allocation3 + $0x444] ss:$2 sm:$0xff]  ;;  %v3394_v8 = vmax.f32 %v3388_v22, %v3392_v1  ;;  %v4884_v61 = vpack.c.bf16 %v3364_v12, %v3364_v12 }
 0x389   : > { %v3428_v57 = vld [vmem:[#allocation3 + $0x445] ss:$2 sm:$0xff]  ;;  %v3371_v7 = vrot.slane %v4883_v63, 6  ;;  %v3419_v48 = vmax.f32 %v3412_v24, %v3416_v36  ;;  %v3414_v6 = vld [vmem:[#allocation3 + $0x438] ss:$2 sm:$0xf]  ;;  %v3399_v4 = vmax.f32 %v3393_v39, %v3396_v33 }
 0x38a   : > { %v3448_v20 = vld [vmem:[#allocation3 + $0x460] ss:$2 sm:$0xff]  ;;  %v3418_v40 = vld [vmem:[#allocation3 + $0x439] ss:$2 sm:$0xf]  ;;  %v3400_v38 = vmax.f32 %v3394_v8, %v3398_v27  ;;  %v3373_v46 = vrot.slane %v4884_v61, 6 }
 0x38b   : > { %v3424_v19 = vld [vmem:[#allocation3 + $0x454] ss:$2 sm:$0xf]  ;;  %v3372_v18 = vrot.slane %v3371_v7, 4  ;;  %3377 = vst.msk [vmem:[%s5454_s10 + $0x58] sm:$0xc] %vm2900_vm4, %v3371_v7  ;;  %v3425_v55 = vmax.f32 %v3419_v48, %v3422_v32  ;;  %v3420_v35 = vmax.f32 %v3414_v6, %v3418_v40  ;;  %v4885_v49 = vpack.c.bf16 %v3399_v4, %v3399_v4 }
 0x38c   : > { %v3430_v37 = vld [vmem:[#allocation3 + $0x455] ss:$2 sm:$0xf]  ;;  %v3452_v43 = vld [vmem:[#allocation3 + $0x461] ss:$2 sm:$0xff]  ;;  %v4886_v34 = vpack.c.bf16 %v3400_v38, %v3400_v38 }
 0x38d   : > { %v3455_v29 = vmax.f32 %v3448_v20, %v3452_v43  ;;  %v3458_v47 = vld [vmem:[#allocation3 + $0x47c] ss:$2 sm:$0xff]  ;;  %v3464_v54 = vld [vmem:[#allocation3 + $0x47d] ss:$2 sm:$0xff]  ;;  %v3431_v9 = vmax.f32 %v3425_v55, %v3428_v57  ;;  %v3426_v5 = vmax.f32 %v3420_v35, %v3424_v19  ;;  %v3374_v14 = vsel %vm6646_vm5, %v3372_v18, %v3373_v46  ;;  %3409 = vst.msk [vmem:[%s5454_s10 + $0x60] sm:$0xf] %vm2859_vm2, %v4885_v49 }
 0x38e   : > { %v3450_v53 = vld [vmem:[#allocation3 + $0x470] ss:$2 sm:$0xf]  ;;  %v3454_v2 = vld [vmem:[#allocation3 + $0x471] ss:$2 sm:$0xf] }
 0x38f   : > { %v3461_v56 = vmax.f32 %v3455_v29, %v3458_v47  ;;  %v3456_v28 = vmax.f32 %v3450_v53, %v3454_v2  ;;  %v3460_v62 = vld [vmem:[#allocation3 + $0x48c] ss:$2 sm:$0xf]  ;;  %v3466_v13 = vld [vmem:[#allocation3 + $0x48d] ss:$2 sm:$0xf]  ;;  %v4887_v10 = vpack.c.bf16 %v3431_v9, %v3431_v9  ;;  %v3432_v26 = vmax.f32 %v3426_v5, %v3430_v37 }
 0x390   : > { %3378 = vst.msk [vmem:[%s5454_s10 + $0x5c] sm:$0xf] %vm2859_vm2, %v3374_v14  ;;  %v3480_v42 = vld [vmem:[#allocation3 + $0x498] ss:$2 sm:$0xff]  ;;  %v3484_v3 = vld [vmem:[#allocation3 + $0x499] ss:$2 sm:$0xff] }
 0x391   : > { %3410 = vst.msk [vmem:[%s5454_s10 + $0x64] sm:$0x3] %vm2861_vm15, %v4886_v34  ;;  %v3490_v30 = vld [vmem:[#allocation3 + $0x4b4] ss:$2 sm:$0xff]  ;;  %v3467_v51 = vmax.f32 %v3461_v56, %v3464_v54  ;;  %v3462_v0 = vmax.f32 %v3456_v28, %v3460_v62  ;;  %v3487_v44 = vmax.f32 %v3480_v42, %v3484_v3  ;;  %v3496_v45 = vld [vmem:[#allocation3 + $0x4b5] ss:$2 sm:$0xff]  ;;  %v4888_v31 = vpack.c.bf16 %v3432_v26, %v3432_v26 }
 0x392   : > { %v3482_v16 = vld [vmem:[#allocation3 + $0x4a8] ss:$2 sm:$0xf]  ;;  %v3439_v25 = vrot.slane %v4887_v10, 6  ;;  %v3516_v23 = vld [vmem:[#allocation3 + $0x4d0] ss:$2 sm:$0xff] }
 0x393   : > { %v3486_v15 = vld [vmem:[#allocation3 + $0x4a9] ss:$2 sm:$0xf]  ;;  %v4889_v11 = vpack.c.bf16 %v3467_v51, %v3467_v51  ;;  %v3468_v50 = vmax.f32 %v3462_v0, %v3466_v13  ;;  %v3493_v58 = vmax.f32 %v3487_v44, %v3490_v30  ;;  %v3492_v52 = vld [vmem:[#allocation3 + $0x4c4] ss:$2 sm:$0xf] }
 0x394   : > { %v3488_v33 = vmax.f32 %v3482_v16, %v3486_v15  ;;  %v3498_v60 = vld [vmem:[#allocation3 + $0x4c5] ss:$2 sm:$0xf]  ;;  %v3440_v21 = vrot.slane %v3439_v25, 4  ;;  %3445 = vst.msk [vmem:[%s5454_s10 + $0x64] sm:$0xc] %vm2900_vm4, %v3439_v25 }
 0x395   : > { %v3441_v17 = vrot.slane %v4888_v31, 6  ;;  %v3520_v1 = vld [vmem:[#allocation3 + $0x4d1] ss:$2 sm:$0xff]  ;;  %v3526_v41 = vld [vmem:[#allocation3 + $0x4ec] ss:$2 sm:$0xff]  ;;  %v4890_v63 = vpack.c.bf16 %v3468_v50, %v3468_v50  ;;  %v3499_v22 = vmax.f32 %v3493_v58, %v3496_v45 }
 0x396   : > { %3477 = vst.msk [vmem:[%s5454_s10 + $0x6c] sm:$0xf] %vm2859_vm2, %v4889_v11  ;;  %v3494_v27 = vmax.f32 %v3488_v33, %v3492_v52  ;;  %v3523_v24 = vmax.f32 %v3516_v23, %v3520_v1  ;;  %v3532_v12 = vld [vmem:[#allocation3 + $0x4ed] ss:$2 sm:$0xff]  ;;  %v3548_v61 = vld [vmem:[#allocation3 + $0x508] ss:$2 sm:$0xff] }
 0x397   : > { %v3518_v39 = vld [vmem:[#allocation3 + $0x4e0] ss:$2 sm:$0xf]  ;;  %v3442_v36 = vsel %vm6646_vm5, %v3440_v21, %v3441_v17  ;;  %v3522_v32 = vld [vmem:[#allocation3 + $0x4e1] ss:$2 sm:$0xf]  ;;  %v4891_v7 = vpack.c.bf16 %v3499_v22, %v3499_v22 }
 0x398   : > { %v3528_v57 = vld [vmem:[#allocation3 + $0x4fc] ss:$2 sm:$0xf]  ;;  %3446 = vst.msk [vmem:[%s5454_s10 + $0x68] sm:$0xf] %vm2859_vm2, %v3442_v36  ;;  %v3500_v8 = vmax.f32 %v3494_v27, %v3498_v60  ;;  %v3529_v48 = vmax.f32 %v3523_v24, %v3526_v41  ;;  %v3524_v6 = vmax.f32 %v3518_v39, %v3522_v32 }
 0x399   : > { %3478 = vst.msk [vmem:[%s5454_s10 + $0x70] sm:$0x3] %vm2861_vm15, %v4890_v63  ;;  %v3534_v20 = vld [vmem:[#allocation3 + $0x4fd] ss:$2 sm:$0xf]  ;;  %v3507_v19 = vrot.slane %v4891_v7, 6 }
 0x39a   : > { %v3552_v4 = vld [vmem:[#allocation3 + $0x509] ss:$2 sm:$0xff]  ;;  %v3558_v40 = vld [vmem:[#allocation3 + $0x524] ss:$2 sm:$0xff]  ;;  %v4892_v18 = vpack.c.bf16 %v3500_v8, %v3500_v8  ;;  %v3535_v38 = vmax.f32 %v3529_v48, %v3532_v12  ;;  %v3530_v55 = vmax.f32 %v3524_v6, %v3528_v57  ;;  %v3620_v25 = vld [vmem:[#allocation3 + $0x579] ss:$2 sm:$0xff] }
 0x39b   : > { %v3564_v35 = vld [vmem:[#allocation3 + $0x525] ss:$2 sm:$0xff]  ;;  %v3550_v37 = vld [vmem:[#allocation3 + $0x518] ss:$2 sm:$0xf]  ;;  %v3555_v46 = vmax.f32 %v3548_v61, %v3552_v4  ;;  %v3508_v47 = vrot.slane %v3507_v19, 4 }
 0x39c   : > { %v3584_v43 = vld [vmem:[#allocation3 + $0x540] ss:$2 sm:$0xff]  ;;  %v3554_v49 = vld [vmem:[#allocation3 + $0x519] ss:$2 sm:$0xf]  ;;  %v3509_v54 = vrot.slane %v4892_v18, 6  ;;  %v4893_v34 = vpack.c.bf16 %v3535_v38, %v3535_v38  ;;  %v3536_v9 = vmax.f32 %v3530_v55, %v3534_v20 }
 0x39d   : > { %v3560_v29 = vld [vmem:[#allocation3 + $0x534] ss:$2 sm:$0xf]  ;;  %3513 = vst.msk [vmem:[%s5454_s10 + $0x70] sm:$0xc] %vm2900_vm4, %v3507_v19  ;;  %v3561_v53 = vmax.f32 %v3555_v46, %v3558_v40  ;;  %v3556_v2 = vmax.f32 %v3550_v37, %v3554_v49 }
 0x39e   : > { %v3566_v5 = vld [vmem:[#allocation3 + $0x535] ss:$2 sm:$0xf]  ;;  %v3588_v14 = vld [vmem:[#allocation3 + $0x541] ss:$2 sm:$0xff]  ;;  %v3510_v62 = vsel %vm6646_vm5, %v3508_v47, %v3509_v54  ;;  %v4894_v13 = vpack.c.bf16 %v3536_v9, %v3536_v9 }
 0x39f   : > { %v3594_v56 = vld [vmem:[#allocation3 + $0x55c] ss:$2 sm:$0xff]  ;;  %v3600_v28 = vld [vmem:[#allocation3 + $0x55d] ss:$2 sm:$0xff]  ;;  %3545 = vst.msk [vmem:[%s5454_s10 + $0x78] sm:$0xf] %vm2859_vm2, %v4893_v34  ;;  %v3591_v10 = vmax.f32 %v3584_v43, %v3588_v14  ;;  %v3567_v3 = vmax.f32 %v3561_v53, %v3564_v35  ;;  %v3562_v30 = vmax.f32 %v3556_v2, %v3560_v29 }
 0x3a0   : > { %v3586_v26 = vld [vmem:[#allocation3 + $0x550] ss:$2 sm:$0xf]  ;;  %v3590_v42 = vld [vmem:[#allocation3 + $0x551] ss:$2 sm:$0xf] }
 0x3a1   : > { %3514 = vst.msk [vmem:[%s5454_s10 + $0x74] sm:$0xf] %vm2859_vm2, %v3510_v62  ;;  %v3592_v51 = vmax.f32 %v3586_v26, %v3590_v42  ;;  %v3596_v0 = vld [vmem:[#allocation3 + $0x56c] ss:$2 sm:$0xf]  ;;  %v3597_v45 = vmax.f32 %v3591_v10, %v3594_v56  ;;  %v4895_v15 = vpack.c.bf16 %v3567_v3, %v3567_v3  ;;  %v3568_v23 = vmax.f32 %v3562_v30, %v3566_v5 }
 0x3a2   : > { %v3602_v44 = vld [vmem:[#allocation3 + $0x56d] ss:$2 sm:$0xf]  ;;  %3546 = vst.msk [vmem:[%s5454_s10 + $0x7c] sm:$0x3] %vm2861_vm15, %v4894_v13 }
 0x3a3   : > { %v3616_v16 = vld [vmem:[#allocation3 + $0x578] ss:$2 sm:$0xff]  ;;  %v3598_v11 = vmax.f32 %v3592_v51, %v3596_v0  ;;  %v3632_v58 = vld [vmem:[#allocation3 + $0x595] ss:$2 sm:$0xff]  ;;  %v3603_v52 = vmax.f32 %v3597_v45, %v3600_v28  ;;  %v3575_v17 = vrot.slane %v4895_v15, 6  ;;  %v4896_v1 = vpack.c.bf16 %v3568_v23, %v3568_v23 }
 0x3a4   : > { %v3626_v31 = vld [vmem:[#allocation3 + $0x594] ss:$2 sm:$0xff]  ;;  %v3623_v50 = vmax.f32 %v3616_v16, %v3620_v25  ;;  %v3618_v33 = vld [vmem:[#allocation3 + $0x588] ss:$2 sm:$0xf] }
 0x3a5   : > { %v3622_v60 = vld [vmem:[#allocation3 + $0x589] ss:$2 sm:$0xf]  ;;  %v3628_v21 = vld [vmem:[#allocation3 + $0x5a4] ss:$2 sm:$0xf]  ;;  %v3604_v41 = vmax.f32 %v3598_v11, %v3602_v44  ;;  %v4897_v24 = vpack.c.bf16 %v3603_v52, %v3603_v52 }
 0x3a6   : > { %v3629_v63 = vmax.f32 %v3623_v50, %v3626_v31  ;;  %v3634_v22 = vld [vmem:[#allocation3 + $0x5a5] ss:$2 sm:$0xf]  ;;  %v3652_v27 = vld [vmem:[#allocation3 + $0x620] ss:$2 sm:$0xff]  ;;  %v3624_v12 = vmax.f32 %v3618_v33, %v3622_v60  ;;  %v3576_v32 = vrot.slane %v3575_v17, 4 }
 0x3a7   : > { %v3656_v39 = vld [vmem:[#allocation3 + $0x621] ss:$2 sm:$0xff]  ;;  %v3662_v36 = vld [vmem:[#allocation3 + $0x63c] ss:$2 sm:$0xff]  ;;  %3581 = vst.msk [vmem:[%s5454_s10 + $0x7c] sm:$0xc] %vm2900_vm4, %v3575_v17  ;;  %v4898_v7 = vpack.c.bf16 %v3604_v41, %v3604_v41 }
 0x3a8   : > { %v3577_v57 = vrot.slane %v4896_v1, 6  ;;  %v3635_v8 = vmax.f32 %v3629_v63, %v3632_v58  ;;  %v3668_v48 = vld [vmem:[#allocation3 + $0x63d] ss:$2 sm:$0xff]  ;;  %v3654_v6 = vld [vmem:[#allocation3 + $0x630] ss:$2 sm:$0xf]  ;;  %v3630_v20 = vmax.f32 %v3624_v12, %v3628_v21  ;;  %v3659_v61 = vmax.f32 %v3652_v27, %v3656_v39 }
 0x3a9   : > { %3613 = vst.msk [vmem:[%s5454_s10 + $0x84] sm:$0xf] %vm2859_vm2, %v4897_v24  ;;  %v3658_v4 = vld [vmem:[#allocation3 + $0x631] ss:$2 sm:$0xf] }
 0x3aa   : > { %v3664_v40 = vld [vmem:[#allocation3 + $0x64c] ss:$2 sm:$0xf]  ;;  %v3578_v19 = vsel %vm6646_vm5, %v3576_v32, %v3577_v57  ;;  %3614 = vst.msk [vmem:[%s5454_s10 + $0x88] sm:$0x3] %vm2861_vm15, %v4898_v7  ;;  %v4899_v18 = vpack.c.bf16 %v3635_v8, %v3635_v8  ;;  %v3660_v38 = vmax.f32 %v3654_v6, %v3658_v4  ;;  %v3636_v37 = vmax.f32 %v3630_v20, %v3634_v22 }
 0x3ab   : > { %v3670_v55 = vld [vmem:[#allocation3 + $0x64d] ss:$2 sm:$0xf]  ;;  %v3684_v35 = vld [vmem:[#allocation3 + $0x658] ss:$2 sm:$0xff]  ;;  %v3665_v43 = vmax.f32 %v3659_v61, %v3662_v36 }
 0x3ac   : > { %3582 = vst.msk [vmem:[%s5454_s10 + $0x80] sm:$0xf] %vm2859_vm2, %v3578_v19  ;;  %v3688_v46 = vld [vmem:[#allocation3 + $0x659] ss:$2 sm:$0xff]  ;;  %v3694_v49 = vld [vmem:[#allocation3 + $0x674] ss:$2 sm:$0xff]  ;;  %v3666_v54 = vmax.f32 %v3660_v38, %v3664_v40  ;;  %v4900_v53 = vpack.c.bf16 %v3636_v37, %v3636_v37 }
 0x3ad   : > { %v3700_v29 = vld [vmem:[#allocation3 + $0x675] ss:$2 sm:$0xff]  ;;  %v3643_v47 = vrot.slane %v4899_v18, 6  ;;  %v3691_v34 = vmax.f32 %v3684_v35, %v3688_v46  ;;  %v3686_v9 = vld [vmem:[#allocation3 + $0x668] ss:$2 sm:$0xf]  ;;  %v3671_v2 = vmax.f32 %v3665_v43, %v3668_v48 }
 0x3ae   : > { %v3720_v5 = vld [vmem:[#allocation3 + $0x690] ss:$2 sm:$0xff]  ;;  %v3690_v14 = vld [vmem:[#allocation3 + $0x669] ss:$2 sm:$0xf]  ;;  %v3672_v62 = vmax.f32 %v3666_v54, %v3670_v55  ;;  %v3645_v3 = vrot.slane %v4900_v53, 6 }
 0x3af   : > { %v3696_v56 = vld [vmem:[#allocation3 + $0x684] ss:$2 sm:$0xf]  ;;  %v3644_v28 = vrot.slane %v3643_v47, 4  ;;  %3649 = vst.msk [vmem:[%s5454_s10 + $0x88] sm:$0xc] %vm2900_vm4, %v3643_v47  ;;  %v3697_v13 = vmax.f32 %v3691_v34, %v3694_v49  ;;  %v3692_v10 = vmax.f32 %v3686_v9, %v3690_v14  ;;  %v4901_v30 = vpack.c.bf16 %v3671_v2, %v3671_v2 }
 0x3b0   : > { %v3702_v26 = vld [vmem:[#allocation3 + $0x685] ss:$2 sm:$0xf]  ;;  %v3724_v42 = vld [vmem:[#allocation3 + $0x691] ss:$2 sm:$0xff]  ;;  %v4902_v45 = vpack.c.bf16 %v3672_v62, %v3672_v62 }
 0x3b1   : > { %v3727_v51 = vmax.f32 %v3720_v5, %v3724_v42  ;;  %v3730_v0 = vld [vmem:[#allocation3 + $0x6ac] ss:$2 sm:$0xff]  ;;  %v3736_v44 = vld [vmem:[#allocation3 + $0x6ad] ss:$2 sm:$0xff]  ;;  %v3703_v16 = vmax.f32 %v3697_v13, %v3700_v29  ;;  %v3698_v25 = vmax.f32 %v3692_v10, %v3696_v56  ;;  %v3646_v23 = vsel %vm6646_vm5, %v3644_v28, %v3645_v3  ;;  %3681 = vst.msk [vmem:[%s5454_s10 + $0x90] sm:$0xf] %vm2859_vm2, %v4901_v30 }
 0x3b2   : > { %v3722_v31 = vld [vmem:[#allocation3 + $0x6a0] ss:$2 sm:$0xf]  ;;  %v3726_v15 = vld [vmem:[#allocation3 + $0x6a1] ss:$2 sm:$0xf] }
 0x3b3   : > { %v3733_v11 = vmax.f32 %v3727_v51, %v3730_v0  ;;  %v3728_v50 = vmax.f32 %v3722_v31, %v3726_v15  ;;  %v3732_v58 = vld [vmem:[#allocation3 + $0x6bc] ss:$2 sm:$0xf]  ;;  %v3738_v33 = vld [vmem:[#allocation3 + $0x6bd] ss:$2 sm:$0xf]  ;;  %v4903_v52 = vpack.c.bf16 %v3703_v16, %v3703_v16  ;;  %v3704_v60 = vmax.f32 %v3698_v25, %v3702_v26 }
 0x3b4   : > { %3650 = vst.msk [vmem:[%s5454_s10 + $0x8c] sm:$0xf] %vm2859_vm2, %v3646_v23  ;;  %v3752_v21 = vld [vmem:[#allocation3 + $0x6c8] ss:$2 sm:$0xff]  ;;  %v3756_v17 = vld [vmem:[#allocation3 + $0x6c9] ss:$2 sm:$0xff] }
 0x3b5   : > { %3682 = vst.msk [vmem:[%s5454_s10 + $0x94] sm:$0x3] %vm2861_vm15, %v4902_v45  ;;  %v3762_v1 = vld [vmem:[#allocation3 + $0x6e4] ss:$2 sm:$0xff]  ;;  %v3739_v41 = vmax.f32 %v3733_v11, %v3736_v44  ;;  %v3734_v63 = vmax.f32 %v3728_v50, %v3732_v58  ;;  %v3759_v22 = vmax.f32 %v3752_v21, %v3756_v17  ;;  %v3768_v27 = vld [vmem:[#allocation3 + $0x6e5] ss:$2 sm:$0xff]  ;;  %v4904_v39 = vpack.c.bf16 %v3704_v60, %v3704_v60 }
 0x3b6   : > { %v3754_v24 = vld [vmem:[#allocation3 + $0x6d8] ss:$2 sm:$0xf]  ;;  %v3711_v12 = vrot.slane %v4903_v52, 6  ;;  %v3788_v32 = vld [vmem:[#allocation3 + $0x700] ss:$2 sm:$0xff] }
 0x3b7   : > { %v3758_v36 = vld [vmem:[#allocation3 + $0x6d9] ss:$2 sm:$0xf]  ;;  %v4905_v57 = vpack.c.bf16 %v3739_v41, %v3739_v41  ;;  %v3740_v7 = vmax.f32 %v3734_v63, %v3738_v33  ;;  %v3765_v8 = vmax.f32 %v3759_v22, %v3762_v1  ;;  %v3764_v6 = vld [vmem:[#allocation3 + $0x6f4] ss:$2 sm:$0xf] }
 0x3b8   : > { %v3760_v48 = vmax.f32 %v3754_v24, %v3758_v36  ;;  %v3770_v20 = vld [vmem:[#allocation3 + $0x6f5] ss:$2 sm:$0xf]  ;;  %v3712_v61 = vrot.slane %v3711_v12, 4  ;;  %3717 = vst.msk [vmem:[%s5454_s10 + $0x94] sm:$0xc] %vm2900_vm4, %v3711_v12 }
 0x3b9   : > { %v3713_v4 = vrot.slane %v4904_v39, 6  ;;  %v3792_v40 = vld [vmem:[#allocation3 + $0x701] ss:$2 sm:$0xff]  ;;  %v3798_v19 = vld [vmem:[#allocation3 + $0x71c] ss:$2 sm:$0xff]  ;;  %v4906_v18 = vpack.c.bf16 %v3740_v7, %v3740_v7  ;;  %v3771_v38 = vmax.f32 %v3765_v8, %v3768_v27 }
 0x3ba   : > { %3749 = vst.msk [vmem:[%s5454_s10 + $0x9c] sm:$0xf] %vm2859_vm2, %v4905_v57  ;;  %v3766_v55 = vmax.f32 %v3760_v48, %v3764_v6  ;;  %v3795_v35 = vmax.f32 %v3788_v32, %v3792_v40  ;;  %v3804_v37 = vld [vmem:[#allocation3 + $0x71d] ss:$2 sm:$0xff]  ;;  %v3820_v53 = vld [vmem:[#allocation3 + $0x738] ss:$2 sm:$0xff] }
 0x3bb   : > { %v3790_v43 = vld [vmem:[#allocation3 + $0x710] ss:$2 sm:$0xf]  ;;  %v3714_v46 = vsel %vm6646_vm5, %v3712_v61, %v3713_v4  ;;  %v3794_v49 = vld [vmem:[#allocation3 + $0x711] ss:$2 sm:$0xf]  ;;  %v4907_v47 = vpack.c.bf16 %v3771_v38, %v3771_v38 }
 0x3bc   : > { %v3800_v29 = vld [vmem:[#allocation3 + $0x72c] ss:$2 sm:$0xf]  ;;  %3718 = vst.msk [vmem:[%s5454_s10 + $0x98] sm:$0xf] %vm2859_vm2, %v3714_v46  ;;  %v3772_v54 = vmax.f32 %v3766_v55, %v3770_v20  ;;  %v3801_v34 = vmax.f32 %v3795_v35, %v3798_v19  ;;  %v3796_v9 = vmax.f32 %v3790_v43, %v3794_v49 }
 0x3bd   : > { %3750 = vst.msk [vmem:[%s5454_s10 + $0xa0] sm:$0x3] %vm2861_vm15, %v4906_v18  ;;  %v3806_v5 = vld [vmem:[#allocation3 + $0x72d] ss:$2 sm:$0xf]  ;;  %v3779_v56 = vrot.slane %v4907_v47, 6 }
 0x3be   : > { %v3824_v2 = vld [vmem:[#allocation3 + $0x739] ss:$2 sm:$0xff]  ;;  %v3830_v14 = vld [vmem:[#allocation3 + $0x754] ss:$2 sm:$0xff]  ;;  %v4908_v28 = vpack.c.bf16 %v3772_v54, %v3772_v54  ;;  %v3807_v62 = vmax.f32 %v3801_v34, %v3804_v37  ;;  %v3802_v13 = vmax.f32 %v3796_v9, %v3800_v29  ;;  %v3892_v12 = vld [vmem:[#allocation3 + $0x7a9] ss:$2 sm:$0xff] }
 0x3bf   : > { %v3836_v10 = vld [vmem:[#allocation3 + $0x755] ss:$2 sm:$0xff]  ;;  %v3822_v26 = vld [vmem:[#allocation3 + $0x748] ss:$2 sm:$0xf]  ;;  %v3827_v3 = vmax.f32 %v3820_v53, %v3824_v2  ;;  %v3780_v0 = vrot.slane %v3779_v56, 4 }
 0x3c0   : > { %v3856_v42 = vld [vmem:[#allocation3 + $0x770] ss:$2 sm:$0xff]  ;;  %v3826_v30 = vld [vmem:[#allocation3 + $0x749] ss:$2 sm:$0xf]  ;;  %v3781_v44 = vrot.slane %v4908_v28, 6  ;;  %v4909_v45 = vpack.c.bf16 %v3807_v62, %v3807_v62  ;;  %v3808_v16 = vmax.f32 %v3802_v13, %v3806_v5 }
 0x3c1   : > { %v3832_v51 = vld [vmem:[#allocation3 + $0x764] ss:$2 sm:$0xf]  ;;  %3785 = vst.msk [vmem:[%s5454_s10 + $0xa0] sm:$0xc] %vm2900_vm4, %v3779_v56  ;;  %v3833_v31 = vmax.f32 %v3827_v3, %v3830_v14  ;;  %v3828_v15 = vmax.f32 %v3822_v26, %v3826_v30 }
 0x3c2   : > { %v3838_v25 = vld [vmem:[#allocation3 + $0x765] ss:$2 sm:$0xf]  ;;  %v3860_v23 = vld [vmem:[#allocation3 + $0x771] ss:$2 sm:$0xff]  ;;  %v3782_v58 = vsel %vm6646_vm5, %v3780_v0, %v3781_v44  ;;  %v4910_v33 = vpack.c.bf16 %v3808_v16, %v3808_v16 }
 0x3c3   : > { %v3866_v11 = vld [vmem:[#allocation3 + $0x78c] ss:$2 sm:$0xff]  ;;  %v3872_v50 = vld [vmem:[#allocation3 + $0x78d] ss:$2 sm:$0xff]  ;;  %3817 = vst.msk [vmem:[%s5454_s10 + $0xa8] sm:$0xf] %vm2859_vm2, %v4909_v45  ;;  %v3863_v52 = vmax.f32 %v3856_v42, %v3860_v23  ;;  %v3839_v17 = vmax.f32 %v3833_v31, %v3836_v10  ;;  %v3834_v1 = vmax.f32 %v3828_v15, %v3832_v51 }
 0x3c4   : > { %v3858_v60 = vld [vmem:[#allocation3 + $0x780] ss:$2 sm:$0xf]  ;;  %v3862_v21 = vld [vmem:[#allocation3 + $0x781] ss:$2 sm:$0xf] }
 0x3c5   : > { %3786 = vst.msk [vmem:[%s5454_s10 + $0xa4] sm:$0xf] %vm2859_vm2, %v3782_v58  ;;  %v3864_v41 = vmax.f32 %v3858_v60, %v3862_v21  ;;  %v3868_v63 = vld [vmem:[#allocation3 + $0x79c] ss:$2 sm:$0xf]  ;;  %v3869_v27 = vmax.f32 %v3863_v52, %v3866_v11  ;;  %v4911_v36 = vpack.c.bf16 %v3839_v17, %v3839_v17  ;;  %v3840_v32 = vmax.f32 %v3834_v1, %v3838_v25 }
 0x3c6   : > { %v3874_v22 = vld [vmem:[#allocation3 + $0x79d] ss:$2 sm:$0xf]  ;;  %3818 = vst.msk [vmem:[%s5454_s10 + $0xac] sm:$0x3] %vm2861_vm15, %v4910_v33 }
 0x3c7   : > { %v3888_v24 = vld [vmem:[#allocation3 + $0x7a8] ss:$2 sm:$0xff]  ;;  %v3870_v57 = vmax.f32 %v3864_v41, %v3868_v63  ;;  %v3904_v8 = vld [vmem:[#allocation3 + $0x7c5] ss:$2 sm:$0xff]  ;;  %v3875_v6 = vmax.f32 %v3869_v27, %v3872_v50  ;;  %v3847_v4 = vrot.slane %v4911_v36, 6  ;;  %v4912_v40 = vpack.c.bf16 %v3840_v32, %v3840_v32 }
 0x3c8   : > { %v3898_v39 = vld [vmem:[#allocation3 + $0x7c4] ss:$2 sm:$0xff]  ;;  %v3895_v7 = vmax.f32 %v3888_v24, %v3892_v12  ;;  %v3890_v48 = vld [vmem:[#allocation3 + $0x7b8] ss:$2 sm:$0xf] }
 0x3c9   : > { %v3894_v20 = vld [vmem:[#allocation3 + $0x7b9] ss:$2 sm:$0xf]  ;;  %v3900_v61 = vld [vmem:[#allocation3 + $0x7d4] ss:$2 sm:$0xf]  ;;  %v3876_v19 = vmax.f32 %v3870_v57, %v3874_v22  ;;  %v4913_v35 = vpack.c.bf16 %v3875_v6, %v3875_v6 }
 0x3ca   : > { %v3901_v18 = vmax.f32 %v3895_v7, %v3898_v39  ;;  %v3906_v38 = vld [vmem:[#allocation3 + $0x7d5] ss:$2 sm:$0xf]  ;;  %v3924_v55 = vld [vmem:[#allocation3 + $0x7e0] ss:$2 sm:$0xff]  ;;  %v3896_v37 = vmax.f32 %v3890_v48, %v3894_v20  ;;  %v3848_v49 = vrot.slane %v3847_v4, 4 }
 0x3cb   : > { %v3928_v43 = vld [vmem:[#allocation3 + $0x7e1] ss:$2 sm:$0xff]  ;;  %v3934_v46 = vld [vmem:[#allocation3 + $0x7fc] ss:$2 sm:$0xff]  ;;  %3853 = vst.msk [vmem:[%s5454_s10 + $0xac] sm:$0xc] %vm2900_vm4, %v3847_v4  ;;  %v4914_v47 = vpack.c.bf16 %v3876_v19, %v3876_v19 }
 0x3cc   : > { %v3849_v29 = vrot.slane %v4912_v40, 6  ;;  %v3907_v54 = vmax.f32 %v3901_v18, %v3904_v8  ;;  %v3940_v34 = vld [vmem:[#allocation3 + $0x7fd] ss:$2 sm:$0xff]  ;;  %v3926_v9 = vld [vmem:[#allocation3 + $0x7f0] ss:$2 sm:$0xf]  ;;  %v3902_v5 = vmax.f32 %v3896_v37, %v3900_v61  ;;  %v3931_v53 = vmax.f32 %v3924_v55, %v3928_v43 }
 0x3cd   : > { %3885 = vst.msk [vmem:[%s5454_s10 + $0xb4] sm:$0xf] %vm2859_vm2, %v4913_v35  ;;  %v3930_v2 = vld [vmem:[#allocation3 + $0x7f1] ss:$2 sm:$0xf] }
 0x3ce   : > { %v3936_v14 = vld [vmem:[#allocation3 + $0x80c] ss:$2 sm:$0xf]  ;;  %v3850_v56 = vsel %vm6646_vm5, %v3848_v49, %v3849_v29  ;;  %3886 = vst.msk [vmem:[%s5454_s10 + $0xb8] sm:$0x3] %vm2861_vm15, %v4914_v47  ;;  %v4915_v28 = vpack.c.bf16 %v3907_v54, %v3907_v54  ;;  %v3932_v62 = vmax.f32 %v3926_v9, %v3930_v2  ;;  %v3908_v26 = vmax.f32 %v3902_v5, %v3906_v38 }
 0x3cf   : > { %v3942_v13 = vld [vmem:[#allocation3 + $0x80d] ss:$2 sm:$0xf]  ;;  %v3956_v10 = vld [vmem:[#allocation3 + $0x818] ss:$2 sm:$0xff]  ;;  %v3937_v42 = vmax.f32 %v3931_v53, %v3934_v46 }
 0x3d0   : > { %3854 = vst.msk [vmem:[%s5454_s10 + $0xb0] sm:$0xf] %vm2859_vm2, %v3850_v56  ;;  %v3960_v3 = vld [vmem:[#allocation3 + $0x819] ss:$2 sm:$0xff]  ;;  %v3966_v30 = vld [vmem:[#allocation3 + $0x834] ss:$2 sm:$0xff]  ;;  %v3938_v44 = vmax.f32 %v3932_v62, %v3936_v14  ;;  %v4916_v31 = vpack.c.bf16 %v3908_v26, %v3908_v26 }
 0x3d1   : > { %v3972_v51 = vld [vmem:[#allocation3 + $0x835] ss:$2 sm:$0xff]  ;;  %v3915_v0 = vrot.slane %v4915_v28, 6  ;;  %v3963_v45 = vmax.f32 %v3956_v10, %v3960_v3  ;;  %v3958_v16 = vld [vmem:[#allocation3 + $0x828] ss:$2 sm:$0xf]  ;;  %v3943_v15 = vmax.f32 %v3937_v42, %v3940_v34 }
 0x3d2   : > { %v3992_v25 = vld [vmem:[#allocation3 + $0x850] ss:$2 sm:$0xff]  ;;  %v3962_v23 = vld [vmem:[#allocation3 + $0x829] ss:$2 sm:$0xf]  ;;  %v3944_v58 = vmax.f32 %v3938_v44, %v3942_v13  ;;  %v3917_v17 = vrot.slane %v4916_v31, 6 }
 0x3d3   : > { %v3968_v11 = vld [vmem:[#allocation3 + $0x844] ss:$2 sm:$0xf]  ;;  %v3916_v50 = vrot.slane %v3915_v0, 4  ;;  %3921 = vst.msk [vmem:[%s5454_s10 + $0xb8] sm:$0xc] %vm2900_vm4, %v3915_v0  ;;  %v3969_v33 = vmax.f32 %v3963_v45, %v3966_v30  ;;  %v3964_v52 = vmax.f32 %v3958_v16, %v3962_v23  ;;  %v4917_v1 = vpack.c.bf16 %v3943_v15, %v3943_v15 }
 0x3d4   : > { %v3974_v60 = vld [vmem:[#allocation3 + $0x845] ss:$2 sm:$0xf]  ;;  %v3996_v21 = vld [vmem:[#allocation3 + $0x851] ss:$2 sm:$0xff]  ;;  %v4918_v27 = vpack.c.bf16 %v3944_v58, %v3944_v58 }
 0x3d5   : > { %v3999_v41 = vmax.f32 %v3992_v25, %v3996_v21  ;;  %v4002_v63 = vld [vmem:[#allocation3 + $0x86c] ss:$2 sm:$0xff]  ;;  %v4008_v22 = vld [vmem:[#allocation3 + $0x86d] ss:$2 sm:$0xff]  ;;  %v3975_v24 = vmax.f32 %v3969_v33, %v3972_v51  ;;  %v3970_v12 = vmax.f32 %v3964_v52, %v3968_v11  ;;  %v3918_v32 = vsel %vm6646_vm5, %v3916_v50, %v3917_v17  ;;  %3953 = vst.msk [vmem:[%s5454_s10 + $0xc0] sm:$0xf] %vm2859_vm2, %v4917_v1 }
 0x3d6   : > { %v3994_v39 = vld [vmem:[#allocation3 + $0x860] ss:$2 sm:$0xf]  ;;  %v3998_v36 = vld [vmem:[#allocation3 + $0x861] ss:$2 sm:$0xf] }
 0x3d7   : > { %v4005_v57 = vmax.f32 %v3999_v41, %v4002_v63  ;;  %v4000_v7 = vmax.f32 %v3994_v39, %v3998_v36  ;;  %v4004_v8 = vld [vmem:[#allocation3 + $0x87c] ss:$2 sm:$0xf]  ;;  %v4010_v48 = vld [vmem:[#allocation3 + $0x87d] ss:$2 sm:$0xf]  ;;  %v4919_v6 = vpack.c.bf16 %v3975_v24, %v3975_v24  ;;  %v3976_v20 = vmax.f32 %v3970_v12, %v3974_v60 }
 0x3d8   : > { %3922 = vst.msk [vmem:[%s5454_s10 + $0xbc] sm:$0xf] %vm2859_vm2, %v3918_v32  ;;  %v4024_v61 = vld [vmem:[#allocation3 + $0x888] ss:$2 sm:$0xff]  ;;  %v4028_v4 = vld [vmem:[#allocation3 + $0x889] ss:$2 sm:$0xff] }
 0x3d9   : > { %3954 = vst.msk [vmem:[%s5454_s10 + $0xc4] sm:$0x3] %vm2861_vm15, %v4918_v27  ;;  %v4034_v40 = vld [vmem:[#allocation3 + $0x8a4] ss:$2 sm:$0xff]  ;;  %v4011_v19 = vmax.f32 %v4005_v57, %v4008_v22  ;;  %v4006_v18 = vmax.f32 %v4000_v7, %v4004_v8  ;;  %v4031_v38 = vmax.f32 %v4024_v61, %v4028_v4  ;;  %v4040_v55 = vld [vmem:[#allocation3 + $0x8a5] ss:$2 sm:$0xff]  ;;  %v4920_v43 = vpack.c.bf16 %v3976_v20, %v3976_v20 }
 0x3da   : > { %v4026_v35 = vld [vmem:[#allocation3 + $0x898] ss:$2 sm:$0xf]  ;;  %v3983_v37 = vrot.slane %v4919_v6, 6  ;;  %v4064_v14 = vld [vmem:[#allocation3 + $0x931] ss:$2 sm:$0xff] }
 0x3db   : > { %v4030_v46 = vld [vmem:[#allocation3 + $0x899] ss:$2 sm:$0xf]  ;;  %v4060_v49 = vld [vmem:[#allocation3 + $0x930] ss:$2 sm:$0xff]  ;;  %v4921_v29 = vpack.c.bf16 %v4011_v19, %v4011_v19  ;;  %v4012_v47 = vmax.f32 %v4006_v18, %v4010_v48  ;;  %v4037_v54 = vmax.f32 %v4031_v38, %v4034_v40  ;;  %v3985_v2 = vrot.slane %v4920_v43, 6 }
 0x3dc   : > { %v4032_v34 = vmax.f32 %v4026_v35, %v4030_v46  ;;  %v4036_v9 = vld [vmem:[#allocation3 + $0x8b4] ss:$2 sm:$0xf]  ;;  %v4042_v5 = vld [vmem:[#allocation3 + $0x8b5] ss:$2 sm:$0xf]  ;;  %v4067_v10 = vmax.f32 %v4060_v49, %v4064_v14 }
 0x3dd   : > { %v3984_v53 = vrot.slane %v3983_v37, 4  ;;  %3989 = vst.msk [vmem:[%s5454_s10 + $0xc4] sm:$0xc] %vm2900_vm4, %v3983_v37  ;;  %v4070_v56 = vld [vmem:[#allocation3 + $0x94c] ss:$2 sm:$0xff]  ;;  %v4922_v28 = vpack.c.bf16 %v4012_v47, %v4012_v47  ;;  %v4043_v62 = vmax.f32 %v4037_v54, %v4040_v55 }
 0x3de   : > { %4021 = vst.msk [vmem:[%s5454_s10 + $0xcc] sm:$0xf] %vm2859_vm2, %v4921_v29  ;;  %v4038_v13 = vmax.f32 %v4032_v34, %v4036_v9  ;;  %v4076_v26 = vld [vmem:[#allocation3 + $0x94d] ss:$2 sm:$0xff]  ;;  %v4073_v45 = vmax.f32 %v4067_v10, %v4070_v56  ;;  %v4092_v31 = vld [vmem:[#allocation3 + $0x968] ss:$2 sm:$0xff] }
 0x3df   : > { %v4062_v42 = vld [vmem:[#allocation3 + $0x940] ss:$2 sm:$0xf]  ;;  %v3986_v3 = vsel %vm6646_vm5, %v3984_v53, %v3985_v2  ;;  %v4066_v30 = vld [vmem:[#allocation3 + $0x941] ss:$2 sm:$0xf]  ;;  %v4923_v0 = vpack.c.bf16 %v4043_v62, %v4043_v62 }
 0x3e0   : > { %v4072_v51 = vld [vmem:[#allocation3 + $0x95c] ss:$2 sm:$0xf]  ;;  %3990 = vst.msk [vmem:[%s5454_s10 + $0xc8] sm:$0xf] %vm2859_vm2, %v3986_v3  ;;  %v4044_v44 = vmax.f32 %v4038_v13, %v4042_v5  ;;  %v4068_v16 = vmax.f32 %v4062_v42, %v4066_v30  ;;  %v4079_v58 = vmax.f32 %v4073_v45, %v4076_v26 }
 0x3e1   : > { %4022 = vst.msk [vmem:[%s5454_s10 + $0xd0] sm:$0x3] %vm2861_vm15, %v4922_v28  ;;  %v4078_v25 = vld [vmem:[#allocation3 + $0x95d] ss:$2 sm:$0xf]  ;;  %v4051_v11 = vrot.slane %v4923_v0, 6 }
 0x3e2   : > { %v4096_v15 = vld [vmem:[#allocation3 + $0x969] ss:$2 sm:$0xff]  ;;  %v4102_v23 = vld [vmem:[#allocation3 + $0x984] ss:$2 sm:$0xff]  ;;  %v4924_v50 = vpack.c.bf16 %v4044_v44, %v4044_v44  ;;  %v4074_v33 = vmax.f32 %v4068_v16, %v4072_v51  ;;  %v4925_v27 = vpack.c.bf16 %v4079_v58, %v4079_v58  ;;  %v4164_v37 = vld [vmem:[#allocation3 + $0x9d9] ss:$2 sm:$0xff] }
 0x3e3   : > { %v4108_v52 = vld [vmem:[#allocation3 + $0x985] ss:$2 sm:$0xff]  ;;  %v4094_v60 = vld [vmem:[#allocation3 + $0x978] ss:$2 sm:$0xf]  ;;  %v4099_v17 = vmax.f32 %v4092_v31, %v4096_v15  ;;  %v4052_v63 = vrot.slane %v4051_v11, 4 }
 0x3e4   : > { %v4128_v21 = vld [vmem:[#allocation3 + $0x9a0] ss:$2 sm:$0xff]  ;;  %v4098_v1 = vld [vmem:[#allocation3 + $0x979] ss:$2 sm:$0xf]  ;;  %v4053_v22 = vrot.slane %v4924_v50, 6  ;;  %v4080_v24 = vmax.f32 %v4074_v33, %v4078_v25 }
 0x3e5   : > { %v4104_v41 = vld [vmem:[#allocation3 + $0x994] ss:$2 sm:$0xf]  ;;  %4057 = vst.msk [vmem:[%s5454_s10 + $0xd0] sm:$0xc] %vm2900_vm4, %v4051_v11  ;;  %v4105_v39 = vmax.f32 %v4099_v17, %v4102_v23  ;;  %v4100_v36 = vmax.f32 %v4094_v60, %v4098_v1 }
 0x3e6   : > { %v4110_v12 = vld [vmem:[#allocation3 + $0x995] ss:$2 sm:$0xf]  ;;  %v4132_v32 = vld [vmem:[#allocation3 + $0x9a1] ss:$2 sm:$0xff]  ;;  %v4054_v8 = vsel %vm6646_vm5, %v4052_v63, %v4053_v22  ;;  %v4926_v48 = vpack.c.bf16 %v4080_v24, %v4080_v24 }
 0x3e7   : > { %v4138_v57 = vld [vmem:[#allocation3 + $0x9bc] ss:$2 sm:$0xff]  ;;  %v4144_v7 = vld [vmem:[#allocation3 + $0x9bd] ss:$2 sm:$0xff]  ;;  %4089 = vst.msk [vmem:[%s5454_s10 + $0xd8] sm:$0xf] %vm2859_vm2, %v4925_v27  ;;  %v4135_v6 = vmax.f32 %v4128_v21, %v4132_v32  ;;  %v4111_v4 = vmax.f32 %v4105_v39, %v4108_v52  ;;  %v4106_v40 = vmax.f32 %v4100_v36, %v4104_v41 }
 0x3e8   : > { %v4130_v20 = vld [vmem:[#allocation3 + $0x9b0] ss:$2 sm:$0xf]  ;;  %v4134_v61 = vld [vmem:[#allocation3 + $0x9b1] ss:$2 sm:$0xf] }
 0x3e9   : > { %4058 = vst.msk [vmem:[%s5454_s10 + $0xd4] sm:$0xf] %vm2859_vm2, %v4054_v8  ;;  %v4136_v19 = vmax.f32 %v4130_v20, %v4134_v61  ;;  %v4140_v18 = vld [vmem:[#allocation3 + $0x9cc] ss:$2 sm:$0xf]  ;;  %v4141_v55 = vmax.f32 %v4135_v6, %v4138_v57  ;;  %v4927_v46 = vpack.c.bf16 %v4111_v4, %v4111_v4  ;;  %v4112_v49 = vmax.f32 %v4106_v40, %v4110_v12 }
 0x3ea   : > { %v4146_v38 = vld [vmem:[#allocation3 + $0x9cd] ss:$2 sm:$0xf]  ;;  %4090 = vst.msk [vmem:[%s5454_s10 + $0xdc] sm:$0x3] %vm2861_vm15, %v4926_v48 }
 0x3eb   : > { %v4160_v35 = vld [vmem:[#allocation3 + $0x9d8] ss:$2 sm:$0xff]  ;;  %v4142_v29 = vmax.f32 %v4136_v19, %v4140_v18  ;;  %v4176_v54 = vld [vmem:[#allocation3 + $0x9f5] ss:$2 sm:$0xff]  ;;  %v4147_v9 = vmax.f32 %v4141_v55, %v4144_v7  ;;  %v4119_v2 = vrot.slane %v4927_v46, 6  ;;  %v4928_v14 = vpack.c.bf16 %v4112_v49, %v4112_v49 }
 0x3ec   : > { %v4170_v43 = vld [vmem:[#allocation3 + $0x9f4] ss:$2 sm:$0xff]  ;;  %v4167_v47 = vmax.f32 %v4160_v35, %v4164_v37  ;;  %v4162_v34 = vld [vmem:[#allocation3 + $0x9e8] ss:$2 sm:$0xf] }
 0x3ed   : > { %v4166_v5 = vld [vmem:[#allocation3 + $0x9e9] ss:$2 sm:$0xf]  ;;  %v4172_v53 = vld [vmem:[#allocation3 + $0xa04] ss:$2 sm:$0xf]  ;;  %v4148_v56 = vmax.f32 %v4142_v29, %v4146_v38  ;;  %v4929_v10 = vpack.c.bf16 %v4147_v9, %v4147_v9 }
 0x3ee   : > { %v4173_v28 = vmax.f32 %v4167_v47, %v4170_v43  ;;  %v4178_v62 = vld [vmem:[#allocation3 + $0xa05] ss:$2 sm:$0xf]  ;;  %v4196_v13 = vld [vmem:[#allocation3 + $0xa10] ss:$2 sm:$0xff]  ;;  %v4168_v26 = vmax.f32 %v4162_v34, %v4166_v5  ;;  %v4120_v30 = vrot.slane %v4119_v2, 4 }
 0x3ef   : > { %v4200_v42 = vld [vmem:[#allocation3 + $0xa11] ss:$2 sm:$0xff]  ;;  %v4206_v3 = vld [vmem:[#allocation3 + $0xa2c] ss:$2 sm:$0xff]  ;;  %4125 = vst.msk [vmem:[%s5454_s10 + $0xdc] sm:$0xc] %vm2900_vm4, %v4119_v2  ;;  %v4930_v0 = vpack.c.bf16 %v4148_v56, %v4148_v56 }
 0x3f0   : > { %v4121_v51 = vrot.slane %v4928_v14, 6  ;;  %v4179_v44 = vmax.f32 %v4173_v28, %v4176_v54  ;;  %v4212_v45 = vld [vmem:[#allocation3 + $0xa2d] ss:$2 sm:$0xff]  ;;  %v4198_v16 = vld [vmem:[#allocation3 + $0xa20] ss:$2 sm:$0xf]  ;;  %v4174_v25 = vmax.f32 %v4168_v26, %v4172_v53  ;;  %v4203_v31 = vmax.f32 %v4196_v13, %v4200_v42 }
 0x3f1   : > { %4157 = vst.msk [vmem:[%s5454_s10 + $0xe4] sm:$0xf] %vm2859_vm2, %v4929_v10  ;;  %v4202_v15 = vld [vmem:[#allocation3 + $0xa21] ss:$2 sm:$0xf] }
 0x3f2   : > { %v4208_v23 = vld [vmem:[#allocation3 + $0xa3c] ss:$2 sm:$0xf]  ;;  %v4122_v11 = vsel %vm6646_vm5, %v4120_v30, %v4121_v51  ;;  %4158 = vst.msk [vmem:[%s5454_s10 + $0xe8] sm:$0x3] %vm2861_vm15, %v4930_v0  ;;  %v4931_v50 = vpack.c.bf16 %v4179_v44, %v4179_v44  ;;  %v4204_v58 = vmax.f32 %v4198_v16, %v4202_v15  ;;  %v4180_v60 = vmax.f32 %v4174_v25, %v4178_v62 }
 0x3f3   : > { %v4214_v33 = vld [vmem:[#allocation3 + $0xa3d] ss:$2 sm:$0xf]  ;;  %v4228_v52 = vld [vmem:[#allocation3 + $0xa48] ss:$2 sm:$0xff]  ;;  %v4209_v21 = vmax.f32 %v4203_v31, %v4206_v3 }
 0x3f4   : > { %4126 = vst.msk [vmem:[%s5454_s10 + $0xe0] sm:$0xf] %vm2859_vm2, %v4122_v11  ;;  %v4232_v17 = vld [vmem:[#allocation3 + $0xa49] ss:$2 sm:$0xff]  ;;  %v4238_v1 = vld [vmem:[#allocation3 + $0xa64] ss:$2 sm:$0xff]  ;;  %v4210_v22 = vmax.f32 %v4204_v58, %v4208_v23  ;;  %v4932_v39 = vpack.c.bf16 %v4180_v60, %v4180_v60 }
 0x3f5   : > { %v4244_v41 = vld [vmem:[#allocation3 + $0xa65] ss:$2 sm:$0xff]  ;;  %v4187_v63 = vrot.slane %v4931_v50, 6  ;;  %v4235_v27 = vmax.f32 %v4228_v52, %v4232_v17  ;;  %v4230_v24 = vld [vmem:[#allocation3 + $0xa58] ss:$2 sm:$0xf]  ;;  %v4215_v36 = vmax.f32 %v4209_v21, %v4212_v45 }
 0x3f6   : > { %v4264_v12 = vld [vmem:[#allocation3 + $0xa80] ss:$2 sm:$0xff]  ;;  %v4234_v32 = vld [vmem:[#allocation3 + $0xa59] ss:$2 sm:$0xf]  ;;  %v4216_v8 = vmax.f32 %v4210_v22, %v4214_v33  ;;  %v4189_v4 = vrot.slane %v4932_v39, 6 }
 0x3f7   : > { %v4240_v57 = vld [vmem:[#allocation3 + $0xa74] ss:$2 sm:$0xf]  ;;  %v4188_v7 = vrot.slane %v4187_v63, 4  ;;  %4193 = vst.msk [vmem:[%s5454_s10 + $0xe8] sm:$0xc] %vm2900_vm4, %v4187_v63  ;;  %v4241_v48 = vmax.f32 %v4235_v27, %v4238_v1  ;;  %v4236_v6 = vmax.f32 %v4230_v24, %v4234_v32  ;;  %v4933_v40 = vpack.c.bf16 %v4215_v36, %v4215_v36 }
 0x3f8   : > { %v4246_v20 = vld [vmem:[#allocation3 + $0xa75] ss:$2 sm:$0xf]  ;;  %v4268_v61 = vld [vmem:[#allocation3 + $0xa81] ss:$2 sm:$0xff]  ;;  %v4934_v55 = vpack.c.bf16 %v4216_v8, %v4216_v8 }
 0x3f9   : > { %v4271_v19 = vmax.f32 %v4264_v12, %v4268_v61  ;;  %v4274_v18 = vld [vmem:[#allocation3 + $0xa9c] ss:$2 sm:$0xff]  ;;  %v4280_v38 = vld [vmem:[#allocation3 + $0xa9d] ss:$2 sm:$0xff]  ;;  %v4247_v35 = vmax.f32 %v4241_v48, %v4244_v41  ;;  %v4242_v37 = vmax.f32 %v4236_v6, %v4240_v57  ;;  %v4190_v49 = vsel %vm6646_vm5, %v4188_v7, %v4189_v4  ;;  %4225 = vst.msk [vmem:[%s5454_s10 + $0xf0] sm:$0xf] %vm2859_vm2, %v4933_v40 }
 0x3fa   : > { %v4266_v43 = vld [vmem:[#allocation3 + $0xa90] ss:$2 sm:$0xf]  ;;  %v4270_v46 = vld [vmem:[#allocation3 + $0xa91] ss:$2 sm:$0xf] }
 0x3fb   : > { %v4277_v29 = vmax.f32 %v4271_v19, %v4274_v18  ;;  %v4272_v47 = vmax.f32 %v4266_v43, %v4270_v46  ;;  %v4276_v54 = vld [vmem:[#allocation3 + $0xaac] ss:$2 sm:$0xf]  ;;  %v4282_v34 = vld [vmem:[#allocation3 + $0xaad] ss:$2 sm:$0xf]  ;;  %v4935_v9 = vpack.c.bf16 %v4247_v35, %v4247_v35  ;;  %v4248_v5 = vmax.f32 %v4242_v37, %v4246_v20 }
 0x3fc   : > { %4194 = vst.msk [vmem:[%s5454_s10 + $0xec] sm:$0xf] %vm2859_vm2, %v4190_v49  ;;  %v4296_v53 = vld [vmem:[#allocation3 + $0xab8] ss:$2 sm:$0xff]  ;;  %v4300_v2 = vld [vmem:[#allocation3 + $0xab9] ss:$2 sm:$0xff] }
 0x3fd   : > { %4226 = vst.msk [vmem:[%s5454_s10 + $0xf4] sm:$0x3] %vm2861_vm15, %v4934_v55  ;;  %v4306_v14 = vld [vmem:[#allocation3 + $0xad4] ss:$2 sm:$0xff]  ;;  %v4283_v56 = vmax.f32 %v4277_v29, %v4280_v38  ;;  %v4278_v28 = vmax.f32 %v4272_v47, %v4276_v54  ;;  %v4303_v62 = vmax.f32 %v4296_v53, %v4300_v2  ;;  %v4312_v13 = vld [vmem:[#allocation3 + $0xad5] ss:$2 sm:$0xff]  ;;  %v4936_v42 = vpack.c.bf16 %v4248_v5, %v4248_v5 }
 0x3fe   : > { %v4298_v10 = vld [vmem:[#allocation3 + $0xac8] ss:$2 sm:$0xf]  ;;  %v4255_v26 = vrot.slane %v4935_v9, 6  ;;  %v4332_v30 = vld [vmem:[#allocation3 + $0xaf0] ss:$2 sm:$0xff] }
 0x3ff   : > { %v4302_v3 = vld [vmem:[#allocation3 + $0xac9] ss:$2 sm:$0xf]  ;;  %v4937_v51 = vpack.c.bf16 %v4283_v56, %v4283_v56  ;;  %v4284_v0 = vmax.f32 %v4278_v28, %v4282_v34  ;;  %v4309_v44 = vmax.f32 %v4303_v62, %v4306_v14  ;;  %v4308_v16 = vld [vmem:[#allocation3 + $0xae4] ss:$2 sm:$0xf] }
 0x400   : > { %v4304_v45 = vmax.f32 %v4298_v10, %v4302_v3  ;;  %v4314_v25 = vld [vmem:[#allocation3 + $0xae5] ss:$2 sm:$0xf]  ;;  %v4256_v31 = vrot.slane %v4255_v26, 4  ;;  %4261 = vst.msk [vmem:[%s5454_s10 + $0xf4] sm:$0xc] %vm2900_vm4, %v4255_v26 }
 0x401   : > { %v4257_v15 = vrot.slane %v4936_v42, 6  ;;  %v4336_v23 = vld [vmem:[#allocation3 + $0xaf1] ss:$2 sm:$0xff]  ;;  %v4342_v11 = vld [vmem:[#allocation3 + $0xb0c] ss:$2 sm:$0xff]  ;;  %v4938_v50 = vpack.c.bf16 %v4284_v0, %v4284_v0  ;;  %v4315_v58 = vmax.f32 %v4309_v44, %v4312_v13 }
 0x402   : > { %4293 = vst.msk [vmem:[%s5454_s10 + $0xfc] sm:$0xf] %vm2859_vm2, %v4937_v51  ;;  %v4310_v33 = vmax.f32 %v4304_v45, %v4308_v16  ;;  %v4339_v52 = vmax.f32 %v4332_v30, %v4336_v23  ;;  %v4348_v60 = vld [vmem:[#allocation3 + $0xb0d] ss:$2 sm:$0xff]  ;;  %v4364_v39 = vld [vmem:[#allocation3 + $0xb28] ss:$2 sm:$0xff] }
 0x403   : > { %v4334_v21 = vld [vmem:[#allocation3 + $0xb00] ss:$2 sm:$0xf]  ;;  %v4258_v17 = vsel %vm6646_vm5, %v4256_v31, %v4257_v15  ;;  %v4338_v1 = vld [vmem:[#allocation3 + $0xb01] ss:$2 sm:$0xf]  ;;  %v4939_v63 = vpack.c.bf16 %v4315_v58, %v4315_v58 }
 0x404   : > { %v4344_v41 = vld [vmem:[#allocation3 + $0xb1c] ss:$2 sm:$0xf]  ;;  %4262 = vst.msk [vmem:[%s5454_s10 + $0xf8] sm:$0xf] %vm2859_vm2, %v4258_v17  ;;  %v4316_v22 = vmax.f32 %v4310_v33, %v4314_v25  ;;  %v4345_v27 = vmax.f32 %v4339_v52, %v4342_v11  ;;  %v4340_v24 = vmax.f32 %v4334_v21, %v4338_v1 }
 0x405   : > { %4294 = vst.msk [vmem:[%s5454_s10 + $0x100] sm:$0x3] %vm2861_vm15, %v4938_v50  ;;  %v4350_v12 = vld [vmem:[#allocation3 + $0xb1d] ss:$2 sm:$0xf]  ;;  %v4323_v57 = vrot.slane %v4939_v63, 6 }
 0x406   : > { %v4368_v36 = vld [vmem:[#allocation3 + $0xb29] ss:$2 sm:$0xff]  ;;  %v4374_v32 = vld [vmem:[#allocation3 + $0xb44] ss:$2 sm:$0xff]  ;;  %v4940_v7 = vpack.c.bf16 %v4316_v22, %v4316_v22  ;;  %v4351_v8 = vmax.f32 %v4345_v27, %v4348_v60  ;;  %v4346_v48 = vmax.f32 %v4340_v24, %v4344_v41  ;;  %v4436_v26 = vld [vmem:[#allocation3 + $0xb99] ss:$2 sm:$0xff] }
 0x407   : > { %v4380_v6 = vld [vmem:[#allocation3 + $0xb45] ss:$2 sm:$0xff]  ;;  %v4366_v20 = vld [vmem:[#allocation3 + $0xb38] ss:$2 sm:$0xf]  ;;  %v4371_v4 = vmax.f32 %v4364_v39, %v4368_v36  ;;  %v4324_v18 = vrot.slane %v4323_v57, 4 }
 0x408   : > { %v4400_v61 = vld [vmem:[#allocation3 + $0xb60] ss:$2 sm:$0xff]  ;;  %v4370_v40 = vld [vmem:[#allocation3 + $0xb39] ss:$2 sm:$0xf]  ;;  %v4325_v38 = vrot.slane %v4940_v7, 6  ;;  %v4941_v55 = vpack.c.bf16 %v4351_v8, %v4351_v8  ;;  %v4352_v35 = vmax.f32 %v4346_v48, %v4350_v12 }
 0x409   : > { %v4376_v19 = vld [vmem:[#allocation3 + $0xb54] ss:$2 sm:$0xf]  ;;  %4329 = vst.msk [vmem:[%s5454_s10 + $0x100] sm:$0xc] %vm2900_vm4, %v4323_v57  ;;  %v4377_v43 = vmax.f32 %v4371_v4, %v4374_v32  ;;  %v4372_v46 = vmax.f32 %v4366_v20, %v4370_v40 }
 0x40a   : > { %v4382_v37 = vld [vmem:[#allocation3 + $0xb55] ss:$2 sm:$0xf]  ;;  %v4404_v49 = vld [vmem:[#allocation3 + $0xb61] ss:$2 sm:$0xff]  ;;  %v4326_v54 = vsel %vm6646_vm5, %v4324_v18, %v4325_v38  ;;  %v4942_v34 = vpack.c.bf16 %v4352_v35, %v4352_v35 }
 0x40b   : > { %v4410_v29 = vld [vmem:[#allocation3 + $0xb7c] ss:$2 sm:$0xff]  ;;  %v4416_v47 = vld [vmem:[#allocation3 + $0xb7d] ss:$2 sm:$0xff]  ;;  %4361 = vst.msk [vmem:[%s5454_s10 + $0x108] sm:$0xf] %vm2859_vm2, %v4941_v55  ;;  %v4407_v9 = vmax.f32 %v4400_v61, %v4404_v49  ;;  %v4383_v2 = vmax.f32 %v4377_v43, %v4380_v6  ;;  %v4378_v14 = vmax.f32 %v4372_v46, %v4376_v19 }
 0x40c   : > { %v4402_v5 = vld [vmem:[#allocation3 + $0xb70] ss:$2 sm:$0xf]  ;;  %v4406_v53 = vld [vmem:[#allocation3 + $0xb71] ss:$2 sm:$0xf] }
 0x40d   : > { %4330 = vst.msk [vmem:[%s5454_s10 + $0x104] sm:$0xf] %vm2859_vm2, %v4326_v54  ;;  %v4408_v56 = vmax.f32 %v4402_v5, %v4406_v53  ;;  %v4412_v28 = vld [vmem:[#allocation3 + $0xb8c] ss:$2 sm:$0xf]  ;;  %v4413_v13 = vmax.f32 %v4407_v9, %v4410_v29  ;;  %v4943_v3 = vpack.c.bf16 %v4383_v2, %v4383_v2  ;;  %v4384_v30 = vmax.f32 %v4378_v14, %v4382_v37 }
 0x40e   : > { %v4418_v62 = vld [vmem:[#allocation3 + $0xb8d] ss:$2 sm:$0xf]  ;;  %4362 = vst.msk [vmem:[%s5454_s10 + $0x10c] sm:$0x3] %vm2861_vm15, %v4942_v34 }
 0x40f   : > { %v4432_v10 = vld [vmem:[#allocation3 + $0xb98] ss:$2 sm:$0xff]  ;;  %v4414_v51 = vmax.f32 %v4408_v56, %v4412_v28  ;;  %v4434_v44 = vld [vmem:[#allocation3 + $0xba8] ss:$2 sm:$0xf]  ;;  %v4419_v45 = vmax.f32 %v4413_v13, %v4416_v47  ;;  %v4391_v31 = vrot.slane %v4943_v3, 6  ;;  %v4944_v15 = vpack.c.bf16 %v4384_v30, %v4384_v30 }
 0x410   : > { %v4442_v42 = vld [vmem:[#allocation3 + $0xbb4] ss:$2 sm:$0xff]  ;;  %v4439_v0 = vmax.f32 %v4432_v10, %v4436_v26  ;;  %v4448_v16 = vld [vmem:[#allocation3 + $0xbb5] ss:$2 sm:$0xff] }
 0x411   : > { %v4438_v25 = vld [vmem:[#allocation3 + $0xba9] ss:$2 sm:$0xf]  ;;  %v4420_v23 = vmax.f32 %v4414_v51, %v4418_v62  ;;  %v4444_v50 = vld [vmem:[#allocation3 + $0xbc4] ss:$2 sm:$0xf]  ;;  %v4945_v58 = vpack.c.bf16 %v4419_v45, %v4419_v45 }
 0x412   : > { %v4445_v11 = vmax.f32 %v4439_v0, %v4442_v42  ;;  %v4440_v33 = vmax.f32 %v4434_v44, %v4438_v25  ;;  %v4392_v52 = vrot.slane %v4391_v31, 4  ;;  %4397 = vst.msk [vmem:[%s5454_s10 + $0x10c] sm:$0xc] %vm2900_vm4, %v4391_v31  ;;  %v4393_v60 = vrot.slane %v4944_v15, 6 }
 0x413   : > { %v4946_v21 = vpack.c.bf16 %v4420_v23, %v4420_v23  ;;  %v4450_v1 = vld [vmem:[#allocation3 + $0xbc5] ss:$2 sm:$0xf]  ;;  %4429 = vst.msk [vmem:[%s5454_s10 + $0x114] sm:$0xf] %vm2859_vm2, %v4945_v58 }
 0x414   : > { %v4451_v17 = vmax.f32 %v4445_v11, %v4448_v16  ;;  %v4446_v41 = vmax.f32 %v4440_v33, %v4444_v50  ;;  %v4394_v63 = vsel %vm6646_vm5, %v4392_v52, %v4393_v60 }
 0x415   : > { %4430 = vst.msk [vmem:[%s5454_s10 + $0x118] sm:$0x3] %vm2861_vm15, %v4946_v21 }
 0x416   : > { %v4947_v22 = vpack.c.bf16 %v4451_v17, %v4451_v17  ;;  %4398 = vst.msk [vmem:[%s5454_s10 + $0x110] sm:$0xf] %vm2859_vm2, %v4394_v63  ;;  %v4452_v27 = vmax.f32 %v4446_v41, %v4450_v1 }
 0x418   : > { %v4459_v24 = vrot.slane %v4947_v22, 6  ;;  %v4948_v12 = vpack.c.bf16 %v4452_v27, %v4452_v27 }
 0x41a   : > { %v4460_v39 = vrot.slane %v4459_v24, 4  ;;  %4465 = vst.msk [vmem:[%s5454_s10 + $0x118] sm:$0xc] %vm2900_vm4, %v4459_v24  ;;  %v4461_v36 = vrot.slane %v4948_v12, 6 }
 0x41c   : > { %v4462_v32 = vsel %vm6646_vm5, %v4460_v39, %v4461_v36 }
 0x41d   : > { %4466 = vst.msk [vmem:[%s5454_s10 + $0x11c] sm:$0xf] %vm2859_vm2, %v4462_v32 }
 0x41e PF: > { %s15_s18 = sadd.s32 1, %s5375_s18  }
 0x41f   : > { %p12_p6 = scmp.ge.s32.totalorder %s15_s18, 4  }
 0x421   :  { %14 = sbr.rel (!%p12_p6) target bundleno = 1 (0x1), region = 497 }

</bundles_post_ra>
